<compile_context>
chip_gen: v5e
topology: v5e:2x2
jax: 0.10.0
libtpu: 0.0.40
codegen_flags: <defaults>
</compile_context>

<pallas_src>
import functools

import jax
import jax.numpy as jnp
from jax import lax
from jax.experimental import pallas as pl
from jax.experimental.pallas import tpu as pltpu


# ----------------------------- Pallas kernel ------------------------------- #

def _basic_block_kernel(*refs, stride, Ho, Wo, downsample):
    """Fused BasicBlock forward for one batch image (one grid step)."""
    if downsample:
        (xph_ref, w1_ref, w2_ref, wsc_ref,
         shift1_ref, shift2_ref, out_ref, y1_ref) = refs
    else:
        (xph_ref, w1_ref, w2_ref,
         shift1_ref, shift2_ref, out_ref, y1_ref) = refs
        wsc_ref = None

    s = stride
    cp_in = xph_ref.shape[-1]
    cp = out_ref.shape[-1]
    rows = Ho * Wo

    # ---- conv1 (3x3, stride s) + bn1 (scale folded into w1) + ReLU ----
    # Each tap is a unit-stride slice of one phase plane of the zero-padded
    # input (im2col fused in-VMEM); tap cast to bf16 feeds the MXU, f32 acc.
    acc1 = None
    for t in range(9):
        dy, dx = divmod(t, 3)
        ph = (dy % s) * s + (dx % s)                   # which spatial phase
        oy, ox = dy // s, dx // s                      # offset inside phase
        tap = xph_ref[ph, oy:oy + Ho, ox:ox + Wo, :]
        tap = tap.reshape(rows, cp_in).astype(jnp.bfloat16)
        part = jnp.dot(tap, w1_ref[t], preferred_element_type=jnp.float32)
        acc1 = part if acc1 is None else acc1 + part
    y1 = jnp.maximum(acc1 + shift1_ref[...], 0.0)      # (rows, cp) f32

    # y1 image with a zero halo in VMEM (bf16): the halo is conv2's zero
    # padding.  One aligned full-tile store; cast to bf16 happens once here
    # instead of once per conv2 tap.
    y1_ref[...] = jnp.pad(y1.astype(jnp.bfloat16).reshape(Ho, Wo, cp),
                          ((1, 1), (1, 1), (0, 0)))

    # ---- conv2 (3x3, stride 1) + bn2 (scale folded into w2) ----
    acc2 = None
    for t in range(9):
        dy, dx = divmod(t, 3)
        tap = y1_ref[dy:dy + Ho, dx:dx + Wo, :].reshape(rows, cp)
        part = jnp.dot(tap, w2_ref[t], preferred_element_type=jnp.float32)
        acc2 = part if acc2 is None else acc2 + part

    # ---- shortcut (fused) + residual add + ReLU ----
    if downsample:
        # 1x1 conv, stride s: reads unpadded x[::s, ::s] == phase (s-1, s-1).
        xs = xph_ref[s * s - 1, 0:Ho, 0:Wo, :]
        xs = xs.reshape(rows, cp_in).astype(jnp.bfloat16)
        res = jnp.dot(xs, wsc_ref[...], preferred_element_type=jnp.float32)
        # (shortcut-conv bias was folded into shift2 at prep time)
    else:
        # identity shortcut, kept in f32 (cp == cp_in here).
        res = xph_ref[0, 1:Ho + 1, 1:Wo + 1, :].reshape(rows, cp)

    y2 = jnp.maximum(acc2 + shift2_ref[...] + res, 0.0)
    out_ref[...] = y2.reshape(Ho, Wo, cp).astype(out_ref.dtype)


# ------------------------------ JAX glue ----------------------------------- #

def _round_up(x, m):
    return ((x + m - 1) // m) * m


def _phase_split(x_nhwc, stride, cp_in):
    """Zero-pad spatially (3x3, pad=1), zero-pad channels to cp_in, then split
    into stride x stride spatial phases so every conv tap is unit-stride."""
    N, H, W, C = x_nhwc.shape
    s = stride
    xp = jnp.pad(x_nhwc, ((0, 0), (1, 1), (1, 1), (0, cp_in - C)))
    Hp, Wp = H + 2, W + 2
    Hph, Wph = -(-Hp // s), -(-Wp // s)
    xp = jnp.pad(xp, ((0, 0), (0, s * Hph - Hp), (0, s * Wph - Wp), (0, 0)))
    # (N, Hph, s, Wph, s, C) -> (N, s, s, Hph, Wph, C):
    #   xph[n, py, px, i, j, c] == xp[n, s*i+py, s*j+px, c]
    xph = xp.reshape(N, Hph, s, Wph, s, cp_in).transpose(0, 2, 4, 1, 3, 5)
    return xph.reshape(N * s * s, Hph, Wph, cp_in), Hph, Wph


def _prep_conv_bn(w_mat, bias, gamma, beta, mean, var, cin, cout,
                  cp_in, cp, eps=1e-5):
    """Fold BN scale into weight columns and BN shift + conv bias into one
    per-channel shift; zero-pad channels to lane-dense sizes; weights->bf16."""
    scale = gamma / jnp.sqrt(var + eps)
    shift = beta + scale * (bias - mean)
    w = w_mat.reshape(9, cin, cout) * scale[None, None, :]
    w = jnp.pad(w, ((0, 0), (0, cp_in - cin), (0, cp - cout)))
    shift = jnp.pad(shift, (0, cp - cout))
    return w.astype(jnp.bfloat16), shift.reshape(1, cp).astype(jnp.float32)


def basic_block_forward(x_nchw, params, downsample):
    """BasicBlock forward.  x_nchw: (N, Cin, H, W) float32."""
    x = jnp.transpose(x_nchw, (0, 2, 3, 1)).astype(jnp.float32)   # NCHW->NHWC
    N, H, W, Cin = x.shape
    stride = 2 if downsample else 1
    Cout = params["w1"].shape[-1]
    if not downsample:
        assert Cin == Cout, "identity shortcut needs Cin == Cout"

    cp_in = _round_up(Cin, 128)      # lane-dense K
    cp = _round_up(Cout, 128)        # lane-dense N / output channels
    Ho = (H + 2 - 3) // stride + 1
    Wo = (W + 2 - 3) // stride + 1
    s = stride

    xph, Hph, Wph = _phase_split(x, s, cp_in)      # (N*s*s, Hph, Wph, cp_in)

    w1, shift1 = _prep_conv_bn(params["w1"], params["b1"],
                               params["bn1_gamma"], params["bn1_beta"],
                               params["bn1_mean"], params["bn1_var"],
                               Cin, Cout, cp_in, cp)
    w2, shift2 = _prep_conv_bn(params["w2"], params["b2"],
                               params["bn2_gamma"], params["bn2_beta"],
                               params["bn2_mean"], params["bn2_var"],
                               Cout, Cout, cp, cp)

    in_specs = [
        pl.BlockSpec((s * s, Hph, Wph, cp_in), lambda n: (n, 0, 0, 0)),
        pl.BlockSpec((9, cp_in, cp), lambda n: (0, 0, 0)),
        pl.BlockSpec((9, cp, cp), lambda n: (0, 0, 0)),
    ]
    args = [xph, w1, w2]
    if downsample:
        w_sc = jnp.pad(params["w_sc"], ((0, cp_in - Cin), (0, cp - Cout)))
        args.append(w_sc.astype(jnp.bfloat16))
        in_specs.append(pl.BlockSpec((cp_in, cp), lambda n: (0, 0)))
        # shortcut-conv bias is added before the final ReLU -> fold into shift2
        shift2 = shift2 + jnp.pad(params["b_sc"], (0, cp - Cout)).reshape(1, cp)
    in_specs += [pl.BlockSpec((1, cp), lambda n: (0, 0)),
                 pl.BlockSpec((1, cp), lambda n: (0, 0))]
    args += [shift1, shift2]

    kernel = functools.partial(_basic_block_kernel, stride=s, Ho=Ho, Wo=Wo,
                               downsample=downsample)

    out = pl.pallas_call(
        kernel,
        out_shape=jax.ShapeDtypeStruct((N, Ho, Wo, cp), jnp.float32),
        grid=(N,),
        in_specs=in_specs,
        out_specs=pl.BlockSpec((None, Ho, Wo, cp), lambda n: (n, 0, 0, 0)),
        scratch_shapes=[pltpu.VMEM((Ho + 2, Wo + 2, cp), jnp.bfloat16)],
        compiler_params=pltpu.CompilerParams(
            dimension_semantics=("parallel",),
            vmem_limit_bytes=64 * 1024 * 1024),
    )(*args)

    out = out[:, :, :, :Cout]                      # drop lane-padding channels
    return jnp.transpose(out, (0, 3, 1, 2))        # NHWC -> NCHW


# --------------------------- reference (plain JAX) -------------------------- #

def _conv_nhwc(x, w_hwio, b, stride):
    y = lax.conv_general_dilated(
        x, w_hwio, window_strides=(stride, stride),
        padding=[(w_hwio.shape[0] // 2,) * 2, (w_hwio.shape[1] // 2,) * 2],
        dimension_numbers=("NHWC", "HWIO", "NHWC"))
    return y + b


def basic_block_reference(x_nchw, params, downsample):
    x = jnp.transpose(x_nchw, (0, 2, 3, 1))
    stride = 2 if downsample else 1
    Cin = x.shape[-1]
    Cout = params["w1"].shape[-1]

    if downsample:
        w_sc = params["w_sc"].reshape(1, 1, Cin, Cout)
        shortcut = _conv_nhwc(x, w_sc, params["b_sc"], stride)
    else:
        shortcut = x

    def bn(y, g, b, m, v, eps=1e-5):
        return g * (y - m) / jnp.sqrt(v + eps) + b

    w1 = params["w1"].reshape(3, 3, Cin, Cout)
    y = _conv_nhwc(x, w1, params["b1"], stride)
    y = bn(y, params["bn1_gamma"], params["bn1_beta"],
           params["bn1_mean"], params["bn1_var"])
    y = jnp.maximum(y, 0.0)
    w2 = params["w2"].reshape(3, 3, Cout, Cout)
    y = _conv_nhwc(y, w2, params["b2"], 1)
    y = bn(y, params["bn2_gamma"], params["bn2_beta"],
           params["bn2_mean"], params["bn2_var"])
    y = jnp.maximum(y + shortcut, 0.0)
    return jnp.transpose(y, (0, 3, 1, 2))


# --------------------------------- main ------------------------------------ #

def make_params(key, cin, cout):
    ks = jax.random.split(key, 8)
    p = {
        # 3x3 conv weights stored as (9*Cin, Cout) matrices (HWIO tap order).
        "w1": 0.1 * jax.random.normal(ks[0], (9 * cin, cout), jnp.float32),
        "b1": 0.1 * jax.random.normal(ks[1], (cout,), jnp.float32),
        "w2": 0.1 * jax.random.normal(ks[2], (9 * cout, cout), jnp.float32),
        "b2": 0.1 * jax.random.normal(ks[3], (cout,), jnp.float32),
        "w_sc": 0.1 * jax.random.normal(ks[4], (cin, cout), jnp.float32),
        "b_sc": 0.1 * jax.random.normal(ks[5], (cout,), jnp.float32),
        "bn1_gamma": 1.0 + 0.1 * jax.random.normal(ks[6], (cout,), jnp.float32),
        "bn1_beta": 0.05 * jnp.arange(cout, dtype=jnp.float32),
        "bn1_mean": 0.02 * jnp.arange(cout, dtype=jnp.float32),
        "bn1_var": 1.0 + 0.01 * jnp.arange(cout, dtype=jnp.float32),
        "bn2_gamma": 1.0 + 0.1 * jax.random.normal(ks[7], (cout,), jnp.float32),
        "bn2_beta": -0.03 * jnp.arange(cout, dtype=jnp.float32),
        "bn2_mean": 0.01 * jnp.arange(cout, dtype=jnp.float32),
        "bn2_var": 1.0 + 0.02 * jnp.arange(cout, dtype=jnp.float32),
    }
    return p


if __name__ == "__main__":
    key = jax.random.PRNGKey(0)
    k_x, k_p1, k_p2 = jax.random.split(key, 3)

    N, Cin, H, W = 2, 4, 16, 16
    x = jax.random.normal(k_x, (N, Cin, H, W), jnp.float32)

    # Tolerance note: matmuls use bf16 MXU inputs with f32 accumulation, so we
    # compare against the pure-f32 reference with a slightly relaxed tolerance.
    RTOL = ATOL = 2e-2

    # Case 1: downsample=False (identity shortcut, Cout == Cin).
    params_a = make_params(k_p1, Cin, Cin)
    out_a = basic_block_forward(x, params_a, downsample=False)
    jax.block_until_ready(out_a)
    ref_a = basic_block_reference(x, params_a, downsample=False)
    assert out_a.shape == (N, Cin, H, W)
    assert jnp.allclose(out_a, ref_a, rtol=RTOL, atol=ATOL)

    # Case 2: downsample=True (stride 2, 1x1 conv shortcut), Cout = 8.
    Cout = 8
    params_b = make_params(k_p2, Cin, Cout)
    out_b = basic_block_forward(x, params_b, downsample=True)
    jax.block_until_ready(out_b)
    ref_b = basic_block_reference(x, params_b, downsample=True)
    assert out_b.shape == (N, Cout, H // 2, W // 2)
    assert jnp.allclose(out_b, ref_b, rtol=RTOL, atol=ATOL)

    print("KERNEL_OK")
</pallas_src>

<mosaic_0001>
module attributes {stable_mosaic.version = 11 : i64} {
  func.func @_basic_block_kernel(%arg0: i32, %arg1: memref<1x18x18x128xf32, #tpu.memory_space<vmem>>, %arg2: memref<9x128x128xbf16, #tpu.memory_space<vmem>>, %arg3: memref<9x128x128xbf16, #tpu.memory_space<vmem>>, %arg4: memref<1x128xf32, #tpu.memory_space<vmem>>, %arg5: memref<1x128xf32, #tpu.memory_space<vmem>>, %arg6: memref<1x16x16x128xf32, #tpu.memory_space<vmem>>, %arg7: memref<18x18x128xbf16, #tpu.memory_space<vmem>>) attributes {dimension_semantics = [#tpu.dimension_semantics<parallel>], iteration_bounds = array<i64: 2>, scalar_prefetch = 0 : i64, scratch_operands = 1 : i64, tpu.core_type = #tpu.core_type<tc>, window_params = [{transform_indices = @transform_0, window_bounds = array<i64: 1, 18, 18, 128>}, {pipeline_mode = #tpu.pipeline_mode<synchronous>, transform_indices = @transform_1, window_bounds = array<i64: 9, 128, 128>}, {pipeline_mode = #tpu.pipeline_mode<synchronous>, transform_indices = @transform_2, window_bounds = array<i64: 9, 128, 128>}, {pipeline_mode = #tpu.pipeline_mode<synchronous>, transform_indices = @transform_3, window_bounds = array<i64: 1, 128>}, {pipeline_mode = #tpu.pipeline_mode<synchronous>, transform_indices = @transform_4, window_bounds = array<i64: 1, 128>}, {transform_indices = @transform_5, window_bounds = array<i64: 1, 16, 16, 128>}]} {
    %c0 = arith.constant 0 : index
    %c0_0 = arith.constant 0 : index
    %c0_1 = arith.constant 0 : index
    %c0_2 = arith.constant 0 : index
    %0 = vector.load %arg1[%c0, %c0_0, %c0_1, %c0_2] : memref<1x18x18x128xf32, #tpu.memory_space<vmem>>, vector<1x16x16x128xf32>
    %1 = vector.shape_cast %0 : vector<1x16x16x128xf32> to vector<16x16x128xf32>
    %2 = vector.shape_cast %1 : vector<16x16x128xf32> to vector<256x128xf32>
    %3 = arith.truncf %2 : vector<256x128xf32> to vector<256x128xbf16>
    %c0_3 = arith.constant 0 : index
    %c0_4 = arith.constant 0 : index
    %c0_5 = arith.constant 0 : index
    %4 = vector.load %arg2[%c0_3, %c0_4, %c0_5] : memref<9x128x128xbf16, #tpu.memory_space<vmem>>, vector<1x128x128xbf16>
    %5 = vector.shape_cast %4 : vector<1x128x128xbf16> to vector<128x128xbf16>
    %cst = arith.constant dense<0.000000e+00> : vector<256x128xf32>
    %6 = tpu.matmul %3, %5, %cst {dimension_numbers = #tpu.dot_dimension_numbers<[1], [0], [0], [1], [0, 0, 1, 1], [], []>} : vector<256x128xbf16>, vector<128x128xbf16>, vector<256x128xf32> -> vector<256x128xf32>
    %c0_6 = arith.constant 0 : index
    %c0_7 = arith.constant 0 : index
    %c1 = arith.constant 1 : index
    %c0_8 = arith.constant 0 : index
    %7 = vector.load %arg1[%c0_6, %c0_7, %c1, %c0_8] : memref<1x18x18x128xf32, #tpu.memory_space<vmem>>, vector<1x16x16x128xf32>
    %8 = vector.shape_cast %7 : vector<1x16x16x128xf32> to vector<16x16x128xf32>
    %9 = vector.shape_cast %8 : vector<16x16x128xf32> to vector<256x128xf32>
    %10 = arith.truncf %9 : vector<256x128xf32> to vector<256x128xbf16>
    %c1_9 = arith.constant 1 : index
    %c0_10 = arith.constant 0 : index
    %c0_11 = arith.constant 0 : index
    %11 = vector.load %arg2[%c1_9, %c0_10, %c0_11] : memref<9x128x128xbf16, #tpu.memory_space<vmem>>, vector<1x128x128xbf16>
    %12 = vector.shape_cast %11 : vector<1x128x128xbf16> to vector<128x128xbf16>
    %cst_12 = arith.constant dense<0.000000e+00> : vector<256x128xf32>
    %13 = tpu.matmul %10, %12, %cst_12 {dimension_numbers = #tpu.dot_dimension_numbers<[1], [0], [0], [1], [0, 0, 1, 1], [], []>} : vector<256x128xbf16>, vector<128x128xbf16>, vector<256x128xf32> -> vector<256x128xf32>
    %14 = arith.addf %6, %13 : vector<256x128xf32>
    %c0_13 = arith.constant 0 : index
    %c0_14 = arith.constant 0 : index
    %c2 = arith.constant 2 : index
    %c0_15 = arith.constant 0 : index
    %15 = vector.load %arg1[%c0_13, %c0_14, %c2, %c0_15] : memref<1x18x18x128xf32, #tpu.memory_space<vmem>>, vector<1x16x16x128xf32>
    %16 = vector.shape_cast %15 : vector<1x16x16x128xf32> to vector<16x16x128xf32>
    %17 = vector.shape_cast %16 : vector<16x16x128xf32> to vector<256x128xf32>
    %18 = arith.truncf %17 : vector<256x128xf32> to vector<256x128xbf16>
    %c2_16 = arith.constant 2 : index
    %c0_17 = arith.constant 0 : index
    %c0_18 = arith.constant 0 : index
    %19 = vector.load %arg2[%c2_16, %c0_17, %c0_18] : memref<9x128x128xbf16, #tpu.memory_space<vmem>>, vector<1x128x128xbf16>
    %20 = vector.shape_cast %19 : vector<1x128x128xbf16> to vector<128x128xbf16>
    %cst_19 = arith.constant dense<0.000000e+00> : vector<256x128xf32>
    %21 = tpu.matmul %18, %20, %cst_19 {dimension_numbers = #tpu.dot_dimension_numbers<[1], [0], [0], [1], [0, 0, 1, 1], [], []>} : vector<256x128xbf16>, vector<128x128xbf16>, vector<256x128xf32> -> vector<256x128xf32>
    %22 = arith.addf %14, %21 : vector<256x128xf32>
    %c0_20 = arith.constant 0 : index
    %c1_21 = arith.constant 1 : index
    %c0_22 = arith.constant 0 : index
    %c0_23 = arith.constant 0 : index
    %23 = vector.load %arg1[%c0_20, %c1_21, %c0_22, %c0_23] : memref<1x18x18x128xf32, #tpu.memory_space<vmem>>, vector<1x16x16x128xf32>
    %24 = vector.shape_cast %23 : vector<1x16x16x128xf32> to vector<16x16x128xf32>
    %25 = vector.shape_cast %24 : vector<16x16x128xf32> to vector<256x128xf32>
    %26 = arith.truncf %25 : vector<256x128xf32> to vector<256x128xbf16>
    %c3 = arith.constant 3 : index
    %c0_24 = arith.constant 0 : index
    %c0_25 = arith.constant 0 : index
    %27 = vector.load %arg2[%c3, %c0_24, %c0_25] : memref<9x128x128xbf16, #tpu.memory_space<vmem>>, vector<1x128x128xbf16>
    %28 = vector.shape_cast %27 : vector<1x128x128xbf16> to vector<128x128xbf16>
    %cst_26 = arith.constant dense<0.000000e+00> : vector<256x128xf32>
    %29 = tpu.matmul %26, %28, %cst_26 {dimension_numbers = #tpu.dot_dimension_numbers<[1], [0], [0], [1], [0, 0, 1, 1], [], []>} : vector<256x128xbf16>, vector<128x128xbf16>, vector<256x128xf32> -> vector<256x128xf32>
    %30 = arith.addf %22, %29 : vector<256x128xf32>
    %c0_27 = arith.constant 0 : index
    %c1_28 = arith.constant 1 : index
    %c1_29 = arith.constant 1 : index
    %c0_30 = arith.constant 0 : index
    %31 = vector.load %arg1[%c0_27, %c1_28, %c1_29, %c0_30] : memref<1x18x18x128xf32, #tpu.memory_space<vmem>>, vector<1x16x16x128xf32>
    %32 = vector.shape_cast %31 : vector<1x16x16x128xf32> to vector<16x16x128xf32>
    %33 = vector.shape_cast %32 : vector<16x16x128xf32> to vector<256x128xf32>
    %34 = arith.truncf %33 : vector<256x128xf32> to vector<256x128xbf16>
    %c4 = arith.constant 4 : index
    %c0_31 = arith.constant 0 : index
    %c0_32 = arith.constant 0 : index
    %35 = vector.load %arg2[%c4, %c0_31, %c0_32] : memref<9x128x128xbf16, #tpu.memory_space<vmem>>, vector<1x128x128xbf16>
    %36 = vector.shape_cast %35 : vector<1x128x128xbf16> to vector<128x128xbf16>
    %cst_33 = arith.constant dense<0.000000e+00> : vector<256x128xf32>
    %37 = tpu.matmul %34, %36, %cst_33 {dimension_numbers = #tpu.dot_dimension_numbers<[1], [0], [0], [1], [0, 0, 1, 1], [], []>} : vector<256x128xbf16>, vector<128x128xbf16>, vector<256x128xf32> -> vector<256x128xf32>
    %38 = arith.addf %30, %37 : vector<256x128xf32>
    %c0_34 = arith.constant 0 : index
    %c1_35 = arith.constant 1 : index
    %c2_36 = arith.constant 2 : index
    %c0_37 = arith.constant 0 : index
    %39 = vector.load %arg1[%c0_34, %c1_35, %c2_36, %c0_37] : memref<1x18x18x128xf32, #tpu.memory_space<vmem>>, vector<1x16x16x128xf32>
    %40 = vector.shape_cast %39 : vector<1x16x16x128xf32> to vector<16x16x128xf32>
    %41 = vector.shape_cast %40 : vector<16x16x128xf32> to vector<256x128xf32>
    %42 = arith.truncf %41 : vector<256x128xf32> to vector<256x128xbf16>
    %c5 = arith.constant 5 : index
    %c0_38 = arith.constant 0 : index
    %c0_39 = arith.constant 0 : index
    %43 = vector.load %arg2[%c5, %c0_38, %c0_39] : memref<9x128x128xbf16, #tpu.memory_space<vmem>>, vector<1x128x128xbf16>
    %44 = vector.shape_cast %43 : vector<1x128x128xbf16> to vector<128x128xbf16>
    %cst_40 = arith.constant dense<0.000000e+00> : vector<256x128xf32>
    %45 = tpu.matmul %42, %44, %cst_40 {dimension_numbers = #tpu.dot_dimension_numbers<[1], [0], [0], [1], [0, 0, 1, 1], [], []>} : vector<256x128xbf16>, vector<128x128xbf16>, vector<256x128xf32> -> vector<256x128xf32>
    %46 = arith.addf %38, %45 : vector<256x128xf32>
    %c0_41 = arith.constant 0 : index
    %c2_42 = arith.constant 2 : index
    %c0_43 = arith.constant 0 : index
    %c0_44 = arith.constant 0 : index
    %47 = vector.load %arg1[%c0_41, %c2_42, %c0_43, %c0_44] : memref<1x18x18x128xf32, #tpu.memory_space<vmem>>, vector<1x16x16x128xf32>
    %48 = vector.shape_cast %47 : vector<1x16x16x128xf32> to vector<16x16x128xf32>
    %49 = vector.shape_cast %48 : vector<16x16x128xf32> to vector<256x128xf32>
    %50 = arith.truncf %49 : vector<256x128xf32> to vector<256x128xbf16>
    %c6 = arith.constant 6 : index
    %c0_45 = arith.constant 0 : index
    %c0_46 = arith.constant 0 : index
    %51 = vector.load %arg2[%c6, %c0_45, %c0_46] : memref<9x128x128xbf16, #tpu.memory_space<vmem>>, vector<1x128x128xbf16>
    %52 = vector.shape_cast %51 : vector<1x128x128xbf16> to vector<128x128xbf16>
    %cst_47 = arith.constant dense<0.000000e+00> : vector<256x128xf32>
    %53 = tpu.matmul %50, %52, %cst_47 {dimension_numbers = #tpu.dot_dimension_numbers<[1], [0], [0], [1], [0, 0, 1, 1], [], []>} : vector<256x128xbf16>, vector<128x128xbf16>, vector<256x128xf32> -> vector<256x128xf32>
    %54 = arith.addf %46, %53 : vector<256x128xf32>
    %c0_48 = arith.constant 0 : index
    %c2_49 = arith.constant 2 : index
    %c1_50 = arith.constant 1 : index
    %c0_51 = arith.constant 0 : index
    %55 = vector.load %arg1[%c0_48, %c2_49, %c1_50, %c0_51] : memref<1x18x18x128xf32, #tpu.memory_space<vmem>>, vector<1x16x16x128xf32>
    %56 = vector.shape_cast %55 : vector<1x16x16x128xf32> to vector<16x16x128xf32>
    %57 = vector.shape_cast %56 : vector<16x16x128xf32> to vector<256x128xf32>
    %58 = arith.truncf %57 : vector<256x128xf32> to vector<256x128xbf16>
    %c7 = arith.constant 7 : index
    %c0_52 = arith.constant 0 : index
    %c0_53 = arith.constant 0 : index
    %59 = vector.load %arg2[%c7, %c0_52, %c0_53] : memref<9x128x128xbf16, #tpu.memory_space<vmem>>, vector<1x128x128xbf16>
    %60 = vector.shape_cast %59 : vector<1x128x128xbf16> to vector<128x128xbf16>
    %cst_54 = arith.constant dense<0.000000e+00> : vector<256x128xf32>
    %61 = tpu.matmul %58, %60, %cst_54 {dimension_numbers = #tpu.dot_dimension_numbers<[1], [0], [0], [1], [0, 0, 1, 1], [], []>} : vector<256x128xbf16>, vector<128x128xbf16>, vector<256x128xf32> -> vector<256x128xf32>
    %62 = arith.addf %54, %61 : vector<256x128xf32>
    %c0_55 = arith.constant 0 : index
    %c2_56 = arith.constant 2 : index
    %c2_57 = arith.constant 2 : index
    %c0_58 = arith.constant 0 : index
    %63 = vector.load %arg1[%c0_55, %c2_56, %c2_57, %c0_58] : memref<1x18x18x128xf32, #tpu.memory_space<vmem>>, vector<1x16x16x128xf32>
    %64 = vector.shape_cast %63 : vector<1x16x16x128xf32> to vector<16x16x128xf32>
    %65 = vector.shape_cast %64 : vector<16x16x128xf32> to vector<256x128xf32>
    %66 = arith.truncf %65 : vector<256x128xf32> to vector<256x128xbf16>
    %c8 = arith.constant 8 : index
    %c0_59 = arith.constant 0 : index
    %c0_60 = arith.constant 0 : index
    %67 = vector.load %arg2[%c8, %c0_59, %c0_60] : memref<9x128x128xbf16, #tpu.memory_space<vmem>>, vector<1x128x128xbf16>
    %68 = vector.shape_cast %67 : vector<1x128x128xbf16> to vector<128x128xbf16>
    %cst_61 = arith.constant dense<0.000000e+00> : vector<256x128xf32>
    %69 = tpu.matmul %66, %68, %cst_61 {dimension_numbers = #tpu.dot_dimension_numbers<[1], [0], [0], [1], [0, 0, 1, 1], [], []>} : vector<256x128xbf16>, vector<128x128xbf16>, vector<256x128xf32> -> vector<256x128xf32>
    %70 = arith.addf %62, %69 : vector<256x128xf32>
    %c0_62 = arith.constant 0 : index
    %c0_63 = arith.constant 0 : index
    %71 = vector.load %arg4[%c0_62, %c0_63] : memref<1x128xf32, #tpu.memory_space<vmem>>, vector<1x128xf32>
    %72 = vector.broadcast %71 : vector<1x128xf32> to vector<256x128xf32>
    %73 = arith.addf %70, %72 : vector<256x128xf32>
    %cst_64 = arith.constant 0.000000e+00 : f32
    %74 = vector.broadcast %cst_64 : f32 to vector<256x128xf32>
    %75 = arith.maximumf %73, %74 : vector<256x128xf32>
    %76 = arith.truncf %75 : vector<256x128xf32> to vector<256x128xbf16>
    %77 = vector.shape_cast %76 : vector<256x128xbf16> to vector<16x16x128xbf16>
    %c0_i32 = arith.constant 0 : i32
    %78 = arith.sitofp %c0_i32 : i32 to bf16
    %79 = vector.broadcast %78 : bf16 to vector<1x16x128xbf16>
    %80 = tpu.concatenate %79, %77 in 0 : vector<1x16x128xbf16>, vector<16x16x128xbf16> -> vector<17x16x128xbf16>
    %81 = vector.broadcast %78 : bf16 to vector<1x16x128xbf16>
    %82 = tpu.concatenate %80, %81 in 0 : vector<17x16x128xbf16>, vector<1x16x128xbf16> -> vector<18x16x128xbf16>
    %83 = vector.broadcast %78 : bf16 to vector<18x1x128xbf16>
    %84 = tpu.concatenate %83, %82 in 1 : vector<18x1x128xbf16>, vector<18x16x128xbf16> -> vector<18x17x128xbf16>
    %85 = vector.broadcast %78 : bf16 to vector<18x1x128xbf16>
    %86 = tpu.concatenate %84, %85 in 1 : vector<18x17x128xbf16>, vector<18x1x128xbf16> -> vector<18x18x128xbf16>
    %c0_65 = arith.constant 0 : index
    %c0_66 = arith.constant 0 : index
    %c0_67 = arith.constant 0 : index
    %87 = vector.load %arg7[%c0_65, %c0_66, %c0_67] : memref<18x18x128xbf16, #tpu.memory_space<vmem>>, vector<18x18x128xbf16>
    tpu.vector_store %arg7[%c0_65, %c0_66, %c0_67], %86 {strides = array<i32>} : memref<18x18x128xbf16, #tpu.memory_space<vmem>>, vector<18x18x128xbf16>,
    %c0_68 = arith.constant 0 : index
    %c0_69 = arith.constant 0 : index
    %c0_70 = arith.constant 0 : index
    %88 = vector.load %arg7[%c0_68, %c0_69, %c0_70] : memref<18x18x128xbf16, #tpu.memory_space<vmem>>, vector<16x16x128xbf16>
    %89 = vector.shape_cast %88 : vector<16x16x128xbf16> to vector<256x128xbf16>
    %c0_71 = arith.constant 0 : index
    %c0_72 = arith.constant 0 : index
    %c0_73 = arith.constant 0 : index
    %90 = vector.load %arg3[%c0_71, %c0_72, %c0_73] : memref<9x128x128xbf16, #tpu.memory_space<vmem>>, vector<1x128x128xbf16>
    %91 = vector.shape_cast %90 : vector<1x128x128xbf16> to vector<128x128xbf16>
    %cst_74 = arith.constant dense<0.000000e+00> : vector<256x128xf32>
    %92 = tpu.matmul %89, %91, %cst_74 {dimension_numbers = #tpu.dot_dimension_numbers<[1], [0], [0], [1], [0, 0, 1, 1], [], []>} : vector<256x128xbf16>, vector<128x128xbf16>, vector<256x128xf32> -> vector<256x128xf32>
    %c0_75 = arith.constant 0 : index
    %c1_76 = arith.constant 1 : index
    %c0_77 = arith.constant 0 : index
    %93 = vector.load %arg7[%c0_75, %c1_76, %c0_77] : memref<18x18x128xbf16, #tpu.memory_space<vmem>>, vector<16x16x128xbf16>
    %94 = vector.shape_cast %93 : vector<16x16x128xbf16> to vector<256x128xbf16>
    %c1_78 = arith.constant 1 : index
    %c0_79 = arith.constant 0 : index
    %c0_80 = arith.constant 0 : index
    %95 = vector.load %arg3[%c1_78, %c0_79, %c0_80] : memref<9x128x128xbf16, #tpu.memory_space<vmem>>, vector<1x128x128xbf16>
    %96 = vector.shape_cast %95 : vector<1x128x128xbf16> to vector<128x128xbf16>
    %cst_81 = arith.constant dense<0.000000e+00> : vector<256x128xf32>
    %97 = tpu.matmul %94, %96, %cst_81 {dimension_numbers = #tpu.dot_dimension_numbers<[1], [0], [0], [1], [0, 0, 1, 1], [], []>} : vector<256x128xbf16>, vector<128x128xbf16>, vector<256x128xf32> -> vector<256x128xf32>
    %98 = arith.addf %92, %97 : vector<256x128xf32>
    %c0_82 = arith.constant 0 : index
    %c2_83 = arith.constant 2 : index
    %c0_84 = arith.constant 0 : index
    %99 = vector.load %arg7[%c0_82, %c2_83, %c0_84] : memref<18x18x128xbf16, #tpu.memory_space<vmem>>, vector<16x16x128xbf16>
    %100 = vector.shape_cast %99 : vector<16x16x128xbf16> to vector<256x128xbf16>
    %c2_85 = arith.constant 2 : index
    %c0_86 = arith.constant 0 : index
    %c0_87 = arith.constant 0 : index
    %101 = vector.load %arg3[%c2_85, %c0_86, %c0_87] : memref<9x128x128xbf16, #tpu.memory_space<vmem>>, vector<1x128x128xbf16>
    %102 = vector.shape_cast %101 : vector<1x128x128xbf16> to vector<128x128xbf16>
    %cst_88 = arith.constant dense<0.000000e+00> : vector<256x128xf32>
    %103 = tpu.matmul %100, %102, %cst_88 {dimension_numbers = #tpu.dot_dimension_numbers<[1], [0], [0], [1], [0, 0, 1, 1], [], []>} : vector<256x128xbf16>, vector<128x128xbf16>, vector<256x128xf32> -> vector<256x128xf32>
    %104 = arith.addf %98, %103 : vector<256x128xf32>
    %c1_89 = arith.constant 1 : index
    %c0_90 = arith.constant 0 : index
    %c0_91 = arith.constant 0 : index
    %105 = vector.load %arg7[%c1_89, %c0_90, %c0_91] : memref<18x18x128xbf16, #tpu.memory_space<vmem>>, vector<16x16x128xbf16>
    %106 = vector.shape_cast %105 : vector<16x16x128xbf16> to vector<256x128xbf16>
    %c3_92 = arith.constant 3 : index
    %c0_93 = arith.constant 0 : index
    %c0_94 = arith.constant 0 : index
    %107 = vector.load %arg3[%c3_92, %c0_93, %c0_94] : memref<9x128x128xbf16, #tpu.memory_space<vmem>>, vector<1x128x128xbf16>
    %108 = vector.shape_cast %107 : vector<1x128x128xbf16> to vector<128x128xbf16>
    %cst_95 = arith.constant dense<0.000000e+00> : vector<256x128xf32>
    %109 = tpu.matmul %106, %108, %cst_95 {dimension_numbers = #tpu.dot_dimension_numbers<[1], [0], [0], [1], [0, 0, 1, 1], [], []>} : vector<256x128xbf16>, vector<128x128xbf16>, vector<256x128xf32> -> vector<256x128xf32>
    %110 = arith.addf %104, %109 : vector<256x128xf32>
    %c1_96 = arith.constant 1 : index
    %c1_97 = arith.constant 1 : index
    %c0_98 = arith.constant 0 : index
    %111 = vector.load %arg7[%c1_96, %c1_97, %c0_98] : memref<18x18x128xbf16, #tpu.memory_space<vmem>>, vector<16x16x128xbf16>
    %112 = vector.shape_cast %111 : vector<16x16x128xbf16> to vector<256x128xbf16>
    %c4_99 = arith.constant 4 : index
    %c0_100 = arith.constant 0 : index
    %c0_101 = arith.constant 0 : index
    %113 = vector.load %arg3[%c4_99, %c0_100, %c0_101] : memref<9x128x128xbf16, #tpu.memory_space<vmem>>, vector<1x128x128xbf16>
    %114 = vector.shape_cast %113 : vector<1x128x128xbf16> to vector<128x128xbf16>
    %cst_102 = arith.constant dense<0.000000e+00> : vector<256x128xf32>
    %115 = tpu.matmul %112, %114, %cst_102 {dimension_numbers = #tpu.dot_dimension_numbers<[1], [0], [0], [1], [0, 0, 1, 1], [], []>} : vector<256x128xbf16>, vector<128x128xbf16>, vector<256x128xf32> -> vector<256x128xf32>
    %116 = arith.addf %110, %115 : vector<256x128xf32>
    %c1_103 = arith.constant 1 : index
    %c2_104 = arith.constant 2 : index
    %c0_105 = arith.constant 0 : index
    %117 = vector.load %arg7[%c1_103, %c2_104, %c0_105] : memref<18x18x128xbf16, #tpu.memory_space<vmem>>, vector<16x16x128xbf16>
    %118 = vector.shape_cast %117 : vector<16x16x128xbf16> to vector<256x128xbf16>
    %c5_106 = arith.constant 5 : index
    %c0_107 = arith.constant 0 : index
    %c0_108 = arith.constant 0 : index
    %119 = vector.load %arg3[%c5_106, %c0_107, %c0_108] : memref<9x128x128xbf16, #tpu.memory_space<vmem>>, vector<1x128x128xbf16>
    %120 = vector.shape_cast %119 : vector<1x128x128xbf16> to vector<128x128xbf16>
    %cst_109 = arith.constant dense<0.000000e+00> : vector<256x128xf32>
    %121 = tpu.matmul %118, %120, %cst_109 {dimension_numbers = #tpu.dot_dimension_numbers<[1], [0], [0], [1], [0, 0, 1, 1], [], []>} : vector<256x128xbf16>, vector<128x128xbf16>, vector<256x128xf32> -> vector<256x128xf32>
    %122 = arith.addf %116, %121 : vector<256x128xf32>
    %c2_110 = arith.constant 2 : index
    %c0_111 = arith.constant 0 : index
    %c0_112 = arith.constant 0 : index
    %123 = vector.load %arg7[%c2_110, %c0_111, %c0_112] : memref<18x18x128xbf16, #tpu.memory_space<vmem>>, vector<16x16x128xbf16>
    %124 = vector.shape_cast %123 : vector<16x16x128xbf16> to vector<256x128xbf16>
    %c6_113 = arith.constant 6 : index
    %c0_114 = arith.constant 0 : index
    %c0_115 = arith.constant 0 : index
    %125 = vector.load %arg3[%c6_113, %c0_114, %c0_115] : memref<9x128x128xbf16, #tpu.memory_space<vmem>>, vector<1x128x128xbf16>
    %126 = vector.shape_cast %125 : vector<1x128x128xbf16> to vector<128x128xbf16>
    %cst_116 = arith.constant dense<0.000000e+00> : vector<256x128xf32>
    %127 = tpu.matmul %124, %126, %cst_116 {dimension_numbers = #tpu.dot_dimension_numbers<[1], [0], [0], [1], [0, 0, 1, 1], [], []>} : vector<256x128xbf16>, vector<128x128xbf16>, vector<256x128xf32> -> vector<256x128xf32>
    %128 = arith.addf %122, %127 : vector<256x128xf32>
    %c2_117 = arith.constant 2 : index
    %c1_118 = arith.constant 1 : index
    %c0_119 = arith.constant 0 : index
    %129 = vector.load %arg7[%c2_117, %c1_118, %c0_119] : memref<18x18x128xbf16, #tpu.memory_space<vmem>>, vector<16x16x128xbf16>
    %130 = vector.shape_cast %129 : vector<16x16x128xbf16> to vector<256x128xbf16>
    %c7_120 = arith.constant 7 : index
    %c0_121 = arith.constant 0 : index
    %c0_122 = arith.constant 0 : index
    %131 = vector.load %arg3[%c7_120, %c0_121, %c0_122] : memref<9x128x128xbf16, #tpu.memory_space<vmem>>, vector<1x128x128xbf16>
    %132 = vector.shape_cast %131 : vector<1x128x128xbf16> to vector<128x128xbf16>
    %cst_123 = arith.constant dense<0.000000e+00> : vector<256x128xf32>
    %133 = tpu.matmul %130, %132, %cst_123 {dimension_numbers = #tpu.dot_dimension_numbers<[1], [0], [0], [1], [0, 0, 1, 1], [], []>} : vector<256x128xbf16>, vector<128x128xbf16>, vector<256x128xf32> -> vector<256x128xf32>
    %134 = arith.addf %128, %133 : vector<256x128xf32>
    %c2_124 = arith.constant 2 : index
    %c2_125 = arith.constant 2 : index
    %c0_126 = arith.constant 0 : index
    %135 = vector.load %arg7[%c2_124, %c2_125, %c0_126] : memref<18x18x128xbf16, #tpu.memory_space<vmem>>, vector<16x16x128xbf16>
    %136 = vector.shape_cast %135 : vector<16x16x128xbf16> to vector<256x128xbf16>
    %c8_127 = arith.constant 8 : index
    %c0_128 = arith.constant 0 : index
    %c0_129 = arith.constant 0 : index
    %137 = vector.load %arg3[%c8_127, %c0_128, %c0_129] : memref<9x128x128xbf16, #tpu.memory_space<vmem>>, vector<1x128x128xbf16>
    %138 = vector.shape_cast %137 : vector<1x128x128xbf16> to vector<128x128xbf16>
    %cst_130 = arith.constant dense<0.000000e+00> : vector<256x128xf32>
    %139 = tpu.matmul %136, %138, %cst_130 {dimension_numbers = #tpu.dot_dimension_numbers<[1], [0], [0], [1], [0, 0, 1, 1], [], []>} : vector<256x128xbf16>, vector<128x128xbf16>, vector<256x128xf32> -> vector<256x128xf32>
    %140 = arith.addf %134, %139 : vector<256x128xf32>
    %c0_131 = arith.constant 0 : index
    %c1_132 = arith.constant 1 : index
    %c1_133 = arith.constant 1 : index
    %c0_134 = arith.constant 0 : index
    %141 = vector.load %arg1[%c0_131, %c1_132, %c1_133, %c0_134] : memref<1x18x18x128xf32, #tpu.memory_space<vmem>>, vector<1x16x16x128xf32>
    %142 = vector.shape_cast %141 : vector<1x16x16x128xf32> to vector<16x16x128xf32>
    %143 = vector.shape_cast %142 : vector<16x16x128xf32> to vector<256x128xf32>
    %c0_135 = arith.constant 0 : index
    %c0_136 = arith.constant 0 : index
    %144 = vector.load %arg5[%c0_135, %c0_136] : memref<1x128xf32, #tpu.memory_space<vmem>>, vector<1x128xf32>
    %145 = vector.broadcast %144 : vector<1x128xf32> to vector<256x128xf32>
    %146 = arith.addf %140, %145 : vector<256x128xf32>
    %147 = arith.addf %146, %143 : vector<256x128xf32>
    %cst_137 = arith.constant 0.000000e+00 : f32
    %148 = vector.broadcast %cst_137 : f32 to vector<256x128xf32>
    %149 = arith.maximumf %147, %148 : vector<256x128xf32>
    %150 = vector.shape_cast %149 : vector<256x128xf32> to vector<16x16x128xf32>
    %c0_138 = arith.constant 0 : index
    %c0_139 = arith.constant 0 : index
    %c0_140 = arith.constant 0 : index
    %c0_141 = arith.constant 0 : index
    %151 = vector.load %arg6[%c0_138, %c0_139, %c0_140, %c0_141] : memref<1x16x16x128xf32, #tpu.memory_space<vmem>>, vector<1x16x16x128xf32>
    %152 = vector.shape_cast %151 : vector<1x16x16x128xf32> to vector<16x16x128xf32>
    %153 = vector.shape_cast %150 : vector<16x16x128xf32> to vector<1x16x16x128xf32>
    tpu.vector_store %arg6[%c0_138, %c0_139, %c0_140, %c0_141], %153 {strides = array<i32>} : memref<1x16x16x128xf32, #tpu.memory_space<vmem>>, vector<1x16x16x128xf32>,
    return
  }
  func.func @transform_0(%arg0: i32) -> (i32, i32, i32, i32) {
    %c0_i32 = arith.constant 0 : i32
    %c0_i32_0 = arith.constant 0 : i32
    %c0_i32_1 = arith.constant 0 : i32
    %c0_i32_2 = arith.constant 0 : i32
    return %arg0, %c0_i32, %c0_i32_0, %c0_i32_1 : i32, i32, i32, i32
  }
  func.func @transform_1(%arg0: i32) -> (i32, i32, i32) {
    %c0_i32 = arith.constant 0 : i32
    %c0_i32_0 = arith.constant 0 : i32
    %c0_i32_1 = arith.constant 0 : i32
    %c0_i32_2 = arith.constant 0 : i32
    return %c0_i32, %c0_i32_0, %c0_i32_1 : i32, i32, i32
  }
  func.func @transform_2(%arg0: i32) -> (i32, i32, i32) {
    %c0_i32 = arith.constant 0 : i32
    %c0_i32_0 = arith.constant 0 : i32
    %c0_i32_1 = arith.constant 0 : i32
    %c0_i32_2 = arith.constant 0 : i32
    return %c0_i32, %c0_i32_0, %c0_i32_1 : i32, i32, i32
  }
  func.func @transform_3(%arg0: i32) -> (i32, i32) {
    %c0_i32 = arith.constant 0 : i32
    %c0_i32_0 = arith.constant 0 : i32
    %c0_i32_1 = arith.constant 0 : i32
    return %c0_i32, %c0_i32_0 : i32, i32
  }
  func.func @transform_4(%arg0: i32) -> (i32, i32) {
    %c0_i32 = arith.constant 0 : i32
    %c0_i32_0 = arith.constant 0 : i32
    %c0_i32_1 = arith.constant 0 : i32
    return %c0_i32, %c0_i32_0 : i32, i32
  }
  func.func @transform_5(%arg0: i32) -> (i32, i32, i32, i32) {
    %c0_i32 = arith.constant 0 : i32
    %c0_i32_0 = arith.constant 0 : i32
    %c0_i32_1 = arith.constant 0 : i32
    %c0_i32_2 = arith.constant 0 : i32
    return %arg0, %c0_i32, %c0_i32_0, %c0_i32_1 : i32, i32, i32, i32
  }
}

</mosaic_0001>

<bundles_post_ra>
// kernel: tpu_custom_call.1
= control target key start
LH: loop header
LB: loop body
LE: loop exit
PB: predicated region body
PF: predicated region fallthrough
CT: control target
= control target key end

     0   :  { %10 = vsyncpa [#allocation4], 0  ;;  %s11993_s0 = inlined_call_operand.vmem [shape: f32[2,18,18,128], index: 0, kind: input, shape index: {}]   ;;  %s11994_s1 = inlined_call_operand.vmem [shape: bf16[9,128,128], index: 1, kind: input, shape index: {}]   ;;  %s11995_s2 = inlined_call_operand.vmem [shape: bf16[9,128,128], index: 2, kind: input, shape index: {}]   ;;  %s11996_s3 = inlined_call_operand.vmem [shape: f32[1,128], index: 3, kind: input, shape index: {}]   ;;  %s11997_s4 = inlined_call_operand.vmem [shape: f32[1,128], index: 4, kind: input, shape index: {}]   ;;  %s11998_s5 = inlined_call_operand.hbm [shape: f32[2,16,16,128], index: 5, kind: output, shape index: {}]  }
   0x1   :  { %12 = vsyncpa [#allocation4 + $0x1], 0  ;;  %s8943_s18 = smov 0   ;;  %s8945_s19 = smov 0  }
   0x2   :  { %s8947_s20 = smov 0   ;;  %s8949_s21 = smov 0  }
   0x3 LB: > { %s8964_s22 = sadd.s32 4294967295, %s8908_s21   ;;  %s7281_s23 = sadd.s32 4294967294, %s8908_s21   ;;  %s8908_s21 = sphi %s8949_s21, %s12220_s21   ;;  %s8904_s20 = sphi %s8947_s20, %s12219_s20   ;;  %s8900_s19 = sphi %s8945_s19, %s12218_s19   ;;  %s8896_s18 = sphi %s8943_s18, %s12217_s18  }
   0x4   : > { %s8968_s24 = sadd.s32 1, %s8908_s21   ;;  %s135_s25 = sadd.s32 1, %s8904_s20 }
   0x5   : > { %s132_s26 = ssub.s32 %s8908_s21, %s8968_s24  ;;  %p145_p0 = scmp.ne.s32.totalorder %s8904_s20, %s8900_s19 }
   0x6   : > { %p133_p1 = scmp.eq.s32.totalorder %s132_s26, 0  ;;  %p146_p2 = scmp.eq.s32.totalorder %s8964_s22, 1 }
   0x7   : > { %p151_p3 = scmp.ne.s32.totalorder %s8900_s19, %s8896_s18  ;;  %p152_p4 = scmp.eq.s32.totalorder %s7281_s23, 1 }
   0x8   : > { %s8979_s27 = scalar_select %p133_p1, %s8904_s20, %s135_s25  }
   0x9   : > { %p8981_p5 = por %p146_p2, %p145_p0  ;;  %p8985_p6 = por %p152_p4, %p151_p3 }
   0xa   : > { %p7284_p7 = scmp.ge.s32.totalorder %s8908_s21, 1  ;;  %p190_p8 = scmp.lt.s32.totalorder %s8908_s21, 3 }
   0xc   : > { %p191_p9 = pnand %p7284_p7, %p190_p8 }
   0xe   : > { %194 = sbr.rel (%p191_p9) target bundleno = 1508 (0x5e4), region = 40 }
  0x13   : > { %v8603_v0 = vld [vmem:[%s11994_s1 + $0x78] sm:$0xff]  ;;  %v8602_v2 = vld [vmem:[%s11994_s1 + $0x70] sm:$0xff]  ;;  %v8601_v4 = vld [vmem:[%s11994_s1 + $0x68] sm:$0xff]  ;;  %p218_p10 = scmp.lt.s32.totalorder %s8964_s22, 1  ;;  %vm2600_vm0 = vcmask 1040384   ;;  %vm3828_vm6 = vcmask 1042432  }
  0x14   : > { %v8595_v1 = vld [vmem:[%s11994_s1 + $0x38] sm:$0xff]  ;;  %401 = vmatpush.bf16.msra.mxu0 %v8603_v0  ;;  %8781 = vmatpush.bf16.msra.mxu2 %v8603_v0  ;;  %v8594_v3 = vld [vmem:[%s11994_s1 + $0x30] sm:$0xff]  ;;  %v8593_v5 = vld [vmem:[%s11994_s1 + $0x28] sm:$0xff]  ;;  %vm2601_vm1 = vsmask.f32 256  ;;  %vm3829_vm7 = vcmask 1046532  }
  0x15   : > { %8789 = vmatpush.bf16.msra.mxu3 %v8595_v1  ;;  %538 = vmatpush.bf16.msra.mxu1 %v8595_v1  ;;  %v8600_v6 = vld [vmem:[%s11994_s1 + $0x60] sm:$0xff]  ;;  %v8599_v8 = vld [vmem:[%s11994_s1 + $0x58] sm:$0xff]  ;;  %s219_s7 = scalar_select %p218_p10, %s8964_s22, 1  ;;  %v8598_v10 = vld [vmem:[%s11994_s1 + $0x50] sm:$0xff]  ;;  %vm2942_vm3 = vsmask.f32 3328 }
  0x16   : > { %v8592_v7 = vld [vmem:[%s11994_s1 + $0x20] sm:$0xff]  ;;  %v8591_v9 = vld [vmem:[%s11994_s1 + $0x18] sm:$0xff]  ;;  %v8590_v11 = vld [vmem:[%s11994_s1 + $0x10] sm:$0xff]  ;;  %vm2943_vm4 = vsmask.f32 7440  ;;  %s215_s26 = sand.u32 1, %s8900_s19  }
  0x17   : > { %s8797_s12 = smul.u32 432, %s219_s7  ;;  %v8597_v12 = vld [vmem:[%s11994_s1 + $0x48] sm:$0xff]  ;;  %v8596_v14 = vld [vmem:[%s11994_s1 + $0x40] sm:$0xff]  ;;  %v8611_v24 = vld [vmem:[%s11994_s1 + $0xb8] sm:$0xff]  ;;  %s7285_s30 = sshll.u32 %s215_s26, 8 }
  0x18   : > { %402 = vmatpush.bf16.msra.mxu0 %v8602_v2  ;;  %8782 = vmatpush.bf16.msra.mxu2 %v8602_v2  ;;  %v8589_v13 = vld [vmem:[%s11994_s1 + $0x8] sm:$0xff]  ;;  %v8588_v15 = vld [vmem:[%s11994_s1] sm:$0xff]  ;;  %v8619_v25 = vld [vmem:[%s11994_s1 + $0xf8] sm:$0xff]  ;;  %s11754_s6 = scalar_lea.vmem [#allocation3], %s7285_s30  ;;  %s8780_s7 = sshll.u32 %s8964_s22, 8 }
  0x19   : > { %8790 = vmatpush.bf16.msra.mxu3 %v8594_v3  ;;  %539 = vmatpush.bf16.msra.mxu1 %v8594_v3  ;;  %s9035_s25 = scalar_lea.vmem %s11993_s0, %s8797_s12  ;;  %v8627_v30 = vld [vmem:[%s11994_s1 + $0x138] sm:$0xff]  ;;  %v8610_v31 = vld [vmem:[%s11994_s1 + $0xb0] sm:$0xff]  ;;  %v8609_v34 = vld [vmem:[%s11994_s1 + $0xa8] sm:$0xff]  ;;  %s7215_s10 = scalar_lea.hbm %s11998_s5, %s8780_s7 }
  0x1a   : > { %v288_v16 = vld [vmem:[%s9035_s25 + $0x1] sm:$0xff]  ;;  %v289_v17 = vld [vmem:[%s9035_s25 + $0x9] sm:$0xff]  ;;  %v290_v37 = vld [vmem:[%s9035_s25 + $0x19] sm:$0xff]  ;;  %s7216_s11 = sshll.u32 %s11754_s6, 4  ;;  %s7218_s12 = sshll.u32 %s7215_s10, 4  ;;  %s7217_s11 = int_to_ptr.vmem [resolvable:$true] %s7216_s11  ;;  %s7219_s12 = int_to_ptr.hbm [resolvable:$true] %s7218_s12 }
  0x1b   : > { %v304_v18 = vld [vmem:[%s9035_s25 + $0xc1] sm:$0xff]  ;;  %v305_v19 = vld [vmem:[%s9035_s25 + $0xc9] sm:$0xff]  ;;  %v320_v26 = vpack.c.bf16 %v289_v17, %v288_v16  ;;  %v306_v39 = vld [vmem:[%s9035_s25 + $0xd9] sm:$0xff]  ;;  %s7204_s22 = scalar_lea.sflag [#allocation4], %s215_s26  ;;  %s8860_s13 = sshra.s32 %s7219_s12, 4  ;;  %s8861_s13 = int_to_ptr.hbm [resolvable:$true] %s8860_s13 }
  0x1c   : > { %403 = vmatpush.bf16.msra.mxu0 %v8601_v4  ;;  %8783 = vmatpush.bf16.msra.mxu2 %v8601_v4  ;;  %v240_v20 = vld [vmem:[%s9035_s25 + $0xc0] sm:$0xff]  ;;  %v241_v21 = vld [vmem:[%s9035_s25 + $0xc8] sm:$0xff]  ;;  %v9060_v27 = vpack.c.bf16 %v305_v19, %v304_v18  ;;  %v8618_v32 = vld [vmem:[%s11994_s1 + $0xf0] sm:$0xff]  ;;  %s8862_s14 = scalar_lea.hbm %s8861_s13, 256  ;;  %s8866_s16 = scalar_lea.hbm %s11998_s5, 512 }
  0x1d   : > { %8791 = vmatpush.bf16.msra.mxu3 %v8593_v5  ;;  %540 = vmatpush.bf16.msra.mxu1 %v8593_v5  ;;  %v224_v22 = vld [vmem:[%s9035_s25] sm:$0xff]  ;;  %v225_v23 = vld [vmem:[%s9035_s25 + $0x8] sm:$0xff]  ;;  %v9062_v28 = vpack.c.bf16 %v241_v21, %v240_v20  ;;  %v8626_v33 = vld [vmem:[%s11994_s1 + $0x130] sm:$0xff]  ;;  %p8863_p11 = scmp.ne.s32.totalorder %s8861_s13, %s8862_s14  ;;  %p8867_p0 = scmp.lt.s32.totalorder %s8861_s13, %s11998_s5 }
  0x1e   : > { %v256_v29 = vpack.c.bf16 %v225_v23, %v224_v22  ;;  %v8617_v35 = vld [vmem:[%s11994_s1 + $0xe8] sm:$0xff]  ;;  %v242_v41 = vld [vmem:[%s9035_s25 + $0xd8] sm:$0xff]  ;;  %v243_v42 = vld [vmem:[%s9035_s25 + $0xe0] sm:$0xff]  ;;  %p8868_p1 = scmp.lt.s32.totalorder %s8866_s16, %s8862_s14 }
  0x1f   : > { %v8625_v36 = vld [vmem:[%s11994_s1 + $0x128] sm:$0xff]  ;;  %v226_v43 = vld [vmem:[%s9035_s25 + $0x18] sm:$0xff]  ;;  %v227_v44 = vld [vmem:[%s9035_s25 + $0x20] sm:$0xff]  ;;  %v9099_v47 = vpack.c.bf16 %v243_v42, %v242_v41  ;;  %p8864_p12 = pnand %p8863_p11, %p8981_p5 }
  0x20   : > { %404 = vmatpush.bf16.msra.mxu0 %v8600_v6  ;;  %8784 = vmatpush.bf16.msra.mxu2 %v8600_v6  ;;  %v291_v38 = vld [vmem:[%s9035_s25 + $0x21] sm:$0xff]  ;;  %v9101_v48 = vpack.c.bf16 %v227_v44, %v226_v43  ;;  %v292_v52 = vld [vmem:[%s9035_s25 + $0x31] sm:$0xff]  ;;  %v293_v53 = vld [vmem:[%s9035_s25 + $0x39] sm:$0xff]  ;;  %p8869_p2 = por %p8868_p1, %p8867_p0 }
  0x21   : > { %8792 = vmatpush.bf16.msra.mxu3 %v8592_v7  ;;  %541 = vmatpush.bf16.msra.mxu1 %v8592_v7  ;;  %v307_v40 = vld [vmem:[%s9035_s25 + $0xe1] sm:$0xff]  ;;  %v9095_v45 = vpack.c.bf16 %v291_v38, %v290_v37  ;;  %v308_v54 = vld [vmem:[%s9035_s25 + $0xf1] sm:$0xff]  ;;  %v309_v55 = vld [vmem:[%s9035_s25 + $0xf9] sm:$0xff]  ;;  %v9124_v60 = vpack.c.bf16 %v293_v53, %v292_v52  ;;  %p8865_p13 = pneg %p8864_p12 }
  0x22   : > { %v9097_v46 = vpack.c.bf16 %v307_v40, %v306_v39  ;;  %v8608_v49 = vld [vmem:[%s11994_s1 + $0xa0] sm:$0xff]  ;;  %v244_v56 = vld [vmem:[%s9035_s25 + $0xf0] sm:$0xff]  ;;  %v245_v57 = vld [vmem:[%s9035_s25 + $0xf8] sm:$0xff]  ;;  %v330_v61 = vpack.c.bf16 %v309_v55, %v308_v54 }
  0x23   : > { %v8616_v50 = vld [vmem:[%s11994_s1 + $0xe0] sm:$0xff]  ;;  %v228_v58 = vld [vmem:[%s9035_s25 + $0x30] sm:$0xff]  ;;  %v229_v59 = vld [vmem:[%s9035_s25 + $0x38] sm:$0xff]  ;;  %v9126_v62 = vpack.c.bf16 %v245_v57, %v244_v56  ;;  %p8870_p3 = pnand %p8869_p2, %p8865_p13 }
  0x24   : > { %405 = vmatpush.bf16.msra.mxu0 %v8599_v8  ;;  %8785 = vmatpush.bf16.msra.mxu2 %v8599_v8  ;;  %v8624_v51 = vld [vmem:[%s11994_s1 + $0x120] sm:$0xff]  ;;  %v9128_v63 = vpack.c.bf16 %v229_v59, %v228_v58  ;;  %v8607_v0 = vld [vmem:[%s11994_s1 + $0x98] sm:$0xff]  ;;  %v294_v3 = vld [vmem:[%s9035_s25 + $0x49] sm:$0xff] }
  0x25   : > { %8793 = vmatpush.bf16.msra.mxu3 %v8591_v9  ;;  %542 = vmatpush.bf16.msra.mxu1 %v8591_v9  ;;  %v8615_v1 = vld [vmem:[%s11994_s1 + $0xd8] sm:$0xff]  ;;  %v310_v5 = vld [vmem:[%s9035_s25 + $0x109] sm:$0xff]  ;;  %v296_v18 = vld [vmem:[%s9035_s25 + $0x61] sm:$0xff] }
  0x26   : > { %v8623_v2 = vld [vmem:[%s11994_s1 + $0x118] sm:$0xff]  ;;  %v246_v7 = vld [vmem:[%s9035_s25 + $0x108] sm:$0xff]  ;;  %v247_v8 = vld [vmem:[%s9035_s25 + $0x110] sm:$0xff] }
  0x27   : > { %v295_v4 = vld [vmem:[%s9035_s25 + $0x51] sm:$0xff]  ;;  %v230_v9 = vld [vmem:[%s9035_s25 + $0x48] sm:$0xff]  ;;  %v248_v22 = vld [vmem:[%s9035_s25 + $0x120] sm:$0xff] }
  0x28   : > { %406 = vmatpush.bf16.msra.mxu0 %v8598_v10  ;;  %8786 = vmatpush.bf16.msra.mxu2 %v8598_v10  ;;  %v311_v6 = vld [vmem:[%s9035_s25 + $0x111] sm:$0xff]  ;;  %v297_v19 = vld [vmem:[%s9035_s25 + $0x69] sm:$0xff]  ;;  %v312_v20 = vld [vmem:[%s9035_s25 + $0x121] sm:$0xff] }
  0x29   : > { %8794 = vmatpush.bf16.msra.mxu3 %v8590_v11  ;;  %543 = vmatpush.bf16.msra.mxu1 %v8590_v11  ;;  %v231_v10 = vld [vmem:[%s9035_s25 + $0x50] sm:$0xff]  ;;  %v9150_v11 = vpack.c.bf16 %v295_v4, %v294_v3  ;;  %v249_v23 = vld [vmem:[%s9035_s25 + $0x128] sm:$0xff]  ;;  %v314_v38 = vld [vmem:[%s9035_s25 + $0x139] sm:$0xff] }
  0x2a   : > { %v8614_v16 = vld [vmem:[%s11994_s1 + $0xd0] sm:$0xff]  ;;  %v299_v37 = vld [vmem:[%s9035_s25 + $0x81] sm:$0xff]  ;;  %v250_v40 = vld [vmem:[%s9035_s25 + $0x138] sm:$0xff] }
  0x2b   : > { %v8622_v17 = vld [vmem:[%s11994_s1 + $0x110] sm:$0xff]  ;;  %v315_v39 = vld [vmem:[%s9035_s25 + $0x141] sm:$0xff]  ;;  %v234_v42 = vld [vmem:[%s9035_s25 + $0x78] sm:$0xff] }
  0x2c   : > { %407 = vmatpush.bf16.msra.mxu0 %v8597_v12  ;;  %8787 = vmatpush.bf16.msra.mxu2 %v8597_v12  ;;  %v331_v12 = vpack.c.bf16 %v311_v6, %v310_v5  ;;  %v313_v21 = vld [vmem:[%s9035_s25 + $0x129] sm:$0xff]  ;;  %v251_v41 = vld [vmem:[%s9035_s25 + $0x140] sm:$0xff]  ;;  %v300_v58 = vld [vmem:[%s9035_s25 + $0x91] sm:$0xff] }
  0x2d   : > { %8795 = vmatpush.bf16.msra.mxu3 %v8589_v13  ;;  %544 = vmatpush.bf16.msra.mxu1 %v8589_v13  ;;  %v267_v13 = vpack.c.bf16 %v247_v8, %v246_v7  ;;  %v235_v43 = vld [vmem:[%s9035_s25 + $0x80] sm:$0xff]  ;;  %v8634_v52 = vld [vmem:[%s11994_s1 + $0x170] sm:$0xff]  ;;  %v8633_v55 = vld [vmem:[%s11994_s1 + $0x168] sm:$0xff] }
  0x2e   : > { %v8604_v53 = vld [vmem:[%s11994_s1 + $0x80] sm:$0xff]  ;;  %v236_v3 = vld [vmem:[%s9035_s25 + $0x90] sm:$0xff]  ;;  %v237_v4 = vld [vmem:[%s9035_s25 + $0x98] sm:$0xff] }
  0x2f   : > { %v8612_v54 = vld [vmem:[%s11994_s1 + $0xc0] sm:$0xff]  ;;  %v8631_v7 = vld [vmem:[%s11994_s1 + $0x158] sm:$0xff]  ;;  %vm9673_vm2 = vmand %vm2600_vm0, %vm2601_vm1 }
  0x30   : > { %408 = vmatpush.bf16.msra.mxu0 %v8596_v14  ;;  %8788 = vmatpush.bf16.msra.mxu2 %v8596_v14  ;;  %v9152_v14 = vpack.c.bf16 %v231_v10, %v230_v9  ;;  %v8620_v56 = vld [vmem:[%s11994_s1 + $0x100] sm:$0xff]  ;;  %v9236_v9 = vpack.c.bf16 %v237_v4, %v236_v3  ;;  %v8630_v10 = vld [vmem:[%s11994_s1 + $0x150] sm:$0xff]  ;;  %vm9706_vm5 = vmor %vm2942_vm3, %vm2943_vm4 }
  0x31   : > { %8796 = vmatpush.bf16.msra.mxu3 %v8588_v15  ;;  %545 = vmatpush.bf16.msra.mxu1 %v8588_v15  ;;  %v8606_v15 = vld [vmem:[%s11994_s1 + $0x90] sm:$0xff]  ;;  %v8632_v57 = vld [vmem:[%s11994_s1 + $0x160] sm:$0xff]  ;;  %vm9775_vm8 = vmor %vm3828_vm6, %vm3829_vm7 }
  0x32   : > { %v301_v59 = vld [vmem:[%s9035_s25 + $0x99] sm:$0xff] }
  0x33   : > { %409 = vmatmul.bf16.vlgmr.msra.gmra.mxu0 %v320_v26  ;;  %449 = vmatmul.bf16.vlgmr.msra.gmra.mxu2 %v9060_v27  ;;  %v9173_v26 = vpack.c.bf16 %v297_v19, %v296_v18  ;;  %v9231_v5 = vpack.c.bf16 %v301_v59, %v300_v58  ;;  %v302_v18 = vld [vmem:[%s9035_s25 + $0xa9] sm:$0xff]  ;;  %v303_v19 = vld [vmem:[%s9035_s25 + $0xb1] sm:$0xff] }
  0x34   : > { %740 = vmatpush.bf16.msrb.mxu2 %v8611_v24  ;;  %586 = vmatmul.bf16.vlgmr.msra.gmra.mxu3 %v9062_v28  ;;  %v232_v24 = vld [vmem:[%s9035_s25 + $0x60] sm:$0xff] }
  0x35   : > { %975 = vmatpush.bf16.msrb.mxu3 %v8619_v25  ;;  %546 = vmatmul.bf16.vlgmr.msra.gmra.mxu1 %v256_v29  ;;  %v233_v25 = vld [vmem:[%s9035_s25 + $0x68] sm:$0xff]  ;;  %v332_v29 = vpack.c.bf16 %v313_v21, %v312_v20  ;;  %v319_v21 = vld [vmem:[%s9035_s25 + $0x171] sm:$0xff] }
  0x36   : > { %1209 = vmatpush.bf16.msrb.mxu0 %v8627_v30  ;;  %v268_v30 = vpack.c.bf16 %v249_v23, %v248_v22  ;;  %v318_v20 = vld [vmem:[%s9035_s25 + $0x169] sm:$0xff] }
  0x37   : > { %v254_v22 = vld [vmem:[%s9035_s25 + $0x168] sm:$0xff]  ;;  %v255_v23 = vld [vmem:[%s9035_s25 + $0x170] sm:$0xff] }
  0x38   : > { %741 = vmatpush.bf16.msrb.mxu2 %v8610_v31  ;;  %v9175_v31 = vpack.c.bf16 %v233_v25, %v232_v24  ;;  %v238_v24 = vld [vmem:[%s9035_s25 + $0xa8] sm:$0xff]  ;;  %v239_v25 = vld [vmem:[%s9035_s25 + $0xb0] sm:$0xff] }
  0x39   : > { %976 = vmatpush.bf16.msrb.mxu3 %v8618_v32  ;;  %v8605_v32 = vld [vmem:[%s11994_s1 + $0x88] sm:$0xff] }
  0x3a   : > { %1210 = vmatpush.bf16.msrb.mxu0 %v8626_v33  ;;  %v8613_v33 = vld [vmem:[%s11994_s1 + $0xc8] sm:$0xff] }
  0x3c   : > { %742 = vmatpush.bf16.msrb.mxu2 %v8609_v34  ;;  %v8621_v34 = vld [vmem:[%s11994_s1 + $0x108] sm:$0xff] }
  0x3d   : > { %977 = vmatpush.bf16.msrb.mxu3 %v8617_v35  ;;  %v8635_v35 = vld [vmem:[%s11994_s1 + $0x178] sm:$0xff] }
  0x3e   : > { %1211 = vmatpush.bf16.msrb.mxu0 %v8625_v36  ;;  %1443 = vmatpush.bf16.msrb.mxu1 %v8635_v35  ;;  %v298_v36 = vld [vmem:[%s9035_s25 + $0x79] sm:$0xff]  ;;  %v628_v35 = vld [vmem:[%s9035_s25 + $0xa] sm:$0xff] }
  0x3f   : > { %v9199_v44 = vpack.c.bf16 %v299_v37, %v298_v36  ;;  %v7575_v36 = vld [vmem:[%s9035_s25 + $0x1a] sm:$0xff]  ;;  %v7576_v37 = vld [vmem:[%s9035_s25 + $0x22] sm:$0xff] }
  0x40   : > { %743 = vmatpush.bf16.msrb.mxu2 %v8608_v49  ;;  %v333_v49 = vpack.c.bf16 %v315_v39, %v314_v38 }
  0x41   : > { %978 = vmatpush.bf16.msrb.mxu3 %v8616_v50  ;;  %v269_v50 = vpack.c.bf16 %v251_v41, %v250_v40  ;;  %v1362_v40 = vpack.c.bf16 %v7576_v37, %v7575_v36 }
  0x42   : > { %1212 = vmatpush.bf16.msrb.mxu0 %v8624_v51  ;;  %v9201_v51 = vpack.c.bf16 %v235_v43, %v234_v42  ;;  %1444 = vmatpush.bf16.msrb.mxu1 %v8634_v52  ;;  %v8642_v43 = vld [vmem:[%s11994_s1 + $0x1b0] sm:$0xff] }
  0x43   : > { %414 = vmatmul.bf16.gmra.mxu0 %v9095_v45  ;;  %454 = vmatmul.bf16.gmra.mxu2 %v9097_v46 }
  0x44   : > { %591 = vmatmul.bf16.gmra.mxu3 %v9099_v47  ;;  %744 = vmatpush.bf16.msrb.mxu2 %v8607_v0  ;;  %v317_v0 = vld [vmem:[%s9035_s25 + $0x159] sm:$0xff] }
  0x45   : > { %551 = vmatmul.bf16.gmra.mxu1 %v9101_v48  ;;  %979 = vmatpush.bf16.msrb.mxu3 %v8615_v1  ;;  %v252_v1 = vld [vmem:[%s9035_s25 + $0x150] sm:$0xff] }
  0x46   : > { %1213 = vmatpush.bf16.msrb.mxu0 %v8623_v2  ;;  %1445 = vmatpush.bf16.msrb.mxu1 %v8633_v55  ;;  %v253_v2 = vld [vmem:[%s9035_s25 + $0x158] sm:$0xff] }
  0x47   : > { %v270_v8 = vpack.c.bf16 %v253_v2, %v252_v1 }
  0x48   : > { %745 = vmatpush.bf16.msrb.mxu2 %v8606_v15  ;;  %v8629_v15 = vld [vmem:[%s11994_s1 + $0x148] sm:$0xff] }
  0x49   : > { %980 = vmatpush.bf16.msrb.mxu3 %v8614_v16  ;;  %v8628_v16 = vld [vmem:[%s11994_s1 + $0x140] sm:$0xff] }
  0x4a   : > { %1214 = vmatpush.bf16.msrb.mxu0 %v8622_v17  ;;  %1446 = vmatpush.bf16.msrb.mxu1 %v8632_v57  ;;  %v8659_v17 = vld [vmem:[%s11994_s1 + $0x238] sm:$0xff] }
  0x4b   : > { %v7578_v57 = vld [vmem:[%s9035_s25 + $0x3a] sm:$0xff] }
  0x4c   : > { %746 = vmatpush.bf16.msrb.mxu2 %v8605_v32  ;;  %v271_v32 = vpack.c.bf16 %v255_v23, %v254_v22  ;;  %v8649_v22 = vld [vmem:[%s11994_s1 + $0x1e8] sm:$0xff] }
  0x4d   : > { %981 = vmatpush.bf16.msrb.mxu3 %v8613_v33  ;;  %v9268_v33 = vpack.c.bf16 %v239_v25, %v238_v24 }
  0x4e   : > { %1215 = vmatpush.bf16.msrb.mxu0 %v8621_v34  ;;  %1447 = vmatpush.bf16.msrb.mxu1 %v8631_v7  ;;  %v627_v34 = vld [vmem:[%s9035_s25 + $0x2] sm:$0xff] }
  0x4f   : > { %v659_v38 = vpack.c.bf16 %v628_v35, %v627_v34  ;;  %v7581_v34 = vld [vmem:[%s9035_s25 + $0x62] sm:$0xff]  ;;  %v7582_v35 = vld [vmem:[%s9035_s25 + $0x6a] sm:$0xff] }
  0x50   : > { %747 = vmatpush.bf16.msrb.mxu2 %v8604_v53 }
  0x51   : > { %982 = vmatpush.bf16.msrb.mxu3 %v8612_v54 }
  0x52   : > { %1216 = vmatpush.bf16.msrb.mxu0 %v8620_v56  ;;  %1448 = vmatpush.bf16.msrb.mxu1 %v8630_v10  ;;  %v7577_v56 = vld [vmem:[%s9035_s25 + $0x32] sm:$0xff] }
  0x53   : > { %419 = vmatmul.bf16.gmra.mxu0 %v9124_v60  ;;  %459 = vmatmul.bf16.gmra.mxu2 %v330_v61  ;;  %v316_v61 = vld [vmem:[%s9035_s25 + $0x151] sm:$0xff]  ;;  %v1363_v1 = vpack.c.bf16 %v7578_v57, %v7577_v56  ;;  %v7583_v56 = vld [vmem:[%s9035_s25 + $0x7a] sm:$0xff]  ;;  %v7584_v57 = vld [vmem:[%s9035_s25 + $0x82] sm:$0xff] }
  0x54   : > { %596 = vmatmul.bf16.gmra.mxu3 %v9126_v62  ;;  %v334_v6 = vpack.c.bf16 %v317_v0, %v316_v61 }
  0x55   : > { %556 = vmatmul.bf16.gmra.mxu1 %v9128_v63 }
  0x56   : > { %1449 = vmatpush.bf16.msrb.mxu1 %v8629_v15  ;;  %2146 = vmatpush.bf16.msra.mxu0 %v8659_v17  ;;  %v7580_v15 = vld [vmem:[%s9035_s25 + $0x52] sm:$0xff] }
  0x5a   : > { %1450 = vmatpush.bf16.msrb.mxu1 %v8628_v16 }
  0x63   : > { %424 = vmatmul.bf16.gmra.mxu0 %v9150_v11  ;;  %464 = vmatmul.bf16.gmra.mxu2 %v331_v12  ;;  %v8643_v12 = vld [vmem:[%s11994_s1 + $0x1b8] sm:$0xff] }
  0x64   : > { %601 = vmatmul.bf16.gmra.mxu3 %v267_v13  ;;  %v8651_v13 = vld [vmem:[%s11994_s1 + $0x1f8] sm:$0xff]  ;;  %1678 = vmatpush.bf16.msra.mxu2 %v8643_v12 }
  0x65   : > { %561 = vmatmul.bf16.gmra.mxu1 %v9152_v14  ;;  %1912 = vmatpush.bf16.msra.mxu3 %v8651_v13  ;;  %v7579_v13 = vld [vmem:[%s9035_s25 + $0x4a] sm:$0xff] }
  0x68   : > { %1679 = vmatpush.bf16.msra.mxu2 %v8642_v43 }
  0x73   : > { %429 = vmatmul.bf16.gmra.mxu0 %v9173_v26  ;;  %469 = vmatmul.bf16.gmra.mxu2 %v332_v29  ;;  %v9266_v29 = vpack.c.bf16 %v303_v19, %v302_v18 }
  0x74   : > { %606 = vmatmul.bf16.gmra.mxu3 %v268_v30  ;;  %v335_v30 = vpack.c.bf16 %v319_v21, %v318_v20  ;;  %v1364_v20 = vpack.c.bf16 %v7580_v15, %v7579_v13 }
  0x75   : > { %566 = vmatmul.bf16.gmra.mxu1 %v9175_v31 }
  0x83   : > { %434 = vmatmul.bf16.gmra.mxu0 %v9199_v44  ;;  %474 = vmatmul.bf16.gmra.mxu2 %v333_v49  ;;  %v8650_v49 = vld [vmem:[%s11994_s1 + $0x1f0] sm:$0xff] }
  0x84   : > { %611 = vmatmul.bf16.gmra.mxu3 %v269_v50 }
  0x85   : > { %571 = vmatmul.bf16.gmra.mxu1 %v9201_v51  ;;  %1913 = vmatpush.bf16.msra.mxu3 %v8650_v49 }
  0x89   : > { %1914 = vmatpush.bf16.msra.mxu3 %v8649_v22 }
  0x93   : > { %439 = vmatmul.bf16.gmra.mxu0 %v9231_v5  ;;  %479 = vmatmul.bf16.gmra.mxu2 %v334_v6 }
  0x94   : > { %616 = vmatmul.bf16.gmra.mxu3 %v270_v8 }
  0x95   : > { %576 = vmatmul.bf16.gmra.mxu1 %v9236_v9 }
  0xa3   : > { %444 = vmatmul.bf16.gmra.mxu0 %v9266_v29  ;;  %484 = vmatmul.bf16.gmra.mxu2 %v335_v30 }
  0xa4   : > { %621 = vmatmul.bf16.gmra.mxu3 %v271_v32 }
  0xa5   : > { %581 = vmatmul.bf16.gmra.mxu1 %v9268_v33 }
  0xb0   : > { %v410_v39 = vpop.f32.mrf.mxu0 }
  0xb2   : > { %v547_v41 = vpop.f32.mrf.mxu1 }
  0xb3   : > { %v9276_v42 = vadd.f32 %v547_v41, %v410_v39  ;;  %748 = vmatmul.bf16.vlgmr.msrb.gmra.mxu2 %v659_v38  ;;  %1217 = vmatmul.bf16.vlgmr.msrb.gmra.mxu0 %v9095_v45 }
  0xb4   : > { %983 = vmatmul.bf16.vlgmr.msrb.gmra.mxu3 %v9101_v48  ;;  %v8658_v48 = vld [vmem:[%s11994_s1 + $0x230] sm:$0xff] }
  0xb5   : > { %1451 = vmatmul.bf16.vlgmr.msrb.gmra.mxu1 %v1362_v40  ;;  %2147 = vmatpush.bf16.msra.mxu0 %v8658_v48 }
  0xb6   : > { %v450_v50 = vpop.f32.mrf.mxu2 }
  0xb7   : > { %v587_v52 = vpop.f32.mrf.mxu3 }
  0xb8   : > { %v9286_v53 = vadd.f32 %v587_v52, %v450_v50  ;;  %v412_v54 = vpop.f32.mrf.mxu0 }
  0xba   : > { %v549_v45 = vpop.f32.mrf.mxu1 }
  0xbb   : > { %v9288_v55 = vadd.f32 %v549_v45, %v412_v54 }
  0xbe   : > { %v452_v58 = vpop.f32.mrf.mxu2 }
  0xbf   : > { %v589_v59 = vpop.f32.mrf.mxu3 }
  0xc0   : > { %v9295_v61 = vadd.f32 %v589_v59, %v452_v58  ;;  %v415_v0 = vpop.f32.mrf.mxu0 }
  0xc2   : > { %v552_v2 = vpop.f32.mrf.mxu1 }
  0xc3   : > { %v9297_v3 = vadd.f32 %v552_v2, %v415_v0  ;;  %753 = vmatmul.bf16.gmra.mxu2 %v1362_v40  ;;  %1222 = vmatmul.bf16.gmra.mxu0 %v9124_v60  ;;  %v1365_v40 = vpack.c.bf16 %v7582_v35, %v7581_v34  ;;  %v1366_v2 = vpack.c.bf16 %v7584_v57, %v7583_v56  ;;  %v8639_v56 = vld [vmem:[%s11994_s1 + $0x198] sm:$0xff] }
  0xc4   : > { %988 = vmatmul.bf16.gmra.mxu3 %v9128_v63  ;;  %v8641_v63 = vld [vmem:[%s11994_s1 + $0x1a8] sm:$0xff]  ;;  %v8647_v57 = vld [vmem:[%s11994_s1 + $0x1d8] sm:$0xff] }
  0xc5   : > { %1456 = vmatmul.bf16.gmra.mxu1 %v1363_v1  ;;  %1680 = vmatpush.bf16.msra.mxu2 %v8641_v63 }
  0xc6   : > { %v455_v4 = vpop.f32.mrf.mxu2 }
  0xc7   : > { %v592_v6 = vpop.f32.mrf.mxu3 }
  0xc8   : > { %v9301_v7 = vadd.f32 %v592_v6, %v455_v4  ;;  %v417_v8 = vpop.f32.mrf.mxu0  ;;  %v8648_v6 = vld [vmem:[%s11994_s1 + $0x1e0] sm:$0xff] }
  0xc9   : > { %1915 = vmatpush.bf16.msra.mxu3 %v8648_v6  ;;  %v8655_v6 = vld [vmem:[%s11994_s1 + $0x218] sm:$0xff] }
  0xca   : > { %v554_v10 = vpop.f32.mrf.mxu1 }
  0xcb   : > { %v9303_v12 = vadd.f32 %v554_v10, %v417_v8 }
  0xcd   : > { %1916 = vmatpush.bf16.msra.mxu3 %v8647_v57 }
  0xce   : > { %v457_v16 = vpop.f32.mrf.mxu2 }
  0xcf   : > { %v594_v17 = vpop.f32.mrf.mxu3 }
  0xd0   : > { %v9307_v18 = vadd.f32 %v594_v17, %v457_v16  ;;  %v420_v19 = vpop.f32.mrf.mxu0  ;;  %v7585_v17 = vld [vmem:[%s9035_s25 + $0x92] sm:$0xff] }
  0xd2   : > { %v557_v60 = vpop.f32.mrf.mxu1 }
  0xd3   : > { %v9309_v21 = vadd.f32 %v557_v60, %v420_v19  ;;  %758 = vmatmul.bf16.gmra.mxu2 %v1363_v1  ;;  %1227 = vmatmul.bf16.gmra.mxu0 %v9150_v11  ;;  %v7586_v19 = vld [vmem:[%s9035_s25 + $0x9a] sm:$0xff] }
  0xd4   : > { %993 = vmatmul.bf16.gmra.mxu3 %v9152_v14  ;;  %v8657_v14 = vld [vmem:[%s11994_s1 + $0x228] sm:$0xff] }
  0xd5   : > { %1461 = vmatmul.bf16.gmra.mxu1 %v1364_v20  ;;  %2148 = vmatpush.bf16.msra.mxu0 %v8657_v14 }
  0xd6   : > { %v460_v23 = vpop.f32.mrf.mxu2 }
  0xd7   : > { %v597_v24 = vpop.f32.mrf.mxu3 }
  0xd8   : > { %v9319_v25 = vadd.f32 %v597_v24, %v460_v23  ;;  %v422_v30 = vpop.f32.mrf.mxu0  ;;  %v1367_v23 = vpack.c.bf16 %v7586_v19, %v7585_v17 }
  0xda   : > { %v559_v11 = vpop.f32.mrf.mxu1 }
  0xdb   : > { %v9321_v32 = vadd.f32 %v559_v11, %v422_v30 }
  0xde   : > { %v462_v36 = vpop.f32.mrf.mxu2 }
  0xdf   : > { %v599_v37 = vpop.f32.mrf.mxu3 }
  0xe0   : > { %v9328_v38 = vadd.f32 %v599_v37, %v462_v36  ;;  %v425_v39 = vpop.f32.mrf.mxu0 }
  0xe2   : > { %v562_v41 = vpop.f32.mrf.mxu1 }
  0xe3   : > { %v9330_v43 = vadd.f32 %v562_v41, %v425_v39  ;;  %763 = vmatmul.bf16.gmra.mxu2 %v1364_v20  ;;  %1232 = vmatmul.bf16.gmra.mxu0 %v9173_v26  ;;  %v7587_v39 = vld [vmem:[%s9035_s25 + $0xaa] sm:$0xff] }
  0xe4   : > { %998 = vmatmul.bf16.gmra.mxu3 %v9175_v31  ;;  %v8640_v31 = vld [vmem:[%s11994_s1 + $0x1a0] sm:$0xff] }
  0xe5   : > { %1466 = vmatmul.bf16.gmra.mxu1 %v1365_v40  ;;  %1681 = vmatpush.bf16.msra.mxu2 %v8640_v31  ;;  %v7590_v31 = vld [vmem:[%s9035_s25 + $0xca] sm:$0xff] }
  0xe6   : > { %v465_v49 = vpop.f32.mrf.mxu2 }
  0xe7   : > { %v602_v50 = vpop.f32.mrf.mxu3 }
  0xe8   : > { %v9334_v52 = vadd.f32 %v602_v50, %v465_v49  ;;  %v427_v54 = vpop.f32.mrf.mxu0 }
  0xe9   : > { %1682 = vmatpush.bf16.msra.mxu2 %v8639_v56 }
  0xea   : > { %v564_v45 = vpop.f32.mrf.mxu1 }
  0xeb   : > { %v9336_v48 = vadd.f32 %v564_v45, %v427_v54 }
  0xee   : > { %v467_v58 = vpop.f32.mrf.mxu2 }
  0xef   : > { %v604_v59 = vpop.f32.mrf.mxu3 }
  0xf0   : > { %v9340_v0 = vadd.f32 %v604_v59, %v467_v58  ;;  %v430_v1 = vpop.f32.mrf.mxu0 }
  0xf2   : > { %v567_v26 = vpop.f32.mrf.mxu1 }
  0xf3   : > { %v9342_v4 = vadd.f32 %v567_v26, %v430_v1  ;;  %768 = vmatmul.bf16.gmra.mxu2 %v1365_v40  ;;  %1237 = vmatmul.bf16.gmra.mxu0 %v9199_v44  ;;  %v7588_v40 = vld [vmem:[%s9035_s25 + $0xb2] sm:$0xff] }
  0xf4   : > { %1003 = vmatmul.bf16.gmra.mxu3 %v9201_v51  ;;  %v8656_v51 = vld [vmem:[%s11994_s1 + $0x220] sm:$0xff]  ;;  %v9375_v45 = vpack.c.bf16 %v7588_v40, %v7587_v39 }
  0xf5   : > { %1471 = vmatmul.bf16.gmra.mxu1 %v1366_v2  ;;  %2149 = vmatpush.bf16.msra.mxu0 %v8656_v51 }
  0xf6   : > { %v470_v8 = vpop.f32.mrf.mxu2 }
  0xf7   : > { %v607_v10 = vpop.f32.mrf.mxu3 }
  0xf8   : > { %v9352_v13 = vadd.f32 %v607_v10, %v470_v8  ;;  %v432_v15 = vpop.f32.mrf.mxu0 }
  0xf9   : > { %2150 = vmatpush.bf16.msra.mxu0 %v8655_v6  ;;  %v7594_v6 = vld [vmem:[%s9035_s25 + $0xfa] sm:$0xff] }
  0xfa   : > { %v569_v44 = vpop.f32.mrf.mxu1 }
  0xfb   : > { %v9354_v16 = vadd.f32 %v569_v44, %v432_v15 }
  0xfe   : > { %v472_v20 = vpop.f32.mrf.mxu2 }
  0xff   : > { %v609_v60 = vpop.f32.mrf.mxu3 }
 0x100   : > { %v9361_v63 = vadd.f32 %v609_v60, %v472_v20  ;;  %v435_v22 = vpop.f32.mrf.mxu0 }
 0x102   : > { %v572_v24 = vpop.f32.mrf.mxu1 }
 0x103   : > { %v9363_v30 = vadd.f32 %v572_v24, %v435_v22  ;;  %773 = vmatmul.bf16.gmra.mxu2 %v1366_v2  ;;  %1242 = vmatmul.bf16.gmra.mxu0 %v9231_v5 }
 0x104   : > { %1008 = vmatmul.bf16.gmra.mxu3 %v9236_v9 }
 0x105   : > { %1476 = vmatmul.bf16.gmra.mxu1 %v1367_v23 }
 0x106   : > { %v475_v11 = vpop.f32.mrf.mxu2 }
 0x107   : > { %v612_v14 = vpop.f32.mrf.mxu3 }
 0x108   : > { %v9367_v34 = vadd.f32 %v612_v14, %v475_v11  ;;  %v437_v35 = vpop.f32.mrf.mxu0  ;;  %v7591_v14 = vld [vmem:[%s9035_s25 + $0xda] sm:$0xff] }
 0x10a   : > { %v574_v36 = vpop.f32.mrf.mxu1 }
 0x10b   : > { %v9369_v37 = vadd.f32 %v574_v36, %v437_v35  ;;  %v7592_v35 = vld [vmem:[%s9035_s25 + $0xe2] sm:$0xff] }
 0x10e   : > { %v477_v41 = vpop.f32.mrf.mxu2 }
 0x10f   : > { %v614_v49 = vpop.f32.mrf.mxu3 }
 0x110   : > { %v9373_v50 = vadd.f32 %v614_v49, %v477_v41  ;;  %v440_v54 = vpop.f32.mrf.mxu0  ;;  %v8638_v49 = vld [vmem:[%s11994_s1 + $0x190] sm:$0xff] }
 0x111   : > { %1683 = vmatpush.bf16.msra.mxu2 %v8638_v49 }
 0x112   : > { %v577_v5 = vpop.f32.mrf.mxu1 }
 0x113   : > { %v9377_v9 = vadd.f32 %v577_v5, %v440_v54  ;;  %778 = vmatmul.bf16.gmra.mxu2 %v1367_v23  ;;  %1247 = vmatmul.bf16.gmra.mxu0 %v9266_v29  ;;  %v8646_v54 = vld [vmem:[%s11994_s1 + $0x1d0] sm:$0xff] }
 0x114   : > { %1013 = vmatmul.bf16.gmra.mxu3 %v9268_v33  ;;  %v7589_v33 = vld [vmem:[%s9035_s25 + $0xc2] sm:$0xff] }
 0x115   : > { %1481 = vmatmul.bf16.gmra.mxu1 %v9375_v45  ;;  %v9399_v51 = vpack.c.bf16 %v7590_v31, %v7589_v33  ;;  %1917 = vmatpush.bf16.msra.mxu3 %v8646_v54  ;;  %v7593_v31 = vld [vmem:[%s9035_s25 + $0xf2] sm:$0xff] }
 0x116   : > { %v480_v58 = vpop.f32.mrf.mxu2 }
 0x117   : > { %v617_v59 = vpop.f32.mrf.mxu3 }
 0x118   : > { %v9388_v1 = vadd.f32 %v617_v59, %v480_v58  ;;  %v442_v2 = vpop.f32.mrf.mxu0 }
 0x11a   : > { %v579_v29 = vpop.f32.mrf.mxu1 }
 0x11b   : > { %v9390_v26 = vadd.f32 %v579_v29, %v442_v2  ;;  %v7513_v2 = vld [vmem:[%s9035_s25 + $0xf1] sm:$0xff]  ;;  %v7514_v29 = vld [vmem:[%s9035_s25 + $0xf9] sm:$0xff] }
 0x11e   : > { %v482_v8 = vpop.f32.mrf.mxu2 }
 0x11f   : > { %v619_v10 = vpop.f32.mrf.mxu3 }
 0x120   : > { %v9397_v15 = vadd.f32 %v619_v10, %v482_v8  ;;  %v445_v44 = vpop.f32.mrf.mxu0  ;;  %v8654_v8 = vld [vmem:[%s11994_s1 + $0x210] sm:$0xff] }
 0x121   : > { %2151 = vmatpush.bf16.msra.mxu0 %v8654_v8 }
 0x122   : > { %v582_v17 = vpop.f32.mrf.mxu1 }
 0x123   : > { %v9401_v19 = vadd.f32 %v582_v17, %v445_v44  ;;  %783 = vmatmul.bf16.gmra.mxu2 %v9375_v45  ;;  %1252 = vmatmul.bf16.gmra.mxu0 %v9060_v27  ;;  %v9415_v27 = vpack.c.bf16 %v7592_v35, %v7591_v14  ;;  %v9438_v17 = vpack.c.bf16 %v7514_v29, %v7513_v2  ;;  %v8691_v14 = vld [vmem:[%s11995_s2 + $0x78] sm:$0xff] }
 0x124   : > { %1018 = vmatmul.bf16.gmra.mxu3 %v9062_v28  ;;  %3458 = vmatpush.bf16.msra.mxu1 %v8691_v14  ;;  %v7596_v2 = vld [vmem:[%s9035_s25 + $0x112] sm:$0xff] }
 0x125   : > { %1486 = vmatmul.bf16.gmra.mxu1 %v9399_v51 }
 0x126   : > { %v485_v20 = vpop.f32.mrf.mxu2 }
 0x127   : > { %v622_v60 = vpop.f32.mrf.mxu3 }
 0x128   : > { %v9407_v22 = vadd.f32 %v622_v60, %v485_v20  ;;  %v447_v23 = vpop.f32.mrf.mxu0  ;;  %v9440_v60 = vpack.c.bf16 %v7594_v6, %v7593_v31 }
 0x12a   : > { %v584_v24 = vpop.f32.mrf.mxu1 }
 0x12b   : > { %v9409_v11 = vadd.f32 %v584_v24, %v447_v23 }
 0x12e   : > { %v487_v36 = vpop.f32.mrf.mxu2 }
 0x12f   : > { %v624_v39 = vpop.f32.mrf.mxu3 }
 0x130   : > { %v9413_v40 = vadd.f32 %v624_v39, %v487_v36  ;;  %v1218_v41 = vpop.f32.mrf.mxu0 }
 0x132   : > { %v1452_v28 = vpop.f32.mrf.mxu1 }
 0x133   : > { %788 = vmatmul.bf16.gmra.mxu2 %v9399_v51  ;;  %1257 = vmatmul.bf16.gmra.mxu0 %v9097_v46 }
 0x134   : > { %1023 = vmatmul.bf16.gmra.mxu3 %v9099_v47 }
 0x135   : > { %1491 = vmatmul.bf16.gmra.mxu1 %v9415_v27 }
 0x136   : > { %v749_v5 = vpop.f32.mrf.mxu2 }
 0x137   : > { %v829_v56 = vadd.f32 %v749_v5, %v9276_v42  ;;  %v984_v57 = vpop.f32.mrf.mxu3 }
 0x138   : > { %v1220_v46 = vpop.f32.mrf.mxu0 }
 0x139   : > { %v1064_v47 = vadd.f32 %v984_v57, %v829_v56  ;;  %v7435_v56 = vld [vmem:[%s9035_s25 + $0x108] sm:$0xff] }
 0x13a   : > { %v1454_v58 = vpop.f32.mrf.mxu1  ;;  %v7515_v57 = vld [vmem:[%s9035_s25 + $0x109] sm:$0xff] }
 0x13b   : > { %v1298_v59 = vadd.f32 %v1218_v41, %v1064_v47 }
 0x13d   : > { %v9430_v33 = vadd.f32 %v1452_v28, %v1298_v59  ;;  %v7595_v59 = vld [vmem:[%s9035_s25 + $0x10a] sm:$0xff] }
 0x13e   : > { %v751_v10 = vpop.f32.mrf.mxu2 }
 0x13f   : > { %v830_v44 = vadd.f32 %v751_v10, %v9288_v55  ;;  %v986_v42 = vpop.f32.mrf.mxu3  ;;  %v9461_v10 = vpack.c.bf16 %v7596_v2, %v7595_v59  ;;  %v7598_v59 = vld [vmem:[%s9035_s25 + $0x12a] sm:$0xff] }
 0x140   : > { %v1223_v20 = vpop.f32.mrf.mxu0  ;;  %v8653_v2 = vld [vmem:[%s11994_s1 + $0x208] sm:$0xff] }
 0x141   : > { %v1065_v23 = vadd.f32 %v986_v42, %v830_v44  ;;  %2152 = vmatpush.bf16.msra.mxu0 %v8653_v2  ;;  %v7600_v2 = vld [vmem:[%s9035_s25 + $0x142] sm:$0xff] }
 0x142   : > { %v1457_v24 = vpop.f32.mrf.mxu1 }
 0x143   : > { %793 = vmatmul.bf16.gmra.mxu2 %v9415_v27  ;;  %1262 = vmatmul.bf16.gmra.mxu0 %v9438_v17  ;;  %v1299_v55 = vadd.f32 %v1220_v46, %v1065_v23  ;;  %v7516_v46 = vld [vmem:[%s9035_s25 + $0x111] sm:$0xff] }
 0x144   : > { %1028 = vmatmul.bf16.gmra.mxu3 %v9126_v62  ;;  %v7436_v62 = vld [vmem:[%s9035_s25 + $0x110] sm:$0xff]  ;;  %v1138_v6 = vpack.c.bf16 %v7516_v46, %v7515_v57 }
 0x145   : > { %1496 = vmatmul.bf16.gmra.mxu1 %v9440_v60  ;;  %v9449_v35 = vadd.f32 %v1454_v58, %v1299_v55  ;;  %v7518_v57 = vld [vmem:[%s9035_s25 + $0x129] sm:$0xff] }
 0x146   : > { %v754_v36 = vpop.f32.mrf.mxu2 }
 0x147   : > { %v831_v39 = vadd.f32 %v754_v36, %v9297_v3  ;;  %v989_v41 = vpop.f32.mrf.mxu3  ;;  %v904_v3 = vpack.c.bf16 %v7436_v62, %v7435_v56  ;;  %v7438_v56 = vld [vmem:[%s9035_s25 + $0x128] sm:$0xff] }
 0x148   : > { %v1225_v28 = vpop.f32.mrf.mxu0  ;;  %v7597_v62 = vld [vmem:[%s9035_s25 + $0x122] sm:$0xff] }
 0x149   : > { %v1066_v49 = vadd.f32 %v989_v41, %v831_v39 }
 0x14a   : > { %v1459_v54 = vpop.f32.mrf.mxu1 }
 0x14b   : > { %v1300_v5 = vadd.f32 %v1223_v20, %v1066_v49 }
 0x14d   : > { %v9455_v47 = vadd.f32 %v1457_v24, %v1300_v5  ;;  %v8645_v24 = vld [vmem:[%s11994_s1 + $0x1c8] sm:$0xff]  ;;  %v7437_v5 = vld [vmem:[%s9035_s25 + $0x120] sm:$0xff] }
 0x14e   : > { %v756_v29 = vpop.f32.mrf.mxu2  ;;  %1918 = vmatpush.bf16.msra.mxu3 %v8645_v24 }
 0x14f   : > { %v832_v58 = vadd.f32 %v756_v29, %v9303_v12  ;;  %v991_v31 = vpop.f32.mrf.mxu3  ;;  %v8637_v12 = vld [vmem:[%s11994_s1 + $0x188] sm:$0xff] }
 0x150   : > { %v1228_v8 = vpop.f32.mrf.mxu0  ;;  %1684 = vmatpush.bf16.msra.mxu2 %v8637_v12 }
 0x151   : > { %v1067_v44 = vadd.f32 %v991_v31, %v832_v58 }
 0x152   : > { %v1462_v42 = vpop.f32.mrf.mxu1 }
 0x153   : > { %798 = vmatmul.bf16.gmra.mxu2 %v9440_v60  ;;  %1267 = vmatmul.bf16.gmra.mxu0 %v1138_v6  ;;  %v1301_v20 = vadd.f32 %v1225_v28, %v1067_v44 }
 0x154   : > { %1033 = vmatmul.bf16.gmra.mxu3 %v904_v3  ;;  %v1373_v3 = vpack.c.bf16 %v7598_v59, %v7597_v62  ;;  %v7440_v62 = vld [vmem:[%s9035_s25 + $0x140] sm:$0xff] }
 0x155   : > { %1501 = vmatmul.bf16.gmra.mxu1 %v9461_v10  ;;  %v9468_v23 = vadd.f32 %v1459_v54, %v1301_v20  ;;  %v7517_v54 = vld [vmem:[%s9035_s25 + $0x121] sm:$0xff] }
 0x156   : > { %v759_v14 = vpop.f32.mrf.mxu2  ;;  %v1139_v31 = vpack.c.bf16 %v7518_v57, %v7517_v54  ;;  %v7519_v54 = vld [vmem:[%s9035_s25 + $0x139] sm:$0xff]  ;;  %v7520_v57 = vld [vmem:[%s9035_s25 + $0x141] sm:$0xff] }
 0x157   : > { %v833_v55 = vadd.f32 %v759_v14, %v9309_v21  ;;  %v994_v36 = vpop.f32.mrf.mxu3  ;;  %v7599_v59 = vld [vmem:[%s9035_s25 + $0x13a] sm:$0xff] }
 0x158   : > { %v1230_v39 = vpop.f32.mrf.mxu0 }
 0x159   : > { %v1068_v41 = vadd.f32 %v994_v36, %v833_v55 }
 0x15a   : > { %v1464_v28 = vpop.f32.mrf.mxu1 }
 0x15b   : > { %v1302_v49 = vadd.f32 %v1228_v8, %v1068_v41  ;;  %v905_v8 = vpack.c.bf16 %v7438_v56, %v7437_v5  ;;  %v7439_v56 = vld [vmem:[%s9035_s25 + $0x138] sm:$0xff] }
 0x15d   : > { %v9478_v46 = vadd.f32 %v1462_v42, %v1302_v49  ;;  %v8690_v42 = vld [vmem:[%s11995_s2 + $0x70] sm:$0xff] }
 0x15e   : > { %v761_v29 = vpop.f32.mrf.mxu2  ;;  %3459 = vmatpush.bf16.msra.mxu1 %v8690_v42 }
 0x15f   : > { %v834_v21 = vadd.f32 %v761_v29, %v9321_v32  ;;  %v996_v58 = vpop.f32.mrf.mxu3 }
 0x160   : > { %v1233_v6 = vpop.f32.mrf.mxu0 }
 0x161   : > { %v1069_v44 = vadd.f32 %v996_v58, %v834_v21  ;;  %v1140_v58 = vpack.c.bf16 %v7520_v57, %v7519_v54  ;;  %v7521_v54 = vld [vmem:[%s9035_s25 + $0x151] sm:$0xff]  ;;  %v7522_v57 = vld [vmem:[%s9035_s25 + $0x159] sm:$0xff] }
 0x162   : > { %v1467_v20 = vpop.f32.mrf.mxu1 }
 0x163   : > { %803 = vmatmul.bf16.gmra.mxu2 %v9461_v10  ;;  %1272 = vmatmul.bf16.gmra.mxu0 %v1139_v31  ;;  %v1303_v12 = vadd.f32 %v1230_v39, %v1069_v44 }
 0x164   : > { %1038 = vmatmul.bf16.gmra.mxu3 %v905_v8  ;;  %v1374_v8 = vpack.c.bf16 %v7600_v2, %v7599_v59  ;;  %v7601_v59 = vld [vmem:[%s9035_s25 + $0x152] sm:$0xff]  ;;  %v7602_v2 = vld [vmem:[%s9035_s25 + $0x15a] sm:$0xff] }
 0x165   : > { %1506 = vmatmul.bf16.gmra.mxu1 %v1373_v3  ;;  %v9490_v32 = vadd.f32 %v1464_v28, %v1303_v12  ;;  %v8644_v12 = vld [vmem:[%s11994_s1 + $0x1c0] sm:$0xff] }
 0x166   : > { %v764_v24 = vpop.f32.mrf.mxu2  ;;  %1919 = vmatpush.bf16.msra.mxu3 %v8644_v12 }
 0x167   : > { %v835_v14 = vadd.f32 %v764_v24, %v9330_v43  ;;  %v999_v55 = vpop.f32.mrf.mxu3  ;;  %v906_v43 = vpack.c.bf16 %v7440_v62, %v7439_v56  ;;  %v7441_v56 = vld [vmem:[%s9035_s25 + $0x150] sm:$0xff] }
 0x168   : > { %v1235_v36 = vpop.f32.mrf.mxu0 }
 0x169   : > { %v1070_v41 = vadd.f32 %v999_v55, %v835_v14 }
 0x16a   : > { %v1469_v49 = vpop.f32.mrf.mxu1 }
 0x16b   : > { %v1304_v5 = vadd.f32 %v1233_v6, %v1070_v41 }
 0x16d   : > { %v9496_v39 = vadd.f32 %v1467_v20, %v1304_v5 }
 0x16e   : > { %v766_v29 = vpop.f32.mrf.mxu2 }
 0x16f   : > { %v836_v28 = vadd.f32 %v766_v29, %v9336_v48  ;;  %v1001_v21 = vpop.f32.mrf.mxu3  ;;  %v8636_v48 = vld [vmem:[%s11994_s1 + $0x180] sm:$0xff] }
 0x170   : > { %v1238_v31 = vpop.f32.mrf.mxu0  ;;  %1685 = vmatpush.bf16.msra.mxu2 %v8636_v48  ;;  %v8652_v29 = vld [vmem:[%s11994_s1 + $0x200] sm:$0xff] }
 0x171   : > { %v1071_v44 = vadd.f32 %v1001_v21, %v836_v28  ;;  %2153 = vmatpush.bf16.msra.mxu0 %v8652_v29 }
 0x172   : > { %v1472_v42 = vpop.f32.mrf.mxu1 }
 0x173   : > { %808 = vmatmul.bf16.gmra.mxu2 %v1373_v3  ;;  %1277 = vmatmul.bf16.gmra.mxu0 %v1140_v58  ;;  %v1305_v6 = vadd.f32 %v1235_v36, %v1071_v44  ;;  %v1141_v58 = vpack.c.bf16 %v7522_v57, %v7521_v54  ;;  %v1375_v44 = vpack.c.bf16 %v7602_v2, %v7601_v59  ;;  %v7524_v54 = vld [vmem:[%s9035_s25 + $0x171] sm:$0xff] }
 0x174   : > { %1043 = vmatmul.bf16.gmra.mxu3 %v906_v43  ;;  %v7603_v59 = vld [vmem:[%s9035_s25 + $0x16a] sm:$0xff]  ;;  %v7604_v2 = vld [vmem:[%s9035_s25 + $0x172] sm:$0xff] }
 0x175   : > { %1511 = vmatmul.bf16.gmra.mxu1 %v1374_v8  ;;  %v9505_v20 = vadd.f32 %v1469_v49, %v1305_v6  ;;  %v7442_v49 = vld [vmem:[%s9035_s25 + $0x158] sm:$0xff] }
 0x176   : > { %v769_v3 = vpop.f32.mrf.mxu2 }
 0x177   : > { %v837_v24 = vadd.f32 %v769_v3, %v9342_v4  ;;  %v1004_v14 = vpop.f32.mrf.mxu3 }
 0x178   : > { %v1240_v55 = vpop.f32.mrf.mxu0 }
 0x179   : > { %v1072_v36 = vadd.f32 %v1004_v14, %v837_v24 }
 0x17a   : > { %v9511_v41 = vpop.f32.mrf.mxu1 }
 0x17b   : > { %v1306_v5 = vadd.f32 %v1238_v31, %v1072_v36  ;;  %v907_v31 = vpack.c.bf16 %v7442_v49, %v7441_v56  ;;  %v7443_v49 = vld [vmem:[%s9035_s25 + $0x168] sm:$0xff] }
 0x17d   : > { %v9517_v62 = vadd.f32 %v1472_v42, %v1306_v5  ;;  %v8689_v42 = vld [vmem:[%s11995_s2 + $0x68] sm:$0xff] }
 0x17e   : > { %v771_v4 = vpop.f32.mrf.mxu2  ;;  %3460 = vmatpush.bf16.msra.mxu1 %v8689_v42 }
 0x17f   : > { %v838_v28 = vadd.f32 %v771_v4, %v9354_v16  ;;  %v1006_v21 = vpop.f32.mrf.mxu3 }
 0x180   : > { %v1243_v43 = vpop.f32.mrf.mxu0 }
 0x181   : > { %v1073_v6 = vadd.f32 %v1006_v21, %v838_v28 }
 0x182   : > { %v1477_v48 = vpop.f32.mrf.mxu1 }
 0x183   : > { %813 = vmatmul.bf16.gmra.mxu2 %v1374_v8  ;;  %1282 = vmatmul.bf16.gmra.mxu0 %v1141_v58  ;;  %v9528_v12 = vadd.f32 %v1240_v55, %v1073_v6  ;;  %v7523_v8 = vld [vmem:[%s9035_s25 + $0x169] sm:$0xff] }
 0x184   : > { %1048 = vmatmul.bf16.gmra.mxu3 %v907_v31  ;;  %v7444_v55 = vld [vmem:[%s9035_s25 + $0x170] sm:$0xff]  ;;  %v1142_v21 = vpack.c.bf16 %v7524_v54, %v7523_v8  ;;  %v1376_v31 = vpack.c.bf16 %v7604_v2, %v7603_v59  ;;  %v7525_v8 = vld [vmem:[%s9035_s25 + $0x181] sm:$0xff] }
 0x185   : > { %1516 = vmatmul.bf16.gmra.mxu1 %v1375_v44  ;;  %v908_v58 = vpack.c.bf16 %v7444_v55, %v7443_v49  ;;  %v7445_v49 = vld [vmem:[%s9035_s25 + $0x180] sm:$0xff]  ;;  %v7446_v55 = vld [vmem:[%s9035_s25 + $0x188] sm:$0xff] }
 0x186   : > { %v774_v16 = vpop.f32.mrf.mxu2  ;;  %v7606_v59 = vld [vmem:[%s9035_s25 + $0x18a] sm:$0xff] }
 0x187   : > { %v839_v3 = vadd.f32 %v774_v16, %v9363_v30  ;;  %v1009_v24 = vpop.f32.mrf.mxu3 }
 0x188   : > { %v1245_v14 = vpop.f32.mrf.mxu0 }
 0x189   : > { %v1074_v36 = vadd.f32 %v1009_v24, %v839_v3 }
 0x18a   : > { %v9531_v5 = vpop.f32.mrf.mxu1 }
 0x18b   : > { %v1308_v56 = vadd.f32 %v1243_v43, %v1074_v36 }
 0x18d   : > { %v9536_v57 = vadd.f32 %v1477_v48, %v1308_v56 }
 0x18e   : > { %v776_v29 = vpop.f32.mrf.mxu2 }
 0x18f   : > { %v840_v4 = vadd.f32 %v776_v29, %v9369_v37  ;;  %v1011_v28 = vpop.f32.mrf.mxu3 }
 0x190   : > { %v1248_v30 = vpop.f32.mrf.mxu0 }
 0x191   : > { %v1075_v6 = vadd.f32 %v1011_v28, %v840_v4 }
 0x192   : > { %v1482_v43 = vpop.f32.mrf.mxu1 }
 0x193   : > { %818 = vmatmul.bf16.gmra.mxu2 %v1375_v44  ;;  %1287 = vmatmul.bf16.gmra.mxu0 %v1142_v21  ;;  %v9542_v48 = vadd.f32 %v1245_v14, %v1075_v6  ;;  %v7526_v44 = vld [vmem:[%s9035_s25 + $0x189] sm:$0xff]  ;;  %v909_v21 = vpack.c.bf16 %v7446_v55, %v7445_v49  ;;  %v7815_v55 = vld [vmem:[%s9035_s25 + $0x32] sm:$0xff] }
 0x194   : > { %1053 = vmatmul.bf16.gmra.mxu3 %v908_v58  ;;  %v7605_v14 = vld [vmem:[%s9035_s25 + $0x182] sm:$0xff]  ;;  %v1143_v28 = vpack.c.bf16 %v7526_v44, %v7525_v8  ;;  %v7655_v44 = vld [vmem:[%s9035_s25 + $0x30] sm:$0xff] }
 0x195   : > { %1521 = vmatmul.bf16.gmra.mxu1 %v1376_v31  ;;  %v1377_v58 = vpack.c.bf16 %v7606_v59, %v7605_v14  ;;  %v7816_v14 = vld [vmem:[%s9035_s25 + $0x3a] sm:$0xff]  ;;  %v7735_v59 = vld [vmem:[%s9035_s25 + $0x31] sm:$0xff] }
 0x196   : > { %v779_v37 = vpop.f32.mrf.mxu2 }
 0x197   : > { %v841_v42 = vadd.f32 %v779_v37, %v9377_v9  ;;  %v1014_v16 = vpop.f32.mrf.mxu3 }
 0x198   : > { %v1250_v3 = vpop.f32.mrf.mxu0 }
 0x199   : > { %v1076_v24 = vadd.f32 %v1014_v16, %v841_v42 }
 0x19a   : > { %v9545_v36 = vpop.f32.mrf.mxu1 }
 0x19b   : > { %v1310_v56 = vadd.f32 %v1248_v30, %v1076_v24  ;;  %v8688_v30 = vld [vmem:[%s11995_s2 + $0x60] sm:$0xff] }
 0x19c   : > { %3461 = vmatpush.bf16.msra.mxu1 %v8688_v30 }
 0x19d   : > { %v9550_v54 = vadd.f32 %v1482_v43, %v1310_v56 }
 0x19e   : > { %v781_v2 = vpop.f32.mrf.mxu2 }
 0x19f   : > { %v842_v29 = vadd.f32 %v781_v2, %v9390_v26  ;;  %v1016_v4 = vpop.f32.mrf.mxu3  ;;  %v7736_v2 = vld [vmem:[%s9035_s25 + $0x39] sm:$0xff] }
 0x1a0   : > { %v1253_v9 = vpop.f32.mrf.mxu0 }
 0x1a1   : > { %v1077_v6 = vadd.f32 %v1016_v4, %v842_v29 }
 0x1a2   : > { %v1487_v37 = vpop.f32.mrf.mxu1 }
 0x1a3   : > { %823 = vmatmul.bf16.gmra.mxu2 %v1376_v31  ;;  %1292 = vmatmul.bf16.gmra.mxu0 %v1143_v28  ;;  %v9559_v43 = vadd.f32 %v1250_v3, %v1077_v6  ;;  %v7656_v31 = vld [vmem:[%s9035_s25 + $0x38] sm:$0xff]  ;;  %v1831_v6 = vpack.c.bf16 %v7736_v2, %v7735_v59 }
 0x1a4   : > { %1058 = vmatmul.bf16.gmra.mxu3 %v909_v21  ;;  %v1597_v21 = vpack.c.bf16 %v7656_v31, %v7655_v44  ;;  %v7657_v31 = vld [vmem:[%s9035_s25 + $0x48] sm:$0xff]  ;;  %v7818_v59 = vld [vmem:[%s9035_s25 + $0x52] sm:$0xff] }
 0x1a5   : > { %1526 = vmatmul.bf16.gmra.mxu1 %v1377_v58 }
 0x1a6   : > { %v784_v26 = vpop.f32.mrf.mxu2 }
 0x1a7   : > { %v843_v42 = vadd.f32 %v784_v26, %v9401_v19  ;;  %v1019_v16 = vpop.f32.mrf.mxu3  ;;  %v2065_v19 = vpack.c.bf16 %v7816_v14, %v7815_v55  ;;  %v7658_v55 = vld [vmem:[%s9035_s25 + $0x50] sm:$0xff] }
 0x1a8   : > { %v1255_v24 = vpop.f32.mrf.mxu0  ;;  %v7817_v14 = vld [vmem:[%s9035_s25 + $0x4a] sm:$0xff] }
 0x1a9   : > { %v1078_v56 = vadd.f32 %v1019_v16, %v843_v42 }
 0x1aa   : > { %v9562_v49 = vpop.f32.mrf.mxu1 }
 0x1ab   : > { %v1312_v8 = vadd.f32 %v1253_v9, %v1078_v56 }
 0x1ad   : > { %v9568_v3 = vadd.f32 %v1487_v37, %v1312_v8 }
 0x1ae   : > { %v786_v29 = vpop.f32.mrf.mxu2 }
 0x1af   : > { %v844_v4 = vadd.f32 %v786_v29, %v9409_v11  ;;  %v1021_v28 = vpop.f32.mrf.mxu3  ;;  %v7737_v29 = vld [vmem:[%s9035_s25 + $0x49] sm:$0xff] }
 0x1b0   : > { %v1258_v58 = vpop.f32.mrf.mxu0 }
 0x1b1   : > { %v1079_v9 = vadd.f32 %v1021_v28, %v844_v4  ;;  %v7738_v4 = vld [vmem:[%s9035_s25 + $0x51] sm:$0xff] }
 0x1b2   : > { %v1492_v30 = vpop.f32.mrf.mxu1 }
 0x1b3   : > { %1686 = vmatmul.bf16.vlgmr.msra.gmra.mxu2 %v1597_v21  ;;  %2154 = vmatmul.bf16.vlgmr.msra.gmra.mxu0 %v2065_v19  ;;  %v9573_v37 = vadd.f32 %v1255_v24, %v1079_v9  ;;  %v1598_v19 = vpack.c.bf16 %v7658_v55, %v7657_v31  ;;  %v1832_v9 = vpack.c.bf16 %v7738_v4, %v7737_v29  ;;  %v7660_v29 = vld [vmem:[%s9035_s25 + $0x68] sm:$0xff] }
 0x1b4   : > { %1920 = vmatmul.bf16.vlgmr.msra.gmra.mxu3 %v1831_v6  ;;  %v7819_v4 = vld [vmem:[%s9035_s25 + $0x62] sm:$0xff] }
 0x1b6   : > { %v789_v26 = vpop.f32.mrf.mxu2 }
 0x1b7   : > { %v845_v11 = vadd.f32 %v789_v26, %v9286_v53  ;;  %v1024_v42 = vpop.f32.mrf.mxu3  ;;  %v2066_v53 = vpack.c.bf16 %v7818_v59, %v7817_v14  ;;  %v7659_v59 = vld [vmem:[%s9035_s25 + $0x60] sm:$0xff] }
 0x1b8   : > { %v1260_v16 = vpop.f32.mrf.mxu0 }
 0x1b9   : > { %v1080_v56 = vadd.f32 %v1024_v42, %v845_v11 }
 0x1ba   : > { %v9576_v8 = vpop.f32.mrf.mxu1 }
 0x1bb   : > { %v1314_v44 = vadd.f32 %v1258_v58, %v1080_v56 }
 0x1bd   : > { %v9582_v2 = vadd.f32 %v1492_v30, %v1314_v44  ;;  %v8687_v30 = vld [vmem:[%s11995_s2 + $0x58] sm:$0xff] }
 0x1be   : > { %v791_v24 = vpop.f32.mrf.mxu2  ;;  %3462 = vmatpush.bf16.msra.mxu1 %v8687_v30 }
 0x1bf   : > { %v846_v28 = vadd.f32 %v791_v24, %v9295_v61  ;;  %v1026_v21 = vpop.f32.mrf.mxu3  ;;  %v7820_v24 = vld [vmem:[%s9035_s25 + $0x6a] sm:$0xff] }
 0x1c0   : > { %v1263_v6 = vpop.f32.mrf.mxu0 }
 0x1c1   : > { %v1081_v26 = vadd.f32 %v1026_v21, %v846_v28  ;;  %v7740_v21 = vld [vmem:[%s9035_s25 + $0x69] sm:$0xff] }
 0x1c2   : > { %v1497_v58 = vpop.f32.mrf.mxu1 }
 0x1c3   : > { %1691 = vmatmul.bf16.gmra.mxu2 %v1598_v19  ;;  %2159 = vmatmul.bf16.gmra.mxu0 %v2066_v53  ;;  %v9590_v11 = vadd.f32 %v1260_v16, %v1081_v26  ;;  %v7739_v16 = vld [vmem:[%s9035_s25 + $0x61] sm:$0xff]  ;;  %v1599_v26 = vpack.c.bf16 %v7660_v29, %v7659_v59 }
 0x1c4   : > { %1925 = vmatmul.bf16.gmra.mxu3 %v1832_v9 }
 0x1c6   : > { %v794_v61 = vpop.f32.mrf.mxu2 }
 0x1c7   : > { %v847_v42 = vadd.f32 %v794_v61, %v9301_v7  ;;  %v1029_v56 = vpop.f32.mrf.mxu3  ;;  %v2067_v7 = vpack.c.bf16 %v7820_v24, %v7819_v4  ;;  %v1833_v61 = vpack.c.bf16 %v7740_v21, %v7739_v16  ;;  %v7661_v24 = vld [vmem:[%s9035_s25 + $0x78] sm:$0xff]  ;;  %v7662_v16 = vld [vmem:[%s9035_s25 + $0x80] sm:$0xff] }
 0x1c8   : > { %v1265_v44 = vpop.f32.mrf.mxu0  ;;  %v7821_v21 = vld [vmem:[%s9035_s25 + $0x7a] sm:$0xff] }
 0x1c9   : > { %v1082_v31 = vadd.f32 %v1029_v56, %v847_v42 }
 0x1ca   : > { %v9593_v55 = vpop.f32.mrf.mxu1 }
 0x1cb   : > { %12005 = vst [vmem:[#allocation6_spill] sm:$0xff] %v9593_v55  ;;  %v1316_v14 = vadd.f32 %v1263_v6, %v1082_v31 }
 0x1cd   : > { %v9599_v28 = vadd.f32 %v1497_v58, %v1316_v14 }
 0x1ce   : > { %v796_v19 = vpop.f32.mrf.mxu2 }
 0x1cf   : > { %v848_v53 = vadd.f32 %v796_v19, %v9307_v18  ;;  %v1031_v9 = vpop.f32.mrf.mxu3  ;;  %v7822_v19 = vld [vmem:[%s9035_s25 + $0x82] sm:$0xff] }
 0x1d0   : > { %v1268_v30 = vpop.f32.mrf.mxu0 }
 0x1d1   : > { %v1083_v6 = vadd.f32 %v1031_v9, %v848_v53  ;;  %v7741_v9 = vld [vmem:[%s9035_s25 + $0x79] sm:$0xff] }
 0x1d2   : > { %v1502_v42 = vpop.f32.mrf.mxu1 }
 0x1d3   : > { %1696 = vmatmul.bf16.gmra.mxu2 %v1599_v26  ;;  %2164 = vmatmul.bf16.gmra.mxu0 %v2067_v7  ;;  %v9604_v58 = vadd.f32 %v1265_v44, %v1083_v6  ;;  %v7742_v26 = vld [vmem:[%s9035_s25 + $0x81] sm:$0xff]  ;;  %v1600_v6 = vpack.c.bf16 %v7662_v16, %v7661_v24 }
 0x1d4   : > { %1930 = vmatmul.bf16.gmra.mxu3 %v1833_v61  ;;  %v1834_v55 = vpack.c.bf16 %v7742_v26, %v7741_v9  ;;  %v7663_v9 = vld [vmem:[%s9035_s25 + $0x90] sm:$0xff]  ;;  %v7664_v26 = vld [vmem:[%s9035_s25 + $0x98] sm:$0xff] }
 0x1d6   : > { %v799_v56 = vpop.f32.mrf.mxu2 }
 0x1d7   : > { %v849_v18 = vadd.f32 %v799_v56, %v9319_v25  ;;  %v1034_v31 = vpop.f32.mrf.mxu3  ;;  %v2068_v25 = vpack.c.bf16 %v7822_v19, %v7821_v21 }
 0x1d8   : > { %v1270_v14 = vpop.f32.mrf.mxu0 }
 0x1d9   : > { %v1084_v59 = vadd.f32 %v1034_v31, %v849_v18 }
 0x1da   : > { %v9607_v29 = vpop.f32.mrf.mxu1 }
 0x1db   : > { %v1318_v4 = vadd.f32 %v1268_v30, %v1084_v59 }
 0x1dd   : > { %v9613_v53 = vadd.f32 %v1502_v42, %v1318_v4  ;;  %v8686_v42 = vld [vmem:[%s11995_s2 + $0x50] sm:$0xff] }
 0x1de   : > { %v801_v44 = vpop.f32.mrf.mxu2  ;;  %3463 = vmatpush.bf16.msra.mxu1 %v8686_v42  ;;  %v1601_v42 = vpack.c.bf16 %v7664_v26, %v7663_v9 }
 0x1df   : > { %v850_v7 = vadd.f32 %v801_v44, %v9328_v38  ;;  %v1036_v61 = vpop.f32.mrf.mxu3  ;;  %v7823_v44 = vld [vmem:[%s9035_s25 + $0x92] sm:$0xff] }
 0x1e0   : > { %v1273_v56 = vpop.f32.mrf.mxu0 }
 0x1e1   : > { %v1085_v18 = vadd.f32 %v1036_v61, %v850_v7  ;;  %v7824_v7 = vld [vmem:[%s9035_s25 + $0x9a] sm:$0xff] }
 0x1e2   : > { %v1507_v30 = vpop.f32.mrf.mxu1 }
 0x1e3   : > { %1701 = vmatmul.bf16.gmra.mxu2 %v1600_v6  ;;  %2169 = vmatmul.bf16.gmra.mxu0 %v2068_v25  ;;  %v9621_v31 = vadd.f32 %v1270_v14, %v1085_v18  ;;  %v7743_v14 = vld [vmem:[%s9035_s25 + $0x91] sm:$0xff]  ;;  %v7744_v6 = vld [vmem:[%s9035_s25 + $0x99] sm:$0xff] }
 0x1e4   : > { %1935 = vmatmul.bf16.gmra.mxu3 %v1834_v55 }
 0x1e6   : > { %v804_v38 = vpop.f32.mrf.mxu2 }
 0x1e7   : > { %v851_v59 = vadd.f32 %v804_v38, %v9334_v52  ;;  %v1039_v4 = vpop.f32.mrf.mxu3  ;;  %v2069_v52 = vpack.c.bf16 %v7824_v7, %v7823_v44  ;;  %v7665_v7 = vld [vmem:[%s9035_s25 + $0xa8] sm:$0xff] }
 0x1e8   : > { %v1275_v24 = vpop.f32.mrf.mxu0 }
 0x1e9   : > { %v1086_v16 = vadd.f32 %v1039_v4, %v851_v59  ;;  %v1835_v59 = vpack.c.bf16 %v7744_v6, %v7743_v14  ;;  %v7666_v14 = vld [vmem:[%s9035_s25 + $0xb0] sm:$0xff] }
 0x1ea   : > { %v9624_v21 = vpop.f32.mrf.mxu1 }
 0x1eb   : > { %v1320_v19 = vadd.f32 %v1273_v56, %v1086_v16 }
 0x1ed   : > { %v9630_v61 = vadd.f32 %v1507_v30, %v1320_v19 }
 0x1ee   : > { %v806_v25 = vpop.f32.mrf.mxu2 }
 0x1ef   : > { %v852_v55 = vadd.f32 %v806_v25, %v9340_v0  ;;  %v1041_v18 = vpop.f32.mrf.mxu3 }
 0x1f0   : > { %v1278_v38 = vpop.f32.mrf.mxu0 }
 0x1f1   : > { %v1087_v4 = vadd.f32 %v1041_v18, %v852_v55  ;;  %v7745_v55 = vld [vmem:[%s9035_s25 + $0xa9] sm:$0xff]  ;;  %v7746_v18 = vld [vmem:[%s9035_s25 + $0xb1] sm:$0xff] }
 0x1f2   : > { %v1512_v56 = vpop.f32.mrf.mxu1 }
 0x1f3   : > { %1706 = vmatmul.bf16.gmra.mxu2 %v1601_v42  ;;  %2174 = vmatmul.bf16.gmra.mxu0 %v2069_v52  ;;  %v9635_v30 = vadd.f32 %v1275_v24, %v1087_v4 }
 0x1f4   : > { %1940 = vmatmul.bf16.gmra.mxu3 %v1835_v59  ;;  %v1602_v59 = vpack.c.bf16 %v7666_v14, %v7665_v7 }
 0x1f6   : > { %v809_v16 = vpop.f32.mrf.mxu2 }
 0x1f7   : > { %v853_v19 = vadd.f32 %v809_v16, %v9352_v13  ;;  %v1044_v0 = vpop.f32.mrf.mxu3  ;;  %v1836_v13 = vpack.c.bf16 %v7746_v18, %v7745_v55  ;;  %v7667_v55 = vld [vmem:[%s9035_s25 + $0xc0] sm:$0xff]  ;;  %v7668_v18 = vld [vmem:[%s9035_s25 + $0xc8] sm:$0xff] }
 0x1f8   : > { %v1280_v25 = vpop.f32.mrf.mxu0 }
 0x1f9   : > { %v1088_v9 = vadd.f32 %v1044_v0, %v853_v19 }
 0x1fa   : > { %v9638_v26 = vpop.f32.mrf.mxu1 }
 0x1fb   : > { %12006 = vst [vmem:[#allocation7_spill] sm:$0xff] %v9638_v26  ;;  %v1322_v44 = vadd.f32 %v1278_v38, %v1088_v9  ;;  %v8685_v38 = vld [vmem:[%s11995_s2 + $0x48] sm:$0xff] }
 0x1fc   : > { %3464 = vmatpush.bf16.msra.mxu1 %v8685_v38 }
 0x1fd   : > { %v9642_v6 = vadd.f32 %v1512_v56, %v1322_v44 }
 0x1fe   : > { %v811_v42 = vpop.f32.mrf.mxu2 }
 0x1ff   : > { %v854_v24 = vadd.f32 %v811_v42, %v9361_v63  ;;  %v1046_v52 = vpop.f32.mrf.mxu3 }
 0x200   : > { %v1283_v4 = vpop.f32.mrf.mxu0 }
 0x201   : > { %v1089_v16 = vadd.f32 %v1046_v52, %v854_v24  ;;  %v7747_v52 = vld [vmem:[%s9035_s25 + $0xc1] sm:$0xff] }
 0x202   : > { %v1517_v19 = vpop.f32.mrf.mxu1 }
 0x203   : > { %1711 = vmatmul.bf16.gmra.mxu2 %v1602_v59  ;;  %2179 = vmatmul.bf16.gmra.mxu0 %v9375_v45  ;;  %v9651_v56 = vadd.f32 %v1280_v25, %v1089_v16  ;;  %v7748_v59 = vld [vmem:[%s9035_s25 + $0xc9] sm:$0xff]  ;;  %v1603_v16 = vpack.c.bf16 %v7668_v18, %v7667_v55  ;;  %v7669_v18 = vld [vmem:[%s9035_s25 + $0xd8] sm:$0xff] }
 0x204   : > { %1945 = vmatmul.bf16.gmra.mxu3 %v1836_v13  ;;  %v1837_v38 = vpack.c.bf16 %v7748_v59, %v7747_v52  ;;  %v8910_v52 = vmov 0  }
 0x205   : > { %v2450_v59 = vrot.slane %v8910_v52, 7 }
 0x206   : > { %v814_v63 = vpop.f32.mrf.mxu2 }
 0x207   : > { %v855_v0 = vadd.f32 %v814_v63, %v9367_v34  ;;  %v1049_v9 = vpop.f32.mrf.mxu3 }
 0x208   : > { %v1285_v44 = vpop.f32.mrf.mxu0 }
 0x209   : > { %v1090_v7 = vadd.f32 %v1049_v9, %v855_v0 }
 0x20a   : > { %v9656_v42 = vpop.f32.mrf.mxu1 }
 0x20b   : > { %v1324_v14 = vadd.f32 %v1283_v4, %v1090_v7  ;;  %12007 = vst [vmem:[#allocation8_spill] sm:$0xff] %v9656_v42  ;;  %v2620_v42 = vsel %vm9673_vm2, %v2450_v59, 0 }
 0x20d   : > { %v9658_v24 = vadd.f32 %v1517_v19, %v1324_v14 }
 0x20e   : > { %v816_v45 = vpop.f32.mrf.mxu2 }
 0x20f   : > { %12008 = vst [vmem:[#allocation9_spill] sm:$0xff] %v9658_v24  ;;  %v856_v25 = vadd.f32 %v816_v45, %v9373_v50  ;;  %v1051_v13 = vpop.f32.mrf.mxu3  ;;  %v7670_v45 = vld [vmem:[%s9035_s25 + $0xe0] sm:$0xff] }
 0x210   : > { %v1288_v34 = vpop.f32.mrf.mxu0 }
 0x211   : > { %v1091_v63 = vadd.f32 %v1051_v13, %v856_v25  ;;  %v7750_v25 = vld [vmem:[%s9035_s25 + $0xe1] sm:$0xff] }
 0x212   : > { %v1522_v0 = vpop.f32.mrf.mxu1 }
 0x213   : > { %1716 = vmatmul.bf16.gmra.mxu2 %v1603_v16  ;;  %2184 = vmatmul.bf16.gmra.mxu0 %v9399_v51  ;;  %v9664_v4 = vadd.f32 %v1285_v44, %v1091_v63  ;;  %v7749_v44 = vld [vmem:[%s9035_s25 + $0xd9] sm:$0xff]  ;;  %v1604_v63 = vpack.c.bf16 %v7670_v45, %v7669_v18 }
 0x214   : > { %1950 = vmatmul.bf16.gmra.mxu3 %v1837_v38 }
 0x215   : > { %12009 = vst [vmem:[#allocation10_spill] sm:$0xff] %v9664_v4 }
 0x216   : > { %v819_v19 = vpop.f32.mrf.mxu2 }
 0x217   : > { %v857_v9 = vadd.f32 %v819_v19, %v9388_v1  ;;  %v1054_v50 = vpop.f32.mrf.mxu3  ;;  %v2603_v1 = vsel %vm9673_vm2, 0, %v2450_v59 }
 0x218   : > { %v1290_v7 = vpop.f32.mrf.mxu0  ;;  %v2671_v19 = vunpack.c.l.b16 %v2603_v1 }
 0x219   : > { %v1092_v14 = vadd.f32 %v1054_v50, %v857_v9  ;;  %v2672_v9 = vunpack.c.h.b16 %v2603_v1 }
 0x21a   : > { %v2722_v52 = vpack.c.b16 %v2671_v19, %v2671_v19  ;;  %v7672_v19 = vld [vmem:[%s9035_s25 + $0xf8] sm:$0xff] }
 0x21b   : > { %v1326_v55 = vadd.f32 %v1288_v34, %v1092_v14  ;;  %v1838_v14 = vpack.c.bf16 %v7750_v25, %v7749_v44 }
 0x21c   : > { %2824 = vst [vmem:[#allocation2] sm:$0xf] %v2722_v52 }
 0x21d   : > { %v9669_v51 = vadd.f32 %v1522_v0, %v1326_v55  ;;  %v9680_v0 = vpop.f32.mrf.mxu1  ;;  %2875 = vst [vmem:[#allocation2 + $0xcc] sm:$0xf] %v2722_v52 }
 0x21e   : > { %v821_v16 = vpop.f32.mrf.mxu2  ;;  %12013 = vst [vmem:[#allocation12_spill] sm:$0xff] %v9680_v0 }
 0x21f   : > { %12010 = vst [vmem:[#allocation11_spill] sm:$0xff] %v9669_v51  ;;  %v858_v34 = vadd.f32 %v821_v16, %v9397_v15  ;;  %v1056_v38 = vpop.f32.mrf.mxu3  ;;  %v2723_v51 = vpack.c.b16 %v2672_v9, %v2672_v9  ;;  %v2673_v15 = vunpack.c.l.b16 %v2620_v42 }
 0x220   : > { %v1293_v50 = vpop.f32.mrf.mxu0 }
 0x221   : > { %v1093_v55 = vadd.f32 %v1056_v38, %v858_v34  ;;  %2825 = vst [vmem:[#allocation2 + $0x4] sm:$0xf] %v2723_v51  ;;  %v2724_v18 = vpack.c.b16 %v2673_v15, %v2673_v15 }
 0x222   : > { %2876 = vst [vmem:[#allocation2 + $0xd0] sm:$0xf] %v2723_v51 }
 0x223   : > { %1721 = vmatmul.bf16.gmra.mxu2 %v1604_v63  ;;  %2189 = vmatmul.bf16.gmra.mxu0 %v9415_v27  ;;  %v9685_v4 = vadd.f32 %v1290_v7, %v1093_v55  ;;  %2826 = vst [vmem:[#allocation2 + $0x8] sm:$0x1] %v2724_v18  ;;  %v2878_v7 = vld [vmem:[#allocation2] sm:$0xf]  ;;  %v7671_v63 = vld [vmem:[%s9035_s25 + $0xf0] sm:$0xff] }
 0x224   : > { %1955 = vmatmul.bf16.gmra.mxu3 %v1838_v14  ;;  %2877 = vst [vmem:[#allocation2 + $0xd4] sm:$0x1] %v2724_v18  ;;  %v2946_v34 = vshrl.u32 %v2878_v7, 16  ;;  %v2949_v38 = vshll.u32 %v2878_v7, 16 }
 0x225   : > { %12014 = vst [vmem:[#allocation13_spill] sm:$0xff] %v9685_v4  ;;  %v1527_v27 = vpop.f32.mrf.mxu1 }
 0x226   : > { %v824_v45 = vpop.f32.mrf.mxu2  ;;  %v2951_v55 = vrot.slane %v2949_v38, 5 }
 0x227   : > { %v859_v44 = vadd.f32 %v824_v45, %v9407_v22  ;;  %v1059_v25 = vpop.f32.mrf.mxu3  ;;  %v2948_v22 = vrot.slane %v2946_v34, 4 }
 0x228   : > { %v1295_v59 = vpop.f32.mrf.mxu0  ;;  %v9688_v42 = vld [vmem:[#allocation2 + $0x4] sm:$0xf] }
 0x229   : > { %v1094_v16 = vadd.f32 %v1059_v25, %v859_v44  ;;  %v2955_v9 = vshll.u32 %v9688_v42, 16  ;;  %v2959_v51 = vshrl.u32 %v9688_v42, 16  ;;  %v1605_v25 = vpack.c.bf16 %v7672_v19, %v7671_v63 }
 0x22a   : > { %v9696_v15 = vld [vmem:[#allocation2 + $0x8] sm:$0x1] }
 0x22b   : > { %v1328_v1 = vadd.f32 %v1293_v50, %v1094_v16  ;;  %v2957_v18 = vrot.slane %v2955_v9, 5  ;;  %v2961_v45 = vrot.slane %v2959_v51, 4  ;;  %v2952_v16 = vor.u32 %v2951_v55, %v2948_v22 }
 0x22c   : > { %v2965_v7 = vshll.u32 %v9696_v15, 16 }
 0x22d   : > { %v9694_v14 = vadd.f32 %v1527_v27, %v1328_v1  ;;  %v2962_v4 = vor.u32 %v2961_v45, %v2957_v18  ;;  %v2953_v27 = vrot.slane %v2952_v16, 4  ;;  %v7673_v45 = vld [vmem:[%s9035_s25 + $0x108] sm:$0xff] }
 0x22e   : > { %v826_v52 = vpop.f32.mrf.mxu2  ;;  %v2967_v63 = vrot.slane %v2965_v7, 5 }
 0x22f   : > { %12015 = vst [vmem:[#allocation14_spill] sm:$0xff] %v9694_v14  ;;  %v860_v50 = vadd.f32 %v826_v52, %v9413_v40  ;;  %v1061_v44 = vpop.f32.mrf.mxu3  ;;  %v2963_v1 = vrot.slane %v2962_v4, 4  ;;  %v8684_v40 = vld [vmem:[%s11995_s2 + $0x40] sm:$0xff]  ;;  %v2958_v4 = vsel %vm9706_vm5, %v2953_v27, %v2957_v18 }
 0x230   : > { %v2155_v0 = vpop.f32.mrf.mxu0  ;;  %3465 = vmatpush.bf16.msra.mxu1 %v8684_v40  ;;  %v9719_v18 = vld [vmem:[%s11996_s3] ss:$0 sm:$0xff] }
 0x231   : > { %v1095_v24 = vadd.f32 %v1061_v44, %v860_v50  ;;  %v7674_v50 = vld [vmem:[%s9035_s25 + $0x110] sm:$0xff] }
 0x232   : > { %v7753_v44 = vld [vmem:[%s9035_s25 + $0x109] sm:$0xff] }
 0x233   : > { %1726 = vmatmul.bf16.gmra.mxu2 %v1605_v25  ;;  %2194 = vmatmul.bf16.gmra.mxu0 %v9440_v60  ;;  %v9701_v34 = vadd.f32 %v1295_v59, %v1095_v24  ;;  %v2968_v60 = vsel %vm9706_vm5, %v2963_v1, %v2967_v63  ;;  %v3346_v24 = vunpack.c.l.b16 %v2958_v4  ;;  %v7754_v25 = vld [vmem:[%s9035_s25 + $0x111] sm:$0xff]  ;;  %v1606_v1 = vpack.c.bf16 %v7674_v50, %v7673_v45  ;;  %v7676_v45 = vld [vmem:[%s9035_s25 + $0x128] sm:$0xff] }
 0x234   : > { %1960 = vmatmul.bf16.gmra.mxu3 %v9438_v17  ;;  %v3347_v19 = vunpack.c.l.b16 %v2968_v60  ;;  %v1840_v63 = vpack.c.bf16 %v7754_v25, %v7753_v44  ;;  %v8683_v25 = vld [vmem:[%s11995_s2 + $0x38] sm:$0xff] }
 0x235   : > { %12016 = vst [vmem:[#allocation15_spill] sm:$0xff] %v9701_v34  ;;  %3691 = vmatpush.bf16.msrb.mxu2 %v8683_v25 }
 0x236   : > { %v1687_v59 = vpop.f32.mrf.mxu2  ;;  %v3378_v55 = vpack.c.b16 %v3347_v19, %v3346_v24 }
 0x237   : > { %v1767_v9 = vadd.f32 %v1687_v59, %v9430_v33  ;;  %v1921_v51 = vpop.f32.mrf.mxu3 }
 0x238   : > { %v2157_v22 = vpop.f32.mrf.mxu0  ;;  %3466 = vmatmul.bf16.vlgmr.msra.gmra.mxu1 %v3378_v55 }
 0x239   : > { %v2001_v52 = vadd.f32 %v1921_v51, %v1767_v9 }
 0x23b   : > { %v2235_v17 = vadd.f32 %v2155_v0, %v2001_v52 }
 0x23d   : > { %v2271_v7 = vadd.f32 %v9719_v18, %v2235_v17 }
 0x23e   : > { %v1689_v16 = vpop.f32.mrf.mxu2 }
 0x23f   : > { %v1768_v33 = vadd.f32 %v1689_v16, %v9449_v35  ;;  %v1923_v27 = vpop.f32.mrf.mxu3  ;;  %v2303_v4 = vmax.f32 %v2271_v7, 0.0  ;;  %v8699_v16 = vld [vmem:[%s11995_s2 + $0xb8] sm:$0xff]  ;;  %v7835_v7 = vld [vmem:[%s9035_s25 + $0x122] sm:$0xff] }
 0x240   : > { %v2160_v40 = vpop.f32.mrf.mxu0  ;;  %4072 = vmatpush.bf16.msrb.mxu3 %v8699_v16 }
 0x241   : > { %v2002_v0 = vadd.f32 %v1923_v27, %v1768_v33  ;;  %v2335_v19 = vpack.c.bf16 %v2303_v4, %v2303_v4  ;;  %v7836_v33 = vld [vmem:[%s9035_s25 + $0x12a] sm:$0xff] }
 0x243   : > { %v2236_v60 = vadd.f32 %v2157_v22, %v2002_v0  ;;  %1731 = vmatmul.bf16.gmra.mxu2 %v1606_v1  ;;  %2199 = vmatmul.bf16.gmra.mxu0 %v9461_v10  ;;  %v7675_v22 = vld [vmem:[%s9035_s25 + $0x120] sm:$0xff]  ;;  %v2399_v50 = vunpack.c.l.b16 %v2335_v19  ;;  %v2075_v19 = vpack.c.bf16 %v7836_v33, %v7835_v7 }
 0x244   : > { %1965 = vmatmul.bf16.gmra.mxu3 %v1840_v63  ;;  %v7755_v1 = vld [vmem:[%s9035_s25 + $0x121] sm:$0xff]  ;;  %v7756_v63 = vld [vmem:[%s9035_s25 + $0x129] sm:$0xff]  ;;  %v1607_v0 = vpack.c.bf16 %v7676_v45, %v7675_v22 }
 0x245   : > { %v2272_v24 = vadd.f32 %v9719_v18, %v2236_v60 }
 0x246   : > { %v1692_v59 = vpop.f32.mrf.mxu2 }
 0x247   : > { %v2304_v35 = vmax.f32 %v2272_v24, 0.0  ;;  %v1769_v9 = vadd.f32 %v1692_v59, %v9455_v47  ;;  %v1926_v51 = vpop.f32.mrf.mxu3  ;;  %v8723_v47 = vld [vmem:[%s11995_s2 + $0xf8] sm:$0xff] }
 0x248   : > { %v2162_v55 = vpop.f32.mrf.mxu0  ;;  %4387 = vmatpush.bf16.msrb.mxu0 %v8723_v47 }
 0x249   : > { %v2336_v52 = vpack.c.bf16 %v2304_v35, %v2304_v35  ;;  %v2003_v17 = vadd.f32 %v1926_v51, %v1769_v9  ;;  %v1841_v9 = vpack.c.bf16 %v7756_v63, %v7755_v1 }
 0x24b   : > { %v2400_v10 = vunpack.c.l.b16 %v2336_v52  ;;  %v2237_v44 = vadd.f32 %v2160_v40, %v2003_v17 }
 0x24d   : > { %v2431_v27 = vpack.c.b16 %v2400_v10, %v2399_v50  ;;  %v2273_v60 = vadd.f32 %v9719_v18, %v2237_v44 }
 0x24e   : > { %v1694_v40 = vpop.f32.mrf.mxu2 }
 0x24f   : > { %v2455_v4 = vshrl.u32 %v2431_v27, 16  ;;  %v1770_v24 = vadd.f32 %v1694_v40, %v9468_v23  ;;  %v1928_v59 = vpop.f32.mrf.mxu3  ;;  %v2458_v52 = vshll.u32 %v2431_v27, 16  ;;  %v2305_v25 = vmax.f32 %v2273_v60, 0.0 }
 0x250   : > { %v2165_v35 = vpop.f32.mrf.mxu0 }
 0x251   : > { %v2457_v51 = vrot.slane %v2455_v4, 7  ;;  %v2004_v17 = vadd.f32 %v1928_v59, %v1770_v24  ;;  %v2337_v27 = vpack.c.bf16 %v2305_v25, %v2305_v25 }
 0x253   : > { %v2460_v50 = vor.u32 %v2458_v52, %v2457_v51  ;;  %v2621_v10 = vsel %vm9673_vm2, %v2457_v51, 0  ;;  %v2238_v16 = vadd.f32 %v2162_v55, %v2004_v17  ;;  %1736 = vmatmul.bf16.gmra.mxu2 %v1607_v0  ;;  %2204 = vmatmul.bf16.gmra.mxu0 %v2075_v19  ;;  %v2401_v59 = vunpack.c.l.b16 %v2337_v27  ;;  %v7677_v51 = vld [vmem:[%s9035_s25 + $0x138] sm:$0xff]  ;;  %v7678_v52 = vld [vmem:[%s9035_s25 + $0x140] sm:$0xff] }
 0x254   : > { %v2676_v22 = vunpack.c.l.b16 %v2621_v10  ;;  %1970 = vmatmul.bf16.gmra.mxu3 %v1841_v9  ;;  %v7837_v17 = vld [vmem:[%s9035_s25 + $0x13a] sm:$0xff] }
 0x255   : > { %v2604_v23 = vsel %vm9673_vm2, 0, %v2460_v50  ;;  %v2274_v45 = vadd.f32 %v9719_v18, %v2238_v16  ;;  %v7838_v50 = vld [vmem:[%s9035_s25 + $0x142] sm:$0xff]  ;;  %v7757_v16 = vld [vmem:[%s9035_s25 + $0x139] sm:$0xff] }
 0x256   : > { %v2674_v44 = vunpack.c.l.b16 %v2604_v23  ;;  %v2675_v47 = vunpack.c.h.b16 %v2604_v23  ;;  %v2727_v7 = vpack.c.b16 %v2676_v22, %v2676_v22  ;;  %v1697_v33 = vpop.f32.mrf.mxu2  ;;  %v7758_v22 = vld [vmem:[%s9035_s25 + $0x141] sm:$0xff] }
 0x257   : > { %v2306_v1 = vmax.f32 %v2274_v45, 0.0  ;;  %v1771_v63 = vadd.f32 %v1697_v33, %v9478_v46  ;;  %v1931_v55 = vpop.f32.mrf.mxu3  ;;  %v8731_v46 = vld [vmem:[%s11995_s2 + $0x138] sm:$0xff]  ;;  %v1842_v27 = vpack.c.bf16 %v7758_v22, %v7757_v16 }
 0x258   : > { %v2725_v40 = vpack.c.b16 %v2674_v44, %v2674_v44  ;;  %v2726_v0 = vpack.c.b16 %v2675_v47, %v2675_v47  ;;  %2829 = vst [vmem:[#allocation2 + $0x14] sm:$0x1] %v2727_v7  ;;  %v2167_v4 = vpop.f32.mrf.mxu0  ;;  %5069 = vmatpush.bf16.msrb.mxu1 %v8731_v46  ;;  %v2076_v7 = vpack.c.bf16 %v7838_v50, %v7837_v17 }
 0x259   : > { %v2338_v60 = vpack.c.bf16 %v2306_v1, %v2306_v1  ;;  %v2005_v24 = vadd.f32 %v1931_v55, %v1771_v63 }
 0x25a   : > { %2827 = vst [vmem:[#allocation2 + $0xc] sm:$0xf] %v2725_v40 }
 0x25b   : > { %2828 = vst [vmem:[#allocation2 + $0x10] sm:$0xf] %v2726_v0  ;;  %v2402_v19 = vunpack.c.l.b16 %v2338_v60  ;;  %v2239_v9 = vadd.f32 %v2165_v35, %v2005_v24  ;;  %v1608_v35 = vpack.c.bf16 %v7678_v52, %v7677_v51 }
 0x25d   : > { %v2432_v10 = vpack.c.b16 %v2402_v19, %v2401_v59  ;;  %v2275_v25 = vadd.f32 %v9719_v18, %v2239_v9 }
 0x25e   : > { %v1699_v23 = vpop.f32.mrf.mxu2 }
 0x25f   : > { %v2462_v45 = vshrl.u32 %v2432_v10, 16  ;;  %v1772_v44 = vadd.f32 %v1699_v23, %v9490_v32  ;;  %v1933_v47 = vpop.f32.mrf.mxu3  ;;  %v9764_v1 = vld [vmem:[#allocation2 + $0x14] sm:$0x1]  ;;  %v2465_v55 = vshll.u32 %v2432_v10, 16  ;;  %v2307_v40 = vmax.f32 %v2275_v25, 0.0 }
 0x260   : > { %v2170_v33 = vpop.f32.mrf.mxu0  ;;  %v2989_v51 = vshll.u32 %v9764_v1, 16 }
 0x261   : > { %v2464_v63 = vrot.slane %v2462_v45, 7  ;;  %v2006_v0 = vadd.f32 %v1933_v47, %v1772_v44  ;;  %v2880_v60 = vld [vmem:[#allocation2 + $0xc] sm:$0xf]  ;;  %v2339_v16 = vpack.c.bf16 %v2307_v40, %v2307_v40 }
 0x262   : > { %v2881_v24 = vld [vmem:[#allocation2 + $0x10] sm:$0xf]  ;;  %v2970_v59 = vshrl.u32 %v2880_v60, 16  ;;  %v2973_v19 = vshll.u32 %v2880_v60, 16  ;;  %v3781_v60 = vld [vmem:[#allocation2 + $0xc] sm:$0xe] }
 0x263   : > { %v2467_v9 = vor.u32 %v2465_v55, %v2464_v63  ;;  %v2622_v32 = vsel %vm9673_vm2, %v2464_v63, 0  ;;  %v2240_v46 = vadd.f32 %v2167_v4, %v2006_v0  ;;  %1741 = vmatmul.bf16.gmra.mxu2 %v1608_v35  ;;  %2209 = vmatmul.bf16.gmra.mxu0 %v2076_v7  ;;  %v2979_v10 = vshll.u32 %v2881_v24, 16 }
 0x264   : > { %v2679_v52 = vunpack.c.l.b16 %v2622_v32  ;;  %1975 = vmatmul.bf16.gmra.mxu3 %v1842_v27  ;;  %v2972_v17 = vrot.slane %v2970_v59, 4  ;;  %v2975_v50 = vrot.slane %v2973_v19, 5  ;;  %v2983_v23 = vshrl.u32 %v2881_v24, 16 }
 0x265   : > { %v2605_v25 = vsel %vm9673_vm2, 0, %v2467_v9  ;;  %v2276_v22 = vadd.f32 %v9719_v18, %v2240_v46  ;;  %v2981_v27 = vrot.slane %v2979_v10, 5  ;;  %v8040_v10 = vrot.slane %v3781_v60, 9  ;;  %v7759_v60 = vld [vmem:[%s9035_s25 + $0x151] sm:$0xff] }
 0x266   : > { %v2677_v45 = vunpack.c.l.b16 %v2605_v25  ;;  %v2678_v44 = vunpack.c.h.b16 %v2605_v25  ;;  %v2730_v47 = vpack.c.b16 %v2679_v52, %v2679_v52  ;;  %v1702_v4 = vpop.f32.mrf.mxu2  ;;  %v2976_v35 = vor.u32 %v2975_v50, %v2972_v17  ;;  %v7679_v50 = vld [vmem:[%s9035_s25 + $0x150] sm:$0xff] }
 0x267   : > { %v2308_v7 = vmax.f32 %v2276_v22, 0.0  ;;  %v1773_v63 = vadd.f32 %v1702_v4, %v9496_v39  ;;  %v1936_v55 = vpop.f32.mrf.mxu3  ;;  %v2985_v0 = vrot.slane %v2983_v23, 4  ;;  %v2991_v17 = vrot.slane %v2989_v51, 5  ;;  %v8698_v4 = vld [vmem:[%s11995_s2 + $0xb0] sm:$0xff] }
 0x268   : > { %v2728_v59 = vpack.c.b16 %v2677_v45, %v2677_v45  ;;  %v2729_v19 = vpack.c.b16 %v2678_v44, %v2678_v44  ;;  %2832 = vst [vmem:[#allocation2 + $0x20] sm:$0x1] %v2730_v47  ;;  %v2172_v40 = vpop.f32.mrf.mxu0  ;;  %v2977_v9 = vrot.slane %v2976_v35, 4  ;;  %v3840_v25 = vrot.slane %v2881_v24, 5  ;;  %v8682_v47 = vld [vmem:[%s11995_s2 + $0x30] sm:$0xff]  ;;  %v7680_v35 = vld [vmem:[%s9035_s25 + $0x158] sm:$0xff]  ;;  %4073 = vmatpush.bf16.msrb.mxu3 %v8698_v4 }
 0x269   : > { %v2340_v32 = vpack.c.bf16 %v2308_v7, %v2308_v7  ;;  %v2007_v46 = vadd.f32 %v1936_v55, %v1773_v63  ;;  %v2986_v34 = vor.u32 %v2985_v0, %v2981_v27  ;;  %v2403_v22 = vunpack.c.l.b16 %v2339_v16  ;;  %v8722_v51 = vld [vmem:[%s11995_s2 + $0xf0] sm:$0xff]  ;;  %v7840_v7 = vld [vmem:[%s9035_s25 + $0x15a] sm:$0xff]  ;;  %3692 = vmatpush.bf16.msrb.mxu2 %v8682_v47 }
 0x26a   : > { %2830 = vst [vmem:[#allocation2 + $0x18] sm:$0xf] %v2728_v59  ;;  %v2982_v39 = vsel %vm9706_vm5, %v2977_v9, %v2981_v27  ;;  %v7839_v16 = vld [vmem:[%s9035_s25 + $0x152] sm:$0xff]  ;;  %v3843_v63 = vrot.slane %v9764_v1, 5  ;;  %4388 = vmatpush.bf16.msrb.mxu0 %v8722_v51 }
 0x26b   : > { %2831 = vst [vmem:[#allocation2 + $0x1c] sm:$0xf] %v2729_v19  ;;  %v2404_v23 = vunpack.c.l.b16 %v2340_v32  ;;  %v2241_v45 = vadd.f32 %v2170_v33, %v2007_v46  ;;  %v2987_v44 = vrot.slane %v2986_v34, 4  ;;  %v3348_v24 = vunpack.c.l.b16 %v2982_v39  ;;  %v7760_v59 = vld [vmem:[%s9035_s25 + $0x159] sm:$0xff] }
 0x26c   : > { %v3841_v33 = vsel %vm9775_vm8, %v8040_v10, %v3840_v25  ;;  %v3842_v34 = vrot.slane %v3840_v25, 4  ;;  %v1609_v10 = vpack.c.bf16 %v7680_v35, %v7679_v50  ;;  %v2077_v25 = vpack.c.bf16 %v7840_v7, %v7839_v16 }
 0x26d   : > { %v2433_v55 = vpack.c.b16 %v2404_v23, %v2403_v22  ;;  %v2277_v27 = vadd.f32 %v9719_v18, %v2241_v45  ;;  %v2992_v0 = vsel %vm9706_vm5, %v2987_v44, %v2991_v17  ;;  %v1843_v45 = vpack.c.bf16 %v7760_v59, %v7759_v60 }
 0x26e   : > { %v1704_v19 = vpop.f32.mrf.mxu2  ;;  %v3349_v9 = vunpack.c.l.b16 %v2992_v0  ;;  %v3844_v32 = vsel %vm9775_vm8, %v3842_v34, %v3843_v63  ;;  %v3962_v44 = vunpack.c.l.b16 %v3841_v33 }
 0x26f   : > { %v2469_v46 = vshrl.u32 %v2433_v55, 16  ;;  %v1774_v39 = vadd.f32 %v1704_v19, %v9505_v20  ;;  %v1938_v1 = vpop.f32.mrf.mxu3  ;;  %v9805_v17 = vld [vmem:[#allocation2 + $0x20] sm:$0x1]  ;;  %v3963_v47 = vunpack.c.l.b16 %v3844_v32  ;;  %v2472_v14 = vshll.u32 %v2433_v55, 16 }
 0x270   : > { %v3379_v22 = vpack.c.b16 %v3349_v9, %v3348_v24  ;;  %v2175_v23 = vpop.f32.mrf.mxu0  ;;  %v2309_v0 = vmax.f32 %v2277_v27, 0.0  ;;  %v3013_v16 = vshll.u32 %v9805_v17, 16 }
 0x271   : > { %v2471_v4 = vrot.slane %v2469_v46, 7  ;;  %v2008_v51 = vadd.f32 %v1938_v1, %v1774_v39  ;;  %v2882_v26 = vld [vmem:[#allocation2 + $0x18] sm:$0xf]  ;;  %v9809_v19 = vpack.c.b16 %v3963_v47, %v3962_v44 }
 0x272   : > { %3471 = vmatmul.bf16.gmra.mxu1 %v3379_v22  ;;  %v9807_v34 = vld [vmem:[#allocation2 + $0x1c] sm:$0xf]  ;;  %v2994_v63 = vshrl.u32 %v2882_v26, 16  ;;  %v2997_v20 = vshll.u32 %v2882_v26, 16  ;;  %v2341_v60 = vpack.c.bf16 %v2309_v0, %v2309_v0  ;;  %v3782_v44 = vld [vmem:[#allocation2 + $0x18] sm:$0xe] }
 0x273   : > { %v2474_v50 = vor.u32 %v2472_v14, %v2471_v4  ;;  %v2623_v24 = vsel %vm9673_vm2, %v2471_v4, 0  ;;  %v2242_v35 = vadd.f32 %v2172_v40, %v2008_v51  ;;  %1746 = vmatmul.bf16.gmra.mxu2 %v1609_v10  ;;  %2214 = vmatmul.bf16.gmra.mxu0 %v2077_v25  ;;  %v3003_v27 = vshll.u32 %v9807_v34, 16 }
 0x274   : > { %v2682_v7 = vunpack.c.l.b16 %v2623_v24  ;;  %1980 = vmatmul.bf16.gmra.mxu3 %v1843_v45  ;;  %v2996_v33 = vrot.slane %v2994_v63, 4  ;;  %v2999_v55 = vrot.slane %v2997_v20, 5  ;;  %v3007_v59 = vshrl.u32 %v9807_v34, 16 }
 0x275   : > { %v2606_v26 = vsel %vm9673_vm2, 0, %v2474_v50  ;;  %v2278_v14 = vadd.f32 %v9719_v18, %v2242_v35  ;;  %v3005_v22 = vrot.slane %v3003_v27, 5  ;;  %v3015_v24 = vrot.slane %v3013_v16, 5  ;;  %v7681_v35 = vld [vmem:[%s9035_s25 + $0x168] sm:$0xff] }
 0x276   : > { %v2680_v9 = vunpack.c.l.b16 %v2606_v26  ;;  %v2681_v40 = vunpack.c.h.b16 %v2606_v26  ;;  %v2733_v32 = vpack.c.b16 %v2682_v7, %v2682_v7  ;;  %v1707_v46 = vpop.f32.mrf.mxu2  ;;  %v3000_v39 = vor.u32 %v2999_v55, %v2996_v33 }
 0x277   : > { %v2310_v1 = vmax.f32 %v2278_v14, 0.0  ;;  %v1775_v10 = vadd.f32 %v1707_v46, %v9517_v62  ;;  %v1941_v25 = vpop.f32.mrf.mxu3  ;;  %v3009_v45 = vrot.slane %v3007_v59, 4  ;;  %v8041_v7 = vrot.slane %v3782_v44, 9  ;;  %v8730_v59 = vld [vmem:[%s11995_s2 + $0x130] sm:$0xff] }
 0x278   : > { %v2731_v47 = vpack.c.b16 %v2680_v9, %v2680_v9  ;;  %v2732_v4 = vpack.c.b16 %v2681_v40, %v2681_v40  ;;  %2835 = vst [vmem:[#allocation2 + $0x2c] sm:$0x1] %v2733_v32  ;;  %v9820_v0 = vpop.f32.mrf.mxu0  ;;  %v3001_v51 = vrot.slane %v3000_v39, 4  ;;  %v3847_v33 = vrot.slane %v9807_v34, 5  ;;  %v7682_v9 = vld [vmem:[%s9035_s25 + $0x170] sm:$0xff]  ;;  %5070 = vmatpush.bf16.msrb.mxu1 %v8730_v59 }
 0x279   : > { %v2342_v63 = vpack.c.bf16 %v2310_v1, %v2310_v1  ;;  %v2009_v20 = vadd.f32 %v1941_v25, %v1775_v10  ;;  %v3010_v50 = vor.u32 %v3009_v45, %v3005_v22  ;;  %v2405_v55 = vunpack.c.l.b16 %v2341_v60  ;;  %v7761_v40 = vld [vmem:[%s9035_s25 + $0x169] sm:$0xff]  ;;  %v7762_v46 = vld [vmem:[%s9035_s25 + $0x171] sm:$0xff] }
 0x27a   : > { %2833 = vst [vmem:[#allocation2 + $0x24] sm:$0xf] %v2731_v47  ;;  %v3006_v62 = vsel %vm9706_vm5, %v3001_v51, %v3005_v22  ;;  %v1541_v32 = vadd.f32 %v9511_v41, %v9528_v12  ;;  %v7841_v39 = vld [vmem:[%s9035_s25 + $0x16a] sm:$0xff]  ;;  %v7842_v1 = vld [vmem:[%s9035_s25 + $0x172] sm:$0xff]  ;;  %v3849_v10 = vrot.slane %v3847_v33, 4  ;;  %v3850_v34 = vrot.slane %v9805_v17, 5 }
 0x27b   : > { %2834 = vst [vmem:[#allocation2 + $0x28] sm:$0xf] %v2732_v4  ;;  %v2406_v27 = vunpack.c.l.b16 %v2342_v63  ;;  %v2243_v26 = vadd.f32 %v2175_v23, %v2009_v20  ;;  %v3011_v14 = vrot.slane %v3010_v50, 4  ;;  %v3350_v16 = vunpack.c.l.b16 %v3006_v62  ;;  %v8681_v22 = vld [vmem:[%s11995_s2 + $0x28] sm:$0xff] }
 0x27c   : > { %v8697_v41 = vld [vmem:[%s11995_s2 + $0xa8] sm:$0xff]  ;;  %v3848_v17 = vsel %vm9775_vm8, %v8041_v7, %v3847_v33  ;;  %v1610_v47 = vpack.c.bf16 %v7682_v9, %v7681_v35  ;;  %v3851_v4 = vsel %vm9775_vm8, %v3849_v10, %v3850_v34  ;;  %v1844_v50 = vpack.c.bf16 %v7762_v46, %v7761_v40  ;;  %3693 = vmatpush.bf16.msrb.mxu2 %v8681_v22  ;;  %v8680_v40 = vld [vmem:[%s11995_s2 + $0x20] sm:$0xff] }
 0x27d   : > { %v2434_v60 = vpack.c.b16 %v2406_v27, %v2405_v55  ;;  %v2279_v23 = vadd.f32 %v9719_v18, %v2243_v26  ;;  %v3016_v25 = vsel %vm9706_vm5, %v3011_v14, %v3015_v24  ;;  %v8721_v12 = vld [vmem:[%s11995_s2 + $0xe8] sm:$0xff]  ;;  %v2078_v62 = vpack.c.bf16 %v7842_v1, %v7841_v39  ;;  %4074 = vmatpush.bf16.msrb.mxu3 %v8697_v41  ;;  %v8720_v1 = vld [vmem:[%s11995_s2 + $0xe0] sm:$0xff] }
 0x27e   : > { %v1709_v45 = vpop.f32.mrf.mxu2  ;;  %v3351_v44 = vunpack.c.l.b16 %v3016_v25  ;;  %4389 = vmatpush.bf16.msrb.mxu0 %v8721_v12  ;;  %v3964_v7 = vunpack.c.l.b16 %v3848_v17  ;;  %v3965_v33 = vunpack.c.l.b16 %v3851_v4 }
 0x27f   : > { %v2476_v51 = vshrl.u32 %v2434_v60, 16  ;;  %v1776_v63 = vadd.f32 %v1709_v45, %v1541_v32  ;;  %v1943_v20 = vpop.f32.mrf.mxu3  ;;  %v2479_v24 = vshll.u32 %v2434_v60, 16  ;;  %v9855_v26 = vld [vmem:[#allocation2 + $0x2c] sm:$0x1]  ;;  %v2311_v14 = vmax.f32 %v2279_v23, 0.0  ;;  %v8696_v32 = vld [vmem:[%s11995_s2 + $0xa0] sm:$0xff] }
 0x280   : > { %v3380_v55 = vpack.c.b16 %v3351_v44, %v3350_v16  ;;  %v9853_v27 = vpop.f32.mrf.mxu0  ;;  %v9868_v10 = vpack.c.b16 %v3965_v33, %v3964_v7  ;;  %v3037_v25 = vshll.u32 %v9855_v26, 16  ;;  %3694 = vmatpush.bf16.msrb.mxu2 %v8680_v40 }
 0x281   : > { %v2478_v35 = vrot.slane %v2476_v51, 7  ;;  %v2010_v59 = vadd.f32 %v1943_v20, %v1776_v63  ;;  %v2884_v9 = vld [vmem:[#allocation2 + $0x24] sm:$0xf]  ;;  %v2343_v44 = vpack.c.bf16 %v2311_v14, %v2311_v14  ;;  %4075 = vmatpush.bf16.msrb.mxu3 %v8696_v32 }
 0x282   : > { %3476 = vmatmul.bf16.gmra.mxu1 %v3380_v55  ;;  %v9863_v16 = vld [vmem:[#allocation2 + $0x28] sm:$0xf]  ;;  %v3018_v46 = vshrl.u32 %v2884_v9, 16  ;;  %v3021_v39 = vshll.u32 %v2884_v9, 16  ;;  %4390 = vmatpush.bf16.msrb.mxu0 %v8720_v1  ;;  %v8719_v55 = vld [vmem:[%s11995_s2 + $0xd8] sm:$0xff] }
 0x283   : > { %v2481_v34 = vor.u32 %v2479_v24, %v2478_v35  ;;  %v2624_v60 = vsel %vm9673_vm2, %v2478_v35, 0  ;;  %v2244_v23 = vadd.f32 %v9820_v0, %v2010_v59  ;;  %1751 = vmatmul.bf16.gmra.mxu2 %v1610_v47  ;;  %2219 = vmatmul.bf16.gmra.mxu0 %v2078_v62  ;;  %v3027_v17 = vshll.u32 %v9863_v16, 16  ;;  %v8679_v0 = vld [vmem:[%s11995_s2 + $0x18] sm:$0xff] }
 0x284   : > { %v2685_v22 = vunpack.c.l.b16 %v2624_v60  ;;  %1985 = vmatmul.bf16.gmra.mxu3 %v1844_v50  ;;  %v3020_v41 = vrot.slane %v3018_v46, 4  ;;  %v3023_v12 = vrot.slane %v3021_v39, 5  ;;  %v3031_v51 = vshrl.u32 %v9863_v16, 16  ;;  %v8695_v47 = vld [vmem:[%s11995_s2 + $0x98] sm:$0xff]  ;;  %3695 = vmatpush.bf16.msrb.mxu2 %v8679_v0  ;;  %v3783_v39 = vld [vmem:[#allocation2 + $0x24] sm:$0xe] }
 0x285   : > { %v2607_v45 = vsel %vm9673_vm2, 0, %v2481_v34  ;;  %v2280_v4 = vadd.f32 %v9719_v18, %v2244_v23  ;;  %v3029_v14 = vrot.slane %v3027_v17, 5  ;;  %4076 = vmatpush.bf16.msrb.mxu3 %v8695_v47  ;;  %v8694_v23 = vld [vmem:[%s11995_s2 + $0x90] sm:$0xff]  ;;  %v7683_v47 = vld [vmem:[%s9035_s25 + $0x180] sm:$0xff] }
 0x286   : > { %v2683_v63 = vunpack.c.l.b16 %v2607_v45  ;;  %v2684_v20 = vunpack.c.h.b16 %v2607_v45  ;;  %v2736_v50 = vpack.c.b16 %v2685_v22, %v2685_v22  ;;  %v1712_v62 = vpop.f32.mrf.mxu2  ;;  %v3024_v24 = vor.u32 %v3023_v12, %v3020_v41  ;;  %4391 = vmatpush.bf16.msrb.mxu0 %v8719_v55  ;;  %v8718_v17 = vld [vmem:[%s11995_s2 + $0xd0] sm:$0xff] }
 0x287   : > { %v2312_v7 = vmax.f32 %v2280_v4, 0.0  ;;  %v1777_v33 = vadd.f32 %v1712_v62, %v9536_v57  ;;  %v1946_v35 = vpop.f32.mrf.mxu3  ;;  %v3033_v59 = vrot.slane %v3031_v51, 4  ;;  %v8678_v57 = vld [vmem:[%s11995_s2 + $0x10] sm:$0xff]  ;;  %v2407_v22 = vunpack.c.l.b16 %v2343_v44  ;;  %v7684_v44 = vld [vmem:[%s9035_s25 + $0x188] sm:$0xff] }
 0x288   : > { %v2734_v9 = vpack.c.b16 %v2683_v63, %v2683_v63  ;;  %v2735_v40 = vpack.c.b16 %v2684_v20, %v2684_v20  ;;  %2838 = vst [vmem:[#allocation2 + $0x38] sm:$0x1] %v2736_v50  ;;  %v9889_v32 = vpop.f32.mrf.mxu0  ;;  %v3025_v46 = vrot.slane %v3024_v24, 4  ;;  %v3039_v12 = vrot.slane %v3037_v25, 5  ;;  %v7763_v50 = vld [vmem:[%s9035_s25 + $0x181] sm:$0xff]  ;;  %v7844_v25 = vld [vmem:[%s9035_s25 + $0x18a] sm:$0xff]  ;;  %3696 = vmatpush.bf16.msrb.mxu2 %v8678_v57 }
 0x289   : > { %v2344_v1 = vpack.c.bf16 %v2312_v7, %v2312_v7  ;;  %v2011_v34 = vadd.f32 %v1946_v35, %v1777_v33  ;;  %v3034_v60 = vor.u32 %v3033_v59, %v3029_v14  ;;  %v3854_v45 = vrot.slane %v9863_v16, 5  ;;  %v7843_v62 = vld [vmem:[%s9035_s25 + $0x182] sm:$0xff]  ;;  %4077 = vmatpush.bf16.msrb.mxu3 %v8694_v23 }
 0x28a   : > { %2836 = vst [vmem:[#allocation2 + $0x30] sm:$0xf] %v2734_v9  ;;  %v3030_v41 = vsel %vm9706_vm5, %v3025_v46, %v3029_v14  ;;  %v8042_v63 = vrot.slane %v3783_v39, 9  ;;  %v3857_v55 = vrot.slane %v9855_v26, 5  ;;  %v1543_v16 = vadd.f32 %v9531_v5, %v9542_v48  ;;  %v7764_v35 = vld [vmem:[%s9035_s25 + $0x189] sm:$0xff]  ;;  %4392 = vmatpush.bf16.msrb.mxu0 %v8718_v17 }
 0x28b   : > { %2837 = vst [vmem:[#allocation2 + $0x34] sm:$0xf] %v2735_v40  ;;  %v2408_v4 = vunpack.c.l.b16 %v2344_v1  ;;  %v2245_v51 = vadd.f32 %v9853_v27, %v2011_v34  ;;  %v3035_v0 = vrot.slane %v3034_v60, 4  ;;  %v3352_v20 = vunpack.c.l.b16 %v3030_v41  ;;  %v8677_v14 = vld [vmem:[%s11995_s2 + $0x8] sm:$0xff]  ;;  %v9937_v17 = vld [vmem:[#allocation2] sm:$0xe] }
 0x28c   : > { %v3856_v24 = vrot.slane %v3854_v45, 4  ;;  %v8693_v59 = vld [vmem:[%s11995_s2 + $0x88] sm:$0xff]  ;;  %v1611_v40 = vpack.c.bf16 %v7684_v44, %v7683_v47  ;;  %v2079_v34 = vpack.c.bf16 %v7844_v25, %v7843_v62  ;;  %v9933_v57 = vsel %vm9775_vm8, %v8042_v63, %v3854_v45  ;;  %3697 = vmatpush.bf16.msrb.mxu2 %v8677_v14  ;;  %v8676_v45 = vld [vmem:[%s11995_s2] sm:$0xff] }
 0x28d   : > { %v2435_v7 = vpack.c.b16 %v2408_v4, %v2407_v22  ;;  %v2281_v33 = vadd.f32 %v9719_v18, %v2245_v51  ;;  %v3040_v27 = vsel %vm9706_vm5, %v3035_v0, %v3039_v12  ;;  %v8717_v5 = vld [vmem:[%s11995_s2 + $0xc8] sm:$0xff]  ;;  %v1845_v12 = vpack.c.bf16 %v7764_v35, %v7763_v50  ;;  %4078 = vmatpush.bf16.msrb.mxu3 %v8693_v59  ;;  %v8692_v63 = vld [vmem:[%s11995_s2 + $0x80] sm:$0xff] }
 0x28e   : > { %v1714_v26 = vpop.f32.mrf.mxu2  ;;  %v3353_v9 = vunpack.c.l.b16 %v3040_v27  ;;  %v9927_v48 = vsel %vm9775_vm8, %v3856_v24, %v3857_v55  ;;  %v3833_v4 = vrot.slane %v9688_v42, 5  ;;  %v9942_v51 = vadd.f32 %v9545_v36, %v9559_v43  ;;  %4393 = vmatpush.bf16.msrb.mxu0 %v8717_v5  ;;  %v8716_v43 = vld [vmem:[%s11995_s2 + $0xc0] sm:$0xff] }
 0x28f   : > { %v2483_v46 = vshrl.u32 %v2435_v7, 16  ;;  %v1778_v39 = vadd.f32 %v1714_v26, %v1543_v16  ;;  %v1948_v1 = vpop.f32.mrf.mxu3  ;;  %v9929_v60 = vld [vmem:[#allocation2 + $0x38] sm:$0x1]  ;;  %v2486_v23 = vshll.u32 %v2435_v7, 16  ;;  %v2313_v47 = vmax.f32 %v2281_v33, 0.0 }
 0x290   : > { %v3381_v22 = vpack.c.b16 %v3353_v9, %v3352_v20  ;;  %v9935_v41 = vpop.f32.mrf.mxu0  ;;  %v3061_v36 = vshll.u32 %v9929_v60, 16  ;;  %v3966_v24 = vunpack.c.l.b16 %v9933_v57  ;;  %v8039_v33 = vrot.slane %v9937_v17, 9  ;;  %3698 = vmatpush.bf16.msrb.mxu2 %v8676_v45 }
 0x291   : > { %v2485_v0 = vrot.slane %v2483_v46, 7  ;;  %v2012_v44 = vadd.f32 %v1948_v1, %v1778_v39  ;;  %v2886_v62 = vld [vmem:[#allocation2 + $0x30] sm:$0xf]  ;;  %v2345_v9 = vpack.c.bf16 %v2313_v47, %v2313_v47  ;;  %4079 = vmatpush.bf16.msrb.mxu3 %v8692_v63  ;;  %v3835_v63 = vrot.slane %v3833_v4, 4 }
 0x292   : > { %3481 = vmatmul.bf16.gmra.mxu1 %v3381_v22  ;;  %v9950_v20 = vld [vmem:[#allocation2 + $0x34] sm:$0xf]  ;;  %v3042_v50 = vshrl.u32 %v2886_v62, 16  ;;  %v3045_v25 = vshll.u32 %v2886_v62, 16  ;;  %4394 = vmatpush.bf16.msrb.mxu0 %v8716_v43 }
 0x293   : > { %v2488_v55 = vor.u32 %v2486_v23, %v2485_v0  ;;  %v2625_v16 = vsel %vm9673_vm2, %v2485_v0, 0  ;;  %v2246_v7 = vadd.f32 %v9889_v32, %v2012_v44  ;;  %1756 = vmatmul.bf16.gmra.mxu2 %v1611_v40  ;;  %2224 = vmatmul.bf16.gmra.mxu0 %v2079_v34  ;;  %v3051_v59 = vshll.u32 %v9950_v20, 16 }
 0x294   : > { %v2688_v27 = vunpack.c.l.b16 %v2625_v16  ;;  %1990 = vmatmul.bf16.gmra.mxu3 %v1845_v12  ;;  %v3044_v35 = vrot.slane %v3042_v50, 4  ;;  %v3047_v14 = vrot.slane %v3045_v25, 5  ;;  %v3055_v46 = vshrl.u32 %v9950_v20, 16  ;;  %v3784_v50 = vld [vmem:[#allocation2 + $0x30] sm:$0xe]  ;;  %v7685_v16 = vld [vmem:[%s9035_s25 + $0x198] sm:$0xff] }
 0x295   : > { %v2608_v26 = vsel %vm9673_vm2, 0, %v2488_v55  ;;  %v2282_v5 = vadd.f32 %v9719_v18, %v2246_v7  ;;  %v3053_v12 = vrot.slane %v3051_v59, 5  ;;  %v3063_v55 = vrot.slane %v3061_v36, 5  ;;  %v7686_v7 = vld [vmem:[%s9035_s25 + $0x1a0] sm:$0xff] }
 0x296   : > { %v2686_v32 = vunpack.c.l.b16 %v2608_v26  ;;  %v2687_v40 = vunpack.c.h.b16 %v2608_v26  ;;  %v2739_v39 = vpack.c.b16 %v2688_v27, %v2688_v27  ;;  %v1717_v1 = vpop.f32.mrf.mxu2  ;;  %v3048_v34 = vor.u32 %v3047_v14, %v3044_v35  ;;  %v7765_v14 = vld [vmem:[%s9035_s25 + $0x199] sm:$0xff]  ;;  %v7766_v59 = vld [vmem:[%s9035_s25 + $0x1a1] sm:$0xff] }
 0x297   : > { %v2314_v57 = vmax.f32 %v2282_v5, 0.0  ;;  %v1779_v23 = vadd.f32 %v1717_v1, %v9550_v54  ;;  %v1951_v22 = vpop.f32.mrf.mxu3  ;;  %v3057_v0 = vrot.slane %v3055_v46, 4  ;;  %v2409_v27 = vunpack.c.l.b16 %v2345_v9  ;;  %v7845_v26 = vld [vmem:[%s9035_s25 + $0x19a] sm:$0xff]  ;;  %v7846_v9 = vld [vmem:[%s9035_s25 + $0x1a2] sm:$0xff] }
 0x298   : > { %v2737_v47 = vpack.c.b16 %v2686_v32, %v2686_v32  ;;  %v2738_v44 = vpack.c.b16 %v2687_v40, %v2687_v40  ;;  %2841 = vst [vmem:[#allocation2 + $0x44] sm:$0x1] %v2739_v39  ;;  %v9967_v62 = vpop.f32.mrf.mxu0  ;;  %v3049_v45 = vrot.slane %v3048_v34, 4  ;;  %v3967_v5 = vunpack.c.l.b16 %v9927_v48  ;;  %v8729_v39 = vld [vmem:[%s11995_s2 + $0x128] sm:$0xff] }
 0x299   : > { %v2346_v25 = vpack.c.bf16 %v2314_v57, %v2314_v57  ;;  %v2013_v43 = vadd.f32 %v1951_v22, %v1779_v23  ;;  %v3058_v54 = vor.u32 %v3057_v0, %v3053_v12  ;;  %v3861_v46 = vrot.slane %v9950_v20, 5  ;;  %5071 = vmatpush.bf16.msrb.mxu1 %v8729_v39 }
 0x29a   : > { %2839 = vst [vmem:[#allocation2 + $0x3c] sm:$0xf] %v2737_v47  ;;  %v3054_v35 = vsel %vm9706_vm5, %v3049_v45, %v3053_v12  ;;  %v8043_v1 = vrot.slane %v3784_v50, 9  ;;  %v3836_v57 = vrot.slane %v9696_v15, 5  ;;  %v9986_v23 = vpack.c.b16 %v3967_v5, %v3966_v24 }
 0x29b   : > { %2840 = vst [vmem:[#allocation2 + $0x40] sm:$0xf] %v2738_v44  ;;  %v2410_v32 = vunpack.c.l.b16 %v2346_v25  ;;  %v2247_v40 = vadd.f32 %v9935_v41, %v2013_v43  ;;  %v3059_v36 = vrot.slane %v3058_v54, 4  ;;  %v3354_v34 = vunpack.c.l.b16 %v3054_v35 }
 0x29c   : > { %v3863_v22 = vrot.slane %v3861_v46, 4  ;;  %v1612_v41 = vpack.c.bf16 %v7686_v7, %v7685_v16  ;;  %v1846_v44 = vpack.c.bf16 %v7766_v59, %v7765_v14  ;;  %v2080_v45 = vpack.c.bf16 %v7846_v9, %v7845_v26 }
 0x29d   : > { %v2436_v48 = vpack.c.b16 %v2410_v32, %v2409_v27  ;;  %v2283_v20 = vadd.f32 %v9719_v18, %v2247_v40  ;;  %v3064_v12 = vsel %vm9706_vm5, %v3059_v36, %v3063_v55  ;;  %v3864_v50 = vrot.slane %v9929_v60, 5 }
 0x29e   : > { %v1719_v0 = vpop.f32.mrf.mxu2  ;;  %v3355_v47 = vunpack.c.l.b16 %v3064_v12  ;;  %v3862_v27 = vsel %vm9775_vm8, %v8043_v1, %v3861_v46  ;;  %v10003_v16 = vsel %vm9775_vm8, %v8039_v33, %v3833_v4  ;;  %v10007_v60 = vsel %vm9775_vm8, %v3835_v63, %v3836_v57 }
 0x29f   : > { %v2490_v25 = vshrl.u32 %v2436_v48, 16  ;;  %v2315_v43 = vmax.f32 %v2283_v20, 0.0  ;;  %v1780_v15 = vadd.f32 %v1719_v0, %v9942_v51  ;;  %v1953_v24 = vpop.f32.mrf.mxu3  ;;  %v9993_v54 = vld [vmem:[#allocation2 + $0x44] sm:$0x1]  ;;  %v3865_v51 = vsel %vm9775_vm8, %v3863_v22, %v3864_v50 }
 0x2a0   : > { %v3382_v35 = vpack.c.b16 %v3355_v47, %v3354_v34  ;;  %v2190_v55 = vpop.f32.mrf.mxu0  ;;  %v2493_v14 = vshll.u32 %v2436_v48, 16  ;;  %v3969_v5 = vunpack.c.l.b16 %v3865_v51  ;;  %v3085_v32 = vshll.u32 %v9993_v54, 16 }
 0x2a1   : > { %v2492_v7 = vrot.slane %v2490_v25, 7  ;;  %v2014_v59 = vadd.f32 %v1953_v24, %v1780_v15  ;;  %v2888_v26 = vld [vmem:[#allocation2 + $0x3c] sm:$0xf]  ;;  %v3968_v4 = vunpack.c.l.b16 %v3862_v27  ;;  %v2347_v40 = vpack.c.bf16 %v2315_v43, %v2315_v43 }
 0x2a2   : > { %3486 = vmatmul.bf16.gmra.mxu1 %v3382_v35  ;;  %v2889_v42 = vld [vmem:[#allocation2 + $0x40] sm:$0xf]  ;;  %v3066_v46 = vshrl.u32 %v2888_v26, 16  ;;  %v3069_v17 = vshll.u32 %v2888_v26, 16  ;;  %v3785_v12 = vld [vmem:[#allocation2 + $0x3c] sm:$0xe] }
 0x2a3   : > { %v2495_v33 = vor.u32 %v2493_v14, %v2492_v7  ;;  %v2626_v63 = vsel %vm9673_vm2, %v2492_v7, 0  ;;  %v2248_v36 = vadd.f32 %v9967_v62, %v2014_v59  ;;  %1761 = vmatmul.bf16.gmra.mxu2 %v1612_v41  ;;  %2229 = vmatmul.bf16.gmra.mxu0 %v2080_v45  ;;  %v3075_v34 = vshll.u32 %v2889_v42, 16 }
 0x2a4   : > { %v2691_v39 = vunpack.c.l.b16 %v2626_v63  ;;  %1995 = vmatmul.bf16.gmra.mxu3 %v1846_v44  ;;  %v3068_v9 = vrot.slane %v3066_v46, 4  ;;  %v3071_v1 = vrot.slane %v3069_v17, 5  ;;  %v3079_v48 = vshrl.u32 %v2889_v42, 16 }
 0x2a5   : > { %v2609_v57 = vsel %vm9673_vm2, 0, %v2495_v33  ;;  %v2284_v22 = vadd.f32 %v9719_v18, %v2248_v36  ;;  %v10018_v20 = vpack.c.b16 %v3969_v5, %v3968_v4  ;;  %v3077_v43 = vrot.slane %v3075_v34, 5 }
 0x2a6   : > { %v2689_v0 = vunpack.c.l.b16 %v2609_v57  ;;  %v2690_v47 = vunpack.c.h.b16 %v2609_v57  ;;  %v2742_v50 = vpack.c.b16 %v2691_v39, %v2691_v39  ;;  %v1722_v62 = vpop.f32.mrf.mxu2  ;;  %v3072_v41 = vor.u32 %v3071_v1, %v3068_v9 }
 0x2a7   : > { %v2316_v45 = vmax.f32 %v2284_v22, 0.0  ;;  %v1781_v44 = vadd.f32 %v1722_v62, %v9568_v3  ;;  %v1956_v25 = vpop.f32.mrf.mxu3  ;;  %v3081_v15 = vrot.slane %v3079_v48, 4  ;;  %v8044_v51 = vrot.slane %v3785_v12, 9  ;;  %v8660_v12 = vld [vmem:[#allocation2] sm:$0xff] }
 0x2a8   : > { %v2740_v24 = vpack.c.b16 %v2689_v0, %v2689_v0  ;;  %v2741_v27 = vpack.c.b16 %v2690_v47, %v2690_v47  ;;  %2844 = vst [vmem:[#allocation2 + $0x50] sm:$0x1] %v2742_v50  ;;  %v2192_v35 = vpop.f32.mrf.mxu0  ;;  %v3073_v18 = vrot.slane %v3072_v41, 4  ;;  %v3868_v26 = vrot.slane %v2889_v42, 5 }
 0x2a9   : > { %v2348_v7 = vpack.c.bf16 %v2316_v45, %v2316_v45  ;;  %v2015_v14 = vadd.f32 %v1956_v25, %v1781_v44  ;;  %v3082_v59 = vor.u32 %v3081_v15, %v3077_v43  ;;  %v1547_v5 = vadd.f32 %v9562_v49, %v9573_v37  ;;  %v10031_v49 = vld [vmem:[%s11996_s3] ss:$0 sm:$0xff]  ;;  %v8700_v15 = vld [vmem:[#allocation2 + $0xc] sm:$0xff] }
 0x2aa   : > { %2842 = vst [vmem:[#allocation2 + $0x48] sm:$0xf] %v2740_v24  ;;  %v3078_v3 = vsel %vm9706_vm5, %v3073_v18, %v3077_v43  ;;  %v3087_v46 = vrot.slane %v3085_v32, 5  ;;  %v3960_v17 = vunpack.c.l.b16 %v10003_v16  ;;  %v2411_v4 = vunpack.c.l.b16 %v2347_v40 }
 0x2ab   : > { %2843 = vst [vmem:[#allocation2 + $0x4c] sm:$0xf] %v2741_v27  ;;  %v2412_v33 = vunpack.c.l.b16 %v2348_v7  ;;  %v2249_v63 = vadd.f32 %v2190_v55, %v2015_v14  ;;  %v3083_v36 = vrot.slane %v3082_v59, 4  ;;  %v3356_v39 = vunpack.c.l.b16 %v3078_v3 }
 0x2ac   : > { %v3961_v9 = vunpack.c.l.b16 %v10007_v60  ;;  %v3870_v1 = vrot.slane %v3868_v26, 4  ;;  %v3871_v42 = vrot.slane %v9993_v54, 5  ;;  %v3869_v55 = vsel %vm9775_vm8, %v8044_v51, %v3868_v26 }
 0x2ad   : > { %v2437_v34 = vpack.c.b16 %v2412_v33, %v2411_v4  ;;  %v2285_v37 = vadd.f32 %v10031_v49, %v2249_v63  ;;  %v3088_v16 = vsel %vm9706_vm5, %v3083_v36, %v3087_v46  ;;  %v3970_v41 = vunpack.c.l.b16 %v3869_v55 }
 0x2ae   : > { %v1724_v32 = vpop.f32.mrf.mxu2  ;;  %v3357_v40 = vunpack.c.l.b16 %v3088_v16  ;;  %v3872_v60 = vsel %vm9775_vm8, %v3870_v1, %v3871_v42  ;;  %v3992_v62 = vpack.c.b16 %v3961_v9, %v3960_v17 }
 0x2af   : > { %v2497_v54 = vshrl.u32 %v2437_v34, 16  ;;  %v2317_v57 = vmax.f32 %v2285_v37, 0.0  ;;  %v1782_v22 = vadd.f32 %v1724_v32, %v1547_v5  ;;  %v1958_v48 = vpop.f32.mrf.mxu3  ;;  %v10040_v0 = vld [vmem:[#allocation2 + $0x50] sm:$0x1]  ;;  %v3971_v45 = vunpack.c.l.b16 %v3872_v60 }
 0x2b0   : > { %v3383_v47 = vpack.c.b16 %v3357_v40, %v3356_v39  ;;  %v2195_v50 = vpop.f32.mrf.mxu0  ;;  %v2500_v25 = vshll.u32 %v2437_v34, 16  ;;  %v3109_v27 = vshll.u32 %v10040_v0, 16 }
 0x2b1   : > { %v2499_v44 = vrot.slane %v2497_v54, 7  ;;  %v2016_v43 = vadd.f32 %v1958_v48, %v1782_v22  ;;  %v2890_v24 = vld [vmem:[#allocation2 + $0x48] sm:$0xf]  ;;  %v10043_v14 = vpack.c.b16 %v3971_v45, %v3970_v41  ;;  %v2349_v3 = vpack.c.bf16 %v2317_v57, %v2317_v57 }
 0x2b2   : > { %3491 = vmatmul.bf16.gmra.mxu1 %v3383_v47  ;;  %v2891_v18 = vld [vmem:[#allocation2 + $0x4c] sm:$0xf]  ;;  %v3090_v51 = vshrl.u32 %v2890_v24, 16  ;;  %v3093_v7 = vshll.u32 %v2890_v24, 16  ;;  %v3786_v59 = vld [vmem:[#allocation2 + $0x48] sm:$0xe] }
 0x2b3   : > { %v2502_v26 = vor.u32 %v2500_v25, %v2499_v44  ;;  %v2627_v5 = vsel %vm9673_vm2, %v2499_v44, 0  ;;  %v2250_v46 = vadd.f32 %v2192_v35, %v2016_v43  ;;  %3699 = vmatmul.bf16.vlgmr.msrb.gmra.mxu2 %v8660_v12  ;;  %4395 = vmatmul.bf16.vlgmr.msrb.gmra.mxu0 %v8700_v15  ;;  %v3099_v63 = vshll.u32 %v2891_v18, 16 }
 0x2b4   : > { %v2694_v17 = vunpack.c.l.b16 %v2627_v5  ;;  %4080 = vmatmul.bf16.vlgmr.msrb.gmra.mxu3 %v3992_v62  ;;  %v3092_v4 = vrot.slane %v3090_v51, 4  ;;  %v3095_v33 = vrot.slane %v3093_v7, 5  ;;  %v3103_v9 = vshrl.u32 %v2891_v18, 16 }
 0x2b5   : > { %v2610_v36 = vsel %vm9673_vm2, 0, %v2502_v26  ;;  %v2286_v39 = vadd.f32 %v10031_v49, %v2250_v46  ;;  %v8045_v1 = vrot.slane %v3786_v59, 9  ;;  %v3101_v60 = vrot.slane %v3099_v63, 5 }
 0x2b6   : > { %v2692_v42 = vunpack.c.l.b16 %v2610_v36  ;;  %v2693_v34 = vunpack.c.h.b16 %v2610_v36  ;;  %v2745_v37 = vpack.c.b16 %v2694_v17, %v2694_v17  ;;  %v1727_v16 = vpop.f32.mrf.mxu2  ;;  %v3096_v55 = vor.u32 %v3095_v33, %v3092_v4 }
 0x2b7   : > { %v2318_v35 = vmax.f32 %v2286_v39, 0.0  ;;  %v1783_v32 = vadd.f32 %v1727_v16, %v9582_v2  ;;  %v1961_v40 = vpop.f32.mrf.mxu3  ;;  %v3105_v54 = vrot.slane %v3103_v9, 4  ;;  %v3875_v47 = vrot.slane %v2891_v18, 5  ;;  %v8728_v18 = vld [vmem:[%s11995_s2 + $0x120] sm:$0xff] }
 0x2b8   : > { %v2743_v57 = vpack.c.b16 %v2692_v42, %v2692_v42  ;;  %v2744_v22 = vpack.c.b16 %v2693_v34, %v2693_v34  ;;  %2847 = vst [vmem:[#allocation2 + $0x5c] sm:$0x1] %v2745_v37  ;;  %v2197_v48 = vpop.f32.mrf.mxu0  ;;  %v3097_v12 = vrot.slane %v3096_v55, 4  ;;  %v3878_v44 = vrot.slane %v10040_v0, 5  ;;  %5072 = vmatpush.bf16.msrb.mxu1 %v8728_v18  ;;  %v8661_v42 = vld [vmem:[#allocation2 + $0xc] sm:$0xff] }
 0x2b9   : > { %v2350_v62 = vpack.c.bf16 %v2318_v35, %v2318_v35  ;;  %v2017_v41 = vadd.f32 %v1961_v40, %v1783_v32  ;;  %v3106_v45 = vor.u32 %v3105_v54, %v3101_v60  ;;  %v2413_v25 = vunpack.c.l.b16 %v2349_v3  ;;  %v8701_v35 = vld [vmem:[#allocation2 + $0x18] sm:$0xff] }
 0x2ba   : > { %2845 = vst [vmem:[#allocation2 + $0x54] sm:$0xf] %v2743_v57  ;;  %v3102_v43 = vsel %vm9706_vm5, %v3097_v12, %v3101_v60  ;;  %v3111_v2 = vrot.slane %v3109_v27, 5  ;;  %v3877_v15 = vrot.slane %v3875_v47, 4  ;;  %v3876_v59 = vsel %vm9775_vm8, %v8045_v1, %v3875_v47 }
 0x2bb   : > { %2846 = vst [vmem:[#allocation2 + $0x58] sm:$0xf] %v2744_v22  ;;  %v2414_v24 = vunpack.c.l.b16 %v2350_v62  ;;  %v2251_v51 = vadd.f32 %v2195_v50, %v2017_v41  ;;  %v3107_v7 = vrot.slane %v3106_v45, 4  ;;  %v1549_v0 = vadd.f32 %v9576_v8, %v9590_v11 }
 0x2bc   : > { %v3358_v26 = vunpack.c.l.b16 %v3102_v43  ;;  %v3879_v5 = vsel %vm9775_vm8, %v3877_v15, %v3878_v44  ;;  %v3972_v33 = vunpack.c.l.b16 %v3876_v59 }
 0x2bd   : > { %v2438_v27 = vpack.c.b16 %v2414_v24, %v2413_v25  ;;  %v2287_v3 = vadd.f32 %v10031_v49, %v2251_v51  ;;  %v3112_v50 = vsel %vm9706_vm5, %v3107_v7, %v3111_v2  ;;  %v3973_v46 = vunpack.c.l.b16 %v3879_v5 }
 0x2be   : > { %v1729_v17 = vpop.f32.mrf.mxu2  ;;  %v3359_v4 = vunpack.c.l.b16 %v3112_v50 }
 0x2bf   : > { %v2504_v63 = vshrl.u32 %v2438_v27, 16  ;;  %v2319_v36 = vmax.f32 %v2287_v3, 0.0  ;;  %v1784_v39 = vadd.f32 %v1729_v17, %v1549_v0  ;;  %v1963_v9 = vpop.f32.mrf.mxu3  ;;  %v10066_v8 = vld [vmem:[#allocation2 + $0x5c] sm:$0x1]  ;;  %v10068_v34 = vpack.c.b16 %v3973_v46, %v3972_v33 }
 0x2c0   : > { %v3384_v11 = vpack.c.b16 %v3359_v4, %v3358_v26  ;;  %v2200_v1 = vpop.f32.mrf.mxu0  ;;  %v2507_v16 = vshll.u32 %v2438_v27, 16  ;;  %v3133_v40 = vshll.u32 %v10066_v8, 16 }
 0x2c1   : > { %v2506_v37 = vrot.slane %v2504_v63, 7  ;;  %v2018_v55 = vadd.f32 %v1963_v9, %v1784_v39  ;;  %v2892_v32 = vld [vmem:[#allocation2 + $0x54] sm:$0xf]  ;;  %v2351_v62 = vpack.c.bf16 %v2319_v36, %v2319_v36  ;;  %v3885_v9 = vrot.slane %v10066_v8, 5 }
 0x2c2   : > { %3496 = vmatmul.bf16.gmra.mxu1 %v3384_v11  ;;  %v2893_v60 = vld [vmem:[#allocation2 + $0x58] sm:$0xf]  ;;  %v3114_v54 = vshrl.u32 %v2892_v32, 16  ;;  %v3117_v57 = vshll.u32 %v2892_v32, 16  ;;  %v3787_v22 = vld [vmem:[#allocation2 + $0x54] sm:$0xe] }
 0x2c3   : > { %v2509_v12 = vor.u32 %v2507_v16, %v2506_v37  ;;  %v2628_v47 = vsel %vm9673_vm2, %v2506_v37, 0  ;;  %v2252_v41 = vadd.f32 %v2197_v48, %v2018_v55  ;;  %3704 = vmatmul.bf16.gmra.mxu2 %v8661_v42  ;;  %4400 = vmatmul.bf16.gmra.mxu0 %v8701_v35  ;;  %v3123_v43 = vshll.u32 %v2893_v60, 16 }
 0x2c4   : > { %v2697_v45 = vunpack.c.l.b16 %v2628_v47  ;;  %4085 = vmatmul.bf16.gmra.mxu3 %v9809_v19  ;;  %v3116_v44 = vrot.slane %v3114_v54, 4  ;;  %v3119_v25 = vrot.slane %v3117_v57, 5  ;;  %v3127_v24 = vshrl.u32 %v2893_v60, 16 }
 0x2c5   : > { %v2611_v2 = vsel %vm9673_vm2, 0, %v2509_v12  ;;  %v2288_v15 = vadd.f32 %v10031_v49, %v2252_v41  ;;  %v8046_v51 = vrot.slane %v3787_v22, 9  ;;  %v3125_v19 = vrot.slane %v3123_v43, 5 }
 0x2c6   : > { %v2695_v7 = vunpack.c.l.b16 %v2611_v2  ;;  %v2696_v18 = vunpack.c.h.b16 %v2611_v2  ;;  %v2748_v59 = vpack.c.b16 %v2697_v45, %v2697_v45  ;;  %v1732_v0 = vpop.f32.mrf.mxu2  ;;  %v3120_v48 = vor.u32 %v3119_v25, %v3116_v44 }
 0x2c7   : > { %v2320_v26 = vmax.f32 %v2288_v15, 0.0  ;;  %v1785_v5 = vadd.f32 %v1732_v0, %v9599_v28  ;;  %v1966_v27 = vpop.f32.mrf.mxu3  ;;  %v3129_v3 = vrot.slane %v3127_v24, 4  ;;  %v3882_v33 = vrot.slane %v2893_v60, 5  ;;  %v12021_v60 = vld [vmem:[#allocation6_spill] sm:$0xff]  ;;  %v8702_v0 = vld [vmem:[#allocation2 + $0x24] sm:$0xff] }
 0x2c8   : > { %v2746_v50 = vpack.c.b16 %v2695_v7, %v2695_v7  ;;  %v2747_v46 = vpack.c.b16 %v2696_v18, %v2696_v18  ;;  %2850 = vst [vmem:[#allocation2 + $0x68] sm:$0x1] %v2748_v59  ;;  %v2202_v17 = vpop.f32.mrf.mxu0  ;;  %v3121_v4 = vrot.slane %v3120_v48, 4  ;;  %v2415_v11 = vunpack.c.l.b16 %v2351_v62  ;;  %v8662_v24 = vld [vmem:[#allocation2 + $0x18] sm:$0xff] }
 0x2c9   : > { %v2352_v63 = vpack.c.bf16 %v2320_v26, %v2320_v26  ;;  %v2019_v36 = vadd.f32 %v1966_v27, %v1785_v5  ;;  %v3130_v39 = vor.u32 %v3129_v3, %v3125_v19  ;;  %v3135_v28 = vrot.slane %v3133_v40, 5 }
 0x2ca   : > { %2848 = vst [vmem:[#allocation2 + $0x60] sm:$0xf] %v2746_v50  ;;  %v3126_v42 = vsel %vm9706_vm5, %v3121_v4, %v3125_v19  ;;  %v3884_v37 = vrot.slane %v3882_v33, 4  ;;  %v3883_v32 = vsel %vm9775_vm8, %v8046_v51, %v3882_v33  ;;  %v1551_v54 = vadd.f32 %v12021_v60, %v9604_v58 }
 0x2cb   : > { %2849 = vst [vmem:[#allocation2 + $0x64] sm:$0xf] %v2747_v46  ;;  %v2416_v16 = vunpack.c.l.b16 %v2352_v63  ;;  %v2253_v55 = vadd.f32 %v2200_v1, %v2019_v36  ;;  %v3131_v35 = vrot.slane %v3130_v39, 4  ;;  %v3360_v57 = vunpack.c.l.b16 %v3126_v42 }
 0x2cc   : > { %v3886_v8 = vsel %vm9775_vm8, %v3884_v37, %v3885_v9  ;;  %v3974_v41 = vunpack.c.l.b16 %v3883_v32 }
 0x2cd   : > { %v2439_v22 = vpack.c.b16 %v2416_v16, %v2415_v11  ;;  %v2289_v12 = vadd.f32 %v10031_v49, %v2253_v55  ;;  %v3136_v40 = vsel %vm9706_vm5, %v3131_v35, %v3135_v28  ;;  %v3975_v47 = vunpack.c.l.b16 %v3886_v8  ;;  %v10098_v11 = vpop.f32.mrf.mxu1 }
 0x2ce   : > { %v1734_v62 = vpop.f32.mrf.mxu2  ;;  %v3361_v1 = vunpack.c.l.b16 %v3136_v40 }
 0x2cf   : > { %v2511_v45 = vshrl.u32 %v2439_v22, 16  ;;  %v2321_v44 = vmax.f32 %v2289_v12, 0.0  ;;  %v1786_v25 = vadd.f32 %v1734_v62, %v1551_v54  ;;  %v1968_v43 = vpop.f32.mrf.mxu3  ;;  %v10090_v2 = vld [vmem:[#allocation2 + $0x68] sm:$0x1]  ;;  %v10092_v51 = vpack.c.b16 %v3975_v47, %v3974_v41 }
 0x2d0   : > { %v3385_v58 = vpack.c.b16 %v3361_v1, %v3360_v57  ;;  %v2205_v15 = vpop.f32.mrf.mxu0  ;;  %v2514_v18 = vshll.u32 %v2439_v22, 16  ;;  %v3157_v26 = vshll.u32 %v10090_v2, 16 }
 0x2d1   : > { %v2513_v7 = vrot.slane %v2511_v45, 7  ;;  %v2020_v59 = vadd.f32 %v1968_v43, %v1786_v25  ;;  %v2894_v48 = vld [vmem:[#allocation2 + $0x60] sm:$0xf]  ;;  %v2353_v4 = vpack.c.bf16 %v2321_v44, %v2321_v44  ;;  %v3892_v25 = vrot.slane %v10090_v2, 5 }
 0x2d2   : > { %3501 = vmatmul.bf16.gmra.mxu1 %v3385_v58  ;;  %v2895_v5 = vld [vmem:[#allocation2 + $0x64] sm:$0xf]  ;;  %v3138_v27 = vshrl.u32 %v2894_v48, 16  ;;  %v3141_v19 = vshll.u32 %v2894_v48, 16  ;;  %v3788_v3 = vld [vmem:[#allocation2 + $0x60] sm:$0xe]  ;;  %v1553_v2 = vadd.f32 %v9607_v29, %v9621_v31 }
 0x2d3   : > { %v2516_v50 = vor.u32 %v2514_v18, %v2513_v7  ;;  %v2629_v46 = vsel %vm9673_vm2, %v2513_v7, 0  ;;  %v2254_v33 = vadd.f32 %v2202_v17, %v2020_v59  ;;  %3709 = vmatmul.bf16.gmra.mxu2 %v8662_v24  ;;  %4405 = vmatmul.bf16.gmra.mxu0 %v8702_v0  ;;  %v3147_v9 = vshll.u32 %v2895_v5, 16  ;;  %v8727_v0 = vld [vmem:[%s11995_s2 + $0x118] sm:$0xff] }
 0x2d4   : > { %v2700_v63 = vunpack.c.l.b16 %v2629_v46  ;;  %4090 = vmatmul.bf16.gmra.mxu3 %v9868_v10  ;;  %v3140_v36 = vrot.slane %v3138_v27, 4  ;;  %v3143_v39 = vrot.slane %v3141_v19, 5  ;;  %v3151_v37 = vshrl.u32 %v2895_v5, 16  ;;  %5073 = vmatpush.bf16.msrb.mxu1 %v8727_v0 }
 0x2d5   : > { %v2612_v42 = vsel %vm9673_vm2, 0, %v2516_v50  ;;  %v2290_v28 = vadd.f32 %v10031_v49, %v2254_v33  ;;  %v8047_v16 = vrot.slane %v3788_v3, 9  ;;  %v3149_v8 = vrot.slane %v3147_v9, 5  ;;  %v10116_v19 = vpop.f32.mrf.mxu1 }
 0x2d6   : > { %v2698_v55 = vunpack.c.l.b16 %v2612_v42  ;;  %v2699_v35 = vunpack.c.h.b16 %v2612_v42  ;;  %v2751_v17 = vpack.c.b16 %v2700_v63, %v2700_v63  ;;  %v1737_v32 = vpop.f32.mrf.mxu2  ;;  %v3144_v60 = vor.u32 %v3143_v39, %v3140_v36 }
 0x2d7   : > { %v2322_v54 = vmax.f32 %v2290_v28, 0.0  ;;  %v1787_v10 = vadd.f32 %v1737_v32, %v9613_v53  ;;  %v1971_v57 = vpop.f32.mrf.mxu3  ;;  %v3153_v22 = vrot.slane %v3151_v37, 4  ;;  %v3889_v1 = vrot.slane %v2895_v5, 5  ;;  %v8663_v28 = vld [vmem:[#allocation2 + $0x24] sm:$0xff] }
 0x2d8   : > { %v2749_v12 = vpack.c.b16 %v2698_v55, %v2698_v55  ;;  %v2750_v40 = vpack.c.b16 %v2699_v35, %v2699_v35  ;;  %2853 = vst [vmem:[#allocation2 + $0x74] sm:$0x1] %v2751_v17  ;;  %v2207_v47 = vpop.f32.mrf.mxu0  ;;  %v3145_v62 = vrot.slane %v3144_v60, 4  ;;  %v2417_v43 = vunpack.c.l.b16 %v2353_v4  ;;  %v8703_v17 = vld [vmem:[#allocation2 + $0x30] sm:$0xff] }
 0x2d9   : > { %v2354_v41 = vpack.c.bf16 %v2322_v54, %v2322_v54  ;;  %v2021_v45 = vadd.f32 %v1971_v57, %v1787_v10  ;;  %v3154_v44 = vor.u32 %v3153_v22, %v3149_v8  ;;  %v3159_v53 = vrot.slane %v3157_v26, 5 }
 0x2da   : > { %2851 = vst [vmem:[#allocation2 + $0x6c] sm:$0xf] %v2749_v12  ;;  %v3150_v58 = vsel %vm9706_vm5, %v3145_v62, %v3149_v8  ;;  %v3891_v24 = vrot.slane %v3889_v1, 4  ;;  %v3890_v48 = vsel %vm9775_vm8, %v8047_v16, %v3889_v1 }
 0x2db   : > { %2852 = vst [vmem:[#allocation2 + $0x70] sm:$0xf] %v2750_v40  ;;  %v2418_v7 = vunpack.c.l.b16 %v2354_v41  ;;  %v2255_v18 = vadd.f32 %v2205_v15, %v2021_v45  ;;  %v3155_v59 = vrot.slane %v3154_v44, 4  ;;  %v3362_v5 = vunpack.c.l.b16 %v3150_v58 }
 0x2dc   : > { %v3893_v27 = vsel %vm9775_vm8, %v3891_v24, %v3892_v25  ;;  %v3976_v33 = vunpack.c.l.b16 %v3890_v48 }
 0x2dd   : > { %v2440_v26 = vpack.c.b16 %v2418_v7, %v2417_v43  ;;  %v2291_v15 = vadd.f32 %v10031_v49, %v2255_v18  ;;  %v3160_v3 = vsel %vm9706_vm5, %v3155_v59, %v3159_v53  ;;  %v3977_v50 = vunpack.c.l.b16 %v3893_v27  ;;  %v10132_v0 = vpop.f32.mrf.mxu1 }
 0x2de   : > { %v1739_v46 = vpop.f32.mrf.mxu2  ;;  %v3363_v4 = vunpack.c.l.b16 %v3160_v3 }
 0x2df   : > { %v2518_v63 = vshrl.u32 %v2440_v26, 16  ;;  %v2323_v36 = vmax.f32 %v2291_v15, 0.0  ;;  %v1788_v29 = vadd.f32 %v1739_v46, %v1553_v2  ;;  %v1973_v31 = vpop.f32.mrf.mxu3  ;;  %v10121_v39 = vld [vmem:[#allocation2 + $0x74] sm:$0x1]  ;;  %v10123_v37 = vpack.c.b16 %v3977_v50, %v3976_v33 }
 0x2e0   : > { %v3386_v9 = vpack.c.b16 %v3363_v4, %v3362_v5  ;;  %v2210_v42 = vpop.f32.mrf.mxu0  ;;  %v2521_v55 = vshll.u32 %v2440_v26, 16  ;;  %v3181_v60 = vshll.u32 %v10121_v39, 16 }
 0x2e1   : > { %v2520_v16 = vrot.slane %v2518_v63, 7  ;;  %v2022_v35 = vadd.f32 %v1973_v31, %v1788_v29  ;;  %v2896_v32 = vld [vmem:[#allocation2 + $0x6c] sm:$0xf]  ;;  %v2355_v40 = vpack.c.bf16 %v2323_v36, %v2323_v36  ;;  %v3899_v36 = vrot.slane %v10121_v39, 5 }
 0x2e2   : > { %3506 = vmatmul.bf16.gmra.mxu1 %v3386_v9  ;;  %v2897_v54 = vld [vmem:[#allocation2 + $0x70] sm:$0xf]  ;;  %v3162_v10 = vshrl.u32 %v2896_v32, 16  ;;  %v3165_v57 = vshll.u32 %v2896_v32, 16  ;;  %v3789_v8 = vld [vmem:[#allocation2 + $0x6c] sm:$0xe] }
 0x2e3   : > { %v2523_v22 = vor.u32 %v2521_v55, %v2520_v16  ;;  %v2630_v12 = vsel %vm9673_vm2, %v2520_v16, 0  ;;  %v2256_v62 = vadd.f32 %v2207_v47, %v2022_v35  ;;  %3714 = vmatmul.bf16.gmra.mxu2 %v8663_v28  ;;  %4410 = vmatmul.bf16.gmra.mxu0 %v8703_v17  ;;  %v3171_v44 = vshll.u32 %v2897_v54, 16 }
 0x2e4   : > { %v2703_v1 = vunpack.c.l.b16 %v2630_v12  ;;  %4095 = vmatmul.bf16.gmra.mxu3 %v9986_v23  ;;  %v3164_v41 = vrot.slane %v3162_v10, 4  ;;  %v3167_v45 = vrot.slane %v3165_v57, 5  ;;  %v3175_v58 = vshrl.u32 %v2897_v54, 16 }
 0x2e5   : > { %v2613_v25 = vsel %vm9673_vm2, 0, %v2523_v22  ;;  %v2292_v43 = vadd.f32 %v10031_v49, %v2256_v62  ;;  %v8048_v53 = vrot.slane %v3789_v8, 9  ;;  %v3173_v5 = vrot.slane %v3171_v44, 5  ;;  %v8664_v44 = vld [vmem:[#allocation2 + $0x30] sm:$0xff] }
 0x2e6   : > { %v2701_v24 = vunpack.c.l.b16 %v2613_v25  ;;  %v2702_v7 = vunpack.c.h.b16 %v2613_v25  ;;  %v2754_v18 = vpack.c.b16 %v2703_v1, %v2703_v1  ;;  %v1742_v59 = vpop.f32.mrf.mxu2  ;;  %v3168_v47 = vor.u32 %v3167_v45, %v3164_v41 }
 0x2e7   : > { %v2324_v48 = vmax.f32 %v2292_v43, 0.0  ;;  %v1789_v23 = vadd.f32 %v1742_v59, %v9630_v61  ;;  %v1976_v2 = vpop.f32.mrf.mxu3  ;;  %v3177_v27 = vrot.slane %v3175_v58, 4  ;;  %v3896_v46 = vrot.slane %v2897_v54, 5 }
 0x2e8   : > { %v2752_v26 = vpack.c.b16 %v2701_v24, %v2701_v24  ;;  %v2753_v15 = vpack.c.b16 %v2702_v7, %v2702_v7  ;;  %2856 = vst [vmem:[#allocation2 + $0x80] sm:$0x1] %v2754_v18  ;;  %v2212_v3 = vpop.f32.mrf.mxu0  ;;  %v3169_v50 = vrot.slane %v3168_v47, 4  ;;  %v2419_v29 = vunpack.c.l.b16 %v2355_v40  ;;  %v8704_v24 = vld [vmem:[#allocation2 + $0x3c] sm:$0xff] }
 0x2e9   : > { %v2356_v4 = vpack.c.bf16 %v2324_v48, %v2324_v48  ;;  %v2023_v33 = vadd.f32 %v1976_v2, %v1789_v23  ;;  %v3178_v63 = vor.u32 %v3177_v27, %v3173_v5  ;;  %v3183_v61 = vrot.slane %v3181_v60, 5 }
 0x2ea   : > { %2854 = vst [vmem:[#allocation2 + $0x78] sm:$0xf] %v2752_v26  ;;  %v3174_v31 = vsel %vm9706_vm5, %v3169_v50, %v3173_v5  ;;  %v3898_v9 = vrot.slane %v3896_v46, 4  ;;  %v3897_v35 = vsel %vm9775_vm8, %v8048_v53, %v3896_v46  ;;  %v1555_v17 = vadd.f32 %v9624_v21, %v9635_v30 }
 0x2eb   : > { %2855 = vst [vmem:[#allocation2 + $0x7c] sm:$0xf] %v2753_v15  ;;  %v2420_v28 = vunpack.c.l.b16 %v2356_v4  ;;  %v2257_v16 = vadd.f32 %v2210_v42, %v2023_v33  ;;  %v3179_v55 = vrot.slane %v3178_v63, 4  ;;  %v3364_v32 = vunpack.c.l.b16 %v3174_v31 }
 0x2ec   : > { %v3900_v39 = vsel %vm9775_vm8, %v3898_v9, %v3899_v36  ;;  %v3978_v22 = vunpack.c.l.b16 %v3897_v35 }
 0x2ed   : > { %v2441_v54 = vpack.c.b16 %v2420_v28, %v2419_v29  ;;  %v2293_v10 = vadd.f32 %v10031_v49, %v2257_v16  ;;  %v3184_v60 = vsel %vm9706_vm5, %v3179_v55, %v3183_v61  ;;  %v3979_v57 = vunpack.c.l.b16 %v3900_v39 }
 0x2ee   : > { %v1744_v8 = vpop.f32.mrf.mxu2  ;;  %v3365_v42 = vunpack.c.l.b16 %v3184_v60 }
 0x2ef   : > { %v2525_v12 = vshrl.u32 %v2441_v54, 16  ;;  %v2325_v40 = vmax.f32 %v2293_v10, 0.0  ;;  %v10147_v62 = vpop.f32.mrf.mxu1  ;;  %v1790_v1 = vadd.f32 %v1744_v8, %v1555_v17  ;;  %v1978_v21 = vpop.f32.mrf.mxu3  ;;  %v10149_v30 = vld [vmem:[#allocation2 + $0x80] sm:$0x1]  ;;  %v10151_v25 = vpack.c.b16 %v3979_v57, %v3978_v22 }
 0x2f0   : > { %v3387_v41 = vpack.c.b16 %v3365_v42, %v3364_v32  ;;  %v2215_v45 = vpop.f32.mrf.mxu0  ;;  %v2528_v58 = vshll.u32 %v2441_v54, 16  ;;  %v3205_v18 = vshll.u32 %v10149_v30, 16 }
 0x2f1   : > { %v2527_v43 = vrot.slane %v2525_v12, 7  ;;  %v2024_v53 = vadd.f32 %v1978_v21, %v1790_v1  ;;  %v2898_v7 = vld [vmem:[#allocation2 + $0x78] sm:$0xf]  ;;  %v2357_v27 = vpack.c.bf16 %v2325_v40, %v2325_v40  ;;  %v3906_v12 = vrot.slane %v10149_v30, 5  ;;  %v12022_v30 = vld [vmem:[#allocation7_spill] sm:$0xff] }
 0x2f2   : > { %3511 = vmatmul.bf16.gmra.mxu1 %v3387_v41  ;;  %v2899_v59 = vld [vmem:[#allocation2 + $0x7c] sm:$0xf]  ;;  %v3186_v47 = vshrl.u32 %v2898_v7, 16  ;;  %v3189_v48 = vshll.u32 %v2898_v7, 16  ;;  %v3790_v23 = vld [vmem:[#allocation2 + $0x78] sm:$0xe] }
 0x2f3   : > { %v2530_v2 = vor.u32 %v2528_v58, %v2527_v43  ;;  %v2631_v5 = vsel %vm9673_vm2, %v2527_v43, 0  ;;  %v2258_v26 = vadd.f32 %v2212_v3, %v2024_v53  ;;  %3719 = vmatmul.bf16.gmra.mxu2 %v8664_v44  ;;  %4415 = vmatmul.bf16.gmra.mxu0 %v8704_v24  ;;  %v3195_v4 = vshll.u32 %v2899_v59, 16  ;;  %v8726_v58 = vld [vmem:[%s11995_s2 + $0x110] sm:$0xff] }
 0x2f4   : > { %v2706_v15 = vunpack.c.l.b16 %v2631_v5  ;;  %4100 = vmatmul.bf16.gmra.mxu3 %v10018_v20  ;;  %v3188_v50 = vrot.slane %v3186_v47, 4  ;;  %v3191_v46 = vrot.slane %v3189_v48, 5  ;;  %v3199_v36 = vshrl.u32 %v2899_v59, 16  ;;  %5074 = vmatpush.bf16.msrb.mxu1 %v8726_v58 }
 0x2f5   : > { %v2614_v33 = vsel %vm9673_vm2, 0, %v2530_v2  ;;  %v2294_v63 = vadd.f32 %v10031_v49, %v2258_v26  ;;  %v8049_v29 = vrot.slane %v3790_v23, 9  ;;  %v3197_v17 = vrot.slane %v3195_v4, 5  ;;  %v8665_v4 = vld [vmem:[#allocation2 + $0x3c] sm:$0xff] }
 0x2f6   : > { %v2704_v31 = vunpack.c.l.b16 %v2614_v33  ;;  %v2705_v61 = vunpack.c.h.b16 %v2614_v33  ;;  %v2757_v9 = vpack.c.b16 %v2706_v15, %v2706_v15  ;;  %v1747_v28 = vpop.f32.mrf.mxu2  ;;  %v3192_v3 = vor.u32 %v3191_v46, %v3188_v50 }
 0x2f7   : > { %v2326_v16 = vmax.f32 %v2294_v63, 0.0  ;;  %v10160_v55 = vpop.f32.mrf.mxu1  ;;  %v1791_v20 = vadd.f32 %v1747_v28, %v9642_v6  ;;  %v1981_v35 = vpop.f32.mrf.mxu3  ;;  %v3201_v32 = vrot.slane %v3199_v36, 4  ;;  %v3903_v57 = vrot.slane %v2899_v59, 5 }
 0x2f8   : > { %v2755_v39 = vpack.c.b16 %v2704_v31, %v2704_v31  ;;  %v2756_v54 = vpack.c.b16 %v2705_v61, %v2705_v61  ;;  %2859 = vst [vmem:[#allocation2 + $0x8c] sm:$0x1] %v2757_v9  ;;  %v2217_v10 = vpop.f32.mrf.mxu0  ;;  %v3193_v60 = vrot.slane %v3192_v3, 4  ;;  %v2421_v40 = vunpack.c.l.b16 %v2357_v27  ;;  %v8705_v9 = vld [vmem:[#allocation2 + $0x48] sm:$0xff] }
 0x2f9   : > { %v2358_v8 = vpack.c.bf16 %v2326_v16, %v2326_v16  ;;  %v2025_v42 = vadd.f32 %v1981_v35, %v1791_v20  ;;  %v3202_v22 = vor.u32 %v3201_v32, %v3197_v17  ;;  %v3207_v6 = vrot.slane %v3205_v18, 5 }
 0x2fa   : > { %2857 = vst [vmem:[#allocation2 + $0x84] sm:$0xf] %v2755_v39  ;;  %v3198_v1 = vsel %vm9706_vm5, %v3193_v60, %v3197_v17  ;;  %v3905_v21 = vrot.slane %v3903_v57, 4  ;;  %v3904_v53 = vsel %vm9775_vm8, %v8049_v29, %v3903_v57  ;;  %v1557_v24 = vadd.f32 %v12022_v30, %v9651_v56 }
 0x2fb   : > { %2858 = vst [vmem:[#allocation2 + $0x88] sm:$0xf] %v2756_v54  ;;  %v2422_v41 = vunpack.c.l.b16 %v2358_v8  ;;  %v2259_v44 = vadd.f32 %v2215_v45, %v2025_v42  ;;  %v3203_v43 = vrot.slane %v3202_v22, 4  ;;  %v3366_v7 = vunpack.c.l.b16 %v3198_v1 }
 0x2fc   : > { %v3907_v59 = vsel %vm9775_vm8, %v3905_v21, %v3906_v12  ;;  %v3980_v5 = vunpack.c.l.b16 %v3904_v53 }
 0x2fd   : > { %v2442_v18 = vpack.c.b16 %v2422_v41, %v2421_v40  ;;  %v2295_v47 = vadd.f32 %v10031_v49, %v2259_v44  ;;  %v3208_v45 = vsel %vm9706_vm5, %v3203_v43, %v3207_v6  ;;  %v3981_v48 = vunpack.c.l.b16 %v3907_v59 }
 0x2fe   : > { %v1749_v23 = vpop.f32.mrf.mxu2  ;;  %v3367_v2 = vunpack.c.l.b16 %v3208_v45 }
 0x2ff   : > { %v2532_v27 = vshrl.u32 %v2442_v18, 16  ;;  %v10178_v26 = vpop.f32.mrf.mxu1  ;;  %v1792_v15 = vadd.f32 %v1749_v23, %v1557_v24  ;;  %v1983_v56 = vpop.f32.mrf.mxu3  ;;  %v10180_v33 = vld [vmem:[#allocation2 + $0x8c] sm:$0x1]  ;;  %v10182_v63 = vpack.c.b16 %v3981_v48, %v3980_v5  ;;  %v2535_v29 = vshll.u32 %v2442_v18, 16 }
 0x300   : > { %v3388_v50 = vpack.c.b16 %v3367_v2, %v3366_v7  ;;  %v2220_v46 = vpop.f32.mrf.mxu0  ;;  %v2327_v31 = vmax.f32 %v2295_v47, 0.0  ;;  %v3229_v39 = vshll.u32 %v10180_v33, 16 }
 0x301   : > { %v2534_v36 = vrot.slane %v2532_v27, 7  ;;  %v2026_v61 = vadd.f32 %v1983_v56, %v1792_v15  ;;  %v2900_v28 = vld [vmem:[#allocation2 + $0x84] sm:$0xf] }
 0x302   : > { %3516 = vmatmul.bf16.gmra.mxu1 %v3388_v50  ;;  %v10184_v3 = vld [vmem:[#allocation2 + $0x88] sm:$0xf]  ;;  %v3210_v16 = vshrl.u32 %v2900_v28, 16  ;;  %v3213_v20 = vshll.u32 %v2900_v28, 16  ;;  %v2359_v22 = vpack.c.bf16 %v2327_v31, %v2327_v31  ;;  %v3231_v5 = vrot.slane %v3229_v39, 5 }
 0x303   : > { %v2537_v35 = vor.u32 %v2535_v29, %v2534_v36  ;;  %v2632_v17 = vsel %vm9673_vm2, %v2534_v36, 0  ;;  %v2260_v32 = vadd.f32 %v2217_v10, %v2026_v61  ;;  %3724 = vmatmul.bf16.gmra.mxu2 %v8665_v4  ;;  %4420 = vmatmul.bf16.gmra.mxu0 %v8705_v9  ;;  %v3219_v8 = vshll.u32 %v10184_v3, 16  ;;  %v12024_v36 = vld [vmem:[#allocation10_spill] sm:$0xff]  ;;  %v12025_v29 = vld [vmem:[#allocation8_spill] sm:$0xff] }
 0x304   : > { %v2709_v54 = vunpack.c.l.b16 %v2632_v17  ;;  %4105 = vmatmul.bf16.gmra.mxu3 %v10043_v14  ;;  %v3212_v60 = vrot.slane %v3210_v16, 4  ;;  %v3215_v57 = vrot.slane %v3213_v20, 5  ;;  %v3223_v40 = vshrl.u32 %v10184_v3, 16  ;;  %v12023_v14 = vld [vmem:[#allocation9_spill] sm:$0xff] }
 0x305   : > { %v2615_v42 = vsel %vm9673_vm2, 0, %v2537_v35  ;;  %v2296_v12 = vadd.f32 %v10031_v49, %v2260_v32  ;;  %v3221_v30 = vrot.slane %v3219_v8, 5  ;;  %v2423_v27 = vunpack.c.l.b16 %v2359_v22 }
 0x306   : > { %v2707_v10 = vunpack.c.l.b16 %v2615_v42  ;;  %v2708_v1 = vunpack.c.h.b16 %v2615_v42  ;;  %v2760_v6 = vpack.c.b16 %v2709_v54, %v2709_v54  ;;  %v1752_v21 = vpop.f32.mrf.mxu2  ;;  %v3216_v41 = vor.u32 %v3215_v57, %v3212_v60  ;;  %v8666_v60 = vld [vmem:[#allocation2 + $0x48] sm:$0xff] }
 0x307   : > { %v2328_v44 = vmax.f32 %v2296_v12, 0.0  ;;  %v10195_v43 = vpop.f32.mrf.mxu1  ;;  %v1793_v58 = vadd.f32 %v1752_v21, %v12023_v14  ;;  %v1986_v53 = vpop.f32.mrf.mxu3  ;;  %v3225_v24 = vrot.slane %v3223_v40, 4  ;;  %v1559_v31 = vadd.f32 %v12025_v29, %v12024_v36  ;;  %v8706_v40 = vld [vmem:[#allocation2 + $0x54] sm:$0xff] }
 0x308   : > { %v2758_v7 = vpack.c.b16 %v2707_v10, %v2707_v10  ;;  %v2759_v59 = vpack.c.b16 %v2708_v1, %v2708_v1  ;;  %2862 = vst [vmem:[#allocation2 + $0x98] sm:$0x1] %v2760_v6  ;;  %v2222_v18 = vpop.f32.mrf.mxu0  ;;  %v3217_v47 = vrot.slane %v3216_v41, 4 }
 0x309   : > { %v2360_v45 = vpack.c.bf16 %v2328_v44, %v2328_v44  ;;  %v2027_v48 = vadd.f32 %v1986_v53, %v1793_v58  ;;  %v3226_v23 = vor.u32 %v3225_v24, %v3221_v30 }
 0x30a   : > { %2860 = vst [vmem:[#allocation2 + $0x90] sm:$0xf] %v2758_v7  ;;  %v3222_v2 = vsel %vm9706_vm5, %v3217_v47, %v3221_v30 }
 0x30b   : > { %2861 = vst [vmem:[#allocation2 + $0x94] sm:$0xf] %v2759_v59  ;;  %v2424_v15 = vunpack.c.l.b16 %v2360_v45  ;;  %v2261_v56 = vadd.f32 %v2220_v46, %v2027_v48  ;;  %v3227_v50 = vrot.slane %v3226_v23, 4  ;;  %v3368_v4 = vunpack.c.l.b16 %v3222_v2 }
 0x30d   : > { %v2443_v61 = vpack.c.b16 %v2424_v15, %v2423_v27  ;;  %v2297_v9 = vadd.f32 %v10031_v49, %v2261_v56  ;;  %v3232_v28 = vsel %vm9706_vm5, %v3227_v50, %v3231_v5 }
 0x30e   : > { %v1754_v16 = vpop.f32.mrf.mxu2  ;;  %v3369_v20 = vunpack.c.l.b16 %v3232_v28 }
 0x30f   : > { %v2539_v35 = vshrl.u32 %v2443_v61, 16  ;;  %v10205_v17 = vpop.f32.mrf.mxu1  ;;  %v1794_v32 = vadd.f32 %v1754_v16, %v1559_v31  ;;  %v1988_v39 = vpop.f32.mrf.mxu3  ;;  %v10207_v57 = vld [vmem:[#allocation2 + $0x98] sm:$0x1]  ;;  %v2542_v42 = vshll.u32 %v2443_v61, 16  ;;  %v2329_v22 = vmax.f32 %v2297_v9, 0.0 }
 0x310   : > { %v3389_v54 = vpack.c.b16 %v3369_v20, %v3368_v4  ;;  %v2225_v46 = vpop.f32.mrf.mxu0  ;;  %v3253_v58 = vshll.u32 %v10207_v57, 16 }
 0x311   : > { %v2541_v8 = vrot.slane %v2539_v35, 7  ;;  %v2028_v12 = vadd.f32 %v1988_v39, %v1794_v32  ;;  %v2902_v10 = vld [vmem:[#allocation2 + $0x90] sm:$0xf]  ;;  %v2361_v47 = vpack.c.bf16 %v2329_v22, %v2329_v22 }
 0x312   : > { %3521 = vmatmul.bf16.gmra.mxu1 %v3389_v54  ;;  %v10209_v1 = vld [vmem:[#allocation2 + $0x94] sm:$0xf]  ;;  %v3234_v6 = vshrl.u32 %v2902_v10, 16  ;;  %v3237_v21 = vshll.u32 %v2902_v10, 16  ;;  %v3255_v32 = vrot.slane %v3253_v58, 5 }
 0x313   : > { %v2544_v41 = vor.u32 %v2542_v42, %v2541_v8  ;;  %v2633_v44 = vsel %vm9673_vm2, %v2541_v8, 0  ;;  %v2262_v14 = vadd.f32 %v2222_v18, %v2028_v12  ;;  %3729 = vmatmul.bf16.gmra.mxu2 %v8666_v60  ;;  %4425 = vmatmul.bf16.gmra.mxu0 %v8706_v40  ;;  %v3243_v7 = vshll.u32 %v10209_v1, 16  ;;  %v8725_v42 = vld [vmem:[%s11995_s2 + $0x108] sm:$0xff]  ;;  %v12027_v12 = vld [vmem:[#allocation13_spill] sm:$0xff]  ;;  %v3791_v58 = vld [vmem:[#allocation2 + $0x84] sm:$0xe] }
 0x314   : > { %v2712_v53 = vunpack.c.l.b16 %v2633_v44  ;;  %4110 = vmatmul.bf16.gmra.mxu3 %v10068_v34  ;;  %v3236_v30 = vrot.slane %v3234_v6, 4  ;;  %v3239_v24 = vrot.slane %v3237_v21, 5  ;;  %v3247_v48 = vshrl.u32 %v10209_v1, 16  ;;  %v12026_v34 = vld [vmem:[#allocation11_spill] sm:$0xff]  ;;  %v12028_v40 = vld [vmem:[#allocation12_spill] sm:$0xff]  ;;  %5075 = vmatpush.bf16.msrb.mxu1 %v8725_v42 }
 0x315   : > { %v2616_v59 = vsel %vm9673_vm2, 0, %v2544_v41  ;;  %v2298_v45 = vadd.f32 %v10031_v49, %v2262_v14  ;;  %v3245_v36 = vrot.slane %v3243_v7, 5  ;;  %v2425_v39 = vunpack.c.l.b16 %v2361_v47  ;;  %v10233_v21 = vld [vmem:[%s11996_s3] ss:$0 sm:$0xff] }
 0x316   : > { %v2710_v18 = vunpack.c.l.b16 %v2616_v59  ;;  %v2711_v23 = vunpack.c.h.b16 %v2616_v59  ;;  %v2763_v2 = vpack.c.b16 %v2712_v53, %v2712_v53  ;;  %v1757_v5 = vpop.f32.mrf.mxu2  ;;  %v3240_v27 = vor.u32 %v3239_v24, %v3236_v30 }
 0x317   : > { %v2330_v15 = vmax.f32 %v2298_v45, 0.0  ;;  %v10220_v56 = vpop.f32.mrf.mxu1  ;;  %v1795_v50 = vadd.f32 %v1757_v5, %v12026_v34  ;;  %v1991_v4 = vpop.f32.mrf.mxu3  ;;  %v3249_v29 = vrot.slane %v3247_v48, 4  ;;  %v1561_v10 = vadd.f32 %v12028_v40, %v12027_v12  ;;  %v8707_v34 = vld [vmem:[#allocation2 + $0x60] sm:$0xff] }
 0x318   : > { %v2761_v31 = vpack.c.b16 %v2710_v18, %v2710_v18  ;;  %v2762_v61 = vpack.c.b16 %v2711_v23, %v2711_v23  ;;  %2865 = vst [vmem:[#allocation2 + $0xa4] sm:$0x1] %v2763_v2  ;;  %v2227_v9 = vpop.f32.mrf.mxu0  ;;  %v3241_v49 = vrot.slane %v3240_v27, 4  ;;  %v8667_v18 = vld [vmem:[#allocation2 + $0x54] sm:$0xff]  ;;  %v8050_v23 = vrot.slane %v3791_v58, 9 }
 0x319   : > { %v2362_v28 = vpack.c.bf16 %v2330_v15, %v2330_v15  ;;  %v2029_v16 = vadd.f32 %v1991_v4, %v1795_v50  ;;  %v3250_v20 = vor.u32 %v3249_v29, %v3245_v36  ;;  %v3910_v2 = vrot.slane %v10184_v3, 5 }
 0x31a   : > { %2863 = vst [vmem:[#allocation2 + $0x9c] sm:$0xf] %v2761_v31  ;;  %v3246_v35 = vsel %vm9706_vm5, %v3241_v49, %v3245_v36  ;;  %v3913_v4 = vrot.slane %v10180_v33, 5 }
 0x31b   : > { %2864 = vst [vmem:[#allocation2 + $0xa0] sm:$0xf] %v2762_v61  ;;  %v2426_v54 = vunpack.c.l.b16 %v2362_v28  ;;  %v2263_v60 = vadd.f32 %v2225_v46, %v2029_v16  ;;  %v3251_v8 = vrot.slane %v3250_v20, 4  ;;  %v3370_v22 = vunpack.c.l.b16 %v3246_v35 }
 0x31c   : > { %v3911_v20 = vsel %vm9775_vm8, %v8050_v23, %v3910_v2 }
 0x31d   : > { %v2444_v6 = vpack.c.b16 %v2426_v54, %v2425_v39  ;;  %v2299_v41 = vadd.f32 %v10233_v21, %v2263_v60  ;;  %v3256_v46 = vsel %vm9706_vm5, %v3251_v8, %v3255_v32 }
 0x31e   : > { %v1759_v44 = vpop.f32.mrf.mxu2  ;;  %v3371_v14 = vunpack.c.l.b16 %v3256_v46 }
 0x31f   : > { %v2546_v53 = vshrl.u32 %v2444_v6, 16  ;;  %v2331_v30 = vmax.f32 %v2299_v41, 0.0  ;;  %v10238_v24 = vpop.f32.mrf.mxu1  ;;  %v1796_v7 = vadd.f32 %v1759_v44, %v1561_v10  ;;  %v1993_v59 = vpop.f32.mrf.mxu3  ;;  %v10240_v47 = vld [vmem:[#allocation2 + $0xa4] sm:$0x1]  ;;  %v2549_v27 = vshll.u32 %v2444_v6, 16 }
 0x320   : > { %v3390_v45 = vpack.c.b16 %v3371_v14, %v3370_v22  ;;  %v2230_v48 = vpop.f32.mrf.mxu0  ;;  %v3277_v49 = vshll.u32 %v10240_v47, 16 }
 0x321   : > { %v2548_v5 = vrot.slane %v2546_v53, 7  ;;  %v2030_v15 = vadd.f32 %v1993_v59, %v1796_v7  ;;  %v2904_v50 = vld [vmem:[#allocation2 + $0x9c] sm:$0xf]  ;;  %v2363_v36 = vpack.c.bf16 %v2331_v30, %v2331_v30 }
 0x322   : > { %3526 = vmatmul.bf16.gmra.mxu1 %v3390_v45  ;;  %v10244_v29 = vld [vmem:[#allocation2 + $0xa0] sm:$0xf]  ;;  %v3258_v31 = vshrl.u32 %v2904_v50, 16  ;;  %v3261_v61 = vshll.u32 %v2904_v50, 16 }
 0x323   : > { %v2551_v28 = vor.u32 %v2549_v27, %v2548_v5  ;;  %v2634_v16 = vsel %vm9673_vm2, %v2548_v5, 0  ;;  %v2264_v3 = vadd.f32 %v2227_v9, %v2030_v15  ;;  %3734 = vmatmul.bf16.gmra.mxu2 %v8667_v18  ;;  %4430 = vmatmul.bf16.gmra.mxu0 %v8707_v34  ;;  %v3267_v39 = vshll.u32 %v10244_v29, 16 }
 0x324   : > { %v2715_v35 = vunpack.c.l.b16 %v2634_v16  ;;  %4115 = vmatmul.bf16.gmra.mxu3 %v10092_v51  ;;  %v3260_v33 = vrot.slane %v3258_v31, 4  ;;  %v3263_v32 = vrot.slane %v3261_v61, 5  ;;  %v3271_v8 = vshrl.u32 %v10244_v29, 16  ;;  %v12029_v51 = vld [vmem:[#allocation14_spill] sm:$0xff]  ;;  %v8724_v16 = vld [vmem:[%s11995_s2 + $0x100] sm:$0xff] }
 0x325   : > { %v2617_v54 = vsel %vm9673_vm2, 0, %v2551_v28  ;;  %v2300_v60 = vadd.f32 %v10233_v21, %v2264_v3  ;;  %v3912_v9 = vrot.slane %v3910_v2, 4  ;;  %v3269_v14 = vrot.slane %v3267_v39, 5  ;;  %5076 = vmatpush.bf16.msrb.mxu1 %v8724_v16 }
 0x326   : > { %v2713_v42 = vunpack.c.l.b16 %v2617_v54  ;;  %v2714_v22 = vunpack.c.h.b16 %v2617_v54  ;;  %v2766_v12 = vpack.c.b16 %v2715_v35, %v2715_v35  ;;  %v1762_v40 = vpop.f32.mrf.mxu2  ;;  %v3264_v10 = vor.u32 %v3263_v32, %v3260_v33  ;;  %v12030_v35 = vld [vmem:[#allocation15_spill] sm:$0xff] }
 0x327   : > { %v2332_v6 = vmax.f32 %v2300_v60, 0.0  ;;  %v10257_v41 = vpop.f32.mrf.mxu1  ;;  %v1797_v46 = vadd.f32 %v1762_v40, %v12029_v51  ;;  %v1996_v44 = vpop.f32.mrf.mxu3  ;;  %v3273_v58 = vrot.slane %v3271_v8, 4  ;;  %v3914_v45 = vsel %vm9775_vm8, %v3912_v9, %v3913_v4  ;;  %v8708_v51 = vld [vmem:[#allocation2 + $0x6c] sm:$0xff] }
 0x328   : > { %v2764_v53 = vpack.c.b16 %v2713_v42, %v2713_v42  ;;  %v2765_v30 = vpack.c.b16 %v2714_v22, %v2714_v22  ;;  %2868 = vst [vmem:[#allocation2 + $0xb0] sm:$0x1] %v2766_v12  ;;  %v2232_v7 = vpop.f32.mrf.mxu0  ;;  %v3265_v59 = vrot.slane %v3264_v10, 4  ;;  %v3279_v27 = vrot.slane %v3277_v49, 5  ;;  %v8668_v22 = vld [vmem:[#allocation2 + $0x60] sm:$0xff] }
 0x329   : > { %v2364_v18 = vpack.c.bf16 %v2332_v6, %v2332_v6  ;;  %v2031_v23 = vadd.f32 %v1996_v44, %v1797_v46  ;;  %v3274_v2 = vor.u32 %v3273_v58, %v3269_v14  ;;  %v3982_v15 = vunpack.c.l.b16 %v3911_v20 }
 0x32a   : > { %2866 = vst [vmem:[#allocation2 + $0xa8] sm:$0xf] %v2764_v53  ;;  %v3270_v5 = vsel %vm9706_vm5, %v3265_v59, %v3269_v14  ;;  %v3983_v34 = vunpack.c.l.b16 %v3914_v45  ;;  %v2427_v50 = vunpack.c.l.b16 %v2363_v36  ;;  %v1563_v33 = vadd.f32 %v10098_v11, %v12030_v35 }
 0x32b   : > { %2867 = vst [vmem:[#allocation2 + $0xac] sm:$0xf] %v2765_v30  ;;  %v2428_v31 = vunpack.c.l.b16 %v2364_v18  ;;  %v2265_v61 = vadd.f32 %v2230_v48, %v2031_v23  ;;  %v3275_v28 = vrot.slane %v3274_v2, 4  ;;  %v3372_v4 = vunpack.c.l.b16 %v3270_v5 }
 0x32c   : > { %v10267_v3 = vpack.c.b16 %v3983_v34, %v3982_v15 }
 0x32d   : > { %v2445_v32 = vpack.c.b16 %v2428_v31, %v2427_v50  ;;  %v2301_v49 = vadd.f32 %v10233_v21, %v2265_v61  ;;  %v3280_v20 = vsel %vm9706_vm5, %v3275_v28, %v3279_v27  ;;  %v8739_v27 = vld [vmem:[%s11995_s2 + $0x178] sm:$0xff] }
 0x32e   : > { %v1764_v36 = vpop.f32.mrf.mxu2  ;;  %v3373_v48 = vunpack.c.l.b16 %v3280_v20  ;;  %5495 = vmatpush.bf16.msra.mxu2 %v8739_v27 }
 0x32f   : > { %v2553_v39 = vshrl.u32 %v2445_v32, 16  ;;  %v10274_v54 = vpop.f32.mrf.mxu1  ;;  %v1798_v60 = vadd.f32 %v1764_v36, %v1563_v33  ;;  %v1998_v8 = vpop.f32.mrf.mxu3  ;;  %v10278_v12 = vld [vmem:[#allocation2 + $0xb0] sm:$0x1]  ;;  %v2556_v40 = vshll.u32 %v2445_v32, 16  ;;  %v2333_v10 = vmax.f32 %v2301_v49, 0.0 }
 0x330   : > { %v3391_v9 = vpack.c.b16 %v3373_v48, %v3372_v4  ;;  %v10276_v42 = vpop.f32.mrf.mxu0  ;;  %v3301_v45 = vshll.u32 %v10278_v12, 16 }
 0x331   : > { %12031 = vst [vmem:[#allocation6_spill] sm:$0xff] %v10276_v42  ;;  %v2555_v11 = vrot.slane %v2553_v39, 7  ;;  %v2032_v6 = vadd.f32 %v1998_v8, %v1798_v60  ;;  %v2906_v46 = vld [vmem:[#allocation2 + $0xa8] sm:$0xf]  ;;  %v2365_v34 = vpack.c.bf16 %v2333_v10, %v2333_v10 }
 0x332   : > { %3531 = vmatmul.bf16.gmra.mxu1 %v3391_v9  ;;  %v10280_v44 = vld [vmem:[#allocation2 + $0xac] sm:$0xf]  ;;  %v3282_v14 = vshrl.u32 %v2906_v46, 16  ;;  %v3285_v58 = vshll.u32 %v2906_v46, 16 }
 0x333   : > { %v2558_v53 = vor.u32 %v2556_v40, %v2555_v11  ;;  %v2635_v30 = vsel %vm9673_vm2, %v2555_v11, 0  ;;  %v2266_v59 = vadd.f32 %v2232_v7, %v2032_v6  ;;  %3739 = vmatmul.bf16.gmra.mxu2 %v8668_v22  ;;  %4435 = vmatmul.bf16.gmra.mxu0 %v8708_v51  ;;  %v3291_v5 = vshll.u32 %v10280_v44, 16  ;;  %v10306_v51 = vld [vmem:[#allocation2 + $0xc] sm:$0xf] }
 0x334   : > { %v2718_v18 = vunpack.c.l.b16 %v2635_v30  ;;  %4120 = vmatmul.bf16.gmra.mxu3 %v10123_v37  ;;  %v3284_v23 = vrot.slane %v3282_v14, 4  ;;  %v3287_v2 = vrot.slane %v3285_v58, 5  ;;  %v3295_v50 = vshrl.u32 %v10280_v44, 16  ;;  %v10308_v14 = vld [vmem:[#allocation2 + $0x10] sm:$0xf] }
 0x335   : > { %v2618_v15 = vsel %vm9673_vm2, 0, %v2558_v53  ;;  %v2302_v7 = vadd.f32 %v10233_v21, %v2266_v59  ;;  %v3293_v49 = vrot.slane %v3291_v5, 5  ;;  %v8763_v21 = vld [vmem:[%s11995_s2 + $0x1b8] sm:$0xff]  ;;  %v2429_v11 = vunpack.c.l.b16 %v2365_v34 }
 0x336   : > { %v2716_v31 = vunpack.c.l.b16 %v2618_v15  ;;  %v2717_v61 = vunpack.c.h.b16 %v2618_v15  ;;  %v2769_v28 = vpack.c.b16 %v2718_v18, %v2718_v18  ;;  %v3700_v37 = vpop.f32.mrf.mxu2  ;;  %v3288_v16 = vor.u32 %v3287_v2, %v3284_v23  ;;  %5810 = vmatpush.bf16.msra.mxu3 %v8763_v21  ;;  %v8771_v15 = vld [vmem:[%s11995_s2 + $0x1f8] sm:$0xff] }
 0x337   : > { %v2334_v4 = vmax.f32 %v2302_v7, 0.0  ;;  %v10294_v35 = vpop.f32.mrf.mxu1  ;;  %v3701_v33 = vadd.f32 %v3700_v37, %v10116_v19  ;;  %v4081_v32 = vpop.f32.mrf.mxu3  ;;  %v3297_v20 = vrot.slane %v3295_v50, 4  ;;  %v3303_v6 = vrot.slane %v3301_v45, 5  ;;  %6492 = vmatpush.bf16.msra.mxu0 %v8771_v15 }
 0x338   : > { %v2767_v36 = vpack.c.b16 %v2716_v31, %v2716_v31  ;;  %v2768_v48 = vpack.c.b16 %v2717_v61, %v2717_v61  ;;  %2871 = vst [vmem:[#allocation2 + $0xbc] sm:$0x1] %v2769_v28  ;;  %v10300_v39 = vpop.f32.mrf.mxu0  ;;  %v3289_v60 = vrot.slane %v3288_v16, 4  ;;  %v4557_v18 = vshrl.u32 %v10306_v51, 16  ;;  %v8669_v28 = vld [vmem:[#allocation2 + $0x6c] sm:$0xff] }
 0x339   : > { %12032 = vst [vmem:[#allocation7_spill] sm:$0xff] %v10300_v39  ;;  %v2366_v8 = vpack.c.bf16 %v2334_v4, %v2334_v4  ;;  %v10302_v9 = vadd.f32 %v4081_v32, %v3701_v33  ;;  %v3298_v22 = vor.u32 %v3297_v20, %v3293_v49  ;;  %v4560_v34 = vshll.u32 %v10306_v51, 16  ;;  %v3792_v16 = vld [vmem:[#allocation2 + $0x90] sm:$0xe]  ;;  %v8709_v32 = vld [vmem:[#allocation2 + $0x78] sm:$0xff] }
 0x33a   : > { %2869 = vst [vmem:[#allocation2 + $0xb4] sm:$0xf] %v2767_v36  ;;  %v3294_v19 = vsel %vm9706_vm5, %v3289_v60, %v3293_v49  ;;  %v4566_v7 = vshll.u32 %v10308_v14, 16  ;;  %v4570_v37 = vshrl.u32 %v10308_v14, 16  ;;  %v8051_v20 = vrot.slane %v3792_v16, 9 }
 0x33b   : > { %12033 = vst [vmem:[#allocation9_spill] sm:$0xff] %v10302_v9  ;;  %v2430_v40 = vunpack.c.l.b16 %v2366_v8  ;;  %v3299_v10 = vrot.slane %v3298_v22, 4  ;;  %v3374_v46 = vunpack.c.l.b16 %v3294_v19  ;;  %v3917_v21 = vrot.slane %v10209_v1, 5 }
 0x33c   : > { %2870 = vst [vmem:[#allocation2 + $0xb8] sm:$0xf] %v2768_v48 }
 0x33d   : > { %v2446_v58 = vpack.c.b16 %v2430_v40, %v2429_v11  ;;  %v3304_v53 = vsel %vm9706_vm5, %v3299_v10, %v3303_v6 }
 0x33e   : > { %v3702_v30 = vpop.f32.mrf.mxu2  ;;  %v3375_v59 = vunpack.c.l.b16 %v3304_v53 }
 0x33f   : > { %v2560_v23 = vshrl.u32 %v2446_v58, 16  ;;  %v10313_v2 = vpop.f32.mrf.mxu1  ;;  %v3703_v5 = vadd.f32 %v3702_v30, %v10132_v0  ;;  %v4083_v27 = vpop.f32.mrf.mxu3  ;;  %v10316_v45 = vld [vmem:[#allocation2 + $0xbc] sm:$0x1]  ;;  %v2563_v50 = vshll.u32 %v2446_v58, 16  ;;  %v3920_v0 = vrot.slane %v10207_v57, 5 }
 0x340   : > { %v3392_v31 = vpack.c.b16 %v3375_v59, %v3374_v46  ;;  %v10323_v61 = vpop.f32.mrf.mxu0  ;;  %v3325_v8 = vshll.u32 %v10316_v45, 16  ;;  %v8779_v57 = vld [vmem:[%s11995_s2 + $0x238] sm:$0xff]  ;;  %v3918_v46 = vsel %vm9775_vm8, %v8051_v20, %v3917_v21  ;;  %v3919_v59 = vrot.slane %v3917_v21, 4 }
 0x341   : > { %12034 = vst [vmem:[#allocation10_spill] sm:$0xff] %v10323_v61  ;;  %v2562_v4 = vrot.slane %v2560_v23, 7  ;;  %v10327_v33 = vadd.f32 %v4083_v27, %v3703_v5  ;;  %v2908_v49 = vld [vmem:[#allocation2 + $0xb4] sm:$0xf]  ;;  %6918 = vmatpush.bf16.msra.mxu1 %v8779_v57 }
 0x342   : > { %3536 = vmatmul.bf16.gmra.mxu1 %v3392_v31  ;;  %v3306_v48 = vshrl.u32 %v2908_v49, 16  ;;  %v3309_v60 = vshll.u32 %v2908_v49, 16  ;;  %v10466_v61 = vld [vmem:[#allocation2 + $0x34] sm:$0xf] }
 0x343   : > { %12035 = vst [vmem:[#allocation8_spill] sm:$0xff] %v10327_v33  ;;  %v10330_v36 = vld [vmem:[#allocation2 + $0xb8] sm:$0xf]  ;;  %v2565_v22 = vor.u32 %v2563_v50, %v2562_v4  ;;  %v2636_v19 = vsel %vm9673_vm2, %v2562_v4, 0  ;;  %3744 = vmatmul.bf16.gmra.mxu2 %v8669_v28  ;;  %4440 = vmatmul.bf16.gmra.mxu0 %v8709_v32  ;;  %v3921_v4 = vsel %vm9775_vm8, %v3919_v59, %v3920_v0  ;;  %v3984_v32 = vunpack.c.l.b16 %v3918_v46 }
 0x344   : > { %v3315_v11 = vshll.u32 %v10330_v36, 16  ;;  %v3319_v1 = vshrl.u32 %v10330_v36, 16  ;;  %v2721_v40 = vunpack.c.l.b16 %v2636_v19  ;;  %4125 = vmatmul.bf16.gmra.mxu3 %v10151_v25  ;;  %v3308_v10 = vrot.slane %v3306_v48, 4 }
 0x345   : > { %v3311_v6 = vrot.slane %v3309_v60, 5  ;;  %v2619_v58 = vsel %vm9673_vm2, 0, %v2565_v22  ;;  %v3985_v48 = vunpack.c.l.b16 %v3921_v4  ;;  %v3327_v22 = vrot.slane %v3325_v8, 5 }
 0x346   : > { %v3317_v53 = vrot.slane %v3315_v11, 5  ;;  %v3321_v30 = vrot.slane %v3319_v1, 4  ;;  %v2719_v23 = vunpack.c.l.b16 %v2619_v58  ;;  %v2720_v5 = vunpack.c.h.b16 %v2619_v58  ;;  %v3705_v15 = vpop.f32.mrf.mxu2 }
 0x347   : > { %v2772_v27 = vpack.c.b16 %v2721_v40, %v2721_v40  ;;  %v3312_v50 = vor.u32 %v3311_v6, %v3308_v10  ;;  %v10345_v31 = vpop.f32.mrf.mxu1  ;;  %v3706_v25 = vadd.f32 %v3705_v15, %v10147_v62  ;;  %v4086_v28 = vpop.f32.mrf.mxu3  ;;  %v4559_v19 = vrot.slane %v4557_v18, 4  ;;  %v8710_v15 = vld [vmem:[#allocation2 + $0x84] sm:$0xff] }
 0x348   : > { %v3322_v16 = vor.u32 %v3321_v30, %v3317_v53  ;;  %v2770_v13 = vpack.c.b16 %v2719_v23, %v2719_v23  ;;  %v2771_v49 = vpack.c.b16 %v2720_v5, %v2720_v5  ;;  %v10350_v20 = vpop.f32.mrf.mxu0  ;;  %v4562_v0 = vrot.slane %v4560_v34, 5  ;;  %v10364_v30 = vld [vmem:[#allocation2 + $0x14] sm:$0x1] }
 0x349   : > { %2874 = vst [vmem:[#allocation2 + $0xc8] sm:$0x1] %v2772_v27  ;;  %v3313_v21 = vrot.slane %v3312_v50, 4  ;;  %v10352_v60 = vadd.f32 %v4086_v28, %v3706_v25  ;;  %v10358_v11 = vpack.c.b16 %v3985_v48, %v3984_v32  ;;  %v4568_v10 = vrot.slane %v4566_v7, 5  ;;  %v8670_v27 = vld [vmem:[#allocation2 + $0x78] sm:$0xff] }
 0x34a   : > { %12036 = vst [vmem:[#allocation11_spill] sm:$0xff] %v10350_v20  ;;  %v3323_v57 = vrot.slane %v3322_v16, 4  ;;  %v4572_v6 = vrot.slane %v4570_v37, 4  ;;  %v4563_v34 = vor.u32 %v4562_v0, %v4559_v19  ;;  %v4576_v7 = vshll.u32 %v10364_v30, 16  ;;  %v4511_v37 = vld [vmem:[#allocation2 + $0x18] sm:$0xf] }
 0x34b   : > { %12037 = vst [vmem:[#allocation13_spill] sm:$0xff] %v10352_v60  ;;  %v3318_v62 = vsel %vm9706_vm5, %v3313_v21, %v3317_v53  ;;  %v4584_v28 = vshll.u32 %v4511_v37, 16  ;;  %v8738_v16 = vld [vmem:[%s11995_s2 + $0x170] sm:$0xff]  ;;  %v10378_v32 = vld [vmem:[#allocation2 + $0x1c] sm:$0xf] }
 0x34c   : > { %2872 = vst [vmem:[#allocation2 + $0xc0] sm:$0xf] %v2770_v13  ;;  %v3328_v1 = vsel %vm9706_vm5, %v3323_v57, %v3327_v22  ;;  %v3376_v40 = vunpack.c.l.b16 %v3318_v62  ;;  %v4573_v59 = vor.u32 %v4572_v6, %v4568_v10  ;;  %v4564_v50 = vrot.slane %v4563_v34, 4  ;;  %5496 = vmatpush.bf16.msra.mxu2 %v8738_v16  ;;  %v8762_v22 = vld [vmem:[%s11995_s2 + $0x1b0] sm:$0xff]  ;;  %v10396_v34 = vld [vmem:[#allocation2 + $0x28] sm:$0xf] }
 0x34d   : > { %2873 = vst [vmem:[#allocation2 + $0xc4] sm:$0xf] %v2771_v49  ;;  %v3377_v8 = vunpack.c.l.b16 %v3328_v1  ;;  %v4578_v4 = vrot.slane %v4576_v7, 5  ;;  %v4586_v0 = vrot.slane %v4584_v28, 5  ;;  %v4590_v1 = vshll.u32 %v10378_v32, 16  ;;  %5811 = vmatpush.bf16.msra.mxu3 %v8762_v22 }
 0x34e   : > { %v3707_v46 = vpop.f32.mrf.mxu2  ;;  %v4574_v25 = vrot.slane %v4573_v59, 4  ;;  %v4569_v57 = vsel %vm9706_vm5, %v4564_v50, %v4568_v10  ;;  %v10398_v59 = vld [vmem:[#allocation2 + $0x1c] sm:$0xf]  ;;  %v10403_v50 = vld [vmem:[#allocation2 + $0x20] sm:$0x1]  ;;  %v4618_v22 = vshrl.u32 %v10396_v34, 16 }
 0x34f   : > { %v3393_v58 = vpack.c.b16 %v3377_v8, %v3376_v40  ;;  %v10366_v53 = vpop.f32.mrf.mxu1  ;;  %v3708_v51 = vadd.f32 %v3707_v46, %v10160_v55  ;;  %v4088_v18 = vpop.f32.mrf.mxu3  ;;  %v4581_v55 = vshrl.u32 %v4511_v37, 16  ;;  %v4594_v40 = vshrl.u32 %v10378_v32, 16 }
 0x350   : > { %v10369_v23 = vpop.f32.mrf.mxu0  ;;  %v4957_v6 = vunpack.c.l.b16 %v4569_v57  ;;  %v4592_v46 = vrot.slane %v4590_v1, 5  ;;  %v8671_v57 = vld [vmem:[#allocation2 + $0x84] sm:$0xff]  ;;  %v8778_v1 = vld [vmem:[%s11995_s2 + $0x230] sm:$0xff] }
 0x351   : > { %12038 = vst [vmem:[#allocation12_spill] sm:$0xff] %v10369_v23  ;;  %v10371_v5 = vadd.f32 %v4088_v18, %v3708_v51  ;;  %v4583_v19 = vrot.slane %v4581_v55, 4  ;;  %v4514_v51 = vld [vmem:[#allocation2 + $0x24] sm:$0xf]  ;;  %6919 = vmatpush.bf16.msra.mxu1 %v8778_v1 }
 0x352   : > { %3541 = vmatmul.bf16.gmra.mxu1 %v3393_v58  ;;  %v4596_v58 = vrot.slane %v4594_v40, 4 }
 0x353   : > { %12039 = vst [vmem:[#allocation14_spill] sm:$0xff] %v10371_v5  ;;  %3749 = vmatmul.bf16.gmra.mxu2 %v8670_v27  ;;  %4445 = vmatmul.bf16.gmra.mxu0 %v8710_v15  ;;  %v4587_v8 = vor.u32 %v4586_v0, %v4583_v19  ;;  %v6679_v19 = vrot.slane %v10398_v59, 5  ;;  %v4600_v0 = vshll.u32 %v10403_v50, 16 }
 0x354   : > { %4130 = vmatmul.bf16.gmra.mxu3 %v10182_v63  ;;  %v4579_v63 = vsel %vm9706_vm5, %v4574_v25, %v4578_v4  ;;  %v8770_v25 = vld [vmem:[%s11995_s2 + $0x1f0] sm:$0xff]  ;;  %v4597_v16 = vor.u32 %v4596_v58, %v4592_v46  ;;  %v4605_v4 = vshrl.u32 %v4514_v51, 16  ;;  %v10420_v58 = vld [vmem:[#allocation2 + $0x20] sm:$0x1] }
 0x355   : > { %v4958_v10 = vunpack.c.l.b16 %v4579_v63  ;;  %v4588_v28 = vrot.slane %v4587_v8, 4  ;;  %v8711_v63 = vld [vmem:[#allocation2 + $0x90] sm:$0xff]  ;;  %6493 = vmatpush.bf16.msra.mxu0 %v8770_v25 }
 0x356   : > { %v3710_v13 = vpop.f32.mrf.mxu2 }
 0x357   : > { %v10380_v49 = vpop.f32.mrf.mxu1  ;;  %v3711_v21 = vadd.f32 %v3710_v13, %v10178_v26  ;;  %v4091_v48 = vpop.f32.mrf.mxu3  ;;  %v4989_v37 = vpack.c.b16 %v4958_v10, %v4957_v6  ;;  %v4608_v13 = vshll.u32 %v4514_v51, 16  ;;  %v4598_v6 = vrot.slane %v4597_v16, 4 }
 0x358   : > { %v10390_v62 = vpop.f32.mrf.mxu0  ;;  %v4607_v10 = vrot.slane %v4605_v4, 4  ;;  %v4593_v51 = vsel %vm9706_vm5, %v4588_v28, %v4592_v46  ;;  %v6682_v46 = vrot.slane %v10420_v58, 5  ;;  %v6614_v28 = vld [vmem:[#allocation2 + $0x24] sm:$0xe] }
 0x359   : > { %12040 = vst [vmem:[#allocation15_spill] sm:$0xff] %v10390_v62  ;;  %v10394_v26 = vadd.f32 %v4091_v48, %v3711_v21  ;;  %v6613_v21 = vld [vmem:[#allocation2 + $0x18] sm:$0xe]  ;;  %v4610_v8 = vrot.slane %v4608_v13, 5  ;;  %v4517_v13 = vld [vmem:[#allocation2 + $0x30] sm:$0xf] }
 0x35a   : > { %v8487_v40 = vrot.slane %v6613_v21, 9  ;;  %v10428_v21 = vld [vmem:[#allocation2 + $0x28] sm:$0xf]  ;;  %v10441_v62 = vld [vmem:[#allocation2 + $0x2c] sm:$0x1]  ;;  %v4629_v23 = vshrl.u32 %v4517_v13, 16 }
 0x35b   : > { %12041 = vst [vmem:[#allocation16_spill] sm:$0xff] %v10394_v26  ;;  %v4611_v1 = vor.u32 %v4610_v8, %v4607_v10  ;;  %v8488_v10 = vrot.slane %v6614_v28, 9 }
 0x35e   : > { %v3712_v18 = vpop.f32.mrf.mxu2 }
 0x35f   : > { %v10400_v27 = vpop.f32.mrf.mxu1  ;;  %v3713_v15 = vadd.f32 %v3712_v18, %v10195_v43  ;;  %v4093_v7 = vpop.f32.mrf.mxu3  ;;  %v4614_v43 = vshll.u32 %v10396_v34, 16  ;;  %v10424_v18 = vld [vmem:[#allocation2 + $0x2c] sm:$0x1] }
 0x360   : > { %v10408_v55 = vpop.f32.mrf.mxu0 }
 0x361   : > { %12042 = vst [vmem:[#allocation17_spill] sm:$0xff] %v10408_v55  ;;  %v10410_v48 = vadd.f32 %v4093_v7, %v3713_v15  ;;  %v10426_v15 = vrot.slane %v4614_v43, 5  ;;  %v4620_v7 = vrot.slane %v4618_v22, 4  ;;  %v4624_v55 = vshll.u32 %v10424_v18, 16 }
 0x362   : > { %5077 = vmatmul.bf16.vlgmr.msrb.gmra.mxu1 %v4989_v37  ;;  %v6681_v37 = vrot.slane %v6679_v19, 4 }
 0x363   : > { %12043 = vst [vmem:[#allocation18_spill] sm:$0xff] %v10410_v48  ;;  %3754 = vmatmul.bf16.gmra.mxu2 %v8671_v57  ;;  %4450 = vmatmul.bf16.gmra.mxu0 %v8711_v63  ;;  %v4602_v57 = vrot.slane %v4600_v0, 5  ;;  %v6680_v63 = vsel %vm9775_vm8, %v8487_v40, %v6679_v19  ;;  %v4959_v0 = vunpack.c.l.b16 %v4593_v51  ;;  %v10446_v48 = vld [vmem:[#allocation2 + $0x34] sm:$0xf]  ;;  %v4520_v19 = vld [vmem:[#allocation2 + $0x3c] sm:$0xf] }
 0x364   : > { %4135 = vmatmul.bf16.gmra.mxu3 %v10267_v3  ;;  %v6683_v40 = vsel %vm9775_vm8, %v6681_v37, %v6682_v46  ;;  %v4653_v20 = vshrl.u32 %v4520_v19, 16  ;;  %v10456_v37 = vrot.slane %v4611_v1, 4 }
 0x365   : > { %v4603_v22 = vsel %vm9706_vm5, %v4598_v6, %v4602_v57  ;;  %v6806_v6 = vunpack.c.l.b16 %v6680_v63  ;;  %v6807_v51 = vunpack.c.l.b16 %v6683_v40  ;;  %v4632_v57 = vshll.u32 %v4517_v13, 16 }
 0x366   : > { %v3715_v25 = vpop.f32.mrf.mxu2  ;;  %v4960_v8 = vunpack.c.l.b16 %v4603_v22  ;;  %v10462_v13 = vrot.slane %v4624_v55, 5  ;;  %v10464_v22 = vrot.slane %v4629_v23, 4  ;;  %v4656_v40 = vshll.u32 %v4520_v19, 16 }
 0x367   : > { %v10430_v3 = vpop.f32.mrf.mxu1  ;;  %v3716_v16 = vadd.f32 %v3715_v25, %v10205_v17  ;;  %v4096_v4 = vpop.f32.mrf.mxu3  ;;  %v4621_v25 = vor.u32 %v4620_v7, %v10426_v15  ;;  %v4642_v7 = vshrl.u32 %v10446_v48, 16  ;;  %v10454_v5 = vpack.c.b16 %v6807_v51, %v6806_v6 }
 0x368   : > { %12044 = vst [vmem:[#allocation19_spill] sm:$0xff] %v10430_v3  ;;  %v10436_v43 = vpop.f32.mrf.mxu0  ;;  %v4990_v51 = vpack.c.b16 %v4960_v8, %v4959_v0  ;;  %v10475_v23 = vrot.slane %v4632_v57, 5  ;;  %v10481_v42 = vrot.slane %v4653_v20, 4  ;;  %v4658_v9 = vrot.slane %v4656_v40, 5 }
 0x369   : > { %12045 = vst [vmem:[#allocation20_spill] sm:$0xff] %v10436_v43  ;;  %v10443_v17 = vadd.f32 %v4096_v4, %v3716_v16  ;;  %v6686_v43 = vrot.slane %v10428_v21, 5  ;;  %v6689_v16 = vrot.slane %v10441_v62, 5  ;;  %v4638_v4 = vshll.u32 %v10446_v48, 16 }
 0x36a   : > { %12047 = vst [vmem:[#allocation22_spill] sm:$0xff] %v10454_v5  ;;  %v10458_v46 = vrot.slane %v4621_v25, 4  ;;  %v10479_v33 = vrot.slane %v4642_v7, 4 }
 0x36b   : > { %12046 = vst [vmem:[#allocation21_spill] sm:$0xff] %v10443_v17  ;;  %v6688_v26 = vrot.slane %v6686_v43, 4  ;;  %v4521_v17 = vld [vmem:[#allocation2 + $0x40] sm:$0xf]  ;;  %v6687_v60 = vsel %vm9775_vm8, %v8488_v10, %v6686_v43  ;;  %v10477_v19 = vrot.slane %v4638_v4, 5  ;;  %v8672_v10 = vld [vmem:[#allocation2 + $0x90] sm:$0xff] }
 0x36c   : > { %v4662_v5 = vshll.u32 %v4521_v17, 16  ;;  %v4666_v39 = vshrl.u32 %v4521_v17, 16  ;;  %v6808_v0 = vunpack.c.l.b16 %v6687_v60  ;;  %v6693_v17 = vrot.slane %v10466_v61, 5 }
 0x36d   : > { %v6690_v63 = vsel %vm9775_vm8, %v6688_v26, %v6689_v16  ;;  %v4523_v26 = vld [vmem:[#allocation2 + $0x48] sm:$0xf]  ;;  %v6615_v16 = vld [vmem:[#allocation2 + $0x30] sm:$0xe]  ;;  %v3924_v4 = vrot.slane %v10244_v29, 5  ;;  %v4617_v60 = vsel %vm9706_vm5, %v10456_v37, %v10426_v15 }
 0x36e   : > { %v3717_v28 = vpop.f32.mrf.mxu2  ;;  %v6809_v8 = vunpack.c.l.b16 %v6690_v63  ;;  %v4680_v57 = vshll.u32 %v4523_v26, 16  ;;  %v10487_v20 = vrot.slane %v4662_v5, 5  ;;  %v4668_v7 = vrot.slane %v4666_v39, 4  ;;  %v8737_v63 = vld [vmem:[%s11995_s2 + $0x168] sm:$0xff]  ;;  %v3793_v15 = vld [vmem:[#allocation2 + $0x9c] sm:$0xe] }
 0x36f   : > { %v10470_v6 = vpop.f32.mrf.mxu1  ;;  %v3718_v1 = vadd.f32 %v3717_v28, %v10220_v56  ;;  %v4098_v25 = vpop.f32.mrf.mxu3  ;;  %v8712_v56 = vld [vmem:[#allocation2 + $0x9c] sm:$0xff]  ;;  %v4524_v28 = vld [vmem:[#allocation2 + $0x4c] sm:$0xf]  ;;  %v4627_v39 = vsel %vm9706_vm5, %v10458_v46, %v10462_v13  ;;  %v4635_v5 = vor.u32 %v10475_v23, %v10464_v22  ;;  %5497 = vmatpush.bf16.msra.mxu2 %v8737_v63  ;;  %v3926_v22 = vrot.slane %v3924_v4, 4  ;;  %v10515_v23 = vld [vmem:[#allocation2 + $0x38] sm:$0x1] }
 0x370   : > { %12048 = vst [vmem:[#allocation23_spill] sm:$0xff] %v10470_v6  ;;  %v10473_v55 = vpop.f32.mrf.mxu0  ;;  %v8489_v6 = vrot.slane %v6615_v16, 9  ;;  %v4686_v40 = vshll.u32 %v4524_v28, 16  ;;  %v4690_v29 = vshrl.u32 %v4524_v28, 16  ;;  %v4682_v16 = vrot.slane %v4680_v57, 5 }
 0x371   : > { %12049 = vst [vmem:[#allocation24_spill] sm:$0xff] %v10473_v55  ;;  %v10483_v43 = vadd.f32 %v4098_v25, %v3718_v1  ;;  %v4677_v55 = vshrl.u32 %v4523_v26, 16  ;;  %v10489_v1 = vld [vmem:[#allocation2 + $0x38] sm:$0x1]  ;;  %v10491_v25 = vpack.c.b16 %v6809_v8, %v6808_v0  ;;  %v10520_v0 = vld [vmem:[#allocation2 + $0x44] sm:$0x1] }
 0x372   : > { %5082 = vmatmul.bf16.gmra.mxu1 %v4990_v51  ;;  %v6695_v51 = vrot.slane %v6693_v17, 4  ;;  %v10527_v57 = vrot.slane %v4686_v40, 5  ;;  %v4636_v3 = vrot.slane %v4635_v5, 4  ;;  %v8769_v5 = vld [vmem:[%s11995_s2 + $0x1e8] sm:$0xff] }
 0x373   : > { %12050 = vst [vmem:[#allocation25_spill] sm:$0xff] %v10483_v43  ;;  %3759 = vmatmul.bf16.gmra.mxu2 %v8672_v10  ;;  %4455 = vmatmul.bf16.gmra.mxu0 %v8712_v56  ;;  %v4679_v37 = vrot.slane %v4677_v55, 4  ;;  %v6694_v10 = vsel %vm9775_vm8, %v8489_v6, %v6693_v17  ;;  %v6696_v56 = vrot.slane %v10489_v1, 5  ;;  %v4659_v55 = vor.u32 %v4658_v9, %v10481_v42 }
 0x374   : > { %12051 = vst [vmem:[#allocation26_spill] sm:$0xff] %v10491_v25  ;;  %4140 = vmatmul.bf16.gmra.mxu3 %v10358_v11  ;;  %v4645_v11 = vor.u32 %v10479_v33, %v10477_v19  ;;  %v8761_v33 = vld [vmem:[%s11995_s2 + $0x1a8] sm:$0xff]  ;;  %v4669_v6 = vor.u32 %v4668_v7, %v10487_v20  ;;  %v3927_v17 = vrot.slane %v10240_v47, 5  ;;  %v8052_v25 = vrot.slane %v3793_v15, 9  ;;  %6494 = vmatpush.bf16.msra.mxu0 %v8769_v5 }
 0x375   : > { %v6697_v63 = vsel %vm9775_vm8, %v6695_v51, %v6696_v56  ;;  %5812 = vmatpush.bf16.msra.mxu3 %v8761_v33  ;;  %v6810_v43 = vunpack.c.l.b16 %v6694_v10  ;;  %v4648_v42 = vshll.u32 %v10515_v23, 16  ;;  %v4672_v9 = vshll.u32 %v10520_v0, 16  ;;  %v10539_v56 = vld [vmem:[#allocation2 + $0x50] sm:$0x1] }
 0x376   : > { %v3720_v26 = vpop.f32.mrf.mxu2  ;;  %v4683_v7 = vor.u32 %v4682_v16, %v4679_v37  ;;  %v3928_v47 = vsel %vm9775_vm8, %v3926_v22, %v3927_v17  ;;  %v4646_v51 = vrot.slane %v4645_v11, 4  ;;  %v3925_v15 = vsel %vm9775_vm8, %v8052_v25, %v3924_v4  ;;  %v10551_v25 = vld [vmem:[#allocation2 + $0x58] sm:$0xf]  ;;  %v5196_v11 = vld [vmem:[#allocation2 + $0x54] sm:$0xe] }
 0x377   : > { %v10512_v28 = vpop.f32.mrf.mxu1  ;;  %v3721_v46 = vadd.f32 %v3720_v26, %v10238_v24  ;;  %v4101_v13 = vpop.f32.mrf.mxu3  ;;  %v4692_v24 = vrot.slane %v4690_v29, 4  ;;  %v4961_v29 = vunpack.c.l.b16 %v4617_v60  ;;  %v4660_v10 = vrot.slane %v4659_v55, 4 }
 0x378   : > { %12052 = vst [vmem:[#allocation27_spill] sm:$0xff] %v10512_v28  ;;  %v10524_v8 = vpop.f32.mrf.mxu0  ;;  %v6811_v28 = vunpack.c.l.b16 %v6697_v63  ;;  %v3987_v37 = vunpack.c.l.b16 %v3928_v47  ;;  %v4650_v16 = vrot.slane %v4648_v42, 5  ;;  %v4674_v63 = vrot.slane %v4672_v9, 5  ;;  %v8673_v9 = vld [vmem:[#allocation2 + $0x9c] sm:$0xff] }
 0x379   : > { %12053 = vst [vmem:[#allocation28_spill] sm:$0xff] %v10524_v8  ;;  %v10531_v26 = vadd.f32 %v4101_v13, %v3721_v46  ;;  %v4962_v8 = vunpack.c.l.b16 %v4627_v39  ;;  %v4670_v46 = vrot.slane %v4669_v6, 4  ;;  %v4693_v13 = vor.u32 %v4692_v24, %v10527_v57  ;;  %v10560_v24 = vld [vmem:[#allocation2 + $0x40] sm:$0xf] }
 0x37a   : > { %v10537_v40 = vpack.c.b16 %v6811_v28, %v6810_v43  ;;  %v4684_v22 = vrot.slane %v4683_v7, 4  ;;  %v4696_v4 = vshll.u32 %v10539_v56, 16  ;;  %v3986_v6 = vunpack.c.l.b16 %v3925_v15  ;;  %v8713_v7 = vld [vmem:[#allocation2 + $0xa8] sm:$0xff]  ;;  %v8736_v15 = vld [vmem:[%s11995_s2 + $0x160] sm:$0xff] }
 0x37b   : > { %12054 = vst [vmem:[#allocation29_spill] sm:$0xff] %v10531_v26  ;;  %v4991_v28 = vpack.c.b16 %v4962_v8, %v4961_v29  ;;  %v4641_v17 = vsel %vm9706_vm5, %v4636_v3, %v10477_v19  ;;  %v4665_v8 = vsel %vm9706_vm5, %v4660_v10, %v10487_v20  ;;  %v4675_v47 = vsel %vm9706_vm5, %v4670_v46, %v4674_v63  ;;  %v10571_v3 = vld [vmem:[#allocation2 + $0x18] sm:$0xf]  ;;  %v8760_v20 = vld [vmem:[%s11995_s2 + $0x1a0] sm:$0xff]  ;;  %v10590_v63 = vld [vmem:[#allocation2 + $0x5c] sm:$0x1] }
 0x37c   : > { %12055 = vst [vmem:[#allocation30_spill] sm:$0xff] %v10537_v40  ;;  %v10569_v29 = vrot.slane %v4693_v13, 4  ;;  %v4005_v19 = vpack.c.b16 %v3987_v37, %v3986_v6  ;;  %v4689_v10 = vsel %vm9706_vm5, %v4684_v22, %v10527_v57  ;;  %v8269_v46 = vrot.slane %v5196_v11, 9  ;;  %v8768_v37 = vld [vmem:[%s11995_s2 + $0x1e0] sm:$0xff]  ;;  %v3794_v11 = vld [vmem:[#allocation2 + $0xa8] sm:$0xe]  ;;  %5498 = vmatpush.bf16.msra.mxu2 %v8736_v15  ;;  %5813 = vmatpush.bf16.msra.mxu3 %v8760_v20 }
 0x37d   : > { %v5298_v13 = vrot.slane %v10551_v25, 5  ;;  %v10597_v22 = vunpack.c.l.b16 %v4665_v8  ;;  %v10599_v5 = vunpack.c.l.b16 %v4675_v47  ;;  %v5190_v6 = vld [vmem:[#allocation2 + $0xc] sm:$0xe]  ;;  %6495 = vmatpush.bf16.msra.mxu0 %v8768_v37  ;;  %v5983_v8 = vshll.u32 %v10571_v3, 16  ;;  %v10609_v47 = vld [vmem:[#allocation2 + $0x44] sm:$0x1] }
 0x37e   : > { %v3722_v33 = vpop.f32.mrf.mxu2  ;;  %v8053_v37 = vrot.slane %v3794_v11, 9  ;;  %v6616_v40 = vld [vmem:[#allocation2 + $0x3c] sm:$0xe]  ;;  %v8758_v11 = vld [vmem:[%s11995_s2 + $0x190] sm:$0xff] }
 0x37f   : > { %v10544_v43 = vpop.f32.mrf.mxu1  ;;  %v3723_v60 = vadd.f32 %v3722_v33, %v10257_v41  ;;  %v4103_v39 = vpop.f32.mrf.mxu3  ;;  %v4651_v41 = vsel %vm9706_vm5, %v4646_v51, %v4650_v16  ;;  %v8777_v51 = vld [vmem:[%s11995_s2 + $0x228] sm:$0xff]  ;;  %v11999_v33 = vrot.slane %v10280_v44, 5  ;;  %v4698_v16 = vrot.slane %v4696_v4, 5 }
 0x380   : > { %v10553_v55 = vpop.f32.mrf.mxu0  ;;  %v10595_v57 = vunpack.c.l.b16 %v4651_v41  ;;  %6920 = vmatpush.bf16.msra.mxu1 %v8777_v51  ;;  %v5301_v51 = vrot.slane %v10590_v63, 5 }
 0x381   : > { %12056 = vst [vmem:[#allocation31_spill] sm:$0xff] %v10553_v55  ;;  %v10562_v42 = vadd.f32 %v4103_v39, %v3723_v60  ;;  %v12000_v60 = vrot.slane %v10560_v24, 5  ;;  %v10593_v39 = vunpack.c.l.b16 %v4641_v17  ;;  %v4699_v4 = vsel %vm9706_vm5, %v10569_v29, %v4698_v16 }
 0x382   : > { %5087 = vmatmul.bf16.gmra.mxu1 %v4991_v28  ;;  %v10604_v28 = vunpack.c.l.b16 %v4689_v10  ;;  %v5256_v17 = vrot.slane %v10308_v14, 5  ;;  %v3933_v14 = vrot.slane %v11999_v33, 4  ;;  %v8735_v10 = vld [vmem:[%s11995_s2 + $0x158] sm:$0xff]  ;;  %v3934_v16 = vrot.slane %v10278_v12, 5 }
 0x383   : > { %12057 = vst [vmem:[#allocation32_spill] sm:$0xff] %v10562_v42  ;;  %3764 = vmatmul.bf16.gmra.mxu2 %v8673_v9  ;;  %4460 = vmatmul.bf16.gmra.mxu0 %v8713_v7  ;;  %v5300_v9 = vrot.slane %v5298_v13, 4  ;;  %v5980_v7 = vshrl.u32 %v10571_v3, 16  ;;  %v8759_v3 = vld [vmem:[%s11995_s2 + $0x198] sm:$0xff]  ;;  %v8734_v42 = vld [vmem:[%s11995_s2 + $0x150] sm:$0xff] }
 0x384   : > { %4145 = vmatmul.bf16.gmra.mxu3 %v4005_v19  ;;  %v5299_v19 = vsel %vm9775_vm8, %v8269_v46, %v5298_v13  ;;  %v8767_v46 = vld [vmem:[%s11995_s2 + $0x1d8] sm:$0xff]  ;;  %v5989_v13 = vshll.u32 %v10398_v59, 16  ;;  %5499 = vmatpush.bf16.msra.mxu2 %v8735_v10  ;;  %v5985_v10 = vrot.slane %v5983_v8, 5 }
 0x385   : > { %v5302_v33 = vsel %vm9775_vm8, %v5300_v9, %v5301_v51  ;;  %5814 = vmatpush.bf16.msra.mxu3 %v8759_v3  ;;  %6496 = vmatpush.bf16.msra.mxu0 %v8767_v46  ;;  %v8766_v9 = vld [vmem:[%s11995_s2 + $0x1d0] sm:$0xff]  ;;  %v10649_v51 = vunpack.c.l.b16 %v4699_v4  ;;  %v10651_v3 = vld [vmem:[#allocation2 + $0x4c] sm:$0xf]  ;;  %v4992_v4 = vpack.c.b16 %v10595_v57, %v10593_v39 }
 0x386   : > { %v3725_v41 = vpop.f32.mrf.mxu2  ;;  %v5396_v12 = vunpack.c.l.b16 %v5302_v33 }
 0x387   : > { %v10614_v29 = vpop.f32.mrf.mxu1  ;;  %v3726_v15 = vadd.f32 %v3725_v41, %v10274_v54  ;;  %v4106_v20 = vpop.f32.mrf.mxu3  ;;  %v6702_v54 = vrot.slane %v12000_v60, 4  ;;  %v5993_v41 = vshrl.u32 %v10398_v59, 16  ;;  %v5395_v60 = vunpack.c.l.b16 %v5299_v19 }
 0x388   : > { %12058 = vst [vmem:[#allocation33_spill] sm:$0xff] %v10614_v29  ;;  %v6703_v59 = vrot.slane %v10609_v47, 5  ;;  %v10644_v26 = vpop.f32.mrf.mxu0  ;;  %v3935_v19 = vsel %vm9775_vm8, %v3933_v14, %v3934_v16  ;;  %5500 = vmatpush.bf16.msra.mxu2 %v8734_v42  ;;  %v8733_v16 = vld [vmem:[%s11995_s2 + $0x148] sm:$0xff] }
 0x389   : > { %v10635_v55 = vadd.f32 %v4106_v20, %v3726_v15  ;;  %12060 = vst [vmem:[#allocation35_spill] sm:$0xff] %v10644_v26  ;;  %v8263_v15 = vrot.slane %v5190_v6, 9  ;;  %v5982_v20 = vrot.slane %v5980_v7, 4  ;;  %v10655_v33 = vpack.c.b16 %v5396_v12, %v5395_v60  ;;  %5815 = vmatpush.bf16.msra.mxu3 %v8758_v11  ;;  %6497 = vmatpush.bf16.msra.mxu0 %v8766_v9 }
 0x38a   : > { %v10659_v46 = vsel %vm9775_vm8, %v6702_v54, %v6703_v59  ;;  %v10661_v26 = vrot.slane %v5989_v13, 5  ;;  %v5995_v29 = vrot.slane %v5993_v41, 4  ;;  %v12062_v6 = vrot.slane %v10280_v44, 5  ;;  %v10676_v44 = vld [vmem:[#allocation2 + $0x48] sm:$0xe]  ;;  %v8714_v13 = vld [vmem:[#allocation2 + $0xb4] sm:$0xff] }
 0x38b   : > { %12059 = vst [vmem:[#allocation34_spill] sm:$0xff] %v10635_v55  ;;  %v8490_v55 = vrot.slane %v6616_v40, 9  ;;  %v5258_v60 = vrot.slane %v5256_v17, 4  ;;  %v12001_v40 = vrot.slane %v10651_v3, 5  ;;  %v3989_v14 = vunpack.c.l.b16 %v3935_v19  ;;  %v8757_v41 = vld [vmem:[%s11995_s2 + $0x188] sm:$0xff] }
 0x38c   : > { %12061 = vst [vmem:[#allocation36_spill] sm:$0xff] %v10655_v33  ;;  %v3932_v7 = vsel %vm9775_vm8, %v8053_v37, %v12062_v6  ;;  %v10674_v54 = vsel %vm9775_vm8, %v8263_v15, %v5256_v17  ;;  %v5986_v39 = vor.u32 %v5985_v10, %v5982_v20  ;;  %v8765_v17 = vld [vmem:[%s11995_s2 + $0x1c8] sm:$0xff]  ;;  %v5259_v12 = vrot.slane %v10364_v30, 5  ;;  %v10699_v10 = vld [vmem:[#allocation2 + $0x18] sm:$0xe]  ;;  %5501 = vmatpush.bf16.msra.mxu2 %v8733_v16 }
 0x38d   : > { %v3988_v9 = vunpack.c.l.b16 %v3932_v7  ;;  %v5996_v15 = vor.u32 %v5995_v29, %v10661_v26  ;;  %v5999_v20 = vshll.u32 %v10420_v58, 16  ;;  %v10701_v19 = vld [vmem:[#allocation2 + $0x64] sm:$0xf]  ;;  %v10703_v6 = vld [vmem:[#allocation2 + $0x50] sm:$0x1]  ;;  %v8674_v30 = vld [vmem:[#allocation2 + $0xa8] sm:$0xff]  ;;  %5816 = vmatpush.bf16.msra.mxu3 %v8757_v41  ;;  %v5383_v29 = vunpack.c.l.b16 %v10674_v54  ;;  %6498 = vmatpush.bf16.msra.mxu0 %v8765_v17 }
 0x38e   : > { %v3727_v8 = vpop.f32.mrf.mxu2  ;;  %v5197_v58 = vld [vmem:[#allocation2 + $0x60] sm:$0xe]  ;;  %v6709_v7 = vrot.slane %v12001_v40, 4  ;;  %v5987_v54 = vrot.slane %v5986_v39, 4  ;;  %v8491_v16 = vrot.slane %v10676_v44, 9  ;;  %v5305_v17 = vrot.slane %v10701_v19, 5 }
 0x38f   : > { %v10678_v57 = vpop.f32.mrf.mxu1  ;;  %v3728_v42 = vadd.f32 %v3727_v8, %v10294_v35  ;;  %v4108_v37 = vpop.f32.mrf.mxu3  ;;  %v12063_v35 = vrot.slane %v10560_v24, 5  ;;  %v6813_v8 = vunpack.c.l.b16 %v10659_v46  ;;  %v8732_v46 = vld [vmem:[%s11995_s2 + $0x140] sm:$0xff]  ;;  %v8270_v41 = vrot.slane %v5197_v58, 9  ;;  %v3795_v44 = vld [vmem:[#allocation2 + $0xb4] sm:$0xe] }
 0x390   : > { %v6001_v39 = vrot.slane %v5999_v20, 5  ;;  %5502 = vmatpush.bf16.msra.mxu2 %v8732_v46  ;;  %v5263_v20 = vrot.slane %v10378_v32, 5 }
 0x391   : > { %v6701_v59 = vsel %vm9775_vm8, %v8490_v55, %v12063_v35  ;;  %v10706_v11 = vadd.f32 %v4108_v37, %v3728_v42  ;;  %v5260_v55 = vsel %vm9775_vm8, %v5258_v60, %v5259_v12  ;;  %v4006_v35 = vpack.c.b16 %v3989_v14, %v3988_v9  ;;  %v8756_v42 = vld [vmem:[%s11995_s2 + $0x180] sm:$0xff]  ;;  %v10724_v14 = vld [vmem:[#allocation2 + $0x68] sm:$0x1]  ;;  %v10728_v9 = vpop.f32.mrf.mxu0 }
 0x392   : > { %5092 = vmatmul.bf16.gmra.mxu1 %v4992_v4  ;;  %v8764_v60 = vld [vmem:[%s11995_s2 + $0x1c0] sm:$0xff]  ;;  %v6812_v37 = vunpack.c.l.b16 %v6701_v59  ;;  %v3938_v4 = vrot.slane %v10330_v36, 5  ;;  %v6710_v12 = vrot.slane %v10703_v6, 5  ;;  %12065 = vst [vmem:[#allocation38_spill] sm:$0xff] %v10728_v9  ;;  %v5384_v40 = vunpack.c.l.b16 %v5260_v55  ;;  %5817 = vmatpush.bf16.msra.mxu3 %v8756_v42 }
 0x393   : > { %12064 = vst [vmem:[#allocation37_spill] sm:$0xff] %v10706_v11  ;;  %3769 = vmatmul.bf16.gmra.mxu2 %v8674_v30  ;;  %4465 = vmatmul.bf16.gmra.mxu0 %v8714_v13  ;;  %v5997_v11 = vrot.slane %v5996_v15, 4  ;;  %v5934_v59 = vld [vmem:[#allocation2 + $0x24] sm:$0xf]  ;;  %v8264_v36 = vrot.slane %v10699_v10, 9  ;;  %v5306_v13 = vsel %vm9775_vm8, %v8270_v41, %v5305_v17  ;;  %v5307_v30 = vrot.slane %v5305_v17, 4 }
 0x394   : > { %4150 = vmatmul.bf16.gmra.mxu3 %v4006_v35  ;;  %v10730_v33 = vpack.c.b16 %v6813_v8, %v6812_v37  ;;  %v6711_v58 = vsel %vm9775_vm8, %v6709_v7, %v6710_v12  ;;  %6499 = vmatpush.bf16.msra.mxu0 %v8764_v60  ;;  %v5992_v15 = vsel %vm9706_vm5, %v5987_v54, %v10661_v26  ;;  %v5308_v8 = vrot.slane %v10724_v14, 5  ;;  %v10754_v12 = vld [vmem:[#allocation2 + $0x58] sm:$0xf] }
 0x395   : > { %v12067_v55 = vrot.slane %v10651_v3, 5  ;;  %v3940_v42 = vrot.slane %v3938_v4, 4  ;;  %v6004_v60 = vshrl.u32 %v5934_v59, 16  ;;  %v6007_v37 = vshll.u32 %v5934_v59, 16 }
 0x396   : > { %12066 = vst [vmem:[#allocation39_spill] sm:$0xff] %v10730_v33  ;;  %v3730_v9 = vpop.f32.mrf.mxu2  ;;  %v8054_v41 = vrot.slane %v3795_v44, 9  ;;  %v3941_v26 = vrot.slane %v10316_v45, 5  ;;  %v5309_v32 = vsel %vm9775_vm8, %v5307_v30, %v5308_v8  ;;  %v5397_v54 = vunpack.c.l.b16 %v5306_v13  ;;  %v5192_v13 = vld [vmem:[#allocation2 + $0x24] sm:$0xe] }
 0x397   : > { %v6708_v10 = vsel %vm9775_vm8, %v8491_v16, %v12067_v55  ;;  %v10746_v35 = vpop.f32.mrf.mxu1  ;;  %v3731_v46 = vadd.f32 %v3730_v9, %v10313_v2  ;;  %v4111_v7 = vpop.f32.mrf.mxu3  ;;  %v5398_v16 = vunpack.c.l.b16 %v5309_v32  ;;  %v6815_v33 = vunpack.c.l.b16 %v6711_v58 }
 0x398   : > { %12068 = vst [vmem:[#allocation40_spill] sm:$0xff] %v10746_v35  ;;  %v6814_v55 = vunpack.c.l.b16 %v6708_v10  ;;  %v10756_v35 = vpack.c.b16 %v5384_v40, %v5383_v29  ;;  %v6002_v2 = vsel %vm9706_vm5, %v5997_v11, %v6001_v39  ;;  %v10762_v9 = vsel %vm9775_vm8, %v8264_v36, %v5263_v20  ;;  %v6618_v39 = vld [vmem:[#allocation2 + $0x54] sm:$0xe] }
 0x399   : > { %v10752_v17 = vadd.f32 %v4111_v7, %v3731_v46  ;;  %v6013_v45 = vshll.u32 %v10428_v21, 16  ;;  %v3942_v59 = vsel %vm9775_vm8, %v3940_v42, %v3941_v26  ;;  %v6017_v44 = vshrl.u32 %v10428_v21, 16  ;;  %v5937_v7 = vld [vmem:[#allocation2 + $0x30] sm:$0xf]  ;;  %v10780_v42 = vpop.f32.mrf.mxu0 }
 0x39a   : > { %v10768_v30 = vpack.c.b16 %v5398_v16, %v5397_v54  ;;  %v10770_v58 = vpack.c.b16 %v6815_v33, %v6814_v55  ;;  %v10772_v40 = vunpack.c.l.b16 %v5992_v15  ;;  %v6006_v29 = vrot.slane %v6004_v60, 4  ;;  %12072 = vst [vmem:[#allocation44_spill] sm:$0xff] %v10780_v42  ;;  %v10789_v16 = vld [vmem:[#allocation2 + $0x5c] sm:$0x1]  ;;  %v5198_v15 = vld [vmem:[#allocation2 + $0x6c] sm:$0xe] }
 0x39b   : > { %12069 = vst [vmem:[#allocation41_spill] sm:$0xff] %v10752_v17  ;;  %v6009_v11 = vrot.slane %v6007_v37, 5  ;;  %v6714_v36 = vrot.slane %v10754_v12, 5  ;;  %v3939_v8 = vsel %vm9775_vm8, %v8054_v41, %v3938_v4  ;;  %v10777_v10 = vunpack.c.l.b16 %v6002_v2  ;;  %v8715_v17 = vld [vmem:[#allocation2 + $0xc0] sm:$0xff] }
 0x39c   : > { %12070 = vst [vmem:[#allocation42_spill] sm:$0xff] %v10768_v30  ;;  %v5265_v46 = vrot.slane %v5263_v20, 4  ;;  %v5266_v21 = vrot.slane %v10403_v50, 5  ;;  %v3991_v26 = vunpack.c.l.b16 %v3942_v59  ;;  %v10783_v60 = vrot.slane %v6013_v45, 5  ;;  %v10791_v59 = vld [vmem:[#allocation2 + $0x70] sm:$0xf] }
 0x39d   : > { %12071 = vst [vmem:[#allocation43_spill] sm:$0xff] %v10770_v58  ;;  %v5270_v37 = vrot.slane %v10396_v34, 5  ;;  %v6019_v54 = vrot.slane %v6017_v44, 4  ;;  %v8265_v20 = vrot.slane %v5192_v13, 9  ;;  %v8492_v50 = vrot.slane %v6618_v39, 9  ;;  %v8675_v34 = vld [vmem:[#allocation2 + $0xb4] sm:$0xff] }
 0x39e   : > { %v3732_v33 = vpop.f32.mrf.mxu2  ;;  %v3990_v55 = vunpack.c.l.b16 %v3939_v8  ;;  %v6010_v2 = vor.u32 %v6009_v11, %v6006_v29  ;;  %v6028_v58 = vshrl.u32 %v5937_v7, 16  ;;  %v6716_v45 = vrot.slane %v6714_v36, 4  ;;  %v8776_v39 = vld [vmem:[%s11995_s2 + $0x220] sm:$0xff] }
 0x39f   : > { %v10786_v32 = vpop.f32.mrf.mxu1  ;;  %v3733_v4 = vadd.f32 %v3732_v33, %v10345_v31  ;;  %v4113_v41 = vpop.f32.mrf.mxu3  ;;  %v10797_v31 = vsel %vm9775_vm8, %v5265_v46, %v5266_v21  ;;  %v6023_v44 = vshll.u32 %v10441_v62, 16  ;;  %v5273_v13 = vrot.slane %v10424_v18, 5  ;;  %v10809_v62 = vld [vmem:[#allocation2 + $0x74] sm:$0x1]  ;;  %6921 = vmatpush.bf16.msra.mxu1 %v8776_v39 }
 0x3a0   : > { %12073 = vst [vmem:[#allocation45_spill] sm:$0xff] %v10786_v32  ;;  %v12075_v29 = vpack.c.b16 %v10599_v5, %v10597_v22  ;;  %v4007_v11 = vpack.c.b16 %v3991_v26, %v3990_v55  ;;  %v5272_v8 = vrot.slane %v5270_v37, 4  ;;  %v6031_v33 = vshll.u32 %v5937_v7, 16  ;;  %v4526_v5 = vld [vmem:[#allocation2 + $0x54] sm:$0xf] }
 0x3a1   : > { %v10793_v42 = vadd.f32 %v4113_v41, %v3733_v4  ;;  %v6717_v4 = vrot.slane %v10789_v16, 5  ;;  %v6020_v46 = vor.u32 %v6019_v54, %v10783_v60  ;;  %v8271_v18 = vrot.slane %v5198_v15, 9  ;;  %v10828_v39 = vpop.f32.mrf.mxu0 }
 0x3a2   : > { %5097 = vmatmul.bf16.gmra.mxu1 %v12075_v29  ;;  %v5312_v21 = vrot.slane %v10791_v59, 5  ;;  %v6715_v22 = vsel %vm9775_vm8, %v8492_v50, %v6714_v36  ;;  %v6011_v26 = vrot.slane %v6010_v2, 4  ;;  %v5271_v7 = vsel %vm9775_vm8, %v8265_v20, %v5270_v37  ;;  %12077 = vst [vmem:[#allocation48_spill] sm:$0xff] %v10828_v39 }
 0x3a3   : > { %12074 = vst [vmem:[#allocation46_spill] sm:$0xff] %v10793_v42  ;;  %3774 = vmatmul.bf16.gmra.mxu2 %v8675_v34  ;;  %4470 = vmatmul.bf16.gmra.mxu0 %v8715_v17  ;;  %v6030_v41 = vrot.slane %v6028_v58, 4  ;;  %v6718_v17 = vsel %vm9775_vm8, %v6716_v45, %v6717_v4  ;;  %v6037_v54 = vshll.u32 %v10466_v61, 16  ;;  %v6041_v15 = vshrl.u32 %v10466_v61, 16 }
 0x3a4   : > { %4155 = vmatmul.bf16.gmra.mxu3 %v4007_v11  ;;  %v5314_v55 = vrot.slane %v5312_v21, 4  ;;  %v6817_v34 = vunpack.c.l.b16 %v6718_v17  ;;  %v6033_v42 = vrot.slane %v6031_v33, 5  ;;  %v5313_v36 = vsel %vm9775_vm8, %v8271_v18, %v5312_v21  ;;  %v10838_v17 = vld [vmem:[#allocation2 + $0x64] sm:$0xf] }
 0x3a5   : > { %v5315_v50 = vrot.slane %v10809_v62, 5  ;;  %v6816_v2 = vunpack.c.l.b16 %v6715_v22  ;;  %v4701_v20 = vshrl.u32 %v4526_v5, 16  ;;  %v6021_v45 = vrot.slane %v6020_v46, 4 }
 0x3a6   : > { %v3735_v29 = vpop.f32.mrf.mxu2  ;;  %v5274_v61 = vsel %vm9775_vm8, %v5272_v8, %v5273_v13  ;;  %v4704_v4 = vshll.u32 %v4526_v5, 16  ;;  %v4710_v33 = vshll.u32 %v10551_v25, 16  ;;  %v5399_v46 = vunpack.c.l.b16 %v5313_v36 }
 0x3a7   : > { %v10823_v11 = vpop.f32.mrf.mxu1  ;;  %v3736_v58 = vadd.f32 %v3735_v29, %v10366_v53  ;;  %v4116_v37 = vpop.f32.mrf.mxu3  ;;  %v5316_v18 = vsel %vm9775_vm8, %v5314_v55, %v5315_v50  ;;  %v10833_v21 = vpack.c.b16 %v6817_v34, %v6816_v2  ;;  %v4714_v53 = vshrl.u32 %v10551_v25, 16  ;;  %v6619_v2 = vld [vmem:[#allocation2 + $0x60] sm:$0xe] }
 0x3a8   : > { %12076 = vst [vmem:[#allocation47_spill] sm:$0xff] %v10823_v11  ;;  %v5400_v29 = vunpack.c.l.b16 %v5316_v18  ;;  %v5386_v13 = vunpack.c.l.b16 %v10797_v31  ;;  %v6034_v8 = vor.u32 %v6033_v42, %v6030_v41  ;;  %v10841_v39 = vrot.slane %v6037_v54, 5  ;;  %v10877_v18 = vld [vmem:[#allocation2 + $0x7c] sm:$0xf] }
 0x3a9   : > { %12078 = vst [vmem:[#allocation49_spill] sm:$0xff] %v10833_v21  ;;  %v10835_v22 = vadd.f32 %v4116_v37, %v3736_v58  ;;  %v6043_v5 = vrot.slane %v6041_v15, 4  ;;  %v6025_v30 = vrot.slane %v6023_v44, 5  ;;  %v5387_v11 = vunpack.c.l.b16 %v5271_v7  ;;  %v10863_v37 = vld [vmem:[#allocation2 + $0x30] sm:$0xe] }
 0x3aa   : > { %v5388_v32 = vunpack.c.l.b16 %v5274_v61  ;;  %v10843_v55 = vpack.c.b16 %v5400_v29, %v5399_v46  ;;  %v4703_v34 = vrot.slane %v4701_v20, 4  ;;  %v4706_v50 = vrot.slane %v4704_v4, 5 }
 0x3ab   : > { %12079 = vst [vmem:[#allocation50_spill] sm:$0xff] %v10835_v22  ;;  %v6016_v25 = vsel %vm9706_vm5, %v6011_v26, %v10783_v60  ;;  %v6721_v36 = vrot.slane %v10838_v17, 5  ;;  %v10849_v58 = vrot.slane %v4710_v33, 5  ;;  %v4716_v42 = vrot.slane %v4714_v53, 4  ;;  %v5199_v53 = vld [vmem:[#allocation2 + $0x78] sm:$0xe] }
 0x3ac   : > { %v6026_v31 = vsel %vm9706_vm5, %v6021_v45, %v6025_v30  ;;  %v6047_v44 = vshll.u32 %v10489_v1, 16  ;;  %v6412_v41 = vpack.c.b16 %v10777_v10, %v10772_v40  ;;  %v12080_v54 = vunpack.c.l.b16 %v10762_v9  ;;  %v10872_v40 = vld [vmem:[#allocation2 + $0x68] sm:$0x1] }
 0x3ad   : > { %v10860_v60 = vrot.slane %v6034_v8, 4  ;;  %v6044_v26 = vor.u32 %v6043_v5, %v10841_v39  ;;  %v10868_v1 = vunpack.c.l.b16 %v6016_v25  ;;  %v10870_v61 = vpack.c.b16 %v5388_v32, %v5387_v11  ;;  %v5940_v11 = vld [vmem:[#allocation2 + $0x3c] sm:$0xf]  ;;  %v10885_v8 = vpop.f32.mrf.mxu0 }
 0x3ae   : > { %v3737_v7 = vpop.f32.mrf.mxu2  ;;  %v10858_v15 = vpack.c.b16 %v5386_v13, %v12080_v54  ;;  %v8493_v9 = vrot.slane %v6619_v2, 9  ;;  %v4707_v10 = vor.u32 %v4706_v50, %v4703_v34  ;;  %v10874_v4 = vunpack.c.l.b16 %v6026_v31  ;;  %12082 = vst [vmem:[#allocation52_spill] sm:$0xff] %v10885_v8  ;;  %v8740_v34 = vld [vmem:[#allocation2 + $0x18] sm:$0xff]  ;;  %v4529_v50 = vld [vmem:[#allocation2 + $0x60] sm:$0xf] }
 0x3af   : > { %v10865_v20 = vpop.f32.mrf.mxu1  ;;  %v3738_v30 = vadd.f32 %v3737_v7, %v10380_v49  ;;  %v4118_v45 = vpop.f32.mrf.mxu3  ;;  %v12002_v33 = vrot.slane %v10446_v48, 5  ;;  %v6723_v46 = vrot.slane %v6721_v36, 4  ;;  %v4717_v49 = vor.u32 %v4716_v42, %v10849_v58  ;;  %v10898_v7 = vld [vmem:[#allocation2 + $0x80] sm:$0x1] }
 0x3b0   : > { %v10882_v13 = vrot.slane %v6047_v44, 5  ;;  %v8266_v32 = vrot.slane %v10863_v37, 9  ;;  %v12083_v5 = vpack.c.b16 %v10649_v51, %v10604_v28  ;;  %v6040_v25 = vsel %vm9706_vm5, %v10860_v60, %v10841_v39 }
 0x3b1   : > { %v10879_v29 = vadd.f32 %v4118_v45, %v3738_v30  ;;  %v6045_v2 = vrot.slane %v6044_v26, 4  ;;  %v6724_v31 = vrot.slane %v10872_v40, 5  ;;  %v4720_v44 = vshll.u32 %v10590_v63, 16 }
 0x3b2   : > { %5102 = vmatmul.bf16.gmra.mxu1 %v12083_v5  ;;  %v8272_v28 = vrot.slane %v5199_v53, 9  ;;  %v5319_v51 = vrot.slane %v10877_v18, 5  ;;  %v6722_v54 = vsel %vm9775_vm8, %v8493_v9, %v6721_v36  ;;  %v4708_v39 = vrot.slane %v4707_v10, 4 }
 0x3b3   : > { %12081 = vst [vmem:[#allocation51_spill] sm:$0xff] %v10879_v29  ;;  %5503 = vmatmul.bf16.vlgmr.msra.gmra.mxu2 %v10756_v35  ;;  %6500 = vmatmul.bf16.vlgmr.msra.gmra.mxu0 %v6412_v41  ;;  %v5279_v60 = vrot.slane %v12002_v33, 4  ;;  %v6052_v26 = vshrl.u32 %v5940_v11, 16  ;;  %v6725_v35 = vsel %vm9775_vm8, %v6723_v46, %v6724_v31  ;;  %v4718_v41 = vrot.slane %v4717_v49, 4 }
 0x3b4   : > { %5818 = vmatmul.bf16.vlgmr.msra.gmra.mxu3 %v8740_v34  ;;  %v4725_v37 = vshrl.u32 %v4529_v50, 16  ;;  %v5321_v63 = vrot.slane %v5319_v51, 4  ;;  %v6819_v30 = vunpack.c.l.b16 %v6725_v35  ;;  %v4728_v53 = vshll.u32 %v4529_v50, 16 }
 0x3b5   : > { %v5320_v5 = vsel %vm9775_vm8, %v8272_v28, %v5319_v51  ;;  %v5322_v36 = vrot.slane %v10898_v7, 5  ;;  %v6818_v9 = vunpack.c.l.b16 %v6722_v54  ;;  %v4722_v33 = vrot.slane %v4720_v44, 5 }
 0x3b6   : > { %v3740_v45 = vpop.f32.mrf.mxu2  ;;  %v4734_v46 = vshll.u32 %v10701_v19, 16  ;;  %v4738_v49 = vshrl.u32 %v10701_v19, 16  ;;  %v4713_v50 = vsel %vm9706_vm5, %v4708_v39, %v10849_v58  ;;  %v6055_v31 = vshll.u32 %v5940_v11, 16  ;;  %v10928_v58 = vld [vmem:[#allocation2 + $0x70] sm:$0xf] }
 0x3b7   : > { %v10910_v10 = vpop.f32.mrf.mxu1  ;;  %v3741_v34 = vadd.f32 %v3740_v45, %v10400_v27  ;;  %v4121_v42 = vpop.f32.mrf.mxu3  ;;  %v5323_v28 = vsel %vm9775_vm8, %v5321_v63, %v5322_v36  ;;  %v10920_v51 = vpack.c.b16 %v6819_v30, %v6818_v9  ;;  %v4723_v27 = vsel %vm9706_vm5, %v4718_v41, %v4722_v33 }
 0x3b8   : > { %v5401_v44 = vunpack.c.l.b16 %v5320_v5  ;;  %v5402_v35 = vunpack.c.l.b16 %v5323_v28  ;;  %v4727_v45 = vrot.slane %v4725_v37, 4  ;;  %v4730_v21 = vrot.slane %v4728_v53, 5  ;;  %v10937_v33 = vpop.f32.mrf.mxu0 }
 0x3b9   : > { %12084 = vst [vmem:[#allocation53_spill] sm:$0xff] %v10920_v51  ;;  %v10922_v54 = vadd.f32 %v4121_v42, %v3741_v34  ;;  %v6061_v19 = vshll.u32 %v10560_v24, 16  ;;  %v6065_v8 = vshrl.u32 %v10560_v24, 16  ;;  %v10930_v11 = vrot.slane %v4734_v46, 5 }
 0x3ba   : > { %v4740_v39 = vrot.slane %v4738_v49, 4  ;;  %v6050_v42 = vsel %vm9706_vm5, %v6045_v2, %v10882_v13  ;;  %v10935_v63 = vpack.c.b16 %v5402_v35, %v5401_v44  ;;  %12087 = vst [vmem:[#allocation56_spill] sm:$0xff] %v10937_v33  ;;  %v4969_v41 = vunpack.c.l.b16 %v4713_v50  ;;  %v6620_v50 = vld [vmem:[#allocation2 + $0x6c] sm:$0xe] }
 0x3bb   : > { %12085 = vst [vmem:[#allocation54_spill] sm:$0xff] %v10922_v54  ;;  %v4970_v37 = vunpack.c.l.b16 %v4723_v27  ;;  %v6054_v30 = vrot.slane %v6052_v26, 4  ;;  %v6057_v53 = vrot.slane %v6055_v31, 5  ;;  %v10939_v5 = vunpack.c.l.b16 %v6040_v25  ;;  %v12089_v31 = vld [vmem:[#allocation19_spill] sm:$0xff] }
 0x3bc   : > { %12086 = vst [vmem:[#allocation55_spill] sm:$0xff] %v10935_v63  ;;  %v12088_v24 = vrot.slane %v10446_v48, 5  ;;  %v6071_v9 = vshll.u32 %v10609_v47, 16  ;;  %v6728_v13 = vrot.slane %v10928_v58, 5  ;;  %v4731_v34 = vor.u32 %v4730_v21, %v4727_v45 }
 0x3bd   : > { %v10949_v46 = vunpack.c.l.b16 %v6050_v42  ;;  %v10951_v49 = vrot.slane %v6061_v19, 5  ;;  %v6067_v26 = vrot.slane %v6065_v8, 4  ;;  %v12090_v27 = vrot.slane %v10515_v23, 5  ;;  %v10967_v19 = vld [vmem:[#allocation2 + $0x88] sm:$0xf] }
 0x3be   : > { %v10945_v36 = vsel %vm9775_vm8, %v8266_v32, %v12088_v24  ;;  %v3742_v2 = vpop.f32.mrf.mxu2  ;;  %v4741_v32 = vor.u32 %v4740_v39, %v10930_v11  ;;  %v4995_v44 = vpack.c.b16 %v4970_v37, %v4969_v41  ;;  %v6413_v8 = vpack.c.b16 %v10874_v4, %v10868_v1  ;;  %v10969_v42 = vld [vmem:[#allocation2 + $0x74] sm:$0x1]  ;;  %v5200_v39 = vld [vmem:[#allocation2 + $0x84] sm:$0xe]  ;;  %v8775_v4 = vld [vmem:[%s11995_s2 + $0x218] sm:$0xff] }
 0x3bf   : > { %v10953_v25 = vpop.f32.mrf.mxu1  ;;  %v3743_v48 = vadd.f32 %v3742_v2, %v12089_v31  ;;  %v4123_v28 = vpop.f32.mrf.mxu3  ;;  %v10961_v47 = vsel %vm9775_vm8, %v5279_v60, %v12090_v27  ;;  %v5389_v35 = vunpack.c.l.b16 %v10945_v36  ;;  %v6058_v45 = vor.u32 %v6057_v53, %v6054_v30  ;;  %v5194_v60 = vld [vmem:[#allocation2 + $0x3c] sm:$0xe]  ;;  %v8741_v41 = vld [vmem:[#allocation2 + $0x24] sm:$0xff]  ;;  %v10982_v36 = vld [vmem:[#allocation2 + $0x8c] sm:$0x1]  ;;  %6922 = vmatpush.bf16.msra.mxu1 %v8775_v4 }
 0x3c0   : > { %v4744_v23 = vshll.u32 %v10724_v14, 16  ;;  %v8494_v2 = vrot.slane %v6620_v50, 9  ;;  %v6730_v31 = vrot.slane %v6728_v13, 4  ;;  %v4732_v37 = vrot.slane %v4731_v34, 4  ;;  %v12093_v4 = vld [vmem:[#allocation23_spill] sm:$0xff] }
 0x3c1   : > { %v10971_v24 = vadd.f32 %v4123_v28, %v3743_v48  ;;  %v5390_v30 = vunpack.c.l.b16 %v10961_v47  ;;  %v6068_v53 = vor.u32 %v6067_v26, %v10951_v49  ;;  %v4742_v14 = vrot.slane %v4741_v32, 4  ;;  %v4532_v28 = vld [vmem:[#allocation2 + $0x6c] sm:$0xf]  ;;  %v8844_v47 = vld [vmem:[#allocation2 + $0x40] sm:$0xf] }
 0x3c2   : > { %5107 = vmatmul.bf16.gmra.mxu1 %v4995_v44  ;;  %v8273_v50 = vrot.slane %v5200_v39, 9  ;;  %v5326_v34 = vrot.slane %v10967_v19, 5  ;;  %v6731_v48 = vrot.slane %v10969_v42, 5  ;;  %v6059_v27 = vrot.slane %v6058_v45, 4 }
 0x3c3   : > { %12091 = vst [vmem:[#allocation19_spill] sm:$0xff] %v10971_v24  ;;  %5508 = vmatmul.bf16.gmra.mxu2 %v10858_v15  ;;  %6505 = vmatmul.bf16.gmra.mxu0 %v6413_v8  ;;  %v6073_v44 = vrot.slane %v6071_v9, 5  ;;  %v8267_v1 = vrot.slane %v5194_v60, 9  ;;  %v5284_v21 = vrot.slane %v8844_v47, 5  ;;  %v4746_v26 = vrot.slane %v4744_v23, 5  ;;  %v10990_v8 = vpop.f32.mrf.mxu0 }
 0x3c4   : > { %5823 = vmatmul.bf16.gmra.mxu3 %v8741_v41  ;;  %v5328_v51 = vrot.slane %v5326_v34, 4  ;;  %v6729_v15 = vsel %vm9775_vm8, %v8494_v2, %v6728_v13  ;;  %v6732_v32 = vsel %vm9775_vm8, %v6730_v31, %v6731_v48  ;;  %12092 = vst [vmem:[#allocation57_spill] sm:$0xff] %v10990_v8  ;;  %v4737_v41 = vsel %vm9706_vm5, %v4732_v37, %v10930_v11  ;;  %v11004_v24 = vld [vmem:[#allocation2 + $0x7c] sm:$0xf] }
 0x3c5   : > { %v6069_v45 = vrot.slane %v6068_v53, 4  ;;  %v5327_v9 = vsel %vm9775_vm8, %v8273_v50, %v5326_v34  ;;  %v5329_v23 = vrot.slane %v10982_v36, 5  ;;  %v4747_v31 = vsel %vm9706_vm5, %v4742_v14, %v4746_v26 }
 0x3c6   : > { %v3745_v39 = vpop.f32.mrf.mxu2  ;;  %v4749_v48 = vshrl.u32 %v4532_v28, 16  ;;  %v4752_v47 = vshll.u32 %v4532_v28, 16  ;;  %v4758_v8 = vshll.u32 %v10791_v59, 16  ;;  %v6820_v37 = vunpack.c.l.b16 %v6729_v15 }
 0x3c7   : > { %v10998_v60 = vpop.f32.mrf.mxu1  ;;  %v3746_v13 = vadd.f32 %v3745_v39, %v12093_v4  ;;  %v4126_v2 = vpop.f32.mrf.mxu3  ;;  %v5330_v11 = vsel %vm9775_vm8, %v5328_v51, %v5329_v23  ;;  %v6821_v53 = vunpack.c.l.b16 %v6732_v32  ;;  %v4762_v34 = vshrl.u32 %v10791_v59, 16  ;;  %v5943_v39 = vld [vmem:[#allocation2 + $0x48] sm:$0xf] }
 0x3c8   : > { %v5403_v4 = vunpack.c.l.b16 %v5327_v9  ;;  %v5404_v33 = vunpack.c.l.b16 %v5330_v11  ;;  %v11011_v54 = vpack.c.b16 %v5390_v30, %v5389_v35  ;;  %v11015_v14 = vsel %vm9775_vm8, %v8267_v1, %v5284_v21  ;;  %v6621_v1 = vld [vmem:[#allocation2 + $0x78] sm:$0xe] }
 0x3c9   : > { %v11008_v50 = vadd.f32 %v4126_v2, %v3746_v13  ;;  %v5286_v28 = vrot.slane %v5284_v21, 4  ;;  %v11017_v26 = vpack.c.b16 %v6821_v53, %v6820_v37  ;;  %v6064_v51 = vsel %vm9706_vm5, %v6059_v27, %v10951_v49 }
 0x3ca   : > { %v6074_v15 = vsel %vm9706_vm5, %v6069_v45, %v6073_v44  ;;  %v11024_v59 = vpack.c.b16 %v5404_v33, %v5403_v4  ;;  %v6735_v32 = vrot.slane %v11004_v24, 5  ;;  %v4971_v35 = vunpack.c.l.b16 %v4737_v41  ;;  %v11039_v41 = vld [vmem:[#allocation2 + $0x80] sm:$0x1] }
 0x3cb   : > { %12094 = vst [vmem:[#allocation23_spill] sm:$0xff] %v11008_v50  ;;  %v4972_v30 = vunpack.c.l.b16 %v4747_v31  ;;  %v6076_v9 = vshrl.u32 %v5943_v39, 16  ;;  %v6079_v23 = vshll.u32 %v5943_v39, 16  ;;  %v4751_v13 = vrot.slane %v4749_v48, 4 }
 0x3cc   : > { %12095 = vst [vmem:[#allocation58_spill] sm:$0xff] %v11017_v26  ;;  %v4754_v21 = vrot.slane %v4752_v47, 5  ;;  %v11027_v2 = vrot.slane %v4758_v8, 5  ;;  %v4764_v11 = vrot.slane %v4762_v34, 4  ;;  %v11029_v53 = vunpack.c.l.b16 %v6064_v51  ;;  %v12098_v8 = vld [vmem:[#allocation27_spill] sm:$0xff] }
 0x3cd   : > { %12096 = vst [vmem:[#allocation59_spill] sm:$0xff] %v11024_v59  ;;  %v12097_v49 = vrot.slane %v10520_v0, 5  ;;  %v6085_v27 = vshll.u32 %v10651_v3, 16  ;;  %v6089_v44 = vshrl.u32 %v10651_v3, 16  ;;  %v11044_v47 = vunpack.c.l.b16 %v6074_v15  ;;  %v11046_v0 = vpop.f32.mrf.mxu0 }
 0x3ce   : > { %v3747_v37 = vpop.f32.mrf.mxu2  ;;  %v8495_v34 = vrot.slane %v6621_v1, 9  ;;  %v6737_v39 = vrot.slane %v6735_v32, 4  ;;  %12099 = vst [vmem:[#allocation27_spill] sm:$0xff] %v11046_v0  ;;  %v4996_v4 = vpack.c.b16 %v4972_v30, %v4971_v35  ;;  %v6081_v51 = vrot.slane %v6079_v23, 5  ;;  %v5946_v30 = vld [vmem:[#allocation2 + $0x54] sm:$0xf] }
 0x3cf   : > { %v11035_v33 = vsel %vm9775_vm8, %v5286_v28, %v12097_v49  ;;  %v11041_v45 = vpop.f32.mrf.mxu1  ;;  %v3748_v31 = vadd.f32 %v3747_v37, %v12098_v8  ;;  %v4128_v48 = vpop.f32.mrf.mxu3  ;;  %v6078_v28 = vrot.slane %v6076_v9, 4  ;;  %v6095_v49 = vshll.u32 %v10703_v6, 16  ;;  %v8742_v37 = vld [vmem:[#allocation2 + $0x30] sm:$0xff] }
 0x3d0   : > { %v4755_v3 = vor.u32 %v4754_v21, %v4751_v13  ;;  %v4765_v50 = vor.u32 %v4764_v11, %v11027_v2  ;;  %v6738_v29 = vrot.slane %v11039_v41, 5  ;;  %v11055_v8 = vrot.slane %v6085_v27, 5  ;;  %v4535_v13 = vld [vmem:[#allocation2 + $0x78] sm:$0xf] }
 0x3d1   : > { %v11049_v26 = vadd.f32 %v4128_v48, %v3748_v31  ;;  %v11057_v35 = vrot.slane %v6089_v44, 4  ;;  %v12101_v6 = vpack.c.b16 %v10949_v46, %v10939_v5  ;;  %v4768_v9 = vshll.u32 %v10809_v62, 16 }
 0x3d2   : > { %5112 = vmatmul.bf16.gmra.mxu1 %v4996_v4  ;;  %v6736_v21 = vsel %vm9775_vm8, %v8495_v34, %v6735_v32  ;;  %v6739_v11 = vsel %vm9775_vm8, %v6737_v39, %v6738_v29  ;;  %v6082_v27 = vor.u32 %v6081_v51, %v6078_v28  ;;  %v11070_v44 = vrot.slane %v6095_v49, 5  ;;  %v11078_v34 = vld [vmem:[#allocation2 + $0x88] sm:$0xf]  ;;  %v6622_v28 = vld [vmem:[#allocation2 + $0x84] sm:$0xe] }
 0x3d3   : > { %12100 = vst [vmem:[#allocation60_spill] sm:$0xff] %v11049_v26  ;;  %5513 = vmatmul.bf16.gmra.mxu2 %v10870_v61  ;;  %6510 = vmatmul.bf16.gmra.mxu0 %v12101_v6  ;;  %v11072_v61 = vld [vmem:[#allocation2 + $0x4c] sm:$0xf]  ;;  %v4756_v46 = vrot.slane %v4755_v3, 4  ;;  %v4766_v31 = vrot.slane %v4765_v50, 4  ;;  %v6100_v48 = vshrl.u32 %v5946_v30, 16  ;;  %v6823_v4 = vunpack.c.l.b16 %v6739_v11 }
 0x3d4   : > { %5828 = vmatmul.bf16.gmra.mxu3 %v8742_v37  ;;  %v4773_v1 = vshrl.u32 %v4535_v13, 16  ;;  %v4776_v32 = vshll.u32 %v4535_v13, 16  ;;  %v6092_v29 = vor.u32 %v11057_v35, %v11055_v8  ;;  %v6822_v39 = vunpack.c.l.b16 %v6736_v21  ;;  %v11085_v13 = vld [vmem:[#allocation2 + $0x8c] sm:$0x1] }
 0x3d5   : > { %v4770_v62 = vrot.slane %v4768_v9, 5  ;;  %v4782_v50 = vshll.u32 %v10877_v18, 16  ;;  %v4786_v3 = vshrl.u32 %v10877_v18, 16  ;;  %v6083_v11 = vrot.slane %v6082_v27, 4  ;;  %v5195_v27 = vld [vmem:[#allocation2 + $0x48] sm:$0xe] }
 0x3d6   : > { %v3750_v6 = vpop.f32.mrf.mxu2  ;;  %v6103_v15 = vshll.u32 %v5946_v30, 16  ;;  %v11087_v23 = vpack.c.b16 %v6823_v4, %v6822_v39  ;;  %v8496_v35 = vrot.slane %v6622_v28, 9  ;;  %v4761_v21 = vsel %vm9706_vm5, %v4756_v46, %v11027_v2 }
 0x3d7   : > { %v11080_v51 = vpop.f32.mrf.mxu1  ;;  %v3751_v49 = vadd.f32 %v3750_v6, %v10544_v43  ;;  %v4131_v37 = vpop.f32.mrf.mxu3  ;;  %v4771_v43 = vsel %vm9706_vm5, %v4766_v31, %v4770_v62  ;;  %v6742_v9 = vrot.slane %v11078_v34, 5  ;;  %v4775_v18 = vrot.slane %v4773_v1, 4 }
 0x3d8   : > { %12102 = vst [vmem:[#allocation61_spill] sm:$0xff] %v11087_v23  ;;  %v11097_v6 = vpop.f32.mrf.mxu0  ;;  %v4778_v30 = vrot.slane %v4776_v32, 5  ;;  %v6102_v26 = vrot.slane %v6100_v48, 4  ;;  %v6109_v4 = vshll.u32 %v10754_v12, 16  ;;  %v11100_v39 = vrot.slane %v4782_v50, 5 }
 0x3d9   : > { %v11089_v5 = vadd.f32 %v4131_v37, %v3751_v49  ;;  %12104 = vst [vmem:[#allocation63_spill] sm:$0xff] %v11097_v6  ;;  %v4788_v28 = vrot.slane %v4786_v3, 4  ;;  %v6744_v49 = vrot.slane %v6742_v9, 4  ;;  %v6745_v37 = vrot.slane %v11085_v13, 5  ;;  %v12107_v3 = vld [vmem:[#allocation6_spill] sm:$0xff] }
 0x3da   : > { %v4973_v2 = vunpack.c.l.b16 %v4761_v21  ;;  %v4974_v46 = vunpack.c.l.b16 %v4771_v43  ;;  %v6105_v23 = vrot.slane %v6103_v15, 5  ;;  %v6743_v62 = vsel %vm9775_vm8, %v8496_v35, %v6742_v9  ;;  %v12108_v43 = vld [vmem:[#allocation33_spill] sm:$0xff] }
 0x3db   : > { %12103 = vst [vmem:[#allocation62_spill] sm:$0xff] %v11089_v5  ;;  %v8268_v31 = vrot.slane %v5195_v27, 9  ;;  %v12105_v1 = vrot.slane %v11072_v61, 5  ;;  %v6113_v48 = vshrl.u32 %v10754_v12, 16  ;;  %v6746_v50 = vsel %vm9775_vm8, %v6744_v49, %v6745_v37  ;;  %v12106_v5 = vld [vmem:[#allocation9_spill] sm:$0xff] }
 0x3dc   : > { %v4476_v6 = vadd.f32 %v12107_v3, %v12106_v5  ;;  %v4779_v59 = vor.u32 %v4778_v30, %v4775_v18  ;;  %v6088_v15 = vsel %vm9706_vm5, %v6083_v11, %v11055_v8  ;;  %v6093_v21 = vrot.slane %v6092_v29, 4  ;;  %v8743_v30 = vld [vmem:[#allocation2 + $0x3c] sm:$0xff] }
 0x3dd   : > { %v5293_v32 = vrot.slane %v12105_v1, 4  ;;  %v4789_v1 = vor.u32 %v4788_v28, %v11100_v39  ;;  %v6824_v12 = vunpack.c.l.b16 %v6743_v62  ;;  %v6825_v22 = vunpack.c.l.b16 %v6746_v50  ;;  %v4538_v28 = vld [vmem:[#allocation2 + $0x84] sm:$0xf]  ;;  %v11165_v50 = vld [vmem:[#allocation2 + $0x94] sm:$0xf] }
 0x3de   : > { %v3752_v0 = vpop.f32.mrf.mxu2  ;;  %v4997_v49 = vpack.c.b16 %v4974_v46, %v4973_v2  ;;  %v6106_v37 = vor.u32 %v6105_v23, %v6102_v26  ;;  %v11119_v5 = vrot.slane %v6109_v4, 5  ;;  %v4792_v8 = vshll.u32 %v10898_v7, 16  ;;  %v11131_v2 = vld [vmem:[#allocation2 + $0x60] sm:$0xf] }
 0x3df   : > { %v5078_v35 = vpop.f32.mrf.mxu1  ;;  %v3753_v9 = vadd.f32 %v3752_v0, %v12108_v43  ;;  %v4133_v27 = vpop.f32.mrf.mxu3  ;;  %v11124_v29 = vrot.slane %v6113_v48, 4  ;;  %v11126_v11 = vpack.c.b16 %v6825_v22, %v6824_v12  ;;  %v4780_v0 = vrot.slane %v4779_v59, 4  ;;  %v6623_v12 = vld [vmem:[#allocation2 + $0x90] sm:$0xe] }
 0x3e0   : > { %v11117_v63 = vadd.f32 %v5078_v35, %v4476_v6  ;;  %v8774_v6 = vld [vmem:[%s11995_s2 + $0x210] sm:$0xff]  ;;  %v12111_v26 = vpack.c.b16 %v11044_v47, %v11029_v53  ;;  %v4790_v7 = vrot.slane %v4789_v1, 4  ;;  %v12112_v23 = vunpack.c.l.b16 %v11015_v14  ;;  %v11152_v62 = vpop.f32.mrf.mxu0 }
 0x3e1   : > { %v11121_v18 = vadd.f32 %v4133_v27, %v3753_v9  ;;  %12110 = vst [vmem:[#allocation6_spill] sm:$0xff] %v11126_v11  ;;  %v12113_v22 = vunpack.c.l.b16 %v11035_v33  ;;  %v6098_v59 = vsel %vm9706_vm5, %v6093_v21, %v11070_v44  ;;  %v12114_v46 = vrot.slane %v11072_v61, 5  ;;  %6923 = vmatpush.bf16.msra.mxu1 %v8774_v6  ;;  %v12117_v21 = vld [vmem:[#allocation7_spill] sm:$0xff]  ;;  %v11177_v27 = vld [vmem:[#allocation2 + $0x94] sm:$0xf] }
 0x3e2   : > { %5117 = vmatmul.bf16.gmra.mxu1 %v4997_v49  ;;  %v11154_v53 = vunpack.c.l.b16 %v6088_v15  ;;  %v12115_v14 = vrot.slane %v10539_v56, 5  ;;  %v11162_v47 = vrot.slane %v6106_v37, 4  ;;  %v4794_v61 = vrot.slane %v4792_v8, 5  ;;  %v12116_v15 = vld [vmem:[#allocation8_spill] sm:$0xff]  ;;  %v5201_v1 = vld [vmem:[#allocation2 + $0x90] sm:$0xe] }
 0x3e3   : > { %12109 = vst [vmem:[#allocation9_spill] sm:$0xff] %v11121_v18  ;;  %5518 = vmatmul.bf16.gmra.mxu2 %v11011_v54  ;;  %6515 = vmatmul.bf16.gmra.mxu0 %v12111_v26  ;;  %v11141_v4 = vpack.c.b16 %v12113_v22, %v12112_v23  ;;  %v11150_v54 = vsel %vm9775_vm8, %v8268_v31, %v12114_v46  ;;  %v4797_v48 = vshrl.u32 %v4538_v28, 16  ;;  %v4800_v31 = vshll.u32 %v4538_v28, 16  ;;  %v11183_v6 = vld [vmem:[#allocation2 + $0x98] sm:$0x1] }
 0x3e4   : > { %5833 = vmatmul.bf16.gmra.mxu3 %v8743_v30  ;;  %v11160_v33 = vsel %vm9775_vm8, %v5293_v32, %v12115_v14  ;;  %v6124_v3 = vshrl.u32 %v11131_v2, 16  ;;  %v4477_v35 = vadd.f32 %v12117_v21, %v12116_v15  ;;  %v4785_v56 = vsel %vm9706_vm5, %v4780_v0, %v11100_v39  ;;  %v11188_v26 = vld [vmem:[#allocation2 + $0x98] sm:$0x1] }
 0x3e5   : > { %v11173_v32 = vunpack.c.l.b16 %v6098_v59  ;;  %v6116_v9 = vor.u32 %v11124_v29, %v11119_v5  ;;  %v4795_v8 = vsel %vm9706_vm5, %v4790_v7, %v4794_v61  ;;  %v4806_v28 = vshll.u32 %v10967_v19, 16 }
 0x3e6   : > { %v3755_v43 = vpop.f32.mrf.mxu2  ;;  %v8274_v39 = vrot.slane %v5201_v1, 9  ;;  %v4810_v29 = vshrl.u32 %v10967_v19, 16  ;;  %v5333_v23 = vrot.slane %v11165_v50, 5  ;;  %v8497_v22 = vrot.slane %v6623_v12, 9 }
 0x3e7   : > { %v5080_v49 = vpop.f32.mrf.mxu1  ;;  %v3756_v37 = vadd.f32 %v3755_v43, %v10678_v57  ;;  %v4136_v30 = vpop.f32.mrf.mxu3  ;;  %v4799_v57 = vrot.slane %v4797_v48, 4  ;;  %v6127_v46 = vshll.u32 %v11131_v2, 16  ;;  %v6749_v7 = vrot.slane %v11177_v27, 5 }
 0x3e8   : > { %v11185_v0 = vadd.f32 %v5080_v49, %v4477_v35  ;;  %v4802_v14 = vrot.slane %v4800_v31, 5  ;;  %v5334_v61 = vsel %vm9775_vm8, %v8274_v39, %v5333_v23  ;;  %v5335_v15 = vrot.slane %v5333_v23, 4  ;;  %v12121_v23 = vld [vmem:[#allocation10_spill] sm:$0xff] }
 0x3e9   : > { %v11191_v59 = vadd.f32 %v4136_v30, %v3756_v37  ;;  %v5336_v21 = vrot.slane %v11183_v6, 5  ;;  %v4975_v19 = vunpack.c.l.b16 %v4785_v56  ;;  %v4976_v35 = vunpack.c.l.b16 %v4795_v8  ;;  %v11207_v56 = vpop.f32.mrf.mxu0  ;;  %v12120_v8 = vld [vmem:[#allocation13_spill] sm:$0xff] }
 0x3ea   : > { %v6751_v43 = vrot.slane %v6749_v7, 4  ;;  %v6752_v1 = vrot.slane %v11188_v26, 5  ;;  %v11199_v12 = vrot.slane %v4806_v28, 5  ;;  %v4812_v49 = vrot.slane %v4810_v29, 4  ;;  %12119 = vst [vmem:[#allocation8_spill] sm:$0xff] %v11207_v56 }
 0x3eb   : > { %12118 = vst [vmem:[#allocation33_spill] sm:$0xff] %v11191_v59  ;;  %v5337_v2 = vsel %vm9775_vm8, %v5335_v15, %v5336_v21  ;;  %v6750_v48 = vsel %vm9775_vm8, %v8497_v22, %v6749_v7  ;;  %v6126_v31 = vrot.slane %v6124_v3, 4  ;;  %v5405_v37 = vunpack.c.l.b16 %v5334_v61  ;;  %v12122_v21 = vld [vmem:[#allocation40_spill] sm:$0xff] }
 0x3ec   : > { %v5406_v30 = vunpack.c.l.b16 %v5337_v2  ;;  %v6753_v39 = vsel %vm9775_vm8, %v6751_v43, %v6752_v1  ;;  %v4478_v44 = vadd.f32 %v12121_v23, %v12120_v8  ;;  %v4803_v11 = vor.u32 %v4802_v14, %v4799_v57  ;;  %v5952_v14 = vld [vmem:[#allocation2 + $0x6c] sm:$0xf] }
 0x3ed   : > { %v6129_v29 = vrot.slane %v6127_v46, 5  ;;  %v6133_v59 = vshll.u32 %v10838_v17, 16  ;;  %v6826_v7 = vunpack.c.l.b16 %v6750_v48  ;;  %v6827_v61 = vunpack.c.l.b16 %v6753_v39  ;;  %v12126_v39 = vld [vmem:[#allocation14_spill] sm:$0xff] }
 0x3ee   : > { %v3757_v28 = vpop.f32.mrf.mxu2  ;;  %v11213_v3 = vpack.c.b16 %v5406_v30, %v5405_v37  ;;  %v4998_v43 = vpack.c.b16 %v4976_v35, %v4975_v19  ;;  %v4813_v1 = vor.u32 %v4812_v49, %v11199_v12  ;;  %v6137_v8 = vshrl.u32 %v10838_v17, 16  ;;  %v8744_v37 = vld [vmem:[#allocation2 + $0x48] sm:$0xff]  ;;  %v4541_v19 = vld [vmem:[#allocation2 + $0x90] sm:$0xf] }
 0x3ef   : > { %v5083_v15 = vpop.f32.mrf.mxu1  ;;  %v3758_v18 = vadd.f32 %v3757_v28, %v12122_v21  ;;  %v4138_v22 = vpop.f32.mrf.mxu3  ;;  %v6416_v57 = vpack.c.b16 %v11173_v32, %v11154_v53  ;;  %v6117_v46 = vrot.slane %v6116_v9, 4  ;;  %v11223_v28 = vpack.c.b16 %v6827_v61, %v6826_v7  ;;  %v12128_v7 = vld [vmem:[#allocation45_spill] sm:$0xff] }
 0x3f0   : > { %v11215_v2 = vadd.f32 %v5083_v15, %v4478_v44  ;;  %v4816_v48 = vshll.u32 %v10982_v36, 16  ;;  %v5393_v44 = vunpack.c.l.b16 %v11150_v54  ;;  %v6130_v35 = vor.u32 %v6129_v29, %v6126_v31  ;;  %v12127_v29 = vld [vmem:[#allocation11_spill] sm:$0xff] }
 0x3f1   : > { %v11219_v23 = vadd.f32 %v4138_v22, %v3758_v18  ;;  %12124 = vst [vmem:[#allocation13_spill] sm:$0xff] %v11223_v28  ;;  %v4804_v17 = vrot.slane %v4803_v11, 4  ;;  %v5394_v18 = vunpack.c.l.b16 %v11160_v33  ;;  %v6112_v53 = vsel %vm9706_vm5, %v11162_v47, %v11119_v5  ;;  %v5203_v28 = vld [vmem:[#allocation2 + $0xa8] sm:$0xe] }
 0x3f2   : > { %5122 = vmatmul.bf16.gmra.mxu1 %v4998_v43  ;;  %v12125_v32 = vshll.u32 %v10789_v16, 16  ;;  %v4814_v36 = vrot.slane %v4813_v1, 4  ;;  %v11235_v49 = vrot.slane %v6133_v59, 5  ;;  %v6139_v54 = vrot.slane %v6137_v8, 4 }
 0x3f3   : > { %12123 = vst [vmem:[#allocation7_spill] sm:$0xff] %v11219_v23  ;;  %5523 = vmatmul.bf16.gmra.mxu2 %v11141_v4  ;;  %6520 = vmatmul.bf16.gmra.mxu0 %v6416_v57  ;;  %v6148_v31 = vshrl.u32 %v5952_v14, 16  ;;  %v4821_v11 = vshrl.u32 %v4541_v19, 16  ;;  %v4824_v30 = vshll.u32 %v4541_v19, 16  ;;  %v6151_v33 = vshll.u32 %v5952_v14, 16  ;;  %v11248_v57 = vpop.f32.mrf.mxu0 }
 0x3f4   : > { %v6121_v9 = vrot.slane %v12125_v32, 5  ;;  %5838 = vmatmul.bf16.gmra.mxu3 %v8744_v37  ;;  %v4479_v15 = vadd.f32 %v12127_v29, %v12126_v39  ;;  %v4818_v5 = vrot.slane %v4816_v48, 5  ;;  %v6131_v47 = vrot.slane %v6130_v35, 4  ;;  %12129 = vst [vmem:[#allocation10_spill] sm:$0xff] %v11248_v57  ;;  %v11255_v37 = vld [vmem:[#allocation2 + $0xa0] sm:$0xf] }
 0x3f5   : > { %v6143_v16 = vshll.u32 %v10872_v40, 16  ;;  %v4809_v43 = vsel %vm9706_vm5, %v4804_v17, %v11199_v12  ;;  %v4830_v1 = vshll.u32 %v11165_v50, 16  ;;  %v4834_v8 = vshrl.u32 %v11165_v50, 16  ;;  %v5202_v32 = vld [vmem:[#allocation2 + $0x9c] sm:$0xe] }
 0x3f6   : > { %v6122_v4 = vsel %vm9706_vm5, %v6117_v46, %v6121_v9  ;;  %v3760_v21 = vpop.f32.mrf.mxu2  ;;  %v4819_v14 = vsel %vm9706_vm5, %v4814_v36, %v4818_v5  ;;  %v6140_v40 = vor.u32 %v6139_v54, %v11235_v49  ;;  %v6150_v48 = vrot.slane %v6148_v31, 4 }
 0x3f7   : > { %v5085_v22 = vpop.f32.mrf.mxu1  ;;  %v3761_v59 = vadd.f32 %v3760_v21, %v12128_v7  ;;  %v4141_v61 = vpop.f32.mrf.mxu3  ;;  %v4823_v35 = vrot.slane %v4821_v11, 4  ;;  %v4826_v12 = vrot.slane %v4824_v30, 5  ;;  %v6153_v17 = vrot.slane %v6151_v33, 5  ;;  %v11269_v33 = vld [vmem:[#allocation2 + $0xa4] sm:$0x1] }
 0x3f8   : > { %v11250_v46 = vadd.f32 %v5085_v22, %v4479_v15  ;;  %v4977_v9 = vunpack.c.l.b16 %v4809_v43  ;;  %v5420_v50 = vpack.c.b16 %v5394_v18, %v5393_v44  ;;  %v6157_v39 = vshll.u32 %v10928_v58, 16  ;;  %v11271_v7 = vld [vmem:[#allocation2 + $0xa0] sm:$0xf] }
 0x3f9   : > { %v11257_v19 = vadd.f32 %v4141_v61, %v3761_v59  ;;  %v6161_v29 = vshrl.u32 %v10928_v58, 16  ;;  %v4978_v15 = vunpack.c.l.b16 %v4819_v14  ;;  %v11261_v21 = vrot.slane %v4830_v1, 5  ;;  %v12131_v59 = vld [vmem:[#allocation16_spill] sm:$0xff]  ;;  %v12133_v14 = vld [vmem:[#allocation47_spill] sm:$0xff] }
 0x3fa   : > { %v4836_v36 = vrot.slane %v4834_v8, 4  ;;  %v5340_v54 = vrot.slane %v11255_v37, 5  ;;  %v6390_v5 = vunpack.c.l.b16 %v6112_v53  ;;  %v6391_v31 = vunpack.c.l.b16 %v6122_v4  ;;  %v12132_v61 = vld [vmem:[#allocation12_spill] sm:$0xff] }
 0x3fb   : > { %12130 = vst [vmem:[#allocation40_spill] sm:$0xff] %v11257_v19  ;;  %v11264_v22 = vrot.slane %v6143_v16, 5  ;;  %v8275_v11 = vrot.slane %v5202_v32, 9  ;;  %v4827_v30 = vor.u32 %v4826_v12, %v4823_v35  ;;  %v6136_v44 = vsel %vm9706_vm5, %v6131_v47, %v11235_v49 }
 0x3fc   : > { %v6141_v18 = vrot.slane %v6140_v40, 4  ;;  %v6154_v58 = vor.u32 %v6153_v17, %v6150_v48  ;;  %v4480_v43 = vadd.f32 %v12132_v61, %v12131_v59  ;;  %v11275_v53 = vrot.slane %v6157_v39, 5 }
 0x3fd   : > { %v6163_v4 = vrot.slane %v6161_v29, 4  ;;  %v5342_v16 = vrot.slane %v5340_v54, 4  ;;  %v4999_v32 = vpack.c.b16 %v4978_v15, %v4977_v9  ;;  %v4837_v49 = vor.u32 %v4836_v36, %v11261_v21  ;;  %v11290_v9 = vld [vmem:[#allocation2 + $0xa4] sm:$0x1]  ;;  %v6624_v15 = vld [vmem:[#allocation2 + $0x9c] sm:$0xe]  ;;  %v11292_v36 = vpop.f32.mrf.mxu0 }
 0x3fe   : > { %v3762_v1 = vpop.f32.mrf.mxu2  ;;  %v4840_v47 = vshll.u32 %v11183_v6, 16  ;;  %v5341_v48 = vsel %vm9775_vm8, %v8275_v11, %v5340_v54  ;;  %v5343_v17 = vrot.slane %v11269_v33, 5  ;;  %v6756_v39 = vrot.slane %v11271_v7, 5  ;;  %12135 = vst [vmem:[#allocation11_spill] sm:$0xff] %v11292_v36  ;;  %v8745_v6 = vld [vmem:[#allocation2 + $0x54] sm:$0xff] }
 0x3ff   : > { %v5088_v8 = vpop.f32.mrf.mxu1  ;;  %v3763_v35 = vadd.f32 %v3762_v1, %v12133_v14  ;;  %v4143_v12 = vpop.f32.mrf.mxu3  ;;  %v6417_v59 = vpack.c.b16 %v6391_v31, %v6390_v5  ;;  %v4828_v61 = vrot.slane %v4827_v30, 4  ;;  %v11288_v1 = vunpack.c.l.b16 %v6136_v44  ;;  %v4544_v11 = vld [vmem:[#allocation2 + $0x9c] sm:$0xf]  ;;  %v12150_v36 = vld [vmem:[#allocation29_spill] sm:$0xff] }
 0x400   : > { %v11280_v40 = vadd.f32 %v5088_v8, %v4480_v43  ;;  %v6146_v54 = vsel %vm9706_vm5, %v6141_v18, %v11264_v22  ;;  %v8773_v43 = vld [vmem:[%s11995_s2 + $0x208] sm:$0xff]  ;;  %v6155_v5 = vrot.slane %v6154_v58, 4  ;;  %v6167_v31 = vshll.u32 %v10969_v42, 16 }
 0x401   : > { %v11286_v29 = vadd.f32 %v4143_v12, %v3763_v35  ;;  %v5344_v30 = vsel %vm9775_vm8, %v5342_v16, %v5343_v17  ;;  %v4842_v44 = vrot.slane %v4840_v47, 5  ;;  %v6164_v8 = vor.u32 %v6163_v4, %v11275_v53  ;;  %6924 = vmatpush.bf16.msra.mxu1 %v8773_v43  ;;  %v12136_v47 = vld [vmem:[#allocation18_spill] sm:$0xff]  ;;  %v12137_v17 = vld [vmem:[#allocation15_spill] sm:$0xff] }
 0x402   : > { %5127 = vmatmul.bf16.gmra.mxu1 %v4999_v32  ;;  %v5407_v14 = vunpack.c.l.b16 %v5341_v48  ;;  %v5408_v35 = vunpack.c.l.b16 %v5344_v30  ;;  %v4838_v22 = vrot.slane %v4837_v49, 4  ;;  %v8498_v18 = vrot.slane %v6624_v15, 9  ;;  %v5955_v15 = vld [vmem:[#allocation2 + $0x78] sm:$0xf] }
 0x403   : > { %12134 = vst [vmem:[#allocation14_spill] sm:$0xff] %v11286_v29  ;;  %5528 = vmatmul.bf16.gmra.mxu2 %v5420_v50  ;;  %6525 = vmatmul.bf16.gmra.mxu0 %v6417_v59  ;;  %v6758_v12 = vrot.slane %v6756_v39, 4  ;;  %v6759_v32 = vrot.slane %v11290_v9, 5  ;;  %v4833_v42 = vsel %vm9706_vm5, %v4828_v61, %v11261_v21  ;;  %v4845_v58 = vshrl.u32 %v4544_v11, 16 }
 0x404   : > { %5843 = vmatmul.bf16.gmra.mxu3 %v8745_v6  ;;  %v4848_v16 = vshll.u32 %v4544_v11, 16  ;;  %v11308_v50 = vpack.c.b16 %v5408_v35, %v5407_v14  ;;  %v4481_v4 = vadd.f32 %v12137_v17, %v12136_v47  ;;  %v4854_v59 = vshll.u32 %v11255_v37, 16  ;;  %v11324_v17 = vld [vmem:[#allocation2 + $0xac] sm:$0xf] }
 0x405   : > { %v4858_v49 = vshrl.u32 %v11255_v37, 16  ;;  %v6760_v6 = vsel %vm9775_vm8, %v6758_v12, %v6759_v32  ;;  %v6393_v61 = vunpack.c.l.b16 %v6146_v54  ;;  %v6160_v11 = vsel %vm9706_vm5, %v6155_v5, %v11275_v53 }
 0x406   : > { %v3765_v48 = vpop.f32.mrf.mxu2  ;;  %v6169_v14 = vrot.slane %v6167_v31, 5  ;;  %v4843_v47 = vsel %vm9706_vm5, %v4838_v22, %v4842_v44  ;;  %v6165_v37 = vrot.slane %v6164_v8, 4  ;;  %v6757_v12 = vsel %vm9775_vm8, %v8498_v18, %v6756_v39 }
 0x407   : > { %v5090_v43 = vpop.f32.mrf.mxu1  ;;  %v3766_v30 = vadd.f32 %v3765_v48, %v10865_v20  ;;  %v4146_v21 = vpop.f32.mrf.mxu3  ;;  %v4979_v20 = vunpack.c.l.b16 %v4833_v42  ;;  %v6172_v54 = vshrl.u32 %v5955_v15, 16  ;;  %v6175_v48 = vshll.u32 %v5955_v15, 16 }
 0x408   : > { %v11320_v35 = vadd.f32 %v5090_v43, %v4481_v4  ;;  %v4847_v29 = vrot.slane %v4845_v58, 4  ;;  %v4850_v53 = vrot.slane %v4848_v16, 5  ;;  %v11330_v5 = vrot.slane %v4854_v59, 5  ;;  %v11333_v43 = vpop.f32.mrf.mxu0  ;;  %v11340_v58 = vld [vmem:[#allocation2 + $0xb0] sm:$0x1] }
 0x409   : > { %v11328_v32 = vadd.f32 %v4146_v21, %v3766_v30  ;;  %v4860_v31 = vrot.slane %v4858_v49, 4  ;;  %v4980_v4 = vunpack.c.l.b16 %v4843_v47  ;;  %v5347_v44 = vrot.slane %v11324_v17, 5  ;;  %12139 = vst [vmem:[#allocation16_spill] sm:$0xff] %v11333_v43  ;;  %v11346_v49 = vld [vmem:[#allocation2 + $0xac] sm:$0xf]  ;;  %v12142_v21 = vld [vmem:[#allocation17_spill] sm:$0xff] }
 0x40a   : > { %v6828_v8 = vunpack.c.l.b16 %v6757_v12  ;;  %v6829_v22 = vunpack.c.l.b16 %v6760_v6  ;;  %v6418_v39 = vpack.c.b16 %v6393_v61, %v11288_v1  ;;  %v6170_v18 = vsel %vm9706_vm5, %v6165_v37, %v6169_v14  ;;  %v12141_v6 = vld [vmem:[#allocation21_spill] sm:$0xff]  ;;  %v12198_v38 = vld [vmem:[#allocation14_spill] sm:$0xff] }
 0x40b   : > { %12138 = vst [vmem:[#allocation45_spill] sm:$0xff] %v11328_v32  ;;  %v8276_v42 = vrot.slane %v5203_v28, 9  ;;  %v11338_v15 = vunpack.c.l.b16 %v6160_v11  ;;  %v11342_v16 = vrot.slane %v6172_v54, 4  ;;  %v11344_v59 = vrot.slane %v6175_v48, 5  ;;  %v4547_v48 = vld [vmem:[#allocation2 + $0xa8] sm:$0xf] }
 0x40c   : > { %v11348_v30 = vpack.c.b16 %v6829_v22, %v6828_v8  ;;  %v4482_v47 = vadd.f32 %v12142_v21, %v12141_v6  ;;  %v4851_v61 = vor.u32 %v4850_v53, %v4847_v29  ;;  %v4861_v14 = vor.u32 %v4860_v31, %v11330_v5  ;;  %v6625_v6 = vld [vmem:[#allocation2 + $0xa8] sm:$0xe]  ;;  %v8746_v21 = vld [vmem:[#allocation2 + $0x60] sm:$0xff] }
 0x40d   : > { %v5349_v28 = vrot.slane %v5347_v44, 4  ;;  %v5000_v54 = vpack.c.b16 %v4980_v4, %v4979_v20  ;;  %v11354_v32 = vunpack.c.l.b16 %v6170_v18  ;;  %v6181_v43 = vshll.u32 %v11004_v24, 16  ;;  %v11369_v18 = vld [vmem:[#allocation2 + $0xb0] sm:$0x1] }
 0x40e   : > { %12140 = vst [vmem:[#allocation12_spill] sm:$0xff] %v11348_v30  ;;  %v3767_v1 = vpop.f32.mrf.mxu2  ;;  %v5348_v22 = vsel %vm9775_vm8, %v8276_v42, %v5347_v44  ;;  %v5350_v29 = vrot.slane %v11340_v58, 5  ;;  %v6763_v53 = vrot.slane %v11346_v49, 5  ;;  %v6178_v20 = vor.u32 %v11344_v59, %v11342_v16 }
 0x40f   : > { %v5093_v11 = vpop.f32.mrf.mxu1  ;;  %v3768_v37 = vadd.f32 %v3767_v1, %v10910_v10  ;;  %v4148_v12 = vpop.f32.mrf.mxu3  ;;  %v4864_v10 = vshll.u32 %v11269_v33, 16  ;;  %v6185_v4 = vshrl.u32 %v11004_v24, 16  ;;  %v4862_v44 = vrot.slane %v4861_v14, 4 }
 0x410   : > { %v11357_v8 = vadd.f32 %v5093_v11, %v4482_v47  ;;  %v4852_v47 = vrot.slane %v4851_v61, 4  ;;  %v4869_v42 = vshrl.u32 %v4547_v48, 16  ;;  %v5351_v1 = vsel %vm9775_vm8, %v5349_v28, %v5350_v29  ;;  %v12144_v11 = vld [vmem:[#allocation36_spill] sm:$0xff] }
 0x411   : > { %v11363_v31 = vadd.f32 %v4148_v12, %v3768_v37  ;;  %v4872_v33 = vshll.u32 %v4547_v48, 16  ;;  %v4878_v37 = vshll.u32 %v11324_v17, 16  ;;  %v5409_v16 = vunpack.c.l.b16 %v5348_v22  ;;  %v12146_v48 = vld [vmem:[#allocation25_spill] sm:$0xff]  ;;  %v12147_v29 = vld [vmem:[#allocation20_spill] sm:$0xff] }
 0x412   : > { %5132 = vmatmul.bf16.gmra.mxu1 %v5000_v54  ;;  %v5410_v59 = vunpack.c.l.b16 %v5351_v1  ;;  %v4882_v24 = vshrl.u32 %v11324_v17, 16  ;;  %v8499_v12 = vrot.slane %v6625_v6, 9  ;;  %v6765_v54 = vrot.slane %v6763_v53, 4  ;;  %v5204_v6 = vld [vmem:[#allocation2 + $0xb4] sm:$0xe] }
 0x413   : > { %12143 = vst [vmem:[#allocation47_spill] sm:$0xff] %v11363_v31  ;;  %5533 = vmatmul.bf16.gmra.mxu2 %v12144_v11  ;;  %6530 = vmatmul.bf16.gmra.mxu0 %v6418_v39  ;;  %v6766_v61 = vrot.slane %v11369_v18, 5  ;;  %v4866_v14 = vrot.slane %v4864_v10, 5  ;;  %v11377_v30 = vrot.slane %v6181_v43, 5  ;;  %v11379_v31 = vrot.slane %v6185_v4, 4  ;;  %v11383_v39 = vpop.f32.mrf.mxu0 }
 0x414   : > { %5848 = vmatmul.bf16.gmra.mxu3 %v8746_v21  ;;  %v11381_v28 = vpack.c.b16 %v5410_v59, %v5409_v16  ;;  %12145 = vst [vmem:[#allocation18_spill] sm:$0xff] %v11383_v39  ;;  %v4483_v22 = vadd.f32 %v12147_v29, %v12146_v48  ;;  %v4857_v17 = vsel %vm9706_vm5, %v4852_v47, %v11330_v5  ;;  %v4871_v16 = vrot.slane %v4869_v42, 4  ;;  %v11396_v48 = vld [vmem:[#allocation2 + $0x84] sm:$0xf]  ;;  %v11402_v47 = vld [vmem:[#allocation2 + $0xb8] sm:$0xf] }
 0x415   : > { %v6767_v43 = vsel %vm9775_vm8, %v6765_v54, %v6766_v61  ;;  %v4867_v11 = vsel %vm9706_vm5, %v4862_v44, %v4866_v14  ;;  %v4874_v59 = vrot.slane %v4872_v33, 5  ;;  %v11400_v39 = vrot.slane %v4878_v37, 5  ;;  %v11414_v61 = vld [vmem:[#allocation2 + $0xb8] sm:$0xf]  ;;  %v6626_v37 = vld [vmem:[#allocation2 + $0xb4] sm:$0xe] }
 0x416   : > { %v3770_v1 = vpop.f32.mrf.mxu2  ;;  %v4884_v5 = vrot.slane %v4882_v24, 4  ;;  %v6764_v54 = vsel %vm9775_vm8, %v8499_v12, %v6763_v53  ;;  %v6419_v44 = vpack.c.b16 %v11354_v32, %v11338_v15  ;;  %v11410_v42 = vrot.slane %v6178_v20, 4  ;;  %v11420_v12 = vld [vmem:[#allocation2 + $0xbc] sm:$0x1] }
 0x417   : > { %v5095_v10 = vpop.f32.mrf.mxu1  ;;  %v3771_v4 = vadd.f32 %v3770_v1, %v10953_v25  ;;  %v4151_v21 = vpop.f32.mrf.mxu3  ;;  %v6188_v33 = vor.u32 %v11379_v31, %v11377_v30  ;;  %v4981_v24 = vunpack.c.l.b16 %v4857_v17  ;;  %v4982_v14 = vunpack.c.l.b16 %v4867_v11 }
 0x418   : > { %v11398_v29 = vadd.f32 %v5095_v10, %v4483_v22  ;;  %v11416_v22 = vld [vmem:[#allocation2 + $0xbc] sm:$0x1]  ;;  %v6196_v1 = vshrl.u32 %v11396_v48, 16  ;;  %v6199_v53 = vshll.u32 %v11396_v48, 16  ;;  %v8277_v10 = vrot.slane %v5204_v6, 9  ;;  %v12151_v6 = vld [vmem:[#allocation24_spill] sm:$0xff] }
 0x419   : > { %v11406_v25 = vadd.f32 %v4151_v21, %v3771_v4  ;;  %v5354_v32 = vrot.slane %v11402_v47, 5  ;;  %v6830_v15 = vunpack.c.l.b16 %v6764_v54  ;;  %v6831_v20 = vunpack.c.l.b16 %v6767_v43 }
 0x41a   : > { %v4875_v4 = vor.u32 %v4874_v59, %v4871_v16  ;;  %v4885_v31 = vor.u32 %v4884_v5, %v11400_v39  ;;  %v8500_v21 = vrot.slane %v6626_v37, 9  ;;  %v6770_v17 = vrot.slane %v11414_v61, 5 }
 0x41b   : > { %12148 = vst [vmem:[#allocation15_spill] sm:$0xff] %v11406_v25  ;;  %v5355_v11 = vsel %vm9775_vm8, %v8277_v10, %v5354_v32  ;;  %v5356_v25 = vrot.slane %v5354_v32, 4  ;;  %v5357_v19 = vrot.slane %v11416_v22, 5  ;;  %v11428_v48 = vpack.c.b16 %v6831_v20, %v6830_v15  ;;  %v11439_v20 = vpop.f32.mrf.mxu0 }
 0x41c   : > { %v4484_v23 = vadd.f32 %v12151_v6, %v12150_v36  ;;  %v6771_v43 = vsel %vm9775_vm8, %v8500_v21, %v6770_v17  ;;  %v6772_v16 = vrot.slane %v6770_v17, 4  ;;  %v6773_v59 = vrot.slane %v11420_v12, 5 }
 0x41d   : > { %12149 = vst [vmem:[#allocation21_spill] sm:$0xff] %v11428_v48  ;;  %v5001_v10 = vpack.c.b16 %v4982_v14, %v4981_v24  ;;  %v4888_v32 = vshll.u32 %v11340_v58, 16  ;;  %v5358_v15 = vsel %vm9775_vm8, %v5356_v25, %v5357_v19  ;;  %v5411_v6 = vunpack.c.l.b16 %v5355_v11  ;;  %v8747_v24 = vld [vmem:[#allocation2 + $0x6c] sm:$0xff]  ;;  %v8772_v19 = vld [vmem:[%s11995_s2 + $0x200] sm:$0xff]  ;;  %v4550_v14 = vld [vmem:[#allocation2 + $0xb4] sm:$0xf] }
 0x41e   : > { %v3772_v57 = vpop.f32.mrf.mxu2  ;;  %v5412_v48 = vunpack.c.l.b16 %v5358_v15  ;;  %v6774_v21 = vsel %vm9775_vm8, %v6772_v16, %v6773_v59  ;;  %v4876_v56 = vrot.slane %v4875_v4, 4  ;;  %v4886_v58 = vrot.slane %v4885_v31, 4  ;;  %6925 = vmatpush.bf16.msra.mxu1 %v8772_v19  ;;  %v11485_v19 = vld [vmem:[#allocation2 + $0xc4] sm:$0xf] }
 0x41f   : > { %v5098_v5 = vpop.f32.mrf.mxu1  ;;  %v3773_v54 = vadd.f32 %v3772_v57, %v10998_v60  ;;  %v4153_v37 = vpop.f32.mrf.mxu3  ;;  %v6832_v60 = vunpack.c.l.b16 %v6771_v43  ;;  %v6833_v57 = vunpack.c.l.b16 %v6774_v21  ;;  %v6205_v11 = vshll.u32 %v11078_v34, 16 }
 0x420   : > { %v11441_v36 = vadd.f32 %v5098_v5, %v4484_v23  ;;  %v11450_v25 = vpack.c.b16 %v5412_v48, %v5411_v6  ;;  %v12154_v23 = vld [vmem:[#allocation42_spill] sm:$0xff]  ;;  %v4890_v4 = vrot.slane %v4888_v32, 5  ;;  %v6184_v31 = vsel %vm9706_vm5, %v11410_v42, %v11377_v30  ;;  %v12158_v32 = vld [vmem:[#allocation28_spill] sm:$0xff] }
 0x421   : > { %v11445_v17 = vadd.f32 %v4153_v37, %v3773_v54  ;;  %v11454_v16 = vpack.c.b16 %v6833_v57, %v6832_v60  ;;  %v6189_v43 = vrot.slane %v6188_v33, 4  ;;  %v12156_v59 = vshll.u32 %v11039_v41, 16 }
 0x422   : > { %12152 = vst [vmem:[#allocation17_spill] sm:$0xff] %v11441_v36  ;;  %5137 = vmatmul.bf16.gmra.mxu1 %v5001_v10  ;;  %v11465_v5 = vrot.slane %v6196_v1, 4  ;;  %v11467_v54 = vrot.slane %v6199_v53, 5  ;;  %v6209_v37 = vshrl.u32 %v11078_v34, 16  ;;  %v12157_v10 = vld [vmem:[#allocation32_spill] sm:$0xff]  ;;  %v4891_v30 = vsel %vm9706_vm5, %v4886_v58, %v4890_v4 }
 0x423   : > { %12153 = vst [vmem:[#allocation36_spill] sm:$0xff] %v11445_v17  ;;  %5538 = vmatmul.bf16.gmra.mxu2 %v12154_v23  ;;  %6535 = vmatmul.bf16.gmra.mxu0 %v6419_v44  ;;  %v6193_v48 = vrot.slane %v12156_v59, 5  ;;  %v4881_v44 = vsel %vm9706_vm5, %v4876_v56, %v11400_v39  ;;  %v4485_v15 = vadd.f32 %v12158_v32, %v12157_v10  ;;  %v4893_v41 = vshrl.u32 %v4550_v14, 16  ;;  %v11478_v53 = vld [vmem:[#allocation2 + $0xc4] sm:$0xf]  ;;  %v11491_v10 = vpop.f32.mrf.mxu0 }
 0x424   : > { %12155 = vst [vmem:[#allocation25_spill] sm:$0xff] %v11454_v16  ;;  %5853 = vmatmul.bf16.gmra.mxu3 %v8747_v24  ;;  %v4896_v42 = vshll.u32 %v4550_v14, 16  ;;  %v6396_v56 = vunpack.c.l.b16 %v6184_v31  ;;  %v4902_v39 = vshll.u32 %v11402_v47, 16  ;;  %v11476_v1 = vrot.slane %v6205_v11, 5  ;;  %v5205_v34 = vld [vmem:[#allocation2 + $0xc0] sm:$0xe] }
 0x425   : > { %v6194_v24 = vsel %vm9706_vm5, %v6189_v43, %v6193_v48  ;;  %v4906_v58 = vshrl.u32 %v11402_v47, 16  ;;  %v8278_v23 = vrot.slane %v5205_v34, 9  ;;  %v4983_v4 = vunpack.c.l.b16 %v4881_v44  ;;  %v11489_v59 = vld [vmem:[#allocation2 + $0xc8] sm:$0x1]  ;;  %12161 = vst [vmem:[#allocation24_spill] sm:$0xff] %v11491_v10  ;;  %v12163_v16 = vld [vmem:[#allocation31_spill] sm:$0xff] }
 0x426   : > { %v3775_v6 = vpop.f32.mrf.mxu2  ;;  %v4984_v31 = vunpack.c.l.b16 %v4891_v30  ;;  %v6211_v11 = vrot.slane %v6209_v37, 4  ;;  %v4895_v32 = vrot.slane %v4893_v41, 4  ;;  %v5361_v43 = vrot.slane %v11478_v53, 5 }
 0x427   : > { %v5100_v33 = vpop.f32.mrf.mxu1  ;;  %v3776_v21 = vadd.f32 %v3775_v6, %v11041_v45  ;;  %v4156_v60 = vpop.f32.mrf.mxu3  ;;  %v6627_v45 = vld [vmem:[#allocation2 + $0xc0] sm:$0xe]  ;;  %v11493_v6 = vld [vmem:[#allocation2 + $0xc8] sm:$0x1]  ;;  %v6397_v48 = vunpack.c.l.b16 %v6194_v24  ;;  %v6777_v44 = vrot.slane %v11485_v19, 5  ;;  %v4908_v37 = vrot.slane %v4906_v58, 4 }
 0x428   : > { %v11480_v57 = vadd.f32 %v5100_v33, %v4485_v15  ;;  %v4898_v15 = vrot.slane %v4896_v42, 5  ;;  %v8501_v47 = vrot.slane %v6627_v45, 9  ;;  %v11496_v33 = vrot.slane %v4902_v39, 5  ;;  %v12162_v45 = vld [vmem:[#allocation34_spill] sm:$0xff] }
 0x429   : > { %v11487_v14 = vadd.f32 %v4156_v60, %v3776_v21  ;;  %v6202_v21 = vor.u32 %v11467_v54, %v11465_v5  ;;  %v5362_v30 = vsel %vm9775_vm8, %v8278_v23, %v5361_v43  ;;  %v5363_v60 = vrot.slane %v5361_v43, 4 }
 0x42a   : > { %12159 = vst [vmem:[#allocation20_spill] sm:$0xff] %v11480_v57  ;;  %v5364_v41 = vrot.slane %v11489_v59, 5  ;;  %v6212_v42 = vor.u32 %v6211_v11, %v11476_v1  ;;  %v6778_v34 = vsel %vm9775_vm8, %v8501_v47, %v6777_v44  ;;  %v6779_v24 = vrot.slane %v6777_v44, 4 }
 0x42b   : > { %12160 = vst [vmem:[#allocation29_spill] sm:$0xff] %v11487_v14  ;;  %v6780_v39 = vrot.slane %v11493_v6, 5  ;;  %v4486_v5 = vadd.f32 %v12163_v16, %v12162_v45  ;;  %v5002_v57 = vpack.c.b16 %v4984_v31, %v4983_v4  ;;  %v4899_v58 = vor.u32 %v4898_v15, %v4895_v32 }
 0x42c   : > { %v5365_v23 = vsel %vm9775_vm8, %v5363_v60, %v5364_v41  ;;  %v5413_v11 = vunpack.c.l.b16 %v5362_v30  ;;  %v4909_v10 = vor.u32 %v4908_v37, %v11496_v33  ;;  %v6834_v16 = vunpack.c.l.b16 %v6778_v34  ;;  %v11527_v34 = vpop.f32.mrf.mxu0 }
 0x42d   : > { %v5414_v17 = vunpack.c.l.b16 %v5365_v23  ;;  %v6781_v47 = vsel %vm9775_vm8, %v6779_v24, %v6780_v39  ;;  %v6420_v31 = vpack.c.b16 %v6397_v48, %v6396_v56  ;;  %v6215_v32 = vshll.u32 %v11085_v13, 16  ;;  %v12164_v48 = vld [vmem:[#allocation37_spill] sm:$0xff] }
 0x42e   : > { %v3777_v54 = vpop.f32.mrf.mxu2  ;;  %v6835_v45 = vunpack.c.l.b16 %v6781_v47  ;;  %v4912_v30 = vshll.u32 %v11416_v22, 16  ;;  %v6203_v41 = vrot.slane %v6202_v21, 4  ;;  %v6213_v37 = vrot.slane %v6212_v42, 4 }
 0x42f   : > { %v5103_v43 = vpop.f32.mrf.mxu1  ;;  %v3778_v36 = vadd.f32 %v3777_v54, %v11080_v51  ;;  %v4158_v14 = vpop.f32.mrf.mxu3  ;;  %v11521_v15 = vpack.c.b16 %v5414_v17, %v5413_v11  ;;  %v8748_v51 = vld [vmem:[#allocation2 + $0x78] sm:$0xff]  ;;  %v4910_v56 = vrot.slane %v4909_v10, 4  ;;  %v6217_v13 = vrot.slane %v6215_v32, 5  ;;  %v4553_v17 = vld [vmem:[#allocation2 + $0xc0] sm:$0xf] }
 0x430   : > { %v11515_v44 = vadd.f32 %v5103_v43, %v4486_v5  ;;  %v11524_v60 = vpack.c.b16 %v6835_v45, %v6834_v16  ;;  %v4914_v22 = vrot.slane %v4912_v30, 5  ;;  %v6208_v21 = vsel %vm9706_vm5, %v6203_v41, %v11476_v1 }
 0x431   : > { %v11518_v4 = vadd.f32 %v4158_v14, %v3778_v36  ;;  %v4900_v36 = vrot.slane %v4899_v58, 4  ;;  %v5961_v14 = vld [vmem:[#allocation2 + $0x90] sm:$0xf]  ;;  %v6218_v42 = vsel %vm9706_vm5, %v6213_v37, %v6217_v13  ;;  %v4917_v11 = vshrl.u32 %v4553_v17, 16 }
 0x432   : > { %5142 = vmatmul.bf16.gmra.mxu1 %v5002_v57  ;;  %v12165_v57 = vld [vmem:[#allocation35_spill] sm:$0xff]  ;;  %v6220_v10 = vshrl.u32 %v5961_v14, 16  ;;  %v4915_v43 = vsel %vm9706_vm5, %v4910_v56, %v4914_v22  ;;  %v4920_v47 = vshll.u32 %v4553_v17, 16  ;;  %v4926_v16 = vshll.u32 %v11478_v53, 16  ;;  %v12166_v17 = vld [vmem:[#allocation41_spill] sm:$0xff] }
 0x433   : > { %5543 = vmatmul.bf16.gmra.mxu2 %v10843_v55  ;;  %6540 = vmatmul.bf16.gmra.mxu0 %v6420_v31  ;;  %v4487_v24 = vadd.f32 %v12165_v57, %v12164_v48  ;;  %v4905_v23 = vsel %vm9706_vm5, %v4900_v36, %v11496_v33  ;;  %v4930_v1 = vshrl.u32 %v11478_v53, 16  ;;  %v6223_v45 = vshll.u32 %v5961_v14, 16 }
 0x434   : > { %5858 = vmatmul.bf16.gmra.mxu3 %v8748_v51  ;;  %v6229_v31 = vshll.u32 %v11177_v27, 16  ;;  %v6233_v32 = vshrl.u32 %v11177_v27, 16  ;;  %v6398_v51 = vunpack.c.l.b16 %v6208_v21  ;;  %v4985_v30 = vunpack.c.l.b16 %v4905_v23  ;;  %v11550_v57 = vpop.f32.mrf.mxu0 }
 0x435   : > { %v4986_v41 = vunpack.c.l.b16 %v4915_v43  ;;  %v6399_v33 = vunpack.c.l.b16 %v6218_v42  ;;  %v6222_v37 = vrot.slane %v6220_v10, 4  ;;  %v4919_v36 = vrot.slane %v4917_v11, 4 }
 0x436   : > { %v5504_v39 = vpop.f32.mrf.mxu2  ;;  %v4922_v56 = vrot.slane %v4920_v47, 5  ;;  %v4928_v13 = vrot.slane %v4926_v16, 5  ;;  %v4932_v48 = vrot.slane %v4930_v1, 4  ;;  %v6225_v14 = vrot.slane %v6223_v45, 5  ;;  %v8749_v47 = vld [vmem:[#allocation2 + $0x84] sm:$0xff] }
 0x437   : > { %v5105_v5 = vpop.f32.mrf.mxu1  ;;  %v5584_v54 = vadd.f32 %v5504_v39, %v11117_v63  ;;  %v5819_v55 = vpop.f32.mrf.mxu3  ;;  %v6231_v22 = vrot.slane %v6229_v31, 5  ;;  %v5003_v42 = vpack.c.b16 %v4986_v41, %v4985_v30  ;;  %v6421_v23 = vpack.c.b16 %v6399_v33, %v6398_v51  ;;  %v5964_v30 = vld [vmem:[#allocation2 + $0x9c] sm:$0xf] }
 0x438   : > { %v11537_v58 = vadd.f32 %v5105_v5, %v4487_v24  ;;  %v12167_v24 = vld [vmem:[#allocation38_spill] sm:$0xff]  ;;  %v6235_v5 = vrot.slane %v6233_v32, 4  ;;  %v4923_v43 = vor.u32 %v4922_v56, %v4919_v36  ;;  %v4933_v11 = vor.u32 %v4932_v48, %v4928_v13 }
 0x439   : > { %v11544_v63 = vadd.f32 %v5819_v55, %v5584_v54  ;;  %v4488_v39 = vadd.f32 %v12167_v24, %v12166_v17  ;;  %v6226_v16 = vor.u32 %v6225_v14, %v6222_v37  ;;  %v12168_v17 = vld [vmem:[#allocation55_spill] sm:$0xff]  ;;  %v4936_v45 = vshll.u32 %v11489_v59, 16  ;;  %v12169_v41 = vld [vmem:[#allocation46_spill] sm:$0xff]  ;;  %v12170_v24 = vld [vmem:[#allocation44_spill] sm:$0xff] }
 0x43a   : > { %v6236_v1 = vor.u32 %v6235_v5, %v6231_v22  ;;  %v4924_v31 = vrot.slane %v4923_v43, 4  ;;  %v4934_v32 = vrot.slane %v4933_v11, 4  ;;  %v4489_v51 = vadd.f32 %v12170_v24, %v12169_v41 }
 0x43b   : > { %v6227_v36 = vrot.slane %v6226_v16, 4  ;;  %v6253_v43 = vshll.u32 %v11271_v7, 16  ;;  %v6257_v11 = vshrl.u32 %v11271_v7, 16 }
 0x43c   : > { %v6237_v56 = vrot.slane %v6236_v1, 4  ;;  %v11565_v14 = vpop.f32.mrf.mxu0 }
 0x43d   : > { %v6255_v41 = vrot.slane %v6253_v43, 5  ;;  %v6259_v24 = vrot.slane %v6257_v11, 4  ;;  %v5967_v11 = vld [vmem:[#allocation2 + $0xa8] sm:$0xf] }
 0x43e   : > { %v5506_v53 = vpop.f32.mrf.mxu2 }
 0x43f   : > { %v5108_v54 = vpop.f32.mrf.mxu1  ;;  %v5585_v27 = vadd.f32 %v5506_v53, %v11185_v0  ;;  %v5821_v55 = vpop.f32.mrf.mxu3  ;;  %v6239_v0 = vshll.u32 %v11188_v26, 16  ;;  %v4938_v53 = vrot.slane %v4936_v45, 5  ;;  %v6244_v26 = vshrl.u32 %v5964_v30, 16 }
 0x440   : > { %v11555_v21 = vadd.f32 %v5108_v54, %v4488_v39 }
 0x441   : > { %v11557_v10 = vadd.f32 %v5821_v55, %v5585_v27  ;;  %v6241_v5 = vrot.slane %v6239_v0, 5  ;;  %v4929_v27 = vsel %vm9706_vm5, %v4924_v31, %v4928_v13  ;;  %v4939_v55 = vsel %vm9706_vm5, %v4934_v32, %v4938_v53  ;;  %v12171_v0 = vld [vmem:[#allocation50_spill] sm:$0xff]  ;;  %v12172_v31 = vld [vmem:[#allocation48_spill] sm:$0xff]  ;;  %v8750_v53 = vld [vmem:[#allocation2 + $0x90] sm:$0xff] }
 0x442   : > { %5147 = vmatmul.bf16.gmra.mxu1 %v5003_v42  ;;  %v6247_v42 = vshll.u32 %v5964_v30, 16  ;;  %v4988_v16 = vunpack.c.l.b16 %v4939_v55  ;;  %v6246_v45 = vrot.slane %v6244_v26, 4  ;;  %v4490_v32 = vadd.f32 %v12172_v31, %v12171_v0  ;;  %v12173_v26 = vld [vmem:[#allocation59_spill] sm:$0xff] }
 0x443   : > { %5548 = vmatmul.bf16.gmra.mxu2 %v12168_v17  ;;  %6545 = vmatmul.bf16.gmra.mxu0 %v6421_v23  ;;  %v6242_v23 = vsel %vm9706_vm5, %v6237_v56, %v6241_v5  ;;  %v6260_v5 = vor.u32 %v6259_v24, %v6255_v41  ;;  %v12174_v55 = vld [vmem:[#allocation51_spill] sm:$0xff]  ;;  %v6281_v24 = vshrl.u32 %v11346_v49, 16 }
 0x444   : > { %5863 = vmatmul.bf16.gmra.mxu3 %v8749_v47  ;;  %v4987_v47 = vunpack.c.l.b16 %v4929_v27  ;;  %v6401_v17 = vunpack.c.l.b16 %v6242_v23  ;;  %v6249_v13 = vrot.slane %v6247_v42, 5  ;;  %v6263_v27 = vshll.u32 %v11290_v9, 16  ;;  %v12175_v42 = vld [vmem:[#allocation52_spill] sm:$0xff] }
 0x445   : > { %v6261_v43 = vrot.slane %v6260_v5, 4  ;;  %v6268_v9 = vshrl.u32 %v5967_v11, 16 }
 0x446   : > { %v5509_v33 = vpop.f32.mrf.mxu2  ;;  %v5004_v56 = vpack.c.b16 %v4988_v16, %v4987_v47 }
 0x447   : > { %v5110_v48 = vpop.f32.mrf.mxu1  ;;  %v5586_v37 = vadd.f32 %v5509_v33, %v11215_v2  ;;  %v5824_v39 = vpop.f32.mrf.mxu3  ;;  %v6232_v2 = vsel %vm9706_vm5, %v6227_v36, %v6231_v22 }
 0x448   : > { %v11567_v59 = vadd.f32 %v5110_v48, %v4489_v51  ;;  %v6400_v1 = vunpack.c.l.b16 %v6232_v2  ;;  %v4491_v2 = vadd.f32 %v12175_v42, %v12174_v55 }
 0x449   : > { %v11569_v54 = vadd.f32 %v5824_v39, %v5586_v37  ;;  %v6250_v37 = vor.u32 %v6249_v13, %v6246_v45  ;;  %v11588_v39 = vpop.f32.mrf.mxu0  ;;  %v6265_v45 = vrot.slane %v6263_v27, 5 }
 0x44a   : > { %v6422_v48 = vpack.c.b16 %v6401_v17, %v6400_v1 }
 0x44b   : > { %v6266_v31 = vsel %vm9706_vm5, %v6261_v43, %v6265_v45  ;;  %v8751_v43 = vld [vmem:[#allocation2 + $0x9c] sm:$0xff]  ;;  %v12180_v45 = vld [vmem:[#allocation57_spill] sm:$0xff] }
 0x44e   : > { %v5511_v30 = vpop.f32.mrf.mxu2 }
 0x44f   : > { %v5113_v22 = vpop.f32.mrf.mxu1  ;;  %v5587_v51 = vadd.f32 %v5511_v30, %v11250_v46  ;;  %v5826_v33 = vpop.f32.mrf.mxu3  ;;  %v6251_v46 = vrot.slane %v6250_v37, 4  ;;  %v6277_v30 = vshll.u32 %v11346_v49, 16 }
 0x450   : > { %v11584_v36 = vadd.f32 %v5113_v22, %v4490_v32  ;;  %v6271_v32 = vshll.u32 %v5967_v11, 16 }
 0x451   : > { %v11586_v7 = vadd.f32 %v5826_v33, %v5587_v51  ;;  %v6256_v0 = vsel %vm9706_vm5, %v6251_v46, %v6255_v41  ;;  %v11605_v22 = vpop.f32.mrf.mxu0  ;;  %v6403_v51 = vunpack.c.l.b16 %v6266_v31  ;;  %v6270_v33 = vrot.slane %v6268_v9, 4 }
 0x452   : > { %5152 = vmatmul.bf16.gmra.mxu1 %v5004_v56  ;;  %v12176_v56 = vld [vmem:[#allocation54_spill] sm:$0xff]  ;;  %v6273_v5 = vrot.slane %v6271_v32, 5  ;;  %v6279_v41 = vrot.slane %v6277_v30, 5  ;;  %v5970_v30 = vld [vmem:[#allocation2 + $0xb4] sm:$0xf] }
 0x453   : > { %5553 = vmatmul.bf16.gmra.mxu2 %v12173_v26  ;;  %6550 = vmatmul.bf16.gmra.mxu0 %v6422_v48  ;;  %v12177_v48 = vld [vmem:[#allocation56_spill] sm:$0xff]  ;;  %v6283_v26 = vrot.slane %v6281_v24, 4 }
 0x454   : > { %5868 = vmatmul.bf16.gmra.mxu3 %v8750_v53  ;;  %v4492_v37 = vadd.f32 %v12177_v48, %v12176_v56  ;;  %v6274_v11 = vor.u32 %v6273_v5, %v6270_v33  ;;  %v6292_v48 = vshrl.u32 %v5970_v30, 16  ;;  %v6301_v5 = vshll.u32 %v11414_v61, 16 }
 0x456   : > { %v5514_v23 = vpop.f32.mrf.mxu2  ;;  %v6275_v31 = vrot.slane %v6274_v11, 4 }
 0x457   : > { %v5115_v47 = vpop.f32.mrf.mxu1  ;;  %v5588_v16 = vadd.f32 %v5514_v23, %v11280_v40  ;;  %v5829_v1 = vpop.f32.mrf.mxu3  ;;  %v6402_v40 = vunpack.c.l.b16 %v6256_v0  ;;  %v12178_v23 = vld [vmem:[#allocation22_spill] sm:$0xff] }
 0x458   : > { %v11595_v17 = vadd.f32 %v5115_v47, %v4491_v2  ;;  %v6284_v47 = vor.u32 %v6283_v26, %v6279_v41  ;;  %v6305_v26 = vshrl.u32 %v11414_v61, 16 }
 0x459   : > { %v11597_v13 = vadd.f32 %v5829_v1, %v5588_v16  ;;  %v6423_v49 = vpack.c.b16 %v6403_v51, %v6402_v40  ;;  %v6287_v16 = vshll.u32 %v11369_v18, 16  ;;  %v11617_v1 = vpop.f32.mrf.mxu0  ;;  %v6295_v18 = vshll.u32 %v5970_v30, 16  ;;  %v12183_v30 = vld [vmem:[#allocation26_spill] sm:$0xff] }
 0x45a   : > { %v6285_v32 = vrot.slane %v6284_v47, 4  ;;  %v6303_v47 = vrot.slane %v6301_v5, 5 }
 0x45e   : > { %v5516_v53 = vpop.f32.mrf.mxu2 }
 0x45f   : > { %v5118_v27 = vpop.f32.mrf.mxu1  ;;  %v5589_v46 = vadd.f32 %v5516_v53, %v11320_v35  ;;  %v5831_v55 = vpop.f32.mrf.mxu3  ;;  %v12179_v35 = vld [vmem:[#allocation19_spill] sm:$0xff] }
 0x460   : > { %v11610_v42 = vadd.f32 %v5118_v27, %v4492_v37  ;;  %v4493_v0 = vadd.f32 %v12180_v45, %v12179_v35  ;;  %v6280_v37 = vsel %vm9706_vm5, %v6275_v31, %v6279_v41 }
 0x461   : > { %v11612_v2 = vadd.f32 %v5831_v55, %v5589_v46  ;;  %v6404_v27 = vunpack.c.l.b16 %v6280_v37  ;;  %v6294_v46 = vrot.slane %v6292_v48, 4  ;;  %v6297_v55 = vrot.slane %v6295_v18, 5  ;;  %v12185_v48 = vld [vmem:[#allocation63_spill] sm:$0xff] }
 0x462   : > { %6926 = vmatmul.bf16.vlgmr.msra.gmra.mxu1 %v12178_v23  ;;  %v12182_v23 = vld [vmem:[#allocation27_spill] sm:$0xff] }
 0x463   : > { %5558 = vmatmul.bf16.gmra.mxu2 %v11213_v3  ;;  %6555 = vmatmul.bf16.gmra.mxu0 %v6423_v49  ;;  %v6289_v3 = vrot.slane %v6287_v16, 5  ;;  %v12181_v49 = vld [vmem:[#allocation23_spill] sm:$0xff]  ;;  %v6307_v16 = vrot.slane %v6305_v26, 4 }
 0x464   : > { %5873 = vmatmul.bf16.gmra.mxu3 %v8751_v43  ;;  %v4494_v43 = vadd.f32 %v12182_v23, %v12181_v49  ;;  %v6329_v49 = vshrl.u32 %v11485_v19, 16 }
 0x465   : > { %v6290_v53 = vsel %vm9706_vm5, %v6285_v32, %v6289_v3  ;;  %v6298_v32 = vor.u32 %v6297_v55, %v6294_v46  ;;  %v12184_v3 = vld [vmem:[#allocation60_spill] sm:$0xff] }
 0x466   : > { %v5519_v9 = vpop.f32.mrf.mxu2  ;;  %v4495_v18 = vadd.f32 %v12185_v48, %v12184_v3  ;;  %v6335_v3 = vshll.u32 %v11493_v6, 16  ;;  %v12190_v6 = vld [vmem:[#allocation33_spill] sm:$0xff] }
 0x467   : > { %v5120_v24 = vpop.f32.mrf.mxu1  ;;  %v5590_v40 = vadd.f32 %v5519_v9, %v11357_v8  ;;  %v5834_v51 = vpop.f32.mrf.mxu3  ;;  %v6405_v8 = vunpack.c.l.b16 %v6290_v53  ;;  %v5973_v53 = vld [vmem:[#allocation2 + $0xc0] sm:$0xf] }
 0x468   : > { %v11622_v33 = vadd.f32 %v5120_v24, %v4493_v0  ;;  %v11637_v9 = vpop.f32.mrf.mxu0  ;;  %v8752_v24 = vld [vmem:[#allocation2 + $0xa8] sm:$0xff]  ;;  %v6316_v46 = vshrl.u32 %v5973_v53, 16  ;;  %v6319_v55 = vshll.u32 %v5973_v53, 16 }
 0x469   : > { %v11624_v56 = vadd.f32 %v5834_v51, %v5590_v40  ;;  %v6424_v61 = vpack.c.b16 %v6405_v8, %v6404_v27  ;;  %v6308_v40 = vor.u32 %v6307_v16, %v6303_v47  ;;  %v6311_v51 = vshll.u32 %v11420_v12, 16 }
 0x46a   : > { %v6325_v12 = vshll.u32 %v11485_v19, 16  ;;  %v6318_v16 = vrot.slane %v6316_v46, 4  ;;  %v6337_v46 = vrot.slane %v6335_v3, 5 }
 0x46b   : > { %v6309_v37 = vrot.slane %v6308_v40, 4  ;;  %v6313_v27 = vrot.slane %v6311_v51, 5  ;;  %v12187_v40 = vld [vmem:[#allocation30_spill] sm:$0xff] }
 0x46c   : > { %v8753_v51 = vld [vmem:[#allocation2 + $0xb4] sm:$0xff] }
 0x46e   : > { %v5521_v11 = vpop.f32.mrf.mxu2 }
 0x46f   : > { %v5123_v35 = vpop.f32.mrf.mxu1  ;;  %v5591_v41 = vadd.f32 %v5521_v11, %v11398_v29  ;;  %v5836_v0 = vpop.f32.mrf.mxu3  ;;  %v6299_v29 = vrot.slane %v6298_v32, 4 }
 0x470   : > { %v11635_v45 = vadd.f32 %v5123_v35, %v4494_v43  ;;  %v11654_v23 = vpop.f32.mrf.mxu0  ;;  %v12186_v35 = vld [vmem:[#allocation62_spill] sm:$0xff] }
 0x471   : > { %v11639_v31 = vadd.f32 %v5836_v0, %v5591_v41  ;;  %v6304_v8 = vsel %vm9706_vm5, %v6299_v29, %v6303_v47  ;;  %v4496_v41 = vadd.f32 %v11152_v62, %v12186_v35  ;;  %v6321_v0 = vrot.slane %v6319_v55, 5  ;;  %v12188_v62 = vld [vmem:[#allocation9_spill] sm:$0xff] }
 0x472   : > { %6931 = vmatmul.bf16.gmra.mxu1 %v12183_v30  ;;  %v6406_v43 = vunpack.c.l.b16 %v6304_v8  ;;  %v6331_v47 = vrot.slane %v6329_v49, 4  ;;  %v12191_v49 = vld [vmem:[#allocation10_spill] sm:$0xff] }
 0x473   : > { %5563 = vmatmul.bf16.gmra.mxu2 %v11308_v50  ;;  %6560 = vmatmul.bf16.gmra.mxu0 %v6424_v61  ;;  %v6314_v50 = vsel %vm9706_vm5, %v6309_v37, %v6313_v27  ;;  %v6327_v61 = vrot.slane %v6325_v12, 5  ;;  %v6322_v29 = vor.u32 %v6321_v0, %v6318_v16  ;;  %v11679_v0 = vld [vmem:[#allocation2 + $0xd0] sm:$0xf] }
 0x474   : > { %5878 = vmatmul.bf16.gmra.mxu3 %v8752_v24  ;;  %v6407_v11 = vunpack.c.l.b16 %v6314_v50 }
 0x475   : > { %v6332_v19 = vor.u32 %v6331_v47, %v6327_v61  ;;  %v6323_v53 = vrot.slane %v6322_v29, 4  ;;  %v11681_v47 = vld [vmem:[#allocation2 + $0xd4] sm:$0x1]  ;;  %v8754_v29 = vld [vmem:[#allocation2 + $0xc0] sm:$0xff] }
 0x476   : > { %v6425_v24 = vpack.c.b16 %v6407_v11, %v6406_v43  ;;  %v4498_v43 = vadd.f32 %v12191_v49, %v12190_v6  ;;  %v6359_v3 = vshll.u32 %v11681_v47, 16 }
 0x477   : > { %v5125_v5 = vpop.f32.mrf.mxu1  ;;  %v6328_v50 = vsel %vm9706_vm5, %v6323_v53, %v6327_v61 }
 0x478   : > { %v11646_v26 = vadd.f32 %v5125_v5, %v4495_v18  ;;  %v11663_v48 = vpop.f32.mrf.mxu0  ;;  %v12189_v18 = vld [vmem:[#allocation8_spill] sm:$0xff]  ;;  %v6333_v5 = vrot.slane %v6332_v19, 4  ;;  %v6408_v55 = vunpack.c.l.b16 %v6328_v50  ;;  %v6353_v19 = vshrl.u32 %v11679_v0, 16 }
 0x479   : > { %v4497_v37 = vadd.f32 %v12189_v18, %v12188_v62 }
 0x47a   : > { %v6355_v53 = vrot.slane %v6353_v19, 4 }
 0x47f   : > { %v5128_v32 = vpop.f32.mrf.mxu1 }
 0x480   : > { %v11658_v30 = vadd.f32 %v5128_v32, %v4496_v41  ;;  %v11675_v11 = vpop.f32.mrf.mxu0  ;;  %v5976_v41 = vld [vmem:[#allocation2 + $0xcc] sm:$0xf] }
 0x481   : > { %v6340_v61 = vshrl.u32 %v5976_v41, 16 }
 0x482   : > { %6936 = vmatmul.bf16.gmra.mxu1 %v12187_v40  ;;  %v6349_v40 = vshll.u32 %v11679_v0, 16 }
 0x483   : > { %5568 = vmatmul.bf16.gmra.mxu2 %v11381_v28  ;;  %6565 = vmatmul.bf16.gmra.mxu0 %v6425_v24  ;;  %v6338_v28 = vsel %vm9706_vm5, %v6333_v5, %v6337_v46  ;;  %v6343_v24 = vshll.u32 %v5976_v41, 16  ;;  %v6342_v62 = vrot.slane %v6340_v61, 4  ;;  %v12194_v46 = vld [vmem:[#allocation11_spill] sm:$0xff] }
 0x484   : > { %5883 = vmatmul.bf16.gmra.mxu3 %v8753_v51  ;;  %v6409_v12 = vunpack.c.l.b16 %v6338_v28  ;;  %v12192_v51 = vld [vmem:[#allocation39_spill] sm:$0xff] }
 0x485   : > { %v6345_v18 = vrot.slane %v6343_v24, 5  ;;  %v12195_v24 = vld [vmem:[#allocation40_spill] sm:$0xff] }
 0x486   : > { %v6426_v32 = vpack.c.b16 %v6409_v12, %v6408_v55  ;;  %v6361_v55 = vrot.slane %v6359_v3, 5 }
 0x487   : > { %v5130_v27 = vpop.f32.mrf.mxu1  ;;  %v6346_v5 = vor.u32 %v6345_v18, %v6342_v62  ;;  %v8755_v62 = vld [vmem:[#allocation2 + $0xcc] sm:$0xff]  ;;  %v12197_v18 = vld [vmem:[#allocation43_spill] sm:$0xff] }
 0x488   : > { %v11667_v8 = vadd.f32 %v5130_v27, %v4497_v37  ;;  %v6351_v37 = vrot.slane %v6349_v40, 5  ;;  %v12193_v27 = vld [vmem:[#allocation7_spill] sm:$0xff]  ;;  %v12196_v40 = vld [vmem:[#allocation16_spill] sm:$0xff] }
 0x489   : > { %v4499_v50 = vadd.f32 %v12194_v46, %v12193_v27  ;;  %v6347_v6 = vrot.slane %v6346_v5, 4 }
 0x48a   : > { %v6356_v28 = vor.u32 %v6355_v53, %v6351_v37 }
 0x48f   : > { %v5133_v16 = vpop.f32.mrf.mxu1 }
 0x490   : > { %v11677_v35 = vadd.f32 %v5133_v16, %v4498_v43  ;;  %v6357_v43 = vrot.slane %v6356_v28, 4  ;;  %v11692_v16 = vpop.f32.mrf.mxu0 }
 0x492   : > { %6941 = vmatmul.bf16.gmra.mxu1 %v12192_v51  ;;  %v6362_v41 = vsel %vm9706_vm5, %v6357_v43, %v6361_v55  ;;  %v4500_v51 = vadd.f32 %v12196_v40, %v12195_v24  ;;  %v12202_v43 = vld [vmem:[#allocation47_spill] sm:$0xff] }
 0x493   : > { %5573 = vmatmul.bf16.gmra.mxu2 %v11450_v25  ;;  %6570 = vmatmul.bf16.gmra.mxu0 %v6426_v32  ;;  %v6352_v25 = vsel %vm9706_vm5, %v6347_v6, %v6351_v37  ;;  %v6411_v61 = vunpack.c.l.b16 %v6362_v41  ;;  %v12199_v37 = vld [vmem:[#allocation18_spill] sm:$0xff]  ;;  %v12201_v6 = vld [vmem:[#allocation49_spill] sm:$0xff] }
 0x494   : > { %5888 = vmatmul.bf16.gmra.mxu3 %v8754_v29  ;;  %v6410_v32 = vunpack.c.l.b16 %v6352_v25  ;;  %v4501_v5 = vadd.f32 %v12199_v37, %v12198_v38  ;;  %v12203_v25 = vld [vmem:[#allocation24_spill] sm:$0xff]  ;;  %v12207_v38 = vld [vmem:[#allocation29_spill] sm:$0xff] }
 0x495   : > { %v4503_v41 = vadd.f32 %v12203_v25, %v12202_v43  ;;  %v4506_v37 = vadd.f32 %v11565_v14, %v12207_v38  ;;  %v8551_v25 = vld [vmem:[%s9035_s25 + $0x19] sm:$0xff] }
 0x496   : > { %v6427_v19 = vpack.c.b16 %v6411_v61, %v6410_v32  ;;  %v12204_v61 = vld [vmem:[#allocation15_spill] sm:$0xff] }
 0x497   : > { %v5135_v12 = vpop.f32.mrf.mxu1  ;;  %v4504_v24 = vadd.f32 %v11527_v34, %v12204_v61  ;;  %v12208_v34 = vld [vmem:[#allocation58_spill] sm:$0xff] }
 0x498   : > { %v11690_v49 = vadd.f32 %v5135_v12, %v4499_v50  ;;  %v11703_v53 = vpop.f32.mrf.mxu0  ;;  %v12200_v50 = vld [vmem:[#allocation45_spill] sm:$0xff] }
 0x499   : > { %v4502_v28 = vadd.f32 %v11439_v20, %v12200_v50  ;;  %v12206_v20 = vld [vmem:[#allocation36_spill] sm:$0xff]  ;;  %v4507_v50 = vadd.f32 %v11588_v39, %v11518_v4  ;;  %v12209_v39 = vld [vmem:[#allocation61_spill] sm:$0xff] }
 0x49f   : > { %v5138_v29 = vpop.f32.mrf.mxu1 }
 0x4a0   : > { %v11700_v3 = vadd.f32 %v5138_v29, %v4500_v51  ;;  %v12205_v29 = vld [vmem:[#allocation53_spill] sm:$0xff] }
 0x4a2   : > { %6946 = vmatmul.bf16.gmra.mxu1 %v12197_v18 }
 0x4a3   : > { %5578 = vmatmul.bf16.gmra.mxu2 %v11521_v15  ;;  %6575 = vmatmul.bf16.gmra.mxu0 %v6427_v19  ;;  %v4505_v19 = vadd.f32 %v11550_v57, %v12206_v20  ;;  %v6581_v57 = vadd.f32 %v11605_v22, %v11544_v63  ;;  %v6582_v22 = vadd.f32 %v11617_v1, %v11557_v10  ;;  %v11759_v20 = vpop.f32.mrf.mxu3 }
 0x4a4   : > { %5893 = vmatmul.bf16.gmra.mxu3 %v8755_v62  ;;  %v6583_v10 = vadd.f32 %v11637_v9, %v11569_v54  ;;  %v6584_v54 = vadd.f32 %v11654_v23, %v11586_v7 }
 0x4a7   : > { %v5140_v27 = vpop.f32.mrf.mxu1 }
 0x4a8   : > { %v11708_v46 = vadd.f32 %v5140_v27, %v4501_v5 }
 0x4af   : > { %v5143_v55 = vpop.f32.mrf.mxu1 }
 0x4b0   : > { %v11712_v12 = vadd.f32 %v5143_v55, %v4502_v28 }
 0x4b2   : > { %6951 = vmatmul.bf16.gmra.mxu1 %v12201_v6  ;;  %v11742_v6 = vld [vmem:[%s11997_s4] ss:$0 sm:$0xff] }
 0x4b7   : > { %v5145_v15 = vpop.f32.mrf.mxu1 }
 0x4b8   : > { %v11717_v32 = vadd.f32 %v5145_v15, %v4503_v41  ;;  %v11750_v15 = vpop.f32.mrf.mxu2 }
 0x4bf   : > { %v5148_v40 = vpop.f32.mrf.mxu1 }
 0x4c0   : > { %v11721_v51 = vadd.f32 %v5148_v40, %v4504_v24  ;;  %v8552_v40 = vld [vmem:[%s9035_s25 + $0x21] sm:$0xff]  ;;  %v11765_v1 = vpop.f32.mrf.mxu2 }
 0x4c2   : > { %6956 = vmatmul.bf16.gmra.mxu1 %v12205_v29 }
 0x4c7   : > { %v5150_v62 = vpop.f32.mrf.mxu1 }
 0x4c8   : > { %v11726_v18 = vadd.f32 %v5150_v62, %v4505_v19  ;;  %v11761_v62 = vpop.f32.mrf.mxu0 }
 0x4cf   : > { %v5153_v5 = vpop.f32.mrf.mxu1 }
 0x4d0   : > { %v11730_v27 = vadd.f32 %v5153_v5, %v4506_v37 }
 0x4d2   : > { %6961 = vmatmul.bf16.gmra.mxu1 %v12208_v34  ;;  %v8553_v34 = vld [vmem:[%s9035_s25 + $0x31] sm:$0xff] }
 0x4d7   : > { %v5155_v28 = vpop.f32.mrf.mxu1 }
 0x4d8   : > { %v11735_v55 = vadd.f32 %v5155_v28, %v4507_v50  ;;  %v12210_v28 = vld [vmem:[#allocation6_spill] sm:$0xff] }
 0x4df   : > { %v6927_v14 = vpop.f32.mrf.mxu1 }
 0x4e0   : > { %v7007_v43 = vadd.f32 %v6927_v14, %v6581_v57  ;;  %v11771_v14 = vpop.f32.mrf.mxu3 }
 0x4e2   : > { %v7075_v4 = vadd.f32 %v11742_v6, %v7007_v43  ;;  %6966 = vmatmul.bf16.gmra.mxu1 %v12209_v39  ;;  %v11778_v39 = vpop.f32.mrf.mxu2 }
 0x4e4   : > { %v7107_v41 = vadd.f32 %v8551_v25, %v7075_v4  ;;  %v11775_v25 = vpop.f32.mrf.mxu0 }
 0x4e6   : > { %v7139_v63 = vmax.f32 %v7107_v41, 0.0  ;;  %v8554_v41 = vld [vmem:[%s9035_s25 + $0x39] sm:$0xff] }
 0x4e7   : > { %v6929_v61 = vpop.f32.mrf.mxu1 }
 0x4e8   : > { %7171 = vst [vmem:[%s11754_s6] sm:$0xff] %v7139_v63  ;;  %v7008_v24 = vadd.f32 %v6929_v61, %v6582_v22 }
 0x4ea   : > { %v7076_v29 = vadd.f32 %v11742_v6, %v7008_v24  ;;  %v6585_v24 = vadd.f32 %v11663_v48, %v11597_v13  ;;  %v6586_v13 = vadd.f32 %v11675_v11, %v11612_v2  ;;  %v8557_v11 = vld [vmem:[%s9035_s25 + $0x61] sm:$0xff] }
 0x4ec   : > { %v7108_v19 = vadd.f32 %v8552_v40, %v7076_v29  ;;  %v11784_v40 = vpop.f32.mrf.mxu3  ;;  %v8555_v29 = vld [vmem:[%s9035_s25 + $0x49] sm:$0xff] }
 0x4ee   : > { %v7140_v38 = vmax.f32 %v7108_v19, 0.0  ;;  %v11788_v19 = vpop.f32.mrf.mxu0 }
 0x4ef   : > { %v6932_v37 = vpop.f32.mrf.mxu1 }
 0x4f0   : > { %7172 = vst [vmem:[%s11754_s6 + $0x8] sm:$0xff] %v7140_v38  ;;  %v7009_v5 = vadd.f32 %v6932_v37, %v6583_v10  ;;  %v12211_v10 = vld [vmem:[#allocation13_spill] sm:$0xff]  ;;  %v5531_v37 = vpop.f32.mrf.mxu2 }
 0x4f2   : > { %v7077_v50 = vadd.f32 %v11742_v6, %v7009_v5  ;;  %6971 = vmatmul.bf16.gmra.mxu1 %v12210_v28 }
 0x4f4   : > { %v7109_v57 = vadd.f32 %v8553_v34, %v7077_v50  ;;  %v11795_v28 = vpop.f32.mrf.mxu3 }
 0x4f6   : > { %v7141_v43 = vmax.f32 %v7109_v57, 0.0  ;;  %v8556_v57 = vld [vmem:[%s9035_s25 + $0x51] sm:$0xff] }
 0x4f7   : > { %v6934_v9 = vpop.f32.mrf.mxu1 }
 0x4f8   : > { %7173 = vst [vmem:[%s11754_s6 + $0x10] sm:$0xff] %v7141_v43  ;;  %v7010_v4 = vadd.f32 %v6934_v9, %v6584_v54  ;;  %v11799_v54 = vpop.f32.mrf.mxu0 }
 0x4fa   : > { %v7078_v63 = vadd.f32 %v11742_v6, %v7010_v4  ;;  %v11801_v4 = vpop.f32.mrf.mxu2 }
 0x4fc   : > { %v7110_v22 = vadd.f32 %v8554_v41, %v7078_v63  ;;  %v6587_v63 = vadd.f32 %v11692_v16, %v11624_v56  ;;  %v6588_v56 = vadd.f32 %v11703_v53, %v11639_v31 }
 0x4fe   : > { %v7142_v61 = vmax.f32 %v7110_v22, 0.0 }
 0x4ff   : > { %v6937_v7 = vpop.f32.mrf.mxu1 }
 0x500   : > { %7174 = vst [vmem:[%s11754_s6 + $0x18] sm:$0xff] %v7142_v61  ;;  %v7011_v23 = vadd.f32 %v6937_v7, %v6585_v24  ;;  %v12212_v24 = vld [vmem:[#allocation12_spill] sm:$0xff]  ;;  %v5849_v7 = vpop.f32.mrf.mxu3 }
 0x502   : > { %v7079_v38 = vadd.f32 %v11742_v6, %v7011_v23  ;;  %6976 = vmatmul.bf16.gmra.mxu1 %v12211_v10  ;;  %v11811_v10 = vpop.f32.mrf.mxu0  ;;  %v5536_v16 = vpop.f32.mrf.mxu2 }
 0x504   : > { %v7111_v5 = vadd.f32 %v8555_v29, %v7079_v38  ;;  %v12213_v29 = vld [vmem:[#allocation17_spill] sm:$0xff] }
 0x505   : > { %v5592_v38 = vadd.f32 %v11750_v15, %v12213_v29  ;;  %v12214_v15 = vld [vmem:[#allocation20_spill] sm:$0xff] }
 0x506   : > { %v7143_v34 = vmax.f32 %v7111_v5, 0.0 }
 0x507   : > { %v6939_v48 = vpop.f32.mrf.mxu1 }
 0x508   : > { %7175 = vst [vmem:[%s11754_s6 + $0x20] sm:$0xff] %v7143_v34  ;;  %v7012_v50 = vadd.f32 %v6939_v48, %v6586_v13  ;;  %v8558_v48 = vld [vmem:[%s9035_s25 + $0x69] sm:$0xff] }
 0x50a   : > { %v7080_v43 = vadd.f32 %v11742_v6, %v7012_v50  ;;  %v5907_v50 = vadd.f32 %v11759_v20, %v5592_v38  ;;  %v11824_v53 = vpop.f32.mrf.mxu0  ;;  %v8559_v20 = vld [vmem:[%s9035_s25 + $0x79] sm:$0xff] }
 0x50c   : > { %v7112_v9 = vadd.f32 %v8556_v57, %v7080_v43 }
 0x50e   : > { %v7144_v41 = vmax.f32 %v7112_v9, 0.0  ;;  %v11819_v9 = vpop.f32.mrf.mxu3 }
 0x50f   : > { %v6942_v22 = vpop.f32.mrf.mxu1 }
 0x510   : > { %7176 = vst [vmem:[%s11754_s6 + $0x28] sm:$0xff] %v7144_v41  ;;  %v7013_v2 = vadd.f32 %v6942_v22, %v6587_v63  ;;  %v5593_v41 = vadd.f32 %v11765_v1, %v12214_v15  ;;  %v6589_v22 = vadd.f32 %v11761_v62, %v5907_v50  ;;  %v5594_v62 = vadd.f32 %v11778_v39, %v11515_v44 }
 0x511   : > { %v5595_v44 = vadd.f32 %v5531_v37, %v11537_v58 }
 0x512   : > { %v7081_v61 = vadd.f32 %v11742_v6, %v7013_v2  ;;  %6981 = vmatmul.bf16.gmra.mxu1 %v12212_v24 }
 0x514   : > { %v7113_v23 = vadd.f32 %v8557_v11, %v7081_v61  ;;  %v11827_v11 = vpop.f32.mrf.mxu2  ;;  %v5908_v61 = vadd.f32 %v11771_v14, %v5593_v41  ;;  %v5909_v14 = vadd.f32 %v11784_v40, %v5594_v62  ;;  %v5910_v40 = vadd.f32 %v11795_v28, %v5595_v44  ;;  %v8562_v28 = vld [vmem:[%s9035_s25 + $0x99] sm:$0xff]  ;;  %v6628_v44 = vld [vmem:[#allocation2 + $0xcc] sm:$0xe] }
 0x516   : > { %v7145_v5 = vmax.f32 %v7113_v23, 0.0  ;;  %v12215_v23 = vld [vmem:[#allocation21_spill] sm:$0xff]  ;;  %v6590_v38 = vadd.f32 %v11775_v25, %v5908_v61  ;;  %v6591_v25 = vadd.f32 %v11788_v19, %v5909_v14  ;;  %v5596_v19 = vadd.f32 %v11801_v4, %v11555_v21 }
 0x517   : > { %v6944_v34 = vpop.f32.mrf.mxu1 }
 0x518   : > { %7177 = vst [vmem:[%s11754_s6 + $0x30] sm:$0xff] %v7145_v5  ;;  %v7014_v13 = vadd.f32 %v6944_v34, %v6588_v56  ;;  %v11836_v5 = vpop.f32.mrf.mxu3  ;;  %v5911_v62 = vadd.f32 %v5849_v7, %v5596_v19  ;;  %v8564_v19 = vld [vmem:[%s9035_s25 + $0xb1] sm:$0xff] }
 0x51a   : > { %v7082_v57 = vadd.f32 %v11742_v6, %v7014_v13  ;;  %v8560_v13 = vld [vmem:[%s9035_s25 + $0x81] sm:$0xff]  ;;  %v6593_v21 = vadd.f32 %v11811_v10, %v5911_v62  ;;  %v6787_v10 = vrot.slane %v11681_v47, 5 }
 0x51c   : > { %v7114_v43 = vadd.f32 %v8558_v48, %v7082_v57  ;;  %v11841_v48 = vpop.f32.mrf.mxu0  ;;  %v5541_v57 = vpop.f32.mrf.mxu2 }
 0x51e   : > { %v7146_v63 = vmax.f32 %v7114_v43, 0.0 }
 0x51f   : > { %v6947_v31 = vpop.f32.mrf.mxu1 }
 0x520   : > { %7178 = vst [vmem:[%s11754_s6 + $0x38] sm:$0xff] %v7146_v63  ;;  %v7015_v2 = vadd.f32 %v6947_v31, %v6589_v22  ;;  %v11847_v63 = vpop.f32.mrf.mxu3  ;;  %v8561_v22 = vld [vmem:[%s9035_s25 + $0x91] sm:$0xff] }
 0x522   : > { %v7083_v24 = vadd.f32 %v11742_v6, %v7015_v2  ;;  %6986 = vmatmul.bf16.gmra.mxu1 %v12215_v23  ;;  %v12216_v2 = vld [vmem:[#allocation25_spill] sm:$0xff] }
 0x524   : > { %v7115_v1 = vadd.f32 %v8559_v20, %v7083_v24  ;;  %v11853_v20 = vpop.f32.mrf.mxu0  ;;  %v5544_v37 = vpop.f32.mrf.mxu2  ;;  %v6592_v24 = vadd.f32 %v11799_v54, %v5910_v40 }
 0x526   : > { %v7147_v29 = vmax.f32 %v7115_v1, 0.0 }
 0x527   : > { %v6949_v56 = vpop.f32.mrf.mxu1 }
 0x528   : > { %7179 = vst [vmem:[%s11754_s6 + $0x40] sm:$0xff] %v7147_v29  ;;  %v7016_v34 = vadd.f32 %v6949_v56, %v6590_v38  ;;  %v5859_v38 = vpop.f32.mrf.mxu3 }
 0x52a   : > { %v7084_v50 = vadd.f32 %v11742_v6, %v7016_v34  ;;  %v5597_v34 = vadd.f32 %v5536_v16, %v11567_v59  ;;  %v8502_v59 = vrot.slane %v6628_v44, 9 }
 0x52c   : > { %v7116_v43 = vadd.f32 %v8560_v13, %v7084_v50  ;;  %v11862_v13 = vpop.f32.mrf.mxu0  ;;  %v5546_v4 = vpop.f32.mrf.mxu2  ;;  %v6784_v50 = vrot.slane %v11679_v0, 5  ;;  %v5912_v7 = vadd.f32 %v11819_v9, %v5597_v34  ;;  %v5598_v0 = vadd.f32 %v11827_v11, %v11584_v36  ;;  %v8565_v34 = vld [vmem:[%s9035_s25 + $0xc1] sm:$0xff] }
 0x52e   : > { %v7148_v39 = vmax.f32 %v7116_v43, 0.0  ;;  %v6786_v16 = vrot.slane %v6784_v50, 4  ;;  %v6594_v40 = vadd.f32 %v11824_v53, %v5912_v7  ;;  %v6785_v9 = vsel %vm9775_vm8, %v8502_v59, %v6784_v50  ;;  %v8566_v7 = vld [vmem:[%s9035_s25 + $0xc9] sm:$0xff] }
 0x52f   : > { %v6952_v15 = vpop.f32.mrf.mxu1  ;;  %v6836_v11 = vunpack.c.l.b16 %v6785_v9 }
 0x530   : > { %7180 = vst [vmem:[%s11754_s6 + $0x48] sm:$0xff] %v7148_v39  ;;  %v7017_v41 = vadd.f32 %v6952_v15, %v6591_v25  ;;  %v8563_v39 = vld [vmem:[%s9035_s25 + $0xa9] sm:$0xff] }
 0x532   : > { %v7085_v31 = vadd.f32 %v11742_v6, %v7017_v41  ;;  %6991 = vmatmul.bf16.gmra.mxu1 %v12216_v2  ;;  %v5861_v41 = vpop.f32.mrf.mxu3 }
 0x534   : > { %v7117_v58 = vadd.f32 %v8561_v22, %v7085_v31  ;;  %v6543_v2 = vpop.f32.mrf.mxu0  ;;  %v5549_v47 = vpop.f32.mrf.mxu2 }
 0x536   : > { %v7149_v61 = vmax.f32 %v7117_v58, 0.0 }
 0x537   : > { %v6954_v23 = vpop.f32.mrf.mxu1 }
 0x538   : > { %7181 = vst [vmem:[%s11754_s6 + $0x50] sm:$0xff] %v7149_v61  ;;  %v7018_v1 = vadd.f32 %v6954_v23, %v6592_v24  ;;  %v5913_v61 = vadd.f32 %v11836_v5, %v5598_v0  ;;  %v5599_v23 = vadd.f32 %v5541_v57, %v11595_v17  ;;  %v5600_v17 = vadd.f32 %v5544_v37, %v11610_v42 }
 0x53a   : > { %v7086_v29 = vadd.f32 %v11742_v6, %v7018_v1  ;;  %v6595_v52 = vadd.f32 %v11841_v48, %v5913_v61  ;;  %v5864_v62 = vpop.f32.mrf.mxu3  ;;  %v5914_v5 = vadd.f32 %v11847_v63, %v5599_v23 }
 0x53c   : > { %v7118_v56 = vadd.f32 %v8562_v28, %v7086_v29  ;;  %v6596_v48 = vadd.f32 %v11853_v20, %v5914_v5 }
 0x53e   : > { %v7150_v14 = vmax.f32 %v7118_v56, 0.0 }
 0x53f   : > { %v6957_v54 = vpop.f32.mrf.mxu1 }
 0x540   : > { %7182 = vst [vmem:[%s11754_s6 + $0x58] sm:$0xff] %v7150_v14  ;;  %v7019_v43 = vadd.f32 %v6957_v54, %v6593_v21  ;;  %v6546_v14 = vpop.f32.mrf.mxu0  ;;  %v5551_v54 = vpop.f32.mrf.mxu2 }
 0x541   : > { %v5603_v23 = vadd.f32 %v5551_v54, %v11646_v26 }
 0x542   : > { %v7087_v25 = vadd.f32 %v11742_v6, %v7019_v43  ;;  %6996 = vmatmul.bf16.gmra.mxu1 %v11524_v60  ;;  %v6788_v60 = vsel %vm9775_vm8, %v6786_v16, %v6787_v10 }
 0x543   : > { %v6837_v53 = vunpack.c.l.b16 %v6788_v60  ;;  %v5602_v60 = vadd.f32 %v5549_v47, %v11635_v45 }
 0x544   : > { %v7119_v15 = vadd.f32 %v8563_v39, %v7087_v25  ;;  %v5866_v39 = vpop.f32.mrf.mxu3  ;;  %v5915_v25 = vadd.f32 %v5859_v38, %v5600_v17  ;;  %v8570_v17 = vld [vmem:[%s9035_s25 + $0xf9] sm:$0xff] }
 0x545   : > { %v6853_v28 = vpack.c.b16 %v6837_v53, %v6836_v11  ;;  %v5917_v11 = vadd.f32 %v5864_v62, %v5602_v60 }
 0x546   : > { %v7151_v22 = vmax.f32 %v7119_v15, 0.0  ;;  %v5601_v15 = vadd.f32 %v5546_v4, %v11622_v33  ;;  %v6597_v42 = vadd.f32 %v11862_v13, %v5915_v25 }
 0x547   : > { %v6959_v31 = vpop.f32.mrf.mxu1  ;;  %v6599_v45 = vadd.f32 %v6546_v14, %v5917_v11 }
 0x548   : > { %7183 = vst [vmem:[%s11754_s6 + $0x60] sm:$0xff] %v7151_v22  ;;  %v7020_v58 = vadd.f32 %v6959_v31, %v6594_v40  ;;  %v6548_v59 = vpop.f32.mrf.mxu0  ;;  %v5554_v10 = vpop.f32.mrf.mxu2  ;;  %v8567_v22 = vld [vmem:[%s9035_s25 + $0xd9] sm:$0xff]  ;;  %v5916_v40 = vadd.f32 %v5861_v41, %v5601_v15 }
 0x549   : > { %v5604_v5 = vadd.f32 %v5554_v10, %v11658_v30  ;;  %v8571_v10 = vld [vmem:[%s9035_s25 + $0x109] sm:$0xff] }
 0x54a   : > { %v7088_v36 = vadd.f32 %v11742_v6, %v7020_v58  ;;  %v6598_v33 = vadd.f32 %v6543_v2, %v5916_v40 }
 0x54c   : > { %v7120_v24 = vadd.f32 %v8564_v19, %v7088_v36  ;;  %v5869_v38 = vpop.f32.mrf.mxu3  ;;  %v8568_v36 = vld [vmem:[%s9035_s25 + $0xe1] sm:$0xff] }
 0x54e   : > { %v7152_v1 = vmax.f32 %v7120_v24, 0.0 }
 0x54f   : > { %v6962_v29 = vpop.f32.mrf.mxu1 }
 0x550   : > { %7184 = vst [vmem:[%s11754_s6 + $0x68] sm:$0xff] %v7152_v1  ;;  %v7021_v56 = vadd.f32 %v6962_v29, %v6595_v52  ;;  %v6551_v58 = vpop.f32.mrf.mxu0  ;;  %v5556_v4 = vpop.f32.mrf.mxu2  ;;  %v8569_v29 = vld [vmem:[%s9035_s25 + $0xf1] sm:$0xff] }
 0x552   : > { %v7089_v21 = vadd.f32 %v11742_v6, %v7021_v56  ;;  %7001 = vmatmul.bf16.gmra.mxu1 %v6853_v28  ;;  %v5918_v56 = vadd.f32 %v5866_v39, %v5603_v23 }
 0x554   : > { %v7121_v50 = vadd.f32 %v8565_v34, %v7089_v21  ;;  %v5871_v24 = vpop.f32.mrf.mxu3 }
 0x556   : > { %v7153_v57 = vmax.f32 %v7121_v50, 0.0  ;;  %v6600_v50 = vadd.f32 %v6548_v59, %v5918_v56 }
 0x557   : > { %v6964_v43 = vpop.f32.mrf.mxu1 }
 0x558   : > { %7185 = vst [vmem:[%s11754_s6 + $0x70] sm:$0xff] %v7153_v57  ;;  %v7022_v44 = vadd.f32 %v6964_v43, %v6596_v48  ;;  %v6553_v52 = vpop.f32.mrf.mxu0  ;;  %v5559_v28 = vpop.f32.mrf.mxu2  ;;  %v5919_v57 = vadd.f32 %v5869_v38, %v5604_v5 }
 0x55a   : > { %v7090_v63 = vadd.f32 %v11742_v6, %v7022_v44  ;;  %v6601_v30 = vadd.f32 %v6551_v58, %v5919_v57  ;;  %v8575_v57 = vld [vmem:[%s9035_s25 + $0x139] sm:$0xff] }
 0x55c   : > { %v7122_v16 = vadd.f32 %v8566_v7, %v7090_v63  ;;  %v5874_v26 = vpop.f32.mrf.mxu3  ;;  %v5605_v7 = vadd.f32 %v5556_v4, %v11667_v8 }
 0x55e   : > { %v7154_v0 = vmax.f32 %v7122_v16, 0.0  ;;  %v5920_v15 = vadd.f32 %v5871_v24, %v5605_v7 }
 0x55f   : > { %v6967_v37 = vpop.f32.mrf.mxu1 }
 0x560   : > { %7186 = vst [vmem:[%s11754_s6 + $0x78] sm:$0xff] %v7154_v0  ;;  %v7023_v20 = vadd.f32 %v6967_v37, %v6597_v42  ;;  %v6556_v48 = vpop.f32.mrf.mxu0  ;;  %v5561_v44 = vpop.f32.mrf.mxu2  ;;  %v6602_v8 = vadd.f32 %v6553_v52, %v5920_v15 }
 0x561   : > { %v5607_v4 = vadd.f32 %v5561_v44, %v11690_v49 }
 0x562   : > { %v7091_v31 = vadd.f32 %v11742_v6, %v7023_v20 }
 0x564   : > { %v7123_v9 = vadd.f32 %v8567_v22, %v7091_v31  ;;  %v5876_v16 = vpop.f32.mrf.mxu3  ;;  %v5606_v22 = vadd.f32 %v5559_v28, %v11677_v35 }
 0x565   : > { %v5922_v24 = vadd.f32 %v5876_v16, %v5607_v4 }
 0x566   : > { %v7155_v19 = vmax.f32 %v7123_v9, 0.0  ;;  %v8572_v9 = vld [vmem:[%s9035_s25 + $0x111] sm:$0xff]  ;;  %v5921_v60 = vadd.f32 %v5874_v26, %v5606_v22 }
 0x567   : > { %v6969_v61 = vpop.f32.mrf.mxu1 }
 0x568   : > { %7187 = vst [vmem:[%s11754_s6 + $0x80] sm:$0xff] %v7155_v19  ;;  %v7024_v13 = vadd.f32 %v6969_v61, %v6598_v33  ;;  %v6558_v42 = vpop.f32.mrf.mxu0  ;;  %v5564_v20 = vpop.f32.mrf.mxu2 }
 0x569   : > { %v6604_v49 = vadd.f32 %v6558_v42, %v5922_v24 }
 0x56a   : > { %v7092_v53 = vadd.f32 %v11742_v6, %v7024_v13 }
 0x56c   : > { %v7124_v41 = vadd.f32 %v8568_v36, %v7092_v53  ;;  %v5879_v19 = vpop.f32.mrf.mxu3  ;;  %v6603_v36 = vadd.f32 %v6556_v48, %v5921_v60 }
 0x56e   : > { %v7156_v1 = vmax.f32 %v7124_v41, 0.0  ;;  %v8573_v41 = vld [vmem:[%s9035_s25 + $0x121] sm:$0xff] }
 0x56f   : > { %v6972_v47 = vpop.f32.mrf.mxu1 }
 0x570   : > { %7188 = vst [vmem:[%s11754_s6 + $0x88] sm:$0xff] %v7156_v1  ;;  %v7025_v2 = vadd.f32 %v6972_v47, %v6599_v45  ;;  %v6561_v61 = vpop.f32.mrf.mxu0  ;;  %v5566_v35 = vpop.f32.mrf.mxu2  ;;  %v5608_v47 = vadd.f32 %v5564_v20, %v11700_v3 }
 0x572   : > { %v7093_v34 = vadd.f32 %v11742_v6, %v7025_v2 }
 0x574   : > { %v7125_v62 = vadd.f32 %v8569_v29, %v7093_v34  ;;  %v5881_v45 = vpop.f32.mrf.mxu3  ;;  %v8574_v34 = vld [vmem:[%s9035_s25 + $0x129] sm:$0xff] }
 0x576   : > { %v7157_v21 = vmax.f32 %v7125_v62, 0.0  ;;  %v5923_v62 = vadd.f32 %v5879_v19, %v5608_v47 }
 0x577   : > { %v6974_v54 = vpop.f32.mrf.mxu1 }
 0x578   : > { %7189 = vst [vmem:[%s11754_s6 + $0x90] sm:$0xff] %v7157_v21  ;;  %v7026_v14 = vadd.f32 %v6974_v54, %v6600_v50  ;;  %v6563_v28 = vpop.f32.mrf.mxu0  ;;  %v5569_v56 = vpop.f32.mrf.mxu2  ;;  %v5609_v50 = vadd.f32 %v5566_v35, %v11708_v46  ;;  %v6605_v54 = vadd.f32 %v6561_v61, %v5923_v62 }
 0x57a   : > { %v7094_v43 = vadd.f32 %v11742_v6, %v7026_v14  ;;  %v5924_v48 = vadd.f32 %v5881_v45, %v5609_v50 }
 0x57c   : > { %v7126_v39 = vadd.f32 %v8570_v17, %v7094_v43  ;;  %v5884_v3 = vpop.f32.mrf.mxu3  ;;  %v6606_v46 = vadd.f32 %v6563_v28, %v5924_v48  ;;  %v8579_v28 = vld [vmem:[%s9035_s25 + $0x169] sm:$0xff] }
 0x57e   : > { %v7158_v25 = vmax.f32 %v7126_v39, 0.0 }
 0x57f   : > { %v6977_v63 = vpop.f32.mrf.mxu1 }
 0x580   : > { %7190 = vst [vmem:[%s11754_s6 + $0x98] sm:$0xff] %v7158_v25  ;;  %v7027_v59 = vadd.f32 %v6977_v63, %v6601_v30  ;;  %v6566_v43 = vpop.f32.mrf.mxu0  ;;  %v5571_v39 = vpop.f32.mrf.mxu2  ;;  %v5610_v25 = vadd.f32 %v5569_v56, %v11712_v12 }
 0x581   : > { %v5611_v22 = vadd.f32 %v5571_v39, %v11717_v32 }
 0x582   : > { %v7095_v0 = vadd.f32 %v11742_v6, %v7027_v59  ;;  %v5925_v15 = vadd.f32 %v5884_v3, %v5610_v25  ;;  %v8580_v3 = vld [vmem:[%s9035_s25 + $0x171] sm:$0xff] }
 0x584   : > { %v7127_v37 = vadd.f32 %v8571_v10, %v7095_v0  ;;  %v5886_v16 = vpop.f32.mrf.mxu3  ;;  %v8576_v10 = vld [vmem:[%s9035_s25 + $0x141] sm:$0xff]  ;;  %v6607_v12 = vadd.f32 %v6566_v43, %v5925_v15 }
 0x586   : > { %v7159_v40 = vmax.f32 %v7127_v37, 0.0 }
 0x587   : > { %v6979_v31 = vpop.f32.mrf.mxu1 }
 0x588   : > { %7191 = vst [vmem:[%s11754_s6 + $0xa0] sm:$0xff] %v7159_v40  ;;  %v7028_v38 = vadd.f32 %v6979_v31, %v6602_v8  ;;  %v6568_v42 = vpop.f32.mrf.mxu0  ;;  %v5574_v20 = vpop.f32.mrf.mxu2 }
 0x589   : > { %v5612_v4 = vadd.f32 %v5574_v20, %v11721_v51 }
 0x58a   : > { %v7096_v58 = vadd.f32 %v11742_v6, %v7028_v38  ;;  %v8577_v38 = vld [vmem:[%s9035_s25 + $0x151] sm:$0xff] }
 0x58c   : > { %v7128_v33 = vadd.f32 %v8572_v9, %v7096_v58  ;;  %v5926_v9 = vadd.f32 %v5886_v16, %v5611_v22  ;;  %v5889_v58 = vpop.f32.mrf.mxu3 }
 0x58e   : > { %v7160_v13 = vmax.f32 %v7128_v33, 0.0 }
 0x58f   : > { %v6982_v11 = vpop.f32.mrf.mxu1 }
 0x590   : > { %7192 = vst [vmem:[%s11754_s6 + $0xa8] sm:$0xff] %v7160_v13  ;;  %v7029_v53 = vadd.f32 %v6982_v11, %v6603_v36  ;;  %v6571_v33 = vpop.f32.mrf.mxu0  ;;  %v6608_v13 = vadd.f32 %v6568_v42, %v5926_v9  ;;  %v5576_v32 = vpop.f32.mrf.mxu2  ;;  %v8578_v11 = vld [vmem:[%s9035_s25 + $0x159] sm:$0xff]  ;;  %v8582_v42 = vld [vmem:[%s9035_s25 + $0x189] sm:$0xff] }
 0x592   : > { %v7097_v23 = vadd.f32 %v11742_v6, %v7029_v53  ;;  %v5927_v53 = vadd.f32 %v5889_v58, %v5612_v4 }
 0x594   : > { %v7129_v1 = vadd.f32 %v8573_v41, %v7097_v23  ;;  %v5891_v23 = vpop.f32.mrf.mxu3  ;;  %v6609_v47 = vadd.f32 %v6571_v33, %v5927_v53 }
 0x596   : > { %v7161_v52 = vmax.f32 %v7129_v1, 0.0  ;;  %v5613_v1 = vadd.f32 %v5576_v32, %v11726_v18 }
 0x597   : > { %v6984_v2 = vpop.f32.mrf.mxu1 }
 0x598   : > { %7193 = vst [vmem:[%s11754_s6 + $0xb0] sm:$0xff] %v7161_v52  ;;  %v7030_v29 = vadd.f32 %v6984_v2, %v6604_v49  ;;  %v6573_v49 = vpop.f32.mrf.mxu0  ;;  %v5579_v2 = vpop.f32.mrf.mxu2 }
 0x59a   : > { %v7098_v5 = vadd.f32 %v11742_v6, %v7030_v29  ;;  %v5928_v29 = vadd.f32 %v5891_v23, %v5613_v1 }
 0x59c   : > { %v7130_v21 = vadd.f32 %v8574_v34, %v7098_v5  ;;  %v5894_v62 = vpop.f32.mrf.mxu3  ;;  %v5614_v5 = vadd.f32 %v5579_v2, %v11730_v27  ;;  %v6610_v18 = vadd.f32 %v6573_v49, %v5928_v29 }
 0x59e   : > { %v7162_v26 = vmax.f32 %v7130_v21, 0.0 }
 0x59f   : > { %v6987_v14 = vpop.f32.mrf.mxu1 }
 0x5a0   : > { %7194 = vst [vmem:[%s11754_s6 + $0xb8] sm:$0xff] %v7162_v26  ;;  %v7031_v17 = vadd.f32 %v6987_v14, %v6605_v54  ;;  %v6576_v54 = vpop.f32.mrf.mxu0  ;;  %v5929_v14 = vadd.f32 %v5894_v62, %v5614_v5 }
 0x5a2   : > { %v7099_v44 = vadd.f32 %v11742_v6, %v7031_v17  ;;  %v6611_v43 = vadd.f32 %v6576_v54, %v5929_v14 }
 0x5a4   : > { %v7131_v7 = vadd.f32 %v8575_v57, %v7099_v44  ;;  %v5581_v57 = vpop.f32.mrf.mxu2  ;;  %v5896_v39 = vpop.f32.mrf.mxu3 }
 0x5a5   : > { %v5615_v44 = vadd.f32 %v5581_v57, %v11735_v55 }
 0x5a6   : > { %v7163_v30 = vmax.f32 %v7131_v7, 0.0 }
 0x5a7   : > { %v6989_v63 = vpop.f32.mrf.mxu1 }
 0x5a8   : > { %7195 = vst [vmem:[%s11754_s6 + $0xc0] sm:$0xff] %v7163_v30  ;;  %v7032_v59 = vadd.f32 %v6989_v63, %v6606_v46  ;;  %v8581_v30 = vld [vmem:[%s9035_s25 + $0x181] sm:$0xff]  ;;  %v5930_v46 = vadd.f32 %v5896_v39, %v5615_v44 }
 0x5aa   : > { %v7100_v0 = vadd.f32 %v11742_v6, %v7032_v59  ;;  %v6578_v59 = vpop.f32.mrf.mxu0 }
 0x5ac   : > { %v7132_v37 = vadd.f32 %v8576_v10, %v7100_v0  ;;  %v6612_v10 = vadd.f32 %v6578_v59, %v5930_v46 }
 0x5ae   : > { %v7164_v40 = vmax.f32 %v7132_v37, 0.0 }
 0x5af   : > { %v6992_v8 = vpop.f32.mrf.mxu1 }
 0x5b0   : > { %7196 = vst [vmem:[%s11754_s6 + $0xc8] sm:$0xff] %v7164_v40  ;;  %v7033_v31 = vadd.f32 %v6992_v8, %v6607_v12 }
 0x5b2   : > { %v7101_v60 = vadd.f32 %v11742_v6, %v7033_v31 }
 0x5b4   : > { %v7133_v19 = vadd.f32 %v8577_v38, %v7101_v60 }
 0x5b6   : > { %v7165_v61 = vmax.f32 %v7133_v19, 0.0 }
 0x5b7   : > { %v6994_v36 = vpop.f32.mrf.mxu1 }
 0x5b8   : > { %7197 = vst [vmem:[%s11754_s6 + $0xd0] sm:$0xff] %v7165_v61  ;;  %v7034_v35 = vadd.f32 %v6994_v36, %v6608_v13 }
 0x5ba   : > { %v7102_v41 = vadd.f32 %v11742_v6, %v7034_v35 }
 0x5bc   : > { %v7134_v24 = vadd.f32 %v8578_v11, %v7102_v41 }
 0x5be   : > { %v7166_v45 = vmax.f32 %v7134_v24, 0.0 }
 0x5bf   : > { %v6997_v51 = vpop.f32.mrf.mxu1 }
 0x5c0   : > { %7198 = vst [vmem:[%s11754_s6 + $0xd8] sm:$0xff] %v7166_v45  ;;  %v7035_v52 = vadd.f32 %v6997_v51, %v6609_v47 }
 0x5c2   : > { %v7103_v56 = vadd.f32 %v11742_v6, %v7035_v52 }
 0x5c4   : > { %v7135_v34 = vadd.f32 %v8579_v28, %v7103_v56 }
 0x5c6   : > { %v7167_v21 = vmax.f32 %v7135_v34, 0.0 }
 0x5c7   : > { %v6999_v50 = vpop.f32.mrf.mxu1 }
 0x5c8   : > { %7199 = vst [vmem:[%s11754_s6 + $0xe0] sm:$0xff] %v7167_v21  ;;  %v7036_v26 = vadd.f32 %v6999_v50, %v6610_v18 }
 0x5ca   : > { %v7104_v17 = vadd.f32 %v11742_v6, %v7036_v26 }
 0x5cc   : > { %v7136_v48 = vadd.f32 %v8580_v3, %v7104_v17 }
 0x5ce   : > { %v7168_v27 = vmax.f32 %v7136_v48, 0.0 }
 0x5cf   : > { %v7002_v7 = vpop.f32.mrf.mxu1 }
 0x5d0   : > { %7200 = vst [vmem:[%s11754_s6 + $0xe8] sm:$0xff] %v7168_v27  ;;  %v7037_v25 = vadd.f32 %v7002_v7, %v6611_v43 }
 0x5d2   : > { %v7105_v63 = vadd.f32 %v11742_v6, %v7037_v25 }
 0x5d4   : > { %v7137_v16 = vadd.f32 %v8581_v30, %v7105_v63 }
 0x5d6   : > { %v7169_v15 = vmax.f32 %v7137_v16, 0.0 }
 0x5d7   : > { %v7004_v55 = vpop.f32.mrf.mxu1 }
 0x5d8   : > { %7201 = vst [vmem:[%s11754_s6 + $0xf0] sm:$0xff] %v7169_v15  ;;  %v7038_v0 = vadd.f32 %v7004_v55, %v6612_v10 }
 0x5da   : > { %v7106_v37 = vadd.f32 %v11742_v6, %v7038_v0 }
 0x5dc   : > { %v7138_v20 = vadd.f32 %v8582_v42, %v7106_v37 }
 0x5de   : > { %v7170_v22 = vmax.f32 %v7138_v20, 0.0 }
 0x5e0   : > { %7202 = vst [vmem:[%s11754_s6 + $0xf8] sm:$0xff] %v7170_v22 }
 0x5e1   : > { %8873 = shalt.err (!%p8870_p3)
}
 0x5e2   : > { %s8911_s26 = smov 128   ;;  %s8912_s30 = smov 8  }
 0x5e3   : > { %8798 = dma.vmem_to_hbm [thread:$0]  (%p8981_p5), %s7217_s11, 4096, %s7219_s12, %s7204_s22, %s8911_s26, %s8911_s26, %s8912_s30  }
 0x5e4 PF: > { %p8804_p4 = scmp.ge.s32.totalorder %s8908_s21, 2  ;;  %s7233_s6 = sand.u32 1, %s8896_s18  }
 0x5e5   : > { %s7234_s7 = scalar_lea.sflag [#allocation4], %s7233_s6 }
 0x5e6   : > { %p8801_p7 = pnand %p8804_p4, %p8985_p6 }
 0x5e8   : > { %p8802_p8 = pneg %p8801_p7 }
 0x5ea   : > { %8891 = dma.done.wait (%p8802_p8), %s7234_s7, 4096  }
 0x5eb   : > { %8893 = vsyncadd (%p8802_p8), %s7234_s7, 4294963200  ;;  %p15_p9 = scmp.ge.s32.totalorder %s8968_s24, 4   ;;  %s12217_s18 = smov %s8900_s19 }
 0x5ec   : > { %s12218_s19 = smov %s8904_s20  ;;  %s12219_s20 = smov %s8979_s27 }
 0x5ed   : > { %s12220_s21 = smov %s8968_s24  ;;  %17 = sbr.rel (!%p15_p9) target bundleno = 3 (0x3), region = 95 }
 0x5f2   :  { %7240 = vsyncpa [#allocation4], 1 }
 0x5f3   :  { %7242 = vsyncpa [#allocation4 + $0x1], 1 }

</bundles_post_ra>
